<compile_context>
chip_gen: v5e
topology: v5e:2x2
jax: 0.10.0
libtpu: 0.0.40
codegen_flags: <defaults>
</compile_context>

<pallas_src>
import functools

import jax
import jax.numpy as jnp
from jax.experimental import pallas as pl
from jax.experimental.pallas import tpu as pltpu


# ----------------------------- static geometry ----------------------------- #
_H = _W = 28                  # fc1 = Linear(64*12*12, 128) implies 28x28 input
_HW = _H * _W                 # 784
_C1, _C2 = 32, 64             # conv1 / conv2 output channels
_PH = _PW = 12                # pooled spatial dims
_K2 = 9 * _C1                 # conv2 im2col contraction dim = 288
_R1 = _HW                     # conv1 rows computed on the 28-grid (all of them)
_R2 = 672                     # conv2 rows computed on the 28-grid
_MP = 640                     # 2x2-window max rows
_NF = _C2 * _PH * _PW         # 9216 fc1 input features
_NPAD = 128                   # fc2 output lanes (zero-padded)

# Static consistency checks for the flattened-row trick: every read below stays
# inside computed (valid-or-benign) rows.
assert _MP >= 2 * (_PH - 1) * _W + 2 * (_PW - 1) + 1   # pool gather within mp
assert _R2 >= _MP + _W + 1                             # mp windows within y2
assert _R1 >= _R2 + 2 * _W + 2                         # conv2 taps within y1
assert _R1 == _HW                                      # x_im covers every y1 row


# ------------------------- kernel 1: conv1+conv2+pool ----------------------- #

def _conv_pool_kernel(x_ref, w1_ref, b1_ref, w2_ref, b2_ref, out_ref,
                      y1_ref, y1im_ref, y2_ref, mp_ref):
    # x_ref  : (1, 784, K1P) f32  conv1 im2col, row r = h*28+w, col = tap*cin+c
    # w1_ref : (K1P, 32)     f32  conv1 weight (rows zero-padded past 9*cin)
    # b1_ref : (1, 32)       f32
    # w2_ref : (288, 64)     bf16 conv2 weight, row = tap*32 + c1
    # b2_ref : (1, 128)      f32  conv2 bias tiled twice along lanes
    # out_ref: (1, 72, 128)  bf16 pooled: row j = ph*6+i, lanes [0:64]=pw 2i,
    #                             lanes [64:128]=pw 2i+1
    # scratch: y1 (784,32) bf16, y1im (672,288) bf16, y2 (672,64) f32,
    #          mp (640,64) f32

    # ---- conv1: single MXU GEMM + bias + ReLU (f32 accumulate) -------------
    y1 = jnp.dot(x_ref[0], w1_ref[...], preferred_element_type=jnp.float32)
    y1_ref[...] = jnp.maximum(y1 + b1_ref[...], 0.0).astype(jnp.bfloat16)

    # ---- conv2 im2col: 9 shifted copies of relu(conv1), K = 288 ------------
    taps = [y1_ref[pl.ds((t // 3) * _W + (t % 3), _R2), :] for t in range(9)]
    y1im_ref[...] = jnp.concatenate(taps, axis=1)            # (672, 288) bf16

    # ---- conv2: ONE (672,288)x(288,64) MXU GEMM, written once --------------
    y2_ref[...] = jnp.dot(y1im_ref[...], w2_ref[...],
                          preferred_element_type=jnp.float32)

    # ---- 2x2/2 max-pool of the raw conv2 accumulator -----------------------
    # (bias is per-channel constant over the window and ReLU is monotone, so
    #  bias+ReLU commute with the max and are applied once afterwards)
    mp_ref[...] = jnp.maximum(
        jnp.maximum(y2_ref[pl.ds(0, _MP), :], y2_ref[pl.ds(1, _MP), :]),
        jnp.maximum(y2_ref[pl.ds(_W, _MP), :], y2_ref[pl.ds(_W + 1, _MP), :]))

    # ---- gather pooled rows, pack pw pairs along lanes, bias + ReLU --------
    b2 = b2_ref[...]
    half = _PW // 2
    for ph in range(_PH):
        base = 2 * ph * _W
        ev = mp_ref[pl.ds(base, half, stride=4), :]          # pw = 0,2,...,10
        od = mp_ref[pl.ds(base + 2, half, stride=4), :]      # pw = 1,3,...,11
        tile = jnp.concatenate([ev, od], axis=1)             # (6, 128) f32
        tile = jnp.maximum(tile + b2, 0.0)
        out_ref[0, pl.ds(ph * half, half), :] = tile.astype(out_ref.dtype)


def _conv_pool_call(x_im, w1m, b1, w2m, b2_2):
    B, _, k1p = x_im.shape
    return pl.pallas_call(
        _conv_pool_kernel,
        out_shape=jax.ShapeDtypeStruct((B, _PH * _PW // 2, _NPAD), jnp.bfloat16),
        grid_spec=pltpu.PrefetchScalarGridSpec(
            num_scalar_prefetch=0,
            grid=(B,),
            in_specs=[
                pl.BlockSpec((1, _R1, k1p), lambda b: (b, 0, 0)),
                pl.BlockSpec((k1p, _C1), lambda b: (0, 0)),
                pl.BlockSpec((1, _C1), lambda b: (0, 0)),
                pl.BlockSpec((_K2, _C2), lambda b: (0, 0)),
                pl.BlockSpec((1, _NPAD), lambda b: (0, 0)),
            ],
            out_specs=pl.BlockSpec((1, _PH * _PW // 2, _NPAD),
                                   lambda b: (b, 0, 0)),
            scratch_shapes=[
                pltpu.VMEM((_R1, _C1), jnp.bfloat16),   # relu(conv1)
                pltpu.VMEM((_R2, _K2), jnp.bfloat16),   # conv2 im2col
                pltpu.VMEM((_R2, _C2), jnp.float32),    # conv2 output
                pltpu.VMEM((_MP, _C2), jnp.float32),    # 2x2 window maxima
            ],
        ),
        compiler_params=pltpu.CompilerParams(
            dimension_semantics=("parallel",),
        ),
    )(x_im, w1m, b1, w2m, b2_2)


# ---------------------- kernel 2: fc1 + relu + (dropout) + fc2 -------------- #

def _fc_kernel(x_ref, w1_ref, b1_ref, w2_ref, b2_ref, o_ref):
    h = jnp.dot(x_ref[...], w1_ref[...], preferred_element_type=jnp.float32)
    h = jnp.maximum(h + b1_ref[...], 0.0)
    # TODO(synk): dropout(p=0.5) is identity (inference/eval mode); training-
    # mode parity would need pltpu.prng_* masking and 1/(1-p) scaling.
    logits = jnp.dot(h.astype(jnp.bfloat16), w2_ref[...],
                     preferred_element_type=jnp.float32)
    o_ref[...] = logits + b2_ref[...]


def _fc_call(x_flat, fc1_w, fc1_b, fc2_w, fc2_b):
    Bp, K = x_flat.shape
    assert K == _NF
    bm = Bp if Bp <= 128 else 128
    assert Bp % bm == 0
    return pl.pallas_call(
        _fc_kernel,
        out_shape=jax.ShapeDtypeStruct((Bp, _NPAD), jnp.float32),
        grid_spec=pltpu.PrefetchScalarGridSpec(
            num_scalar_prefetch=0,
            grid=(Bp // bm,),
            in_specs=[
                pl.BlockSpec((bm, _NF), lambda m: (m, 0)),
                pl.BlockSpec((_NF, 128), lambda m: (0, 0)),   # resident weight
                pl.BlockSpec((1, 128), lambda m: (0, 0)),
                pl.BlockSpec((128, _NPAD), lambda m: (0, 0)),
                pl.BlockSpec((1, _NPAD), lambda m: (0, 0)),
            ],
            out_specs=pl.BlockSpec((bm, _NPAD), lambda m: (m, 0)),
        ),
        compiler_params=pltpu.CompilerParams(
            dimension_semantics=("parallel",),
        ),
    )(x_flat, fc1_w, fc1_b, fc2_w, fc2_b)


# ------------------------------ forward wrapper ----------------------------- #

def _conv1_im2col(x_nchw, k1p):
    """Layout plumbing in XLA: (B, cin, 28, 28) -> (B, 784, k1p) f32, where
    column tap*cin + c holds x[h+dy, w+dx, c] for row r = h*28 + w."""
    B, cin = x_nchw.shape[:2]
    xp = jnp.transpose(x_nchw, (0, 2, 3, 1))                 # (B, 28, 28, cin)
    xp = jnp.pad(xp, ((0, 0), (0, 2), (0, 2), (0, 0)))       # (B, 30, 30, cin)
    taps = [xp[:, dy:dy + _H, dx:dx + _W, :].reshape(B, _HW, cin)
            for dy in range(3) for dx in range(3)]
    x_im = jnp.concatenate(taps, axis=-1)                    # (B, 784, 9*cin)
    return jnp.pad(x_im, ((0, 0), (0, 0), (0, k1p - 9 * cin))).astype(jnp.float32)


def torch_cnn_forward(x_nchw, params, num_classes):
    """Matches TorchCNN.forward (dropout in eval mode)."""
    B, _, H, W = x_nchw.shape
    assert (H, W) == (_H, _W), "fc1 = 64*12*12 implies 28x28 input"
    k1p = params["w1m"].shape[0]

    x_im = _conv1_im2col(x_nchw, k1p)
    pooled = _conv_pool_call(x_im, params["w1m"], params["b1"],
                             params["w2m"], params["b2_2"])   # (B, 72, 128) bf16

    # Row-major flatten of the packed (72,128) layout == (ph, pw, c) order,
    # which the prepared fc1 weight is permuted to (contiguous, free reshape).
    flat = pooled.reshape(B, _NF)
    bp = -(-B // 8) * 8
    if bp > 128:
        bp = -(-bp // 128) * 128
    flat = jnp.pad(flat, ((0, bp - B), (0, 0)))

    logits = _fc_call(flat, params["fc1_w"], params["fc1_b"],
                      params["fc2_w"], params["fc2_b"])       # (bp, 128) f32
    return logits[:B, :num_classes]


# ----------------------- params: torch layout + prepare --------------------- #

def init_params(key, num_classes, num_channels):
    """PyTorch-layout parameters with torch's default uniform init."""
    def uniform(k, shape, fan_in):
        bound = 1.0 / jnp.sqrt(jnp.float32(fan_in))
        return jax.random.uniform(k, shape, jnp.float32, -bound, bound)

    ks = jax.random.split(key, 8)
    return {
        "conv1_w": uniform(ks[0], (_C1, num_channels, 3, 3), num_channels * 9),
        "conv1_b": uniform(ks[1], (_C1,), num_channels * 9),
        "conv2_w": uniform(ks[2], (_C2, _C1, 3, 3), _C1 * 9),
        "conv2_b": uniform(ks[3], (_C2,), _C1 * 9),
        "fc1_w": uniform(ks[4], (128, _NF), _NF),
        "fc1_b": uniform(ks[5], (128,), _NF),
        "fc2_w": uniform(ks[6], (num_classes, 128), 128),
        "fc2_b": uniform(ks[7], (num_classes,), 128),
    }


def prepare_params(p):
    """One-time layout transforms + bf16 casts for the kernels."""
    cin = p["conv1_w"].shape[1]
    nc = p["fc2_w"].shape[0]
    assert nc <= _NPAD
    k1 = 9 * cin
    k1p = ((k1 + 15) // 16) * 16

    # conv1 taps: row = (dy*3+dx)*cin + c, zero-padded to k1p rows.
    w1 = jnp.transpose(p["conv1_w"], (2, 3, 1, 0)).reshape(k1, _C1)
    w1 = jnp.pad(w1, ((0, k1p - k1), (0, 0)))
    # conv2 taps: row = (dy*3+dx)*32 + c1 (matches the in-kernel im2col order).
    w2 = jnp.transpose(p["conv2_w"], (2, 3, 1, 0)).reshape(_K2, _C2)

    # fc1: torch flattens pooled NCHW as (c, ph, pw); kernel-1's packed output
    # flattens as (ph, pw, c) -> permute the weight rows once here.
    fc1 = p["fc1_w"].reshape(128, _C2, _PH, _PW)
    fc1 = jnp.transpose(fc1, (2, 3, 1, 0)).reshape(_NF, 128)
    # fc2: (nc, 128) -> (128, 128) zero-padded so stores stay lane-dense.
    fc2 = jnp.zeros((128, _NPAD), jnp.float32).at[:, :nc].set(p["fc2_w"].T)
    b2fc = jnp.zeros((1, _NPAD), jnp.float32).at[0, :nc].set(p["fc2_b"])

    return {
        "w1m": w1.astype(jnp.float32),
        "b1": p["conv1_b"].reshape(1, _C1).astype(jnp.float32),
        "w2m": w2.astype(jnp.bfloat16),
        "b2_2": jnp.tile(p["conv2_b"], 2).reshape(1, _NPAD).astype(jnp.float32),
        "fc1_w": fc1.astype(jnp.bfloat16),
        "fc1_b": p["fc1_b"].reshape(1, 128).astype(jnp.float32),
        "fc2_w": fc2.astype(jnp.bfloat16),
        "fc2_b": b2fc,
    }


# ----------------------------- pure-JAX reference --------------------------- #

def torch_cnn_reference(x, p):
    dn = ("NCHW", "OIHW", "NCHW")
    hi = jax.lax.Precision.HIGHEST
    y = jax.lax.conv_general_dilated(x, p["conv1_w"], (1, 1), "VALID",
                                     dimension_numbers=dn, precision=hi)
    y = jax.nn.relu(y + p["conv1_b"][None, :, None, None])
    y = jax.lax.conv_general_dilated(y, p["conv2_w"], (1, 1), "VALID",
                                     dimension_numbers=dn, precision=hi)
    y = jax.nn.relu(y + p["conv2_b"][None, :, None, None])
    y = jax.lax.reduce_window(y, -jnp.inf, jax.lax.max,
                              (1, 1, 2, 2), (1, 1, 2, 2), "VALID")
    y = y.reshape(y.shape[0], -1)
    y = jax.nn.relu(jnp.dot(y, p["fc1_w"].T, precision=hi) + p["fc1_b"])
    return jnp.dot(y, p["fc2_w"].T, precision=hi) + p["fc2_b"]


# ----------------------------------- main ----------------------------------- #

if __name__ == "__main__":
    num_classes = 10
    num_channels = 1
    B = 2

    key = jax.random.PRNGKey(0)
    k_params, k_x = jax.random.split(key)
    torch_params = init_params(k_params, num_classes, num_channels)
    prep = prepare_params(torch_params)

    # fc1 expects 64*12*12 features => 28x28 spatial input (MNIST-like).
    x = jax.random.normal(k_x, (B, num_channels, _H, _W), jnp.float32)

    fwd = jax.jit(functools.partial(torch_cnn_forward, params=prep,
                                    num_classes=num_classes))
    out = fwd(x)
    jax.block_until_ready(out)
    assert out.shape == (B, num_classes), out.shape

    # Correctness check against a pure-JAX (f32, HIGHEST precision) reference;
    # tolerance absorbs bf16 MXU operands in conv2 / fc1 / fc2.
    ref = torch_cnn_reference(x, torch_params)
    max_err = float(jnp.max(jnp.abs(out - ref)))
    assert max_err < 2e-2, f"max abs err vs reference = {max_err}"

    print("KERNEL_OK")
</pallas_src>

<mosaic_0001>
module attributes {stable_mosaic.version = 11 : i64} {
  func.func @_conv_pool_kernel(%arg0: i32, %arg1: memref<1x784x16xf32, #tpu.memory_space<vmem>>, %arg2: memref<16x32xf32, #tpu.memory_space<vmem>>, %arg3: memref<1x32xf32, #tpu.memory_space<vmem>>, %arg4: memref<288x64xbf16, #tpu.memory_space<vmem>>, %arg5: memref<1x128xf32, #tpu.memory_space<vmem>>, %arg6: memref<1x72x128xbf16, #tpu.memory_space<vmem>>, %arg7: memref<784x32xbf16, #tpu.memory_space<vmem>>, %arg8: memref<672x288xbf16, #tpu.memory_space<vmem>>, %arg9: memref<672x64xf32, #tpu.memory_space<vmem>>, %arg10: memref<640x64xf32, #tpu.memory_space<vmem>>) attributes {dimension_semantics = [#tpu.dimension_semantics<parallel>], iteration_bounds = array<i64: 2>, scalar_prefetch = 0 : i64, scratch_operands = 4 : i64, tpu.core_type = #tpu.core_type<tc>, window_params = [{transform_indices = @transform_0, window_bounds = array<i64: 1, 784, 16>}, {pipeline_mode = #tpu.pipeline_mode<synchronous>, transform_indices = @transform_1, window_bounds = array<i64: 16, 32>}, {pipeline_mode = #tpu.pipeline_mode<synchronous>, transform_indices = @transform_2, window_bounds = array<i64: 1, 32>}, {pipeline_mode = #tpu.pipeline_mode<synchronous>, transform_indices = @transform_3, window_bounds = array<i64: 288, 64>}, {pipeline_mode = #tpu.pipeline_mode<synchronous>, transform_indices = @transform_4, window_bounds = array<i64: 1, 128>}, {transform_indices = @transform_5, window_bounds = array<i64: 1, 72, 128>}]} {
    %c0 = arith.constant 0 : index
    %c0_0 = arith.constant 0 : index
    %c0_1 = arith.constant 0 : index
    %0 = vector.load %arg1[%c0, %c0_0, %c0_1] : memref<1x784x16xf32, #tpu.memory_space<vmem>>, vector<1x784x16xf32>
    %1 = vector.shape_cast %0 : vector<1x784x16xf32> to vector<784x16xf32>
    %c0_2 = arith.constant 0 : index
    %c0_3 = arith.constant 0 : index
    %2 = vector.load %arg2[%c0_2, %c0_3] : memref<16x32xf32, #tpu.memory_space<vmem>>, vector<16x32xf32>
    %cst = arith.constant dense<0.000000e+00> : vector<784x32xf32>
    %3 = tpu.matmul %1, %2, %cst {dimension_numbers = #tpu.dot_dimension_numbers<[1], [0], [0], [1], [0, 0, 1, 1], [], []>} : vector<784x16xf32>, vector<16x32xf32>, vector<784x32xf32> -> vector<784x32xf32>
    %c0_4 = arith.constant 0 : index
    %c0_5 = arith.constant 0 : index
    %4 = vector.load %arg3[%c0_4, %c0_5] : memref<1x32xf32, #tpu.memory_space<vmem>>, vector<1x32xf32>
    %5 = vector.broadcast %4 : vector<1x32xf32> to vector<784x32xf32>
    %6 = arith.addf %3, %5 : vector<784x32xf32>
    %cst_6 = arith.constant 0.000000e+00 : f32
    %7 = vector.broadcast %cst_6 : f32 to vector<784x32xf32>
    %8 = arith.maximumf %6, %7 : vector<784x32xf32>
    %9 = arith.truncf %8 : vector<784x32xf32> to vector<784x32xbf16>
    %c0_7 = arith.constant 0 : index
    %c0_8 = arith.constant 0 : index
    %10 = vector.load %arg7[%c0_7, %c0_8] : memref<784x32xbf16, #tpu.memory_space<vmem>>, vector<784x32xbf16>
    tpu.vector_store %arg7[%c0_7, %c0_8], %9 {strides = array<i32>} : memref<784x32xbf16, #tpu.memory_space<vmem>>, vector<784x32xbf16>,
    %c0_9 = arith.constant 0 : index
    %c0_10 = arith.constant 0 : index
    %11 = vector.load %arg7[%c0_9, %c0_10] : memref<784x32xbf16, #tpu.memory_space<vmem>>, vector<672x32xbf16>
    %c1 = arith.constant 1 : index
    %c0_11 = arith.constant 0 : index
    %12 = vector.load %arg7[%c1, %c0_11] : memref<784x32xbf16, #tpu.memory_space<vmem>>, vector<672x32xbf16>
    %c2 = arith.constant 2 : index
    %c0_12 = arith.constant 0 : index
    %13 = vector.load %arg7[%c2, %c0_12] : memref<784x32xbf16, #tpu.memory_space<vmem>>, vector<672x32xbf16>
    %c28 = arith.constant 28 : index
    %c0_13 = arith.constant 0 : index
    %14 = vector.load %arg7[%c28, %c0_13] : memref<784x32xbf16, #tpu.memory_space<vmem>>, vector<672x32xbf16>
    %c29 = arith.constant 29 : index
    %c0_14 = arith.constant 0 : index
    %15 = vector.load %arg7[%c29, %c0_14] : memref<784x32xbf16, #tpu.memory_space<vmem>>, vector<672x32xbf16>
    %c30 = arith.constant 30 : index
    %c0_15 = arith.constant 0 : index
    %16 = vector.load %arg7[%c30, %c0_15] : memref<784x32xbf16, #tpu.memory_space<vmem>>, vector<672x32xbf16>
    %c56 = arith.constant 56 : index
    %c0_16 = arith.constant 0 : index
    %17 = vector.load %arg7[%c56, %c0_16] : memref<784x32xbf16, #tpu.memory_space<vmem>>, vector<672x32xbf16>
    %c57 = arith.constant 57 : index
    %c0_17 = arith.constant 0 : index
    %18 = vector.load %arg7[%c57, %c0_17] : memref<784x32xbf16, #tpu.memory_space<vmem>>, vector<672x32xbf16>
    %c58 = arith.constant 58 : index
    %c0_18 = arith.constant 0 : index
    %19 = vector.load %arg7[%c58, %c0_18] : memref<784x32xbf16, #tpu.memory_space<vmem>>, vector<672x32xbf16>
    %20 = tpu.concatenate %11, %12, %13, %14, %15, %16, %17, %18, %19 in 1 : vector<672x32xbf16>, vector<672x32xbf16>, vector<672x32xbf16>, vector<672x32xbf16>, vector<672x32xbf16>, vector<672x32xbf16>, vector<672x32xbf16>, vector<672x32xbf16>, vector<672x32xbf16> -> vector<672x288xbf16>
    %c0_19 = arith.constant 0 : index
    %c0_20 = arith.constant 0 : index
    %21 = vector.load %arg8[%c0_19, %c0_20] : memref<672x288xbf16, #tpu.memory_space<vmem>>, vector<672x288xbf16>
    tpu.vector_store %arg8[%c0_19, %c0_20], %20 {strides = array<i32>} : memref<672x288xbf16, #tpu.memory_space<vmem>>, vector<672x288xbf16>,
    %c0_21 = arith.constant 0 : index
    %c0_22 = arith.constant 0 : index
    %22 = vector.load %arg8[%c0_21, %c0_22] : memref<672x288xbf16, #tpu.memory_space<vmem>>, vector<672x288xbf16>
    %c0_23 = arith.constant 0 : index
    %c0_24 = arith.constant 0 : index
    %23 = vector.load %arg4[%c0_23, %c0_24] : memref<288x64xbf16, #tpu.memory_space<vmem>>, vector<288x64xbf16>
    %cst_25 = arith.constant dense<0.000000e+00> : vector<672x64xf32>
    %24 = tpu.matmul %22, %23, %cst_25 {dimension_numbers = #tpu.dot_dimension_numbers<[1], [0], [0], [1], [0, 0, 1, 1], [], []>} : vector<672x288xbf16>, vector<288x64xbf16>, vector<672x64xf32> -> vector<672x64xf32>
    %c0_26 = arith.constant 0 : index
    %c0_27 = arith.constant 0 : index
    %25 = vector.load %arg9[%c0_26, %c0_27] : memref<672x64xf32, #tpu.memory_space<vmem>>, vector<672x64xf32>
    tpu.vector_store %arg9[%c0_26, %c0_27], %24 {strides = array<i32>} : memref<672x64xf32, #tpu.memory_space<vmem>>, vector<672x64xf32>,
    %c0_28 = arith.constant 0 : index
    %c0_29 = arith.constant 0 : index
    %26 = vector.load %arg9[%c0_28, %c0_29] : memref<672x64xf32, #tpu.memory_space<vmem>>, vector<640x64xf32>
    %c1_30 = arith.constant 1 : index
    %c0_31 = arith.constant 0 : index
    %27 = vector.load %arg9[%c1_30, %c0_31] : memref<672x64xf32, #tpu.memory_space<vmem>>, vector<640x64xf32>
    %28 = arith.maximumf %26, %27 : vector<640x64xf32>
    %c28_32 = arith.constant 28 : index
    %c0_33 = arith.constant 0 : index
    %29 = vector.load %arg9[%c28_32, %c0_33] : memref<672x64xf32, #tpu.memory_space<vmem>>, vector<640x64xf32>
    %c29_34 = arith.constant 29 : index
    %c0_35 = arith.constant 0 : index
    %30 = vector.load %arg9[%c29_34, %c0_35] : memref<672x64xf32, #tpu.memory_space<vmem>>, vector<640x64xf32>
    %31 = arith.maximumf %29, %30 : vector<640x64xf32>
    %32 = arith.maximumf %28, %31 : vector<640x64xf32>
    %c0_36 = arith.constant 0 : index
    %c0_37 = arith.constant 0 : index
    %33 = vector.load %arg10[%c0_36, %c0_37] : memref<640x64xf32, #tpu.memory_space<vmem>>, vector<640x64xf32>
    tpu.vector_store %arg10[%c0_36, %c0_37], %32 {strides = array<i32>} : memref<640x64xf32, #tpu.memory_space<vmem>>, vector<640x64xf32>,
    %c0_38 = arith.constant 0 : index
    %c0_39 = arith.constant 0 : index
    %34 = vector.load %arg5[%c0_38, %c0_39] : memref<1x128xf32, #tpu.memory_space<vmem>>, vector<1x128xf32>
    %c0_40 = arith.constant 0 : index
    %c0_41 = arith.constant 0 : index
    %35 = tpu.strided_load %arg10[%c0_40, %c0_41] {strides = array<i32: 4, 1>} : memref<640x64xf32, #tpu.memory_space<vmem>>, vector<6x64xf32>
    %c2_42 = arith.constant 2 : index
    %c0_43 = arith.constant 0 : index
    %36 = tpu.strided_load %arg10[%c2_42, %c0_43] {strides = array<i32: 4, 1>} : memref<640x64xf32, #tpu.memory_space<vmem>>, vector<6x64xf32>
    %37 = tpu.concatenate %35, %36 in 1 : vector<6x64xf32>, vector<6x64xf32> -> vector<6x128xf32>
    %38 = vector.broadcast %34 : vector<1x128xf32> to vector<6x128xf32>
    %39 = arith.addf %37, %38 : vector<6x128xf32>
    %cst_44 = arith.constant 0.000000e+00 : f32
    %40 = vector.broadcast %cst_44 : f32 to vector<6x128xf32>
    %41 = arith.maximumf %39, %40 : vector<6x128xf32>
    %42 = arith.truncf %41 : vector<6x128xf32> to vector<6x128xbf16>
    %c0_45 = arith.constant 0 : index
    %c0_46 = arith.constant 0 : index
    %c0_47 = arith.constant 0 : index
    %43 = vector.load %arg6[%c0_45, %c0_46, %c0_47] : memref<1x72x128xbf16, #tpu.memory_space<vmem>>, vector<1x6x128xbf16>
    %44 = vector.shape_cast %43 : vector<1x6x128xbf16> to vector<6x128xbf16>
    %45 = vector.shape_cast %42 : vector<6x128xbf16> to vector<1x6x128xbf16>
    tpu.vector_store %arg6[%c0_45, %c0_46, %c0_47], %45 {strides = array<i32>} : memref<1x72x128xbf16, #tpu.memory_space<vmem>>, vector<1x6x128xbf16>,
    %c56_48 = arith.constant 56 : index
    %c0_49 = arith.constant 0 : index
    %46 = tpu.strided_load %arg10[%c56_48, %c0_49] {strides = array<i32: 4, 1>} : memref<640x64xf32, #tpu.memory_space<vmem>>, vector<6x64xf32>
    %c58_50 = arith.constant 58 : index
    %c0_51 = arith.constant 0 : index
    %47 = tpu.strided_load %arg10[%c58_50, %c0_51] {strides = array<i32: 4, 1>} : memref<640x64xf32, #tpu.memory_space<vmem>>, vector<6x64xf32>
    %48 = tpu.concatenate %46, %47 in 1 : vector<6x64xf32>, vector<6x64xf32> -> vector<6x128xf32>
    %49 = vector.broadcast %34 : vector<1x128xf32> to vector<6x128xf32>
    %50 = arith.addf %48, %49 : vector<6x128xf32>
    %cst_52 = arith.constant 0.000000e+00 : f32
    %51 = vector.broadcast %cst_52 : f32 to vector<6x128xf32>
    %52 = arith.maximumf %50, %51 : vector<6x128xf32>
    %53 = arith.truncf %52 : vector<6x128xf32> to vector<6x128xbf16>
    %c0_53 = arith.constant 0 : index
    %c6 = arith.constant 6 : index
    %c0_54 = arith.constant 0 : index
    %54 = vector.load %arg6[%c0_53, %c6, %c0_54] : memref<1x72x128xbf16, #tpu.memory_space<vmem>>, vector<1x6x128xbf16>
    %55 = vector.shape_cast %54 : vector<1x6x128xbf16> to vector<6x128xbf16>
    %56 = vector.shape_cast %53 : vector<6x128xbf16> to vector<1x6x128xbf16>
    tpu.vector_store %arg6[%c0_53, %c6, %c0_54], %56 {strides = array<i32>} : memref<1x72x128xbf16, #tpu.memory_space<vmem>>, vector<1x6x128xbf16>,
    %c112 = arith.constant 112 : index
    %c0_55 = arith.constant 0 : index
    %57 = tpu.strided_load %arg10[%c112, %c0_55] {strides = array<i32: 4, 1>} : memref<640x64xf32, #tpu.memory_space<vmem>>, vector<6x64xf32>
    %c114 = arith.constant 114 : index
    %c0_56 = arith.constant 0 : index
    %58 = tpu.strided_load %arg10[%c114, %c0_56] {strides = array<i32: 4, 1>} : memref<640x64xf32, #tpu.memory_space<vmem>>, vector<6x64xf32>
    %59 = tpu.concatenate %57, %58 in 1 : vector<6x64xf32>, vector<6x64xf32> -> vector<6x128xf32>
    %60 = vector.broadcast %34 : vector<1x128xf32> to vector<6x128xf32>
    %61 = arith.addf %59, %60 : vector<6x128xf32>
    %cst_57 = arith.constant 0.000000e+00 : f32
    %62 = vector.broadcast %cst_57 : f32 to vector<6x128xf32>
    %63 = arith.maximumf %61, %62 : vector<6x128xf32>
    %64 = arith.truncf %63 : vector<6x128xf32> to vector<6x128xbf16>
    %c0_58 = arith.constant 0 : index
    %c12 = arith.constant 12 : index
    %c0_59 = arith.constant 0 : index
    %65 = vector.load %arg6[%c0_58, %c12, %c0_59] : memref<1x72x128xbf16, #tpu.memory_space<vmem>>, vector<1x6x128xbf16>
    %66 = vector.shape_cast %65 : vector<1x6x128xbf16> to vector<6x128xbf16>
    %67 = vector.shape_cast %64 : vector<6x128xbf16> to vector<1x6x128xbf16>
    tpu.vector_store %arg6[%c0_58, %c12, %c0_59], %67 {strides = array<i32>} : memref<1x72x128xbf16, #tpu.memory_space<vmem>>, vector<1x6x128xbf16>,
    %c168 = arith.constant 168 : index
    %c0_60 = arith.constant 0 : index
    %68 = tpu.strided_load %arg10[%c168, %c0_60] {strides = array<i32: 4, 1>} : memref<640x64xf32, #tpu.memory_space<vmem>>, vector<6x64xf32>
    %c170 = arith.constant 170 : index
    %c0_61 = arith.constant 0 : index
    %69 = tpu.strided_load %arg10[%c170, %c0_61] {strides = array<i32: 4, 1>} : memref<640x64xf32, #tpu.memory_space<vmem>>, vector<6x64xf32>
    %70 = tpu.concatenate %68, %69 in 1 : vector<6x64xf32>, vector<6x64xf32> -> vector<6x128xf32>
    %71 = vector.broadcast %34 : vector<1x128xf32> to vector<6x128xf32>
    %72 = arith.addf %70, %71 : vector<6x128xf32>
    %cst_62 = arith.constant 0.000000e+00 : f32
    %73 = vector.broadcast %cst_62 : f32 to vector<6x128xf32>
    %74 = arith.maximumf %72, %73 : vector<6x128xf32>
    %75 = arith.truncf %74 : vector<6x128xf32> to vector<6x128xbf16>
    %c0_63 = arith.constant 0 : index
    %c18 = arith.constant 18 : index
    %c0_64 = arith.constant 0 : index
    %76 = vector.load %arg6[%c0_63, %c18, %c0_64] : memref<1x72x128xbf16, #tpu.memory_space<vmem>>, vector<1x6x128xbf16>
    %77 = vector.shape_cast %76 : vector<1x6x128xbf16> to vector<6x128xbf16>
    %78 = vector.shape_cast %75 : vector<6x128xbf16> to vector<1x6x128xbf16>
    tpu.vector_store %arg6[%c0_63, %c18, %c0_64], %78 {strides = array<i32>} : memref<1x72x128xbf16, #tpu.memory_space<vmem>>, vector<1x6x128xbf16>,
    %c224 = arith.constant 224 : index
    %c0_65 = arith.constant 0 : index
    %79 = tpu.strided_load %arg10[%c224, %c0_65] {strides = array<i32: 4, 1>} : memref<640x64xf32, #tpu.memory_space<vmem>>, vector<6x64xf32>
    %c226 = arith.constant 226 : index
    %c0_66 = arith.constant 0 : index
    %80 = tpu.strided_load %arg10[%c226, %c0_66] {strides = array<i32: 4, 1>} : memref<640x64xf32, #tpu.memory_space<vmem>>, vector<6x64xf32>
    %81 = tpu.concatenate %79, %80 in 1 : vector<6x64xf32>, vector<6x64xf32> -> vector<6x128xf32>
    %82 = vector.broadcast %34 : vector<1x128xf32> to vector<6x128xf32>
    %83 = arith.addf %81, %82 : vector<6x128xf32>
    %cst_67 = arith.constant 0.000000e+00 : f32
    %84 = vector.broadcast %cst_67 : f32 to vector<6x128xf32>
    %85 = arith.maximumf %83, %84 : vector<6x128xf32>
    %86 = arith.truncf %85 : vector<6x128xf32> to vector<6x128xbf16>
    %c0_68 = arith.constant 0 : index
    %c24 = arith.constant 24 : index
    %c0_69 = arith.constant 0 : index
    %87 = vector.load %arg6[%c0_68, %c24, %c0_69] : memref<1x72x128xbf16, #tpu.memory_space<vmem>>, vector<1x6x128xbf16>
    %88 = vector.shape_cast %87 : vector<1x6x128xbf16> to vector<6x128xbf16>
    %89 = vector.shape_cast %86 : vector<6x128xbf16> to vector<1x6x128xbf16>
    tpu.vector_store %arg6[%c0_68, %c24, %c0_69], %89 {strides = array<i32>} : memref<1x72x128xbf16, #tpu.memory_space<vmem>>, vector<1x6x128xbf16>,
    %c280 = arith.constant 280 : index
    %c0_70 = arith.constant 0 : index
    %90 = tpu.strided_load %arg10[%c280, %c0_70] {strides = array<i32: 4, 1>} : memref<640x64xf32, #tpu.memory_space<vmem>>, vector<6x64xf32>
    %c282 = arith.constant 282 : index
    %c0_71 = arith.constant 0 : index
    %91 = tpu.strided_load %arg10[%c282, %c0_71] {strides = array<i32: 4, 1>} : memref<640x64xf32, #tpu.memory_space<vmem>>, vector<6x64xf32>
    %92 = tpu.concatenate %90, %91 in 1 : vector<6x64xf32>, vector<6x64xf32> -> vector<6x128xf32>
    %93 = vector.broadcast %34 : vector<1x128xf32> to vector<6x128xf32>
    %94 = arith.addf %92, %93 : vector<6x128xf32>
    %cst_72 = arith.constant 0.000000e+00 : f32
    %95 = vector.broadcast %cst_72 : f32 to vector<6x128xf32>
    %96 = arith.maximumf %94, %95 : vector<6x128xf32>
    %97 = arith.truncf %96 : vector<6x128xf32> to vector<6x128xbf16>
    %c0_73 = arith.constant 0 : index
    %c30_74 = arith.constant 30 : index
    %c0_75 = arith.constant 0 : index
    %98 = vector.load %arg6[%c0_73, %c30_74, %c0_75] : memref<1x72x128xbf16, #tpu.memory_space<vmem>>, vector<1x6x128xbf16>
    %99 = vector.shape_cast %98 : vector<1x6x128xbf16> to vector<6x128xbf16>
    %100 = vector.shape_cast %97 : vector<6x128xbf16> to vector<1x6x128xbf16>
    tpu.vector_store %arg6[%c0_73, %c30_74, %c0_75], %100 {strides = array<i32>} : memref<1x72x128xbf16, #tpu.memory_space<vmem>>, vector<1x6x128xbf16>,
    %c336 = arith.constant 336 : index
    %c0_76 = arith.constant 0 : index
    %101 = tpu.strided_load %arg10[%c336, %c0_76] {strides = array<i32: 4, 1>} : memref<640x64xf32, #tpu.memory_space<vmem>>, vector<6x64xf32>
    %c338 = arith.constant 338 : index
    %c0_77 = arith.constant 0 : index
    %102 = tpu.strided_load %arg10[%c338, %c0_77] {strides = array<i32: 4, 1>} : memref<640x64xf32, #tpu.memory_space<vmem>>, vector<6x64xf32>
    %103 = tpu.concatenate %101, %102 in 1 : vector<6x64xf32>, vector<6x64xf32> -> vector<6x128xf32>
    %104 = vector.broadcast %34 : vector<1x128xf32> to vector<6x128xf32>
    %105 = arith.addf %103, %104 : vector<6x128xf32>
    %cst_78 = arith.constant 0.000000e+00 : f32
    %106 = vector.broadcast %cst_78 : f32 to vector<6x128xf32>
    %107 = arith.maximumf %105, %106 : vector<6x128xf32>
    %108 = arith.truncf %107 : vector<6x128xf32> to vector<6x128xbf16>
    %c0_79 = arith.constant 0 : index
    %c36 = arith.constant 36 : index
    %c0_80 = arith.constant 0 : index
    %109 = vector.load %arg6[%c0_79, %c36, %c0_80] : memref<1x72x128xbf16, #tpu.memory_space<vmem>>, vector<1x6x128xbf16>
    %110 = vector.shape_cast %109 : vector<1x6x128xbf16> to vector<6x128xbf16>
    %111 = vector.shape_cast %108 : vector<6x128xbf16> to vector<1x6x128xbf16>
    tpu.vector_store %arg6[%c0_79, %c36, %c0_80], %111 {strides = array<i32>} : memref<1x72x128xbf16, #tpu.memory_space<vmem>>, vector<1x6x128xbf16>,
    %c392 = arith.constant 392 : index
    %c0_81 = arith.constant 0 : index
    %112 = tpu.strided_load %arg10[%c392, %c0_81] {strides = array<i32: 4, 1>} : memref<640x64xf32, #tpu.memory_space<vmem>>, vector<6x64xf32>
    %c394 = arith.constant 394 : index
    %c0_82 = arith.constant 0 : index
    %113 = tpu.strided_load %arg10[%c394, %c0_82] {strides = array<i32: 4, 1>} : memref<640x64xf32, #tpu.memory_space<vmem>>, vector<6x64xf32>
    %114 = tpu.concatenate %112, %113 in 1 : vector<6x64xf32>, vector<6x64xf32> -> vector<6x128xf32>
    %115 = vector.broadcast %34 : vector<1x128xf32> to vector<6x128xf32>
    %116 = arith.addf %114, %115 : vector<6x128xf32>
    %cst_83 = arith.constant 0.000000e+00 : f32
    %117 = vector.broadcast %cst_83 : f32 to vector<6x128xf32>
    %118 = arith.maximumf %116, %117 : vector<6x128xf32>
    %119 = arith.truncf %118 : vector<6x128xf32> to vector<6x128xbf16>
    %c0_84 = arith.constant 0 : index
    %c42 = arith.constant 42 : index
    %c0_85 = arith.constant 0 : index
    %120 = vector.load %arg6[%c0_84, %c42, %c0_85] : memref<1x72x128xbf16, #tpu.memory_space<vmem>>, vector<1x6x128xbf16>
    %121 = vector.shape_cast %120 : vector<1x6x128xbf16> to vector<6x128xbf16>
    %122 = vector.shape_cast %119 : vector<6x128xbf16> to vector<1x6x128xbf16>
    tpu.vector_store %arg6[%c0_84, %c42, %c0_85], %122 {strides = array<i32>} : memref<1x72x128xbf16, #tpu.memory_space<vmem>>, vector<1x6x128xbf16>,
    %c448 = arith.constant 448 : index
    %c0_86 = arith.constant 0 : index
    %123 = tpu.strided_load %arg10[%c448, %c0_86] {strides = array<i32: 4, 1>} : memref<640x64xf32, #tpu.memory_space<vmem>>, vector<6x64xf32>
    %c450 = arith.constant 450 : index
    %c0_87 = arith.constant 0 : index
    %124 = tpu.strided_load %arg10[%c450, %c0_87] {strides = array<i32: 4, 1>} : memref<640x64xf32, #tpu.memory_space<vmem>>, vector<6x64xf32>
    %125 = tpu.concatenate %123, %124 in 1 : vector<6x64xf32>, vector<6x64xf32> -> vector<6x128xf32>
    %126 = vector.broadcast %34 : vector<1x128xf32> to vector<6x128xf32>
    %127 = arith.addf %125, %126 : vector<6x128xf32>
    %cst_88 = arith.constant 0.000000e+00 : f32
    %128 = vector.broadcast %cst_88 : f32 to vector<6x128xf32>
    %129 = arith.maximumf %127, %128 : vector<6x128xf32>
    %130 = arith.truncf %129 : vector<6x128xf32> to vector<6x128xbf16>
    %c0_89 = arith.constant 0 : index
    %c48 = arith.constant 48 : index
    %c0_90 = arith.constant 0 : index
    %131 = vector.load %arg6[%c0_89, %c48, %c0_90] : memref<1x72x128xbf16, #tpu.memory_space<vmem>>, vector<1x6x128xbf16>
    %132 = vector.shape_cast %131 : vector<1x6x128xbf16> to vector<6x128xbf16>
    %133 = vector.shape_cast %130 : vector<6x128xbf16> to vector<1x6x128xbf16>
    tpu.vector_store %arg6[%c0_89, %c48, %c0_90], %133 {strides = array<i32>} : memref<1x72x128xbf16, #tpu.memory_space<vmem>>, vector<1x6x128xbf16>,
    %c504 = arith.constant 504 : index
    %c0_91 = arith.constant 0 : index
    %134 = tpu.strided_load %arg10[%c504, %c0_91] {strides = array<i32: 4, 1>} : memref<640x64xf32, #tpu.memory_space<vmem>>, vector<6x64xf32>
    %c506 = arith.constant 506 : index
    %c0_92 = arith.constant 0 : index
    %135 = tpu.strided_load %arg10[%c506, %c0_92] {strides = array<i32: 4, 1>} : memref<640x64xf32, #tpu.memory_space<vmem>>, vector<6x64xf32>
    %136 = tpu.concatenate %134, %135 in 1 : vector<6x64xf32>, vector<6x64xf32> -> vector<6x128xf32>
    %137 = vector.broadcast %34 : vector<1x128xf32> to vector<6x128xf32>
    %138 = arith.addf %136, %137 : vector<6x128xf32>
    %cst_93 = arith.constant 0.000000e+00 : f32
    %139 = vector.broadcast %cst_93 : f32 to vector<6x128xf32>
    %140 = arith.maximumf %138, %139 : vector<6x128xf32>
    %141 = arith.truncf %140 : vector<6x128xf32> to vector<6x128xbf16>
    %c0_94 = arith.constant 0 : index
    %c54 = arith.constant 54 : index
    %c0_95 = arith.constant 0 : index
    %142 = vector.load %arg6[%c0_94, %c54, %c0_95] : memref<1x72x128xbf16, #tpu.memory_space<vmem>>, vector<1x6x128xbf16>
    %143 = vector.shape_cast %142 : vector<1x6x128xbf16> to vector<6x128xbf16>
    %144 = vector.shape_cast %141 : vector<6x128xbf16> to vector<1x6x128xbf16>
    tpu.vector_store %arg6[%c0_94, %c54, %c0_95], %144 {strides = array<i32>} : memref<1x72x128xbf16, #tpu.memory_space<vmem>>, vector<1x6x128xbf16>,
    %c560 = arith.constant 560 : index
    %c0_96 = arith.constant 0 : index
    %145 = tpu.strided_load %arg10[%c560, %c0_96] {strides = array<i32: 4, 1>} : memref<640x64xf32, #tpu.memory_space<vmem>>, vector<6x64xf32>
    %c562 = arith.constant 562 : index
    %c0_97 = arith.constant 0 : index
    %146 = tpu.strided_load %arg10[%c562, %c0_97] {strides = array<i32: 4, 1>} : memref<640x64xf32, #tpu.memory_space<vmem>>, vector<6x64xf32>
    %147 = tpu.concatenate %145, %146 in 1 : vector<6x64xf32>, vector<6x64xf32> -> vector<6x128xf32>
    %148 = vector.broadcast %34 : vector<1x128xf32> to vector<6x128xf32>
    %149 = arith.addf %147, %148 : vector<6x128xf32>
    %cst_98 = arith.constant 0.000000e+00 : f32
    %150 = vector.broadcast %cst_98 : f32 to vector<6x128xf32>
    %151 = arith.maximumf %149, %150 : vector<6x128xf32>
    %152 = arith.truncf %151 : vector<6x128xf32> to vector<6x128xbf16>
    %c0_99 = arith.constant 0 : index
    %c60 = arith.constant 60 : index
    %c0_100 = arith.constant 0 : index
    %153 = vector.load %arg6[%c0_99, %c60, %c0_100] : memref<1x72x128xbf16, #tpu.memory_space<vmem>>, vector<1x6x128xbf16>
    %154 = vector.shape_cast %153 : vector<1x6x128xbf16> to vector<6x128xbf16>
    %155 = vector.shape_cast %152 : vector<6x128xbf16> to vector<1x6x128xbf16>
    tpu.vector_store %arg6[%c0_99, %c60, %c0_100], %155 {strides = array<i32>} : memref<1x72x128xbf16, #tpu.memory_space<vmem>>, vector<1x6x128xbf16>,
    %c616 = arith.constant 616 : index
    %c0_101 = arith.constant 0 : index
    %156 = tpu.strided_load %arg10[%c616, %c0_101] {strides = array<i32: 4, 1>} : memref<640x64xf32, #tpu.memory_space<vmem>>, vector<6x64xf32>
    %c618 = arith.constant 618 : index
    %c0_102 = arith.constant 0 : index
    %157 = tpu.strided_load %arg10[%c618, %c0_102] {strides = array<i32: 4, 1>} : memref<640x64xf32, #tpu.memory_space<vmem>>, vector<6x64xf32>
    %158 = tpu.concatenate %156, %157 in 1 : vector<6x64xf32>, vector<6x64xf32> -> vector<6x128xf32>
    %159 = vector.broadcast %34 : vector<1x128xf32> to vector<6x128xf32>
    %160 = arith.addf %158, %159 : vector<6x128xf32>
    %cst_103 = arith.constant 0.000000e+00 : f32
    %161 = vector.broadcast %cst_103 : f32 to vector<6x128xf32>
    %162 = arith.maximumf %160, %161 : vector<6x128xf32>
    %163 = arith.truncf %162 : vector<6x128xf32> to vector<6x128xbf16>
    %c0_104 = arith.constant 0 : index
    %c66 = arith.constant 66 : index
    %c0_105 = arith.constant 0 : index
    %164 = vector.load %arg6[%c0_104, %c66, %c0_105] : memref<1x72x128xbf16, #tpu.memory_space<vmem>>, vector<1x6x128xbf16>
    %165 = vector.shape_cast %164 : vector<1x6x128xbf16> to vector<6x128xbf16>
    %166 = vector.shape_cast %163 : vector<6x128xbf16> to vector<1x6x128xbf16>
    tpu.vector_store %arg6[%c0_104, %c66, %c0_105], %166 {strides = array<i32>} : memref<1x72x128xbf16, #tpu.memory_space<vmem>>, vector<1x6x128xbf16>,
    return
  }
  func.func @transform_0(%arg0: i32) -> (i32, i32, i32) {
    %c0_i32 = arith.constant 0 : i32
    %c0_i32_0 = arith.constant 0 : i32
    %c0_i32_1 = arith.constant 0 : i32
    return %arg0, %c0_i32, %c0_i32_0 : i32, i32, i32
  }
  func.func @transform_1(%arg0: i32) -> (i32, i32) {
    %c0_i32 = arith.constant 0 : i32
    %c0_i32_0 = arith.constant 0 : i32
    %c0_i32_1 = arith.constant 0 : i32
    return %c0_i32, %c0_i32_0 : i32, i32
  }
  func.func @transform_2(%arg0: i32) -> (i32, i32) {
    %c0_i32 = arith.constant 0 : i32
    %c0_i32_0 = arith.constant 0 : i32
    %c0_i32_1 = arith.constant 0 : i32
    return %c0_i32, %c0_i32_0 : i32, i32
  }
  func.func @transform_3(%arg0: i32) -> (i32, i32) {
    %c0_i32 = arith.constant 0 : i32
    %c0_i32_0 = arith.constant 0 : i32
    %c0_i32_1 = arith.constant 0 : i32
    return %c0_i32, %c0_i32_0 : i32, i32
  }
  func.func @transform_4(%arg0: i32) -> (i32, i32) {
    %c0_i32 = arith.constant 0 : i32
    %c0_i32_0 = arith.constant 0 : i32
    %c0_i32_1 = arith.constant 0 : i32
    return %c0_i32, %c0_i32_0 : i32, i32
  }
  func.func @transform_5(%arg0: i32) -> (i32, i32, i32) {
    %c0_i32 = arith.constant 0 : i32
    %c0_i32_0 = arith.constant 0 : i32
    %c0_i32_1 = arith.constant 0 : i32
    return %arg0, %c0_i32, %c0_i32_0 : i32, i32, i32
  }
}

module attributes {stable_mosaic.version = 11 : i64} {
  func.func @_fc_kernel(%arg0: i32, %arg1: memref<8x9216xbf16, #tpu.memory_space<vmem>>, %arg2: memref<9216x128xbf16, #tpu.memory_space<vmem>>, %arg3: memref<1x128xf32, #tpu.memory_space<vmem>>, %arg4: memref<128x128xbf16, #tpu.memory_space<vmem>>, %arg5: memref<1x128xf32, #tpu.memory_space<vmem>>, %arg6: memref<8x128xf32, #tpu.memory_space<vmem>>) attributes {dimension_semantics = [#tpu.dimension_semantics<parallel>], iteration_bounds = array<i64: 1>, scalar_prefetch = 0 : i64, scratch_operands = 0 : i64, tpu.core_type = #tpu.core_type<tc>, window_params = [{transform_indices = @transform_0, window_bounds = array<i64: 8, 9216>}, {pipeline_mode = #tpu.pipeline_mode<synchronous>, transform_indices = @transform_1, window_bounds = array<i64: 9216, 128>}, {pipeline_mode = #tpu.pipeline_mode<synchronous>, transform_indices = @transform_2, window_bounds = array<i64: 1, 128>}, {pipeline_mode = #tpu.pipeline_mode<synchronous>, transform_indices = @transform_3, window_bounds = array<i64: 128, 128>}, {pipeline_mode = #tpu.pipeline_mode<synchronous>, transform_indices = @transform_4, window_bounds = array<i64: 1, 128>}, {transform_indices = @transform_5, window_bounds = array<i64: 8, 128>}]} {
    %c0 = arith.constant 0 : index
    %c0_0 = arith.constant 0 : index
    %0 = vector.load %arg1[%c0, %c0_0] : memref<8x9216xbf16, #tpu.memory_space<vmem>>, vector<8x9216xbf16>
    %c0_1 = arith.constant 0 : index
    %c0_2 = arith.constant 0 : index
    %1 = vector.load %arg2[%c0_1, %c0_2] : memref<9216x128xbf16, #tpu.memory_space<vmem>>, vector<9216x128xbf16>
    %cst = arith.constant dense<0.000000e+00> : vector<8x128xf32>
    %2 = tpu.matmul %0, %1, %cst {dimension_numbers = #tpu.dot_dimension_numbers<[1], [0], [0], [1], [0, 0, 1, 1], [], []>} : vector<8x9216xbf16>, vector<9216x128xbf16>, vector<8x128xf32> -> vector<8x128xf32>
    %c0_3 = arith.constant 0 : index
    %c0_4 = arith.constant 0 : index
    %3 = vector.load %arg3[%c0_3, %c0_4] : memref<1x128xf32, #tpu.memory_space<vmem>>, vector<1x128xf32>
    %4 = vector.broadcast %3 : vector<1x128xf32> to vector<8x128xf32>
    %5 = arith.addf %2, %4 : vector<8x128xf32>
    %cst_5 = arith.constant 0.000000e+00 : f32
    %6 = vector.broadcast %cst_5 : f32 to vector<8x128xf32>
    %7 = arith.maximumf %5, %6 : vector<8x128xf32>
    %8 = arith.truncf %7 : vector<8x128xf32> to vector<8x128xbf16>
    %c0_6 = arith.constant 0 : index
    %c0_7 = arith.constant 0 : index
    %9 = vector.load %arg4[%c0_6, %c0_7] : memref<128x128xbf16, #tpu.memory_space<vmem>>, vector<128x128xbf16>
    %cst_8 = arith.constant dense<0.000000e+00> : vector<8x128xf32>
    %10 = tpu.matmul %8, %9, %cst_8 {dimension_numbers = #tpu.dot_dimension_numbers<[1], [0], [0], [1], [0, 0, 1, 1], [], []>} : vector<8x128xbf16>, vector<128x128xbf16>, vector<8x128xf32> -> vector<8x128xf32>
    %c0_9 = arith.constant 0 : index
    %c0_10 = arith.constant 0 : index
    %11 = vector.load %arg5[%c0_9, %c0_10] : memref<1x128xf32, #tpu.memory_space<vmem>>, vector<1x128xf32>
    %12 = vector.broadcast %11 : vector<1x128xf32> to vector<8x128xf32>
    %13 = arith.addf %10, %12 : vector<8x128xf32>
    %c0_11 = arith.constant 0 : index
    %c0_12 = arith.constant 0 : index
    %14 = vector.load %arg6[%c0_11, %c0_12] : memref<8x128xf32, #tpu.memory_space<vmem>>, vector<8x128xf32>
    tpu.vector_store %arg6[%c0_11, %c0_12], %13 {strides = array<i32>} : memref<8x128xf32, #tpu.memory_space<vmem>>, vector<8x128xf32>,
    return
  }
  func.func @transform_0(%arg0: i32) -> (i32, i32) {
    %c0_i32 = arith.constant 0 : i32
    %c0_i32_0 = arith.constant 0 : i32
    return %arg0, %c0_i32 : i32, i32
  }
  func.func @transform_1(%arg0: i32) -> (i32, i32) {
    %c0_i32 = arith.constant 0 : i32
    %c0_i32_0 = arith.constant 0 : i32
    %c0_i32_1 = arith.constant 0 : i32
    return %c0_i32, %c0_i32_0 : i32, i32
  }
  func.func @transform_2(%arg0: i32) -> (i32, i32) {
    %c0_i32 = arith.constant 0 : i32
    %c0_i32_0 = arith.constant 0 : i32
    %c0_i32_1 = arith.constant 0 : i32
    return %c0_i32, %c0_i32_0 : i32, i32
  }
  func.func @transform_3(%arg0: i32) -> (i32, i32) {
    %c0_i32 = arith.constant 0 : i32
    %c0_i32_0 = arith.constant 0 : i32
    %c0_i32_1 = arith.constant 0 : i32
    return %c0_i32, %c0_i32_0 : i32, i32
  }
  func.func @transform_4(%arg0: i32) -> (i32, i32) {
    %c0_i32 = arith.constant 0 : i32
    %c0_i32_0 = arith.constant 0 : i32
    %c0_i32_1 = arith.constant 0 : i32
    return %c0_i32, %c0_i32_0 : i32, i32
  }
  func.func @transform_5(%arg0: i32) -> (i32, i32) {
    %c0_i32 = arith.constant 0 : i32
    %c0_i32_0 = arith.constant 0 : i32
    return %arg0, %c0_i32 : i32, i32
  }
}

</mosaic_0001>

<bundles_post_ra>
// kernel: torch_cnn_forward.3
= control target key start
LH: loop header
LB: loop body
LE: loop exit
PB: predicated region body
PF: predicated region fallthrough
CT: control target
= control target key end

     0   :  { %s10801_s1 = inlined_call_operand.vmem [shape: bf16[9216,128], index: 1, kind: input, shape index: {}]   ;;  %s10802_s0 = inlined_call_operand.vmem [shape: bf16[8,9216], index: 0, kind: input, shape index: {}]   ;;  %s10803_s2 = inlined_call_operand.vmem [shape: f32[1,128], index: 2, kind: input, shape index: {}]   ;;  %s10804_s4 = inlined_call_operand.vmem [shape: f32[1,128], index: 4, kind: input, shape index: {}]   ;;  %s10805_s3 = inlined_call_operand.vmem [shape: bf16[128,128], index: 3, kind: input, shape index: {}]   ;;  %s10806_s5 = inlined_call_operand.vmem [shape: f32[8,128], index: 5, kind: output, shape index: {}]  }
   0x1   :  { %v8287_v0 = vld [vmem:[%s10801_s1 + $0x38] sm:$0xff]  ;;  %v8286_v4 = vld [vmem:[%s10801_s1 + $0x30] sm:$0xff]  ;;  %v8285_v8 = vld [vmem:[%s10801_s1 + $0x28] sm:$0xff] }
   0x2   :  { %v8295_v1 = vld [vmem:[%s10801_s1 + $0x78] sm:$0xff]  ;;  %4920 = vmatpush.bf16.msra.mxu0 %v8287_v0  ;;  %v8294_v5 = vld [vmem:[%s10801_s1 + $0x70] sm:$0xff]  ;;  %v8293_v9 = vld [vmem:[%s10801_s1 + $0x68] sm:$0xff] }
   0x3   :  { %v8303_v2 = vld [vmem:[%s10801_s1 + $0xb8] sm:$0xff]  ;;  %4933 = vmatpush.bf16.msra.mxu1 %v8295_v1  ;;  %v8302_v6 = vld [vmem:[%s10801_s1 + $0xb0] sm:$0xff]  ;;  %v8301_v10 = vld [vmem:[%s10801_s1 + $0xa8] sm:$0xff] }
   0x4   :  { %v8311_v3 = vld [vmem:[%s10801_s1 + $0xf8] sm:$0xff]  ;;  %4946 = vmatpush.bf16.msra.mxu2 %v8303_v2  ;;  %v8310_v7 = vld [vmem:[%s10801_s1 + $0xf0] sm:$0xff]  ;;  %v8309_v11 = vld [vmem:[%s10801_s1 + $0xe8] sm:$0xff] }
   0x5   :  { %4959 = vmatpush.bf16.msra.mxu3 %v8311_v3  ;;  %v8284_v12 = vld [vmem:[%s10801_s1 + $0x20] sm:$0xff]  ;;  %v8283_v16 = vld [vmem:[%s10801_s1 + $0x18] sm:$0xff]  ;;  %v8282_v20 = vld [vmem:[%s10801_s1 + $0x10] sm:$0xff] }
   0x6   :  { %4921 = vmatpush.bf16.msra.mxu0 %v8286_v4  ;;  %v8292_v13 = vld [vmem:[%s10801_s1 + $0x60] sm:$0xff]  ;;  %v8291_v17 = vld [vmem:[%s10801_s1 + $0x58] sm:$0xff]  ;;  %v8290_v21 = vld [vmem:[%s10801_s1 + $0x50] sm:$0xff] }
   0x7   :  { %4934 = vmatpush.bf16.msra.mxu1 %v8294_v5  ;;  %v8300_v14 = vld [vmem:[%s10801_s1 + $0xa0] sm:$0xff]  ;;  %v8299_v18 = vld [vmem:[%s10801_s1 + $0x98] sm:$0xff]  ;;  %v8298_v22 = vld [vmem:[%s10801_s1 + $0x90] sm:$0xff] }
   0x8   :  { %4947 = vmatpush.bf16.msra.mxu2 %v8302_v6  ;;  %v8308_v15 = vld [vmem:[%s10801_s1 + $0xe0] sm:$0xff]  ;;  %v8307_v19 = vld [vmem:[%s10801_s1 + $0xd8] sm:$0xff]  ;;  %v8306_v23 = vld [vmem:[%s10801_s1 + $0xd0] sm:$0xff] }
   0x9   :  { %4960 = vmatpush.bf16.msra.mxu3 %v8310_v7  ;;  %v8281_v24 = vld [vmem:[%s10801_s1 + $0x8] sm:$0xff]  ;;  %v20_v29 = vld [vmem:[%s10802_s0] sm:$0xff]  ;;  %v8319_v38 = vld [vmem:[%s10801_s1 + $0x138] sm:$0xff] }
   0xa   :  { %4922 = vmatpush.bf16.msra.mxu0 %v8285_v8  ;;  %v8289_v25 = vld [vmem:[%s10801_s1 + $0x48] sm:$0xff]  ;;  %v8280_v30 = vld [vmem:[%s10801_s1] sm:$0xff]  ;;  %v1248_v33 = vunpack.c.l.b16 %v20_v29  ;;  %v1249_v37 = vunpack.c.h.b16 %v20_v29  ;;  %v8327_v39 = vld [vmem:[%s10801_s1 + $0x178] sm:$0xff] }
   0xb   :  { %4935 = vmatpush.bf16.msra.mxu1 %v8293_v9  ;;  %v8297_v26 = vld [vmem:[%s10801_s1 + $0x88] sm:$0xff]  ;;  %v8288_v31 = vld [vmem:[%s10801_s1 + $0x40] sm:$0xff]  ;;  %v8335_v40 = vld [vmem:[%s10801_s1 + $0x1b8] sm:$0xff] }
   0xc   :  { %4948 = vmatpush.bf16.msra.mxu2 %v8301_v10  ;;  %v8305_v27 = vld [vmem:[%s10801_s1 + $0xc8] sm:$0xff]  ;;  %v8296_v34 = vld [vmem:[%s10801_s1 + $0x80] sm:$0xff]  ;;  %v8343_v41 = vld [vmem:[%s10801_s1 + $0x1f8] sm:$0xff]  ;;  %v1320_v43 = vpack.c.b16 %v1248_v33, %v1248_v33  ;;  %v1321_v45 = vpack.c.b16 %v1249_v37, %v1249_v37 }
   0xd   :  { %4961 = vmatpush.bf16.msra.mxu3 %v8309_v11  ;;  %v21_v28 = vld [vmem:[%s10802_s0 + $0x8] sm:$0xff]  ;;  %v8304_v35 = vld [vmem:[%s10801_s1 + $0xc0] sm:$0xff]  ;;  %v8318_v46 = vld [vmem:[%s10801_s1 + $0x130] sm:$0xff] }
   0xe   :  { %4923 = vmatpush.bf16.msra.mxu0 %v8284_v12  ;;  %v1250_v32 = vunpack.c.l.b16 %v21_v28  ;;  %v1251_v36 = vunpack.c.h.b16 %v21_v28  ;;  %v8326_v47 = vld [vmem:[%s10801_s1 + $0x170] sm:$0xff]  ;;  %v8317_v50 = vld [vmem:[%s10801_s1 + $0x128] sm:$0xff]  ;;  %v8316_v54 = vld [vmem:[%s10801_s1 + $0x120] sm:$0xff] }
   0xf   :  { %4936 = vmatpush.bf16.msra.mxu1 %v8292_v13  ;;  %v8334_v48 = vld [vmem:[%s10801_s1 + $0x1b0] sm:$0xff]  ;;  %v8325_v51 = vld [vmem:[%s10801_s1 + $0x168] sm:$0xff]  ;;  %v8324_v55 = vld [vmem:[%s10801_s1 + $0x160] sm:$0xff] }
  0x10   :  { %4949 = vmatpush.bf16.msra.mxu2 %v8300_v14  ;;  %v1322_v42 = vpack.c.b16 %v1250_v32, %v1250_v32  ;;  %v1323_v44 = vpack.c.b16 %v1251_v36, %v1251_v36  ;;  %v8342_v49 = vld [vmem:[%s10801_s1 + $0x1f0] sm:$0xff]  ;;  %v8333_v52 = vld [vmem:[%s10801_s1 + $0x1a8] sm:$0xff]  ;;  %v8332_v56 = vld [vmem:[%s10801_s1 + $0x1a0] sm:$0xff] }
  0x11   :  { %4962 = vmatpush.bf16.msra.mxu3 %v8308_v15  ;;  %v8341_v53 = vld [vmem:[%s10801_s1 + $0x1e8] sm:$0xff]  ;;  %v8340_v57 = vld [vmem:[%s10801_s1 + $0x1e0] sm:$0xff]  ;;  %v8315_v58 = vld [vmem:[%s10801_s1 + $0x118] sm:$0xff] }
  0x12   :  { %4924 = vmatpush.bf16.msra.mxu0 %v8283_v16  ;;  %v8323_v59 = vld [vmem:[%s10801_s1 + $0x158] sm:$0xff]  ;;  %v8314_v62 = vld [vmem:[%s10801_s1 + $0x110] sm:$0xff]  ;;  %v8313_v2 = vld [vmem:[%s10801_s1 + $0x108] sm:$0xff] }
  0x13   :  { %4937 = vmatpush.bf16.msra.mxu1 %v8291_v17  ;;  %v8331_v60 = vld [vmem:[%s10801_s1 + $0x198] sm:$0xff]  ;;  %v8322_v63 = vld [vmem:[%s10801_s1 + $0x150] sm:$0xff]  ;;  %v8321_v3 = vld [vmem:[%s10801_s1 + $0x148] sm:$0xff] }
  0x14   :  { %4950 = vmatpush.bf16.msra.mxu2 %v8299_v18  ;;  %v8339_v61 = vld [vmem:[%s10801_s1 + $0x1d8] sm:$0xff]  ;;  %v8330_v0 = vld [vmem:[%s10801_s1 + $0x190] sm:$0xff]  ;;  %v8329_v4 = vld [vmem:[%s10801_s1 + $0x188] sm:$0xff] }
  0x15   :  { %4963 = vmatpush.bf16.msra.mxu3 %v8307_v19  ;;  %v8338_v1 = vld [vmem:[%s10801_s1 + $0x1d0] sm:$0xff]  ;;  %v8337_v5 = vld [vmem:[%s10801_s1 + $0x1c8] sm:$0xff]  ;;  %v23_v6 = vld [vmem:[%s10802_s0 + $0x18] sm:$0xff] }
  0x16   :  { %4925 = vmatpush.bf16.msra.mxu0 %v8282_v20  ;;  %v22_v7 = vld [vmem:[%s10802_s0 + $0x10] sm:$0xff]  ;;  %v8312_v8 = vld [vmem:[%s10801_s1 + $0x100] sm:$0xff]  ;;  %v1254_v10 = vunpack.c.l.b16 %v23_v6  ;;  %v1255_v14 = vunpack.c.h.b16 %v23_v6  ;;  %v8351_v16 = vld [vmem:[%s10801_s1 + $0x238] sm:$0xff] }
  0x17   :  { %4938 = vmatpush.bf16.msra.mxu1 %v8290_v21  ;;  %v8320_v9 = vld [vmem:[%s10801_s1 + $0x140] sm:$0xff]  ;;  %v1252_v11 = vunpack.c.l.b16 %v22_v7  ;;  %v1253_v15 = vunpack.c.h.b16 %v22_v7  ;;  %v8359_v17 = vld [vmem:[%s10801_s1 + $0x278] sm:$0xff]  ;;  %v8349_v28 = vld [vmem:[%s10801_s1 + $0x228] sm:$0xff] }
  0x18   :  { %4951 = vmatpush.bf16.msra.mxu2 %v8298_v22  ;;  %v8328_v12 = vld [vmem:[%s10801_s1 + $0x180] sm:$0xff]  ;;  %v8367_v18 = vld [vmem:[%s10801_s1 + $0x2b8] sm:$0xff]  ;;  %v1326_v20 = vpack.c.b16 %v1254_v10, %v1254_v10  ;;  %v1327_v22 = vpack.c.b16 %v1255_v14, %v1255_v14  ;;  %v8357_v29 = vld [vmem:[%s10801_s1 + $0x268] sm:$0xff] }
  0x19   :  { %4964 = vmatpush.bf16.msra.mxu3 %v8306_v23  ;;  %v8336_v13 = vld [vmem:[%s10801_s1 + $0x1c0] sm:$0xff]  ;;  %v8375_v19 = vld [vmem:[%s10801_s1 + $0x2f8] sm:$0xff]  ;;  %v1324_v21 = vpack.c.b16 %v1252_v11, %v1252_v11  ;;  %v1325_v23 = vpack.c.b16 %v1253_v15, %v1253_v15  ;;  %v8381_v6 = vld [vmem:[%s10801_s1 + $0x328] sm:$0xff] }
  0x1a   :  { %4926 = vmatpush.bf16.msra.mxu0 %v8281_v24  ;;  %v8350_v24 = vld [vmem:[%s10801_s1 + $0x230] sm:$0xff]  ;;  %v8348_v32 = vld [vmem:[%s10801_s1 + $0x220] sm:$0xff]  ;;  %v8347_v36 = vld [vmem:[%s10801_s1 + $0x218] sm:$0xff] }
  0x1b   :  { %4939 = vmatpush.bf16.msra.mxu1 %v8289_v25  ;;  %v8358_v25 = vld [vmem:[%s10801_s1 + $0x270] sm:$0xff]  ;;  %v8356_v33 = vld [vmem:[%s10801_s1 + $0x260] sm:$0xff]  ;;  %v8355_v37 = vld [vmem:[%s10801_s1 + $0x258] sm:$0xff] }
  0x1c   :  { %4952 = vmatpush.bf16.msra.mxu2 %v8297_v26  ;;  %v8366_v26 = vld [vmem:[%s10801_s1 + $0x2b0] sm:$0xff]  ;;  %v8389_v7 = vld [vmem:[%s10801_s1 + $0x368] sm:$0xff]  ;;  %v8380_v10 = vld [vmem:[%s10801_s1 + $0x320] sm:$0xff] }
  0x1d   :  { %4965 = vmatpush.bf16.msra.mxu3 %v8305_v27  ;;  %v8374_v27 = vld [vmem:[%s10801_s1 + $0x2f0] sm:$0xff]  ;;  %v8388_v11 = vld [vmem:[%s10801_s1 + $0x360] sm:$0xff]  ;;  %v8379_v14 = vld [vmem:[%s10801_s1 + $0x318] sm:$0xff] }
  0x1e   :  { %4927 = vmatpush.bf16.msra.mxu0 %v8280_v30  ;;  %v8365_v30 = vld [vmem:[%s10801_s1 + $0x2a8] sm:$0xff]  ;;  %v8387_v15 = vld [vmem:[%s10801_s1 + $0x358] sm:$0xff] }
  0x1f   :  { %4940 = vmatpush.bf16.msra.mxu1 %v8288_v31  ;;  %v8373_v31 = vld [vmem:[%s10801_s1 + $0x2e8] sm:$0xff] }
  0x20   :  { %4953 = vmatpush.bf16.msra.mxu2 %v8296_v34  ;;  %v8364_v34 = vld [vmem:[%s10801_s1 + $0x2a0] sm:$0xff] }
  0x21   :  { %4966 = vmatpush.bf16.msra.mxu3 %v8304_v35  ;;  %4928 = vmatmul.bf16.vlgmr.msra.gmra.mxu0 %v1320_v43  ;;  %v8372_v35 = vld [vmem:[%s10801_s1 + $0x2e0] sm:$0xff]  ;;  %v8370_v43 = vld [vmem:[%s10801_s1 + $0x2d0] sm:$0xff] }
  0x22   :  { %4972 = vmatpush.bf16.msrb.mxu0 %v8319_v38  ;;  %4941 = vmatmul.bf16.vlgmr.msra.gmra.mxu1 %v1321_v45  ;;  %v8363_v38 = vld [vmem:[%s10801_s1 + $0x298] sm:$0xff]  ;;  %v8353_v45 = vld [vmem:[%s10801_s1 + $0x248] sm:$0xff] }
  0x23   :  { %4985 = vmatpush.bf16.msrb.mxu1 %v8327_v39  ;;  %4954 = vmatmul.bf16.vlgmr.msra.gmra.mxu2 %v1322_v42  ;;  %v8371_v39 = vld [vmem:[%s10801_s1 + $0x2d8] sm:$0xff]  ;;  %v8362_v42 = vld [vmem:[%s10801_s1 + $0x290] sm:$0xff] }
  0x24   :  { %4998 = vmatpush.bf16.msrb.mxu2 %v8335_v40  ;;  %4967 = vmatmul.bf16.vlgmr.msra.gmra.mxu3 %v1323_v44  ;;  %v8346_v40 = vld [vmem:[%s10801_s1 + $0x210] sm:$0xff]  ;;  %v8345_v44 = vld [vmem:[%s10801_s1 + $0x208] sm:$0xff] }
  0x25   :  { %5011 = vmatpush.bf16.msrb.mxu3 %v8343_v41  ;;  %v8354_v41 = vld [vmem:[%s10801_s1 + $0x250] sm:$0xff] }
  0x26   :  { %4973 = vmatpush.bf16.msrb.mxu0 %v8318_v46  ;;  %v8361_v46 = vld [vmem:[%s10801_s1 + $0x288] sm:$0xff] }
  0x27   :  { %4986 = vmatpush.bf16.msrb.mxu1 %v8326_v47  ;;  %v8369_v47 = vld [vmem:[%s10801_s1 + $0x2c8] sm:$0xff] }
  0x28   :  { %4999 = vmatpush.bf16.msrb.mxu2 %v8334_v48  ;;  %v24_v48 = vld [vmem:[%s10802_s0 + $0x20] sm:$0xff] }
  0x29   :  { %5012 = vmatpush.bf16.msrb.mxu3 %v8342_v49  ;;  %v25_v49 = vld [vmem:[%s10802_s0 + $0x28] sm:$0xff] }
  0x2a   :  { %4974 = vmatpush.bf16.msrb.mxu0 %v8317_v50  ;;  %v8344_v50 = vld [vmem:[%s10801_s1 + $0x200] sm:$0xff] }
  0x2b   :  { %4987 = vmatpush.bf16.msrb.mxu1 %v8325_v51  ;;  %v8352_v51 = vld [vmem:[%s10801_s1 + $0x240] sm:$0xff] }
  0x2c   :  { %5000 = vmatpush.bf16.msrb.mxu2 %v8333_v52  ;;  %v1256_v52 = vunpack.c.l.b16 %v24_v48 }
  0x2d   :  { %5013 = vmatpush.bf16.msrb.mxu3 %v8341_v53  ;;  %v1258_v53 = vunpack.c.l.b16 %v25_v49 }
  0x2e   :  { %4975 = vmatpush.bf16.msrb.mxu0 %v8316_v54  ;;  %v8360_v54 = vld [vmem:[%s10801_s1 + $0x280] sm:$0xff] }
  0x2f   :  { %4988 = vmatpush.bf16.msrb.mxu1 %v8324_v55  ;;  %v8368_v55 = vld [vmem:[%s10801_s1 + $0x2c0] sm:$0xff] }
  0x30   :  { %5001 = vmatpush.bf16.msrb.mxu2 %v8332_v56  ;;  %v1257_v56 = vunpack.c.h.b16 %v24_v48  ;;  %v8413_v48 = vld [vmem:[%s10801_s1 + $0x428] sm:$0xff] }
  0x31   :  { %5014 = vmatpush.bf16.msrb.mxu3 %v8340_v57  ;;  %v1259_v57 = vunpack.c.h.b16 %v25_v49  ;;  %v8421_v49 = vld [vmem:[%s10801_s1 + $0x468] sm:$0xff] }
  0x32   :  { %4976 = vmatpush.bf16.msrb.mxu0 %v8315_v58  ;;  %v8383_v58 = vld [vmem:[%s10801_s1 + $0x338] sm:$0xff] }
  0x33   :  { %4989 = vmatpush.bf16.msrb.mxu1 %v8323_v59  ;;  %v8391_v59 = vld [vmem:[%s10801_s1 + $0x378] sm:$0xff] }
  0x34   :  { %5002 = vmatpush.bf16.msrb.mxu2 %v8331_v60  ;;  %v8399_v60 = vld [vmem:[%s10801_s1 + $0x3b8] sm:$0xff] }
  0x35   :  { %5015 = vmatpush.bf16.msrb.mxu3 %v8339_v61  ;;  %v8407_v61 = vld [vmem:[%s10801_s1 + $0x3f8] sm:$0xff] }
  0x36   :  { %4977 = vmatpush.bf16.msrb.mxu0 %v8314_v62  ;;  %v1328_v62 = vpack.c.b16 %v1256_v52, %v1256_v52  ;;  %v8412_v52 = vld [vmem:[%s10801_s1 + $0x420] sm:$0xff] }
  0x37   :  { %4990 = vmatpush.bf16.msrb.mxu1 %v8322_v63  ;;  %v1330_v63 = vpack.c.b16 %v1258_v53, %v1258_v53  ;;  %v8420_v53 = vld [vmem:[%s10801_s1 + $0x460] sm:$0xff] }
  0x38   :  { %5003 = vmatpush.bf16.msrb.mxu2 %v8330_v0  ;;  %v1329_v0 = vpack.c.b16 %v1257_v56, %v1257_v56  ;;  %v8411_v56 = vld [vmem:[%s10801_s1 + $0x418] sm:$0xff] }
  0x39   :  { %5016 = vmatpush.bf16.msrb.mxu3 %v8338_v1  ;;  %v1331_v1 = vpack.c.b16 %v1259_v57, %v1259_v57  ;;  %v8419_v57 = vld [vmem:[%s10801_s1 + $0x458] sm:$0xff] }
  0x3a   :  { %4978 = vmatpush.bf16.msrb.mxu0 %v8313_v2  ;;  %v8382_v2 = vld [vmem:[%s10801_s1 + $0x330] sm:$0xff] }
  0x3b   :  { %4991 = vmatpush.bf16.msrb.mxu1 %v8321_v3  ;;  %v8390_v3 = vld [vmem:[%s10801_s1 + $0x370] sm:$0xff] }
  0x3c   :  { %5004 = vmatpush.bf16.msrb.mxu2 %v8329_v4  ;;  %v8398_v4 = vld [vmem:[%s10801_s1 + $0x3b0] sm:$0xff] }
  0x3d   :  { %5017 = vmatpush.bf16.msrb.mxu3 %v8337_v5  ;;  %v8406_v5 = vld [vmem:[%s10801_s1 + $0x3f0] sm:$0xff] }
  0x3e   :  { %4979 = vmatpush.bf16.msrb.mxu0 %v8312_v8  ;;  %v8397_v8 = vld [vmem:[%s10801_s1 + $0x3a8] sm:$0xff] }
  0x3f   :  { %4992 = vmatpush.bf16.msrb.mxu1 %v8320_v9  ;;  %v8405_v9 = vld [vmem:[%s10801_s1 + $0x3e8] sm:$0xff] }
  0x40   :  { %5005 = vmatpush.bf16.msrb.mxu2 %v8328_v12  ;;  %v8396_v12 = vld [vmem:[%s10801_s1 + $0x3a0] sm:$0xff] }
  0x41   :  { %5018 = vmatpush.bf16.msrb.mxu3 %v8336_v13  ;;  %4980 = vmatmul.bf16.vlgmr.msrb.gmra.mxu0 %v1324_v21  ;;  %v8404_v13 = vld [vmem:[%s10801_s1 + $0x3e0] sm:$0xff]  ;;  %v8402_v21 = vld [vmem:[%s10801_s1 + $0x3d0] sm:$0xff] }
  0x42   :  { %5024 = vmatpush.bf16.msra.mxu0 %v8351_v16  ;;  %4993 = vmatmul.bf16.vlgmr.msrb.gmra.mxu1 %v1325_v23  ;;  %v8395_v16 = vld [vmem:[%s10801_s1 + $0x398] sm:$0xff]  ;;  %v8385_v23 = vld [vmem:[%s10801_s1 + $0x348] sm:$0xff] }
  0x43   :  { %5037 = vmatpush.bf16.msra.mxu1 %v8359_v17  ;;  %5006 = vmatmul.bf16.vlgmr.msrb.gmra.mxu2 %v1326_v20  ;;  %v8403_v17 = vld [vmem:[%s10801_s1 + $0x3d8] sm:$0xff]  ;;  %v8394_v20 = vld [vmem:[%s10801_s1 + $0x390] sm:$0xff] }
  0x44   :  { %5050 = vmatpush.bf16.msra.mxu2 %v8367_v18  ;;  %5019 = vmatmul.bf16.vlgmr.msrb.gmra.mxu3 %v1327_v22  ;;  %v8378_v18 = vld [vmem:[%s10801_s1 + $0x310] sm:$0xff]  ;;  %v8377_v22 = vld [vmem:[%s10801_s1 + $0x308] sm:$0xff] }
  0x45   :  { %5063 = vmatpush.bf16.msra.mxu3 %v8375_v19  ;;  %v8386_v19 = vld [vmem:[%s10801_s1 + $0x350] sm:$0xff] }
  0x46   :  { %5025 = vmatpush.bf16.msra.mxu0 %v8350_v24  ;;  %v8393_v24 = vld [vmem:[%s10801_s1 + $0x388] sm:$0xff] }
  0x47   :  { %5038 = vmatpush.bf16.msra.mxu1 %v8358_v25  ;;  %v8401_v25 = vld [vmem:[%s10801_s1 + $0x3c8] sm:$0xff] }
  0x48   :  { %5051 = vmatpush.bf16.msra.mxu2 %v8366_v26  ;;  %v26_v26 = vld [vmem:[%s10802_s0 + $0x30] sm:$0xff] }
  0x49   :  { %5064 = vmatpush.bf16.msra.mxu3 %v8374_v27  ;;  %v27_v27 = vld [vmem:[%s10802_s0 + $0x38] sm:$0xff] }
  0x4a   :  { %5026 = vmatpush.bf16.msra.mxu0 %v8349_v28  ;;  %v8376_v28 = vld [vmem:[%s10801_s1 + $0x300] sm:$0xff] }
  0x4b   :  { %5039 = vmatpush.bf16.msra.mxu1 %v8357_v29  ;;  %v8384_v29 = vld [vmem:[%s10801_s1 + $0x340] sm:$0xff] }
  0x4c   :  { %5052 = vmatpush.bf16.msra.mxu2 %v8365_v30  ;;  %v1260_v30 = vunpack.c.l.b16 %v26_v26 }
  0x4d   :  { %5065 = vmatpush.bf16.msra.mxu3 %v8373_v31  ;;  %v1262_v31 = vunpack.c.l.b16 %v27_v27 }
  0x4e   :  { %5027 = vmatpush.bf16.msra.mxu0 %v8348_v32  ;;  %v8392_v32 = vld [vmem:[%s10801_s1 + $0x380] sm:$0xff] }
  0x4f   :  { %5040 = vmatpush.bf16.msra.mxu1 %v8356_v33  ;;  %v8400_v33 = vld [vmem:[%s10801_s1 + $0x3c0] sm:$0xff] }
  0x50   :  { %5053 = vmatpush.bf16.msra.mxu2 %v8364_v34  ;;  %v1261_v34 = vunpack.c.h.b16 %v26_v26  ;;  %v8445_v26 = vld [vmem:[%s10801_s1 + $0x528] sm:$0xff] }
  0x51   :  { %5066 = vmatpush.bf16.msra.mxu3 %v8372_v35  ;;  %v1263_v35 = vunpack.c.h.b16 %v27_v27  ;;  %v8453_v27 = vld [vmem:[%s10801_s1 + $0x568] sm:$0xff] }
  0x52   :  { %5028 = vmatpush.bf16.msra.mxu0 %v8347_v36  ;;  %v8415_v36 = vld [vmem:[%s10801_s1 + $0x438] sm:$0xff] }
  0x53   :  { %5041 = vmatpush.bf16.msra.mxu1 %v8355_v37  ;;  %v8423_v37 = vld [vmem:[%s10801_s1 + $0x478] sm:$0xff] }
  0x54   :  { %5054 = vmatpush.bf16.msra.mxu2 %v8363_v38  ;;  %v8431_v38 = vld [vmem:[%s10801_s1 + $0x4b8] sm:$0xff] }
  0x55   :  { %5067 = vmatpush.bf16.msra.mxu3 %v8371_v39  ;;  %v8439_v39 = vld [vmem:[%s10801_s1 + $0x4f8] sm:$0xff] }
  0x56   :  { %5029 = vmatpush.bf16.msra.mxu0 %v8346_v40  ;;  %v1332_v40 = vpack.c.b16 %v1260_v30, %v1260_v30  ;;  %v8469_v30 = vld [vmem:[%s10801_s1 + $0x5e8] sm:$0xff] }
  0x57   :  { %5042 = vmatpush.bf16.msra.mxu1 %v8354_v41  ;;  %v1334_v41 = vpack.c.b16 %v1262_v31, %v1262_v31 }
  0x58   :  { %5055 = vmatpush.bf16.msra.mxu2 %v8362_v42  ;;  %v1333_v42 = vpack.c.b16 %v1261_v34, %v1261_v34 }
  0x59   :  { %5068 = vmatpush.bf16.msra.mxu3 %v8370_v43  ;;  %v1335_v43 = vpack.c.b16 %v1263_v35, %v1263_v35 }
  0x5a   :  { %5030 = vmatpush.bf16.msra.mxu0 %v8345_v44  ;;  %v8414_v44 = vld [vmem:[%s10801_s1 + $0x430] sm:$0xff] }
  0x5b   :  { %5043 = vmatpush.bf16.msra.mxu1 %v8353_v45  ;;  %v8422_v45 = vld [vmem:[%s10801_s1 + $0x470] sm:$0xff] }
  0x5c   :  { %5056 = vmatpush.bf16.msra.mxu2 %v8361_v46  ;;  %v8430_v46 = vld [vmem:[%s10801_s1 + $0x4b0] sm:$0xff] }
  0x5d   :  { %5069 = vmatpush.bf16.msra.mxu3 %v8369_v47  ;;  %v8438_v47 = vld [vmem:[%s10801_s1 + $0x4f0] sm:$0xff] }
  0x5e   :  { %5031 = vmatpush.bf16.msra.mxu0 %v8344_v50  ;;  %v8429_v50 = vld [vmem:[%s10801_s1 + $0x4a8] sm:$0xff] }
  0x5f   :  { %5044 = vmatpush.bf16.msra.mxu1 %v8352_v51  ;;  %v8437_v51 = vld [vmem:[%s10801_s1 + $0x4e8] sm:$0xff] }
  0x60   :  { %5057 = vmatpush.bf16.msra.mxu2 %v8360_v54  ;;  %v8428_v54 = vld [vmem:[%s10801_s1 + $0x4a0] sm:$0xff] }
  0x61   :  { %5070 = vmatpush.bf16.msra.mxu3 %v8368_v55  ;;  %5032 = vmatmul.bf16.vlgmr.msra.gmra.mxu0 %v1328_v62  ;;  %v8436_v55 = vld [vmem:[%s10801_s1 + $0x4e0] sm:$0xff]  ;;  %v8426_v62 = vld [vmem:[%s10801_s1 + $0x490] sm:$0xff] }
  0x62   :  { %5076 = vmatpush.bf16.msrb.mxu0 %v8383_v58  ;;  %5045 = vmatmul.bf16.vlgmr.msra.gmra.mxu1 %v1329_v0  ;;  %v8427_v58 = vld [vmem:[%s10801_s1 + $0x498] sm:$0xff]  ;;  %v8409_v0 = vld [vmem:[%s10801_s1 + $0x408] sm:$0xff] }
  0x63   :  { %5089 = vmatpush.bf16.msrb.mxu1 %v8391_v59  ;;  %5058 = vmatmul.bf16.vlgmr.msra.gmra.mxu2 %v1330_v63  ;;  %v8435_v59 = vld [vmem:[%s10801_s1 + $0x4d8] sm:$0xff]  ;;  %v8434_v63 = vld [vmem:[%s10801_s1 + $0x4d0] sm:$0xff] }
  0x64   :  { %5102 = vmatpush.bf16.msrb.mxu2 %v8399_v60  ;;  %5071 = vmatmul.bf16.vlgmr.msra.gmra.mxu3 %v1331_v1  ;;  %v8410_v60 = vld [vmem:[%s10801_s1 + $0x410] sm:$0xff]  ;;  %v8417_v1 = vld [vmem:[%s10801_s1 + $0x448] sm:$0xff] }
  0x65   :  { %5115 = vmatpush.bf16.msrb.mxu3 %v8407_v61  ;;  %v8418_v61 = vld [vmem:[%s10801_s1 + $0x450] sm:$0xff] }
  0x66   :  { %5077 = vmatpush.bf16.msrb.mxu0 %v8382_v2  ;;  %v8425_v2 = vld [vmem:[%s10801_s1 + $0x488] sm:$0xff] }
  0x67   :  { %5090 = vmatpush.bf16.msrb.mxu1 %v8390_v3  ;;  %v8433_v3 = vld [vmem:[%s10801_s1 + $0x4c8] sm:$0xff] }
  0x68   :  { %5103 = vmatpush.bf16.msrb.mxu2 %v8398_v4  ;;  %v28_v4 = vld [vmem:[%s10802_s0 + $0x40] sm:$0xff] }
  0x69   :  { %5116 = vmatpush.bf16.msrb.mxu3 %v8406_v5  ;;  %v29_v5 = vld [vmem:[%s10802_s0 + $0x48] sm:$0xff] }
  0x6a   :  { %5078 = vmatpush.bf16.msrb.mxu0 %v8381_v6  ;;  %v8408_v6 = vld [vmem:[%s10801_s1 + $0x400] sm:$0xff] }
  0x6b   :  { %5091 = vmatpush.bf16.msrb.mxu1 %v8389_v7  ;;  %v8416_v7 = vld [vmem:[%s10801_s1 + $0x440] sm:$0xff] }
  0x6c   :  { %5104 = vmatpush.bf16.msrb.mxu2 %v8397_v8  ;;  %v1264_v8 = vunpack.c.l.b16 %v28_v4 }
  0x6d   :  { %5117 = vmatpush.bf16.msrb.mxu3 %v8405_v9  ;;  %v1266_v9 = vunpack.c.l.b16 %v29_v5 }
  0x6e   :  { %5079 = vmatpush.bf16.msrb.mxu0 %v8380_v10  ;;  %v8424_v10 = vld [vmem:[%s10801_s1 + $0x480] sm:$0xff] }
  0x6f   :  { %5092 = vmatpush.bf16.msrb.mxu1 %v8388_v11  ;;  %v8432_v11 = vld [vmem:[%s10801_s1 + $0x4c0] sm:$0xff] }
  0x70   :  { %5105 = vmatpush.bf16.msrb.mxu2 %v8396_v12  ;;  %v1265_v12 = vunpack.c.h.b16 %v28_v4 }
  0x71   :  { %5118 = vmatpush.bf16.msrb.mxu3 %v8404_v13  ;;  %v1267_v13 = vunpack.c.h.b16 %v29_v5  ;;  %v8479_v5 = vld [vmem:[%s10801_s1 + $0x638] sm:$0xff] }
  0x72   :  { %5080 = vmatpush.bf16.msrb.mxu0 %v8379_v14  ;;  %v8447_v14 = vld [vmem:[%s10801_s1 + $0x538] sm:$0xff] }
  0x73   :  { %5093 = vmatpush.bf16.msrb.mxu1 %v8387_v15  ;;  %v8455_v15 = vld [vmem:[%s10801_s1 + $0x578] sm:$0xff] }
  0x74   :  { %5106 = vmatpush.bf16.msrb.mxu2 %v8395_v16  ;;  %v8463_v16 = vld [vmem:[%s10801_s1 + $0x5b8] sm:$0xff] }
  0x75   :  { %5119 = vmatpush.bf16.msrb.mxu3 %v8403_v17  ;;  %v8471_v17 = vld [vmem:[%s10801_s1 + $0x5f8] sm:$0xff] }
  0x76   :  { %5081 = vmatpush.bf16.msrb.mxu0 %v8378_v18  ;;  %v1336_v18 = vpack.c.b16 %v1264_v8, %v1264_v8  ;;  %v8503_v8 = vld [vmem:[%s10801_s1 + $0x6f8] sm:$0xff] }
  0x77   :  { %5094 = vmatpush.bf16.msrb.mxu1 %v8386_v19  ;;  %v1338_v19 = vpack.c.b16 %v1266_v9, %v1266_v9 }
  0x78   :  { %5107 = vmatpush.bf16.msrb.mxu2 %v8394_v20  ;;  %v1337_v20 = vpack.c.b16 %v1265_v12, %v1265_v12 }
  0x79   :  { %5120 = vmatpush.bf16.msrb.mxu3 %v8402_v21  ;;  %v1339_v21 = vpack.c.b16 %v1267_v13, %v1267_v13  ;;  %v8478_v13 = vld [vmem:[%s10801_s1 + $0x630] sm:$0xff] }
  0x7a   :  { %5082 = vmatpush.bf16.msrb.mxu0 %v8377_v22  ;;  %v8446_v22 = vld [vmem:[%s10801_s1 + $0x530] sm:$0xff] }
  0x7b   :  { %5095 = vmatpush.bf16.msrb.mxu1 %v8385_v23  ;;  %v8454_v23 = vld [vmem:[%s10801_s1 + $0x570] sm:$0xff] }
  0x7c   :  { %5108 = vmatpush.bf16.msrb.mxu2 %v8393_v24  ;;  %v8462_v24 = vld [vmem:[%s10801_s1 + $0x5b0] sm:$0xff] }
  0x7d   :  { %5121 = vmatpush.bf16.msrb.mxu3 %v8401_v25  ;;  %v8470_v25 = vld [vmem:[%s10801_s1 + $0x5f0] sm:$0xff] }
  0x7e   :  { %5083 = vmatpush.bf16.msrb.mxu0 %v8376_v28  ;;  %v8864_v28 = vld [vmem:[%s10803_s2] ss:$0 sm:$0xff] }
  0x7f   :  { %5096 = vmatpush.bf16.msrb.mxu1 %v8384_v29  ;;  %v8461_v29 = vld [vmem:[%s10801_s1 + $0x5a8] sm:$0xff] }
  0x80   :  { %5109 = vmatpush.bf16.msrb.mxu2 %v8392_v32  ;;  %v8444_v32 = vld [vmem:[%s10801_s1 + $0x520] sm:$0xff] }
  0x81   :  { %5122 = vmatpush.bf16.msrb.mxu3 %v8400_v33  ;;  %5084 = vmatmul.bf16.vlgmr.msrb.gmra.mxu0 %v1332_v40  ;;  %v8452_v33 = vld [vmem:[%s10801_s1 + $0x560] sm:$0xff]  ;;  %v8451_v40 = vld [vmem:[%s10801_s1 + $0x558] sm:$0xff] }
  0x82   :  { %5128 = vmatpush.bf16.msra.mxu0 %v8415_v36  ;;  %5097 = vmatmul.bf16.vlgmr.msrb.gmra.mxu1 %v1333_v42  ;;  %v8460_v36 = vld [vmem:[%s10801_s1 + $0x5a0] sm:$0xff]  ;;  %v8467_v42 = vld [vmem:[%s10801_s1 + $0x5d8] sm:$0xff] }
  0x83   :  { %5141 = vmatpush.bf16.msra.mxu1 %v8423_v37  ;;  %5110 = vmatmul.bf16.vlgmr.msrb.gmra.mxu2 %v1334_v41  ;;  %v8468_v37 = vld [vmem:[%s10801_s1 + $0x5e0] sm:$0xff]  ;;  %v8459_v41 = vld [vmem:[%s10801_s1 + $0x598] sm:$0xff] }
  0x84   :  { %5154 = vmatpush.bf16.msra.mxu2 %v8431_v38  ;;  %5123 = vmatmul.bf16.vlgmr.msrb.gmra.mxu3 %v1335_v43 }
  0x85   :  { %5167 = vmatpush.bf16.msra.mxu3 %v8439_v39  ;;  %v8443_v39 = vld [vmem:[%s10801_s1 + $0x518] sm:$0xff] }
  0x86   :  { %5129 = vmatpush.bf16.msra.mxu0 %v8414_v44 }
  0x87   :  { %5142 = vmatpush.bf16.msra.mxu1 %v8422_v45 }
  0x88   :  { %5155 = vmatpush.bf16.msra.mxu2 %v8430_v46 }
  0x89   :  { %5168 = vmatpush.bf16.msra.mxu3 %v8438_v47  ;;  %v8442_v47 = vld [vmem:[%s10801_s1 + $0x510] sm:$0xff] }
  0x8a   :  { %5130 = vmatpush.bf16.msra.mxu0 %v8413_v48  ;;  %v8450_v48 = vld [vmem:[%s10801_s1 + $0x550] sm:$0xff] }
  0x8b   :  { %5143 = vmatpush.bf16.msra.mxu1 %v8421_v49 }
  0x8c   :  { %5156 = vmatpush.bf16.msra.mxu2 %v8429_v50 }
  0x8d   :  { %5169 = vmatpush.bf16.msra.mxu3 %v8437_v51  ;;  %v8458_v51 = vld [vmem:[%s10801_s1 + $0x590] sm:$0xff] }
  0x8e   :  { %5131 = vmatpush.bf16.msra.mxu0 %v8412_v52  ;;  %v8466_v52 = vld [vmem:[%s10801_s1 + $0x5d0] sm:$0xff] }
  0x8f   :  { %5144 = vmatpush.bf16.msra.mxu1 %v8420_v53  ;;  %v8441_v53 = vld [vmem:[%s10801_s1 + $0x508] sm:$0xff] }
  0x90   :  { %5157 = vmatpush.bf16.msra.mxu2 %v8428_v54  ;;  %v8449_v54 = vld [vmem:[%s10801_s1 + $0x548] sm:$0xff] }
  0x91   :  { %5170 = vmatpush.bf16.msra.mxu3 %v8436_v55  ;;  %v8457_v55 = vld [vmem:[%s10801_s1 + $0x588] sm:$0xff] }
  0x92   :  { %5132 = vmatpush.bf16.msra.mxu0 %v8411_v56  ;;  %v8465_v56 = vld [vmem:[%s10801_s1 + $0x5c8] sm:$0xff] }
  0x93   :  { %5145 = vmatpush.bf16.msra.mxu1 %v8419_v57  ;;  %v30_v57 = vld [vmem:[%s10802_s0 + $0x50] sm:$0xff] }
  0x94   :  { %5158 = vmatpush.bf16.msra.mxu2 %v8427_v58  ;;  %v31_v58 = vld [vmem:[%s10802_s0 + $0x58] sm:$0xff] }
  0x95   :  { %5171 = vmatpush.bf16.msra.mxu3 %v8435_v59  ;;  %v1271_v4 = vunpack.c.h.b16 %v31_v58 }
  0x96   :  { %5133 = vmatpush.bf16.msra.mxu0 %v8410_v60 }
  0x97   :  { %5146 = vmatpush.bf16.msra.mxu1 %v8418_v61  ;;  %v8440_v61 = vld [vmem:[%s10801_s1 + $0x500] sm:$0xff]  ;;  %v1343_v12 = vpack.c.b16 %v1271_v4, %v1271_v4  ;;  %v8518_v4 = vld [vmem:[%s10801_s1 + $0x770] sm:$0xff] }
  0x98   :  { %5159 = vmatpush.bf16.msra.mxu2 %v8426_v62  ;;  %v8448_v62 = vld [vmem:[%s10801_s1 + $0x540] sm:$0xff] }
  0x99   :  { %5172 = vmatpush.bf16.msra.mxu3 %v8434_v63  ;;  %v1268_v63 = vunpack.c.l.b16 %v30_v57 }
  0x9a   :  { %5134 = vmatpush.bf16.msra.mxu0 %v8409_v0  ;;  %v1270_v0 = vunpack.c.l.b16 %v31_v58 }
  0x9b   :  { %5147 = vmatpush.bf16.msra.mxu1 %v8417_v1  ;;  %v8456_v1 = vld [vmem:[%s10801_s1 + $0x580] sm:$0xff]  ;;  %v1340_v9 = vpack.c.b16 %v1268_v63, %v1268_v63 }
  0x9c   :  { %5160 = vmatpush.bf16.msra.mxu2 %v8425_v2  ;;  %v8464_v2 = vld [vmem:[%s10801_s1 + $0x5c0] sm:$0xff] }
  0x9d   :  { %5173 = vmatpush.bf16.msra.mxu3 %v8433_v3  ;;  %v1269_v3 = vunpack.c.h.b16 %v30_v57 }
  0x9e   :  { %5135 = vmatpush.bf16.msra.mxu0 %v8408_v6  ;;  %v4929_v31 = vpop.f32.mrf.mxu0  ;;  %v8487_v6 = vld [vmem:[%s10801_s1 + $0x678] sm:$0xff] }
  0x9f   :  { %5148 = vmatpush.bf16.msra.mxu1 %v8416_v7  ;;  %v4930_v34 = vadd.f32 %v8864_v28, %v4929_v31  ;;  %v4942_v35 = vpop.f32.mrf.mxu1  ;;  %v8495_v7 = vld [vmem:[%s10801_s1 + $0x6b8] sm:$0xff] }
  0xa0   :  { %5161 = vmatpush.bf16.msra.mxu2 %v8424_v10  ;;  %v1342_v10 = vpack.c.b16 %v1270_v0, %v1270_v0  ;;  %v8491_v31 = vld [vmem:[%s10801_s1 + $0x698] sm:$0xff] }
  0xa1   :  { %5174 = vmatpush.bf16.msra.mxu3 %v8432_v11  ;;  %5136 = vmatmul.bf16.vlgmr.msra.gmra.mxu0 %v1336_v18  ;;  %v4943_v38 = vadd.f32 %v4942_v35, %v4930_v34  ;;  %v1341_v11 = vpack.c.b16 %v1269_v3, %v1269_v3  ;;  %v8485_v18 = vld [vmem:[%s10801_s1 + $0x668] sm:$0xff]  ;;  %v8510_v3 = vld [vmem:[%s10801_s1 + $0x730] sm:$0xff] }
  0xa2   :  { %5180 = vmatpush.bf16.msrb.mxu0 %v8447_v14  ;;  %5149 = vmatmul.bf16.vlgmr.msra.gmra.mxu1 %v1337_v20  ;;  %v8486_v14 = vld [vmem:[%s10801_s1 + $0x670] sm:$0xff]  ;;  %v8501_v20 = vld [vmem:[%s10801_s1 + $0x6e8] sm:$0xff] }
  0xa3   :  { %5193 = vmatpush.bf16.msrb.mxu1 %v8455_v15  ;;  %5162 = vmatmul.bf16.vlgmr.msra.gmra.mxu2 %v1338_v19  ;;  %v8494_v15 = vld [vmem:[%s10801_s1 + $0x6b0] sm:$0xff]  ;;  %v8493_v19 = vld [vmem:[%s10801_s1 + $0x6a8] sm:$0xff] }
  0xa4   :  { %5206 = vmatpush.bf16.msrb.mxu2 %v8463_v16  ;;  %5175 = vmatmul.bf16.vlgmr.msra.gmra.mxu3 %v1339_v21  ;;  %v8502_v16 = vld [vmem:[%s10801_s1 + $0x6f0] sm:$0xff] }
  0xa5   :  { %5219 = vmatpush.bf16.msrb.mxu3 %v8471_v17  ;;  %v8477_v17 = vld [vmem:[%s10801_s1 + $0x628] sm:$0xff] }
  0xa6   :  { %5181 = vmatpush.bf16.msrb.mxu0 %v8446_v22  ;;  %v4955_v43 = vpop.f32.mrf.mxu2  ;;  %v4931_v46 = vpop.f32.mrf.mxu0  ;;  %v8476_v22 = vld [vmem:[%s10801_s1 + $0x620] sm:$0xff] }
  0xa7   :  { %5194 = vmatpush.bf16.msrb.mxu1 %v8454_v23  ;;  %v4956_v44 = vadd.f32 %v4955_v43, %v4943_v38  ;;  %v4968_v45 = vpop.f32.mrf.mxu3  ;;  %v4944_v50 = vpop.f32.mrf.mxu1  ;;  %v8484_v23 = vld [vmem:[%s10801_s1 + $0x660] sm:$0xff]  ;;  %v8482_v38 = vld [vmem:[%s10801_s1 + $0x650] sm:$0xff]  ;;  %v8473_v43 = vld [vmem:[%s10801_s1 + $0x608] sm:$0xff] }
  0xa8   :  { %5207 = vmatpush.bf16.msrb.mxu2 %v8462_v24  ;;  %v8497_v46 = vld [vmem:[%s10801_s1 + $0x6c8] sm:$0xff] }
  0xa9   :  { %5220 = vmatpush.bf16.msrb.mxu3 %v8470_v25  ;;  %v9475_v49 = vadd.f32 %v4968_v45, %v4956_v44  ;;  %v8481_v44 = vld [vmem:[%s10801_s1 + $0x648] sm:$0xff] }
  0xaa   :  { %5182 = vmatpush.bf16.msrb.mxu0 %v8445_v26  ;;  %v8492_v26 = vld [vmem:[%s10801_s1 + $0x6a0] sm:$0xff]  ;;  %v8489_v45 = vld [vmem:[%s10801_s1 + $0x688] sm:$0xff] }
  0xab   :  { %5195 = vmatpush.bf16.msrb.mxu1 %v8453_v27  ;;  %v8500_v27 = vld [vmem:[%s10801_s1 + $0x6e0] sm:$0xff] }
  0xac   :  { %5208 = vmatpush.bf16.msrb.mxu2 %v8461_v29  ;;  %v8475_v29 = vld [vmem:[%s10801_s1 + $0x618] sm:$0xff] }
  0xad   :  { %5221 = vmatpush.bf16.msrb.mxu3 %v8469_v30  ;;  %v8483_v30 = vld [vmem:[%s10801_s1 + $0x658] sm:$0xff] }
  0xae   :  { %5183 = vmatpush.bf16.msrb.mxu0 %v8444_v32  ;;  %v4957_v59 = vpop.f32.mrf.mxu2  ;;  %v8499_v32 = vld [vmem:[%s10801_s1 + $0x6d8] sm:$0xff] }
  0xaf   :  { %5196 = vmatpush.bf16.msrb.mxu1 %v8452_v33  ;;  %v4970_v60 = vpop.f32.mrf.mxu3  ;;  %v8511_v59 = vld [vmem:[%s10801_s1 + $0x738] sm:$0xff] }
  0xb0   :  { %5209 = vmatpush.bf16.msrb.mxu2 %v8460_v36  ;;  %v8519_v60 = vld [vmem:[%s10801_s1 + $0x778] sm:$0xff] }
  0xb1   :  { %5222 = vmatpush.bf16.msrb.mxu3 %v8468_v37  ;;  %v8474_v37 = vld [vmem:[%s10801_s1 + $0x610] sm:$0xff] }
  0xb2   :  { %5184 = vmatpush.bf16.msrb.mxu0 %v8443_v39 }
  0xb3   :  { %5197 = vmatpush.bf16.msrb.mxu1 %v8451_v40 }
  0xb4   :  { %5210 = vmatpush.bf16.msrb.mxu2 %v8459_v41  ;;  %v8490_v41 = vld [vmem:[%s10801_s1 + $0x690] sm:$0xff] }
  0xb5   :  { %5223 = vmatpush.bf16.msrb.mxu3 %v8467_v42  ;;  %v8498_v42 = vld [vmem:[%s10801_s1 + $0x6d0] sm:$0xff] }
  0xb6   :  { %5185 = vmatpush.bf16.msrb.mxu0 %v8442_v47  ;;  %v32_v47 = vld [vmem:[%s10802_s0 + $0x60] sm:$0xff] }
  0xb7   :  { %5198 = vmatpush.bf16.msrb.mxu1 %v8450_v48  ;;  %v33_v48 = vld [vmem:[%s10802_s0 + $0x68] sm:$0xff]  ;;  %v1273_v57 = vunpack.c.h.b16 %v32_v47 }
  0xb8   :  { %5211 = vmatpush.bf16.msrb.mxu2 %v8458_v51  ;;  %v8472_v51 = vld [vmem:[%s10801_s1 + $0x600] sm:$0xff]  ;;  %v1275_v58 = vunpack.c.h.b16 %v33_v48 }
  0xb9   :  { %5224 = vmatpush.bf16.msrb.mxu3 %v8466_v52  ;;  %v8480_v52 = vld [vmem:[%s10801_s1 + $0x640] sm:$0xff] }
  0xba   :  { %5186 = vmatpush.bf16.msrb.mxu0 %v8441_v53  ;;  %v1272_v53 = vunpack.c.l.b16 %v32_v47 }
  0xbb   :  { %5199 = vmatpush.bf16.msrb.mxu1 %v8449_v54  ;;  %v1274_v54 = vunpack.c.l.b16 %v33_v48 }
  0xbc   :  { %5212 = vmatpush.bf16.msrb.mxu2 %v8457_v55  ;;  %v8488_v55 = vld [vmem:[%s10801_s1 + $0x680] sm:$0xff]  ;;  %v1344_v63 = vpack.c.b16 %v1272_v53, %v1272_v53 }
  0xbd   :  { %5225 = vmatpush.bf16.msrb.mxu3 %v8465_v56  ;;  %v8496_v56 = vld [vmem:[%s10801_s1 + $0x6c0] sm:$0xff]  ;;  %v1346_v0 = vpack.c.b16 %v1274_v54, %v1274_v54 }
  0xbe   :  { %5187 = vmatpush.bf16.msrb.mxu0 %v8440_v61  ;;  %v4981_v21 = vpop.f32.mrf.mxu0  ;;  %v8527_v61 = vld [vmem:[%s10801_s1 + $0x7b8] sm:$0xff] }
  0xbf   :  { %5200 = vmatpush.bf16.msrb.mxu1 %v8448_v62  ;;  %v4982_v24 = vadd.f32 %v4981_v21, %v9475_v49  ;;  %v4994_v25 = vpop.f32.mrf.mxu1  ;;  %v8535_v62 = vld [vmem:[%s10801_s1 + $0x7f8] sm:$0xff] }
  0xc0   :  { %5213 = vmatpush.bf16.msrb.mxu2 %v8456_v1  ;;  %v1345_v1 = vpack.c.b16 %v1273_v57, %v1273_v57  ;;  %v8523_v21 = vld [vmem:[%s10801_s1 + $0x798] sm:$0xff]  ;;  %v8542_v57 = vld [vmem:[%s10801_s1 + $0x830] sm:$0xff] }
  0xc1   :  { %5226 = vmatpush.bf16.msrb.mxu3 %v8464_v2  ;;  %5188 = vmatmul.bf16.vlgmr.msrb.gmra.mxu0 %v1340_v9  ;;  %v4995_v28 = vadd.f32 %v4994_v25, %v4982_v24  ;;  %v1347_v2 = vpack.c.b16 %v1275_v58, %v1275_v58  ;;  %v8525_v9 = vld [vmem:[%s10801_s1 + $0x7a8] sm:$0xff]  ;;  %v8550_v58 = vld [vmem:[%s10801_s1 + $0x870] sm:$0xff] }
  0xc2   :  { %5232 = vmatpush.bf16.msra.mxu0 %v8479_v5  ;;  %5201 = vmatmul.bf16.vlgmr.msrb.gmra.mxu1 %v1341_v11  ;;  %v8526_v5 = vld [vmem:[%s10801_s1 + $0x7b0] sm:$0xff] }
  0xc3   :  { %5245 = vmatpush.bf16.msra.mxu1 %v8487_v6  ;;  %5214 = vmatmul.bf16.vlgmr.msrb.gmra.mxu2 %v1342_v10  ;;  %v8534_v6 = vld [vmem:[%s10801_s1 + $0x7f0] sm:$0xff]  ;;  %v8533_v10 = vld [vmem:[%s10801_s1 + $0x7e8] sm:$0xff] }
  0xc4   :  { %5258 = vmatpush.bf16.msra.mxu2 %v8495_v7  ;;  %5227 = vmatmul.bf16.vlgmr.msrb.gmra.mxu3 %v1343_v12  ;;  %v8509_v7 = vld [vmem:[%s10801_s1 + $0x728] sm:$0xff] }
  0xc5   :  { %5271 = vmatpush.bf16.msra.mxu3 %v8503_v8  ;;  %v8517_v8 = vld [vmem:[%s10801_s1 + $0x768] sm:$0xff] }
  0xc6   :  { %5233 = vmatpush.bf16.msra.mxu0 %v8478_v13  ;;  %v5007_v33 = vpop.f32.mrf.mxu2  ;;  %v4983_v36 = vpop.f32.mrf.mxu0  ;;  %v8508_v13 = vld [vmem:[%s10801_s1 + $0x720] sm:$0xff] }
  0xc7   :  { %5246 = vmatpush.bf16.msra.mxu1 %v8486_v14  ;;  %v5008_v34 = vadd.f32 %v5007_v33, %v4995_v28  ;;  %v5020_v35 = vpop.f32.mrf.mxu3  ;;  %v4996_v40 = vpop.f32.mrf.mxu1  ;;  %v8516_v14 = vld [vmem:[%s10801_s1 + $0x760] sm:$0xff]  ;;  %v8506_v28 = vld [vmem:[%s10801_s1 + $0x710] sm:$0xff]  ;;  %v8505_v33 = vld [vmem:[%s10801_s1 + $0x708] sm:$0xff] }
  0xc8   :  { %5259 = vmatpush.bf16.msra.mxu2 %v8494_v15  ;;  %v8529_v36 = vld [vmem:[%s10801_s1 + $0x7c8] sm:$0xff] }
  0xc9   :  { %5272 = vmatpush.bf16.msra.mxu3 %v8502_v16  ;;  %v9580_v39 = vadd.f32 %v5020_v35, %v5008_v34  ;;  %v8524_v16 = vld [vmem:[%s10801_s1 + $0x7a0] sm:$0xff]  ;;  %v8513_v34 = vld [vmem:[%s10801_s1 + $0x748] sm:$0xff] }
  0xca   :  { %5234 = vmatpush.bf16.msra.mxu0 %v8477_v17  ;;  %v8532_v17 = vld [vmem:[%s10801_s1 + $0x7e0] sm:$0xff]  ;;  %v8521_v35 = vld [vmem:[%s10801_s1 + $0x788] sm:$0xff] }
  0xcb   :  { %5247 = vmatpush.bf16.msra.mxu1 %v8485_v18 }
  0xcc   :  { %5260 = vmatpush.bf16.msra.mxu2 %v8493_v19  ;;  %v8507_v19 = vld [vmem:[%s10801_s1 + $0x718] sm:$0xff] }
  0xcd   :  { %5273 = vmatpush.bf16.msra.mxu3 %v8501_v20  ;;  %v8515_v20 = vld [vmem:[%s10801_s1 + $0x758] sm:$0xff] }
  0xce   :  { %5235 = vmatpush.bf16.msra.mxu0 %v8476_v22  ;;  %v5009_v49 = vpop.f32.mrf.mxu2  ;;  %v8531_v22 = vld [vmem:[%s10801_s1 + $0x7d8] sm:$0xff] }
  0xcf   :  { %5248 = vmatpush.bf16.msra.mxu1 %v8484_v23  ;;  %v5022_v50 = vpop.f32.mrf.mxu3  ;;  %v8543_v49 = vld [vmem:[%s10801_s1 + $0x838] sm:$0xff] }
  0xd0   :  { %5261 = vmatpush.bf16.msra.mxu2 %v8492_v26  ;;  %v8551_v50 = vld [vmem:[%s10801_s1 + $0x878] sm:$0xff] }
  0xd1   :  { %5274 = vmatpush.bf16.msra.mxu3 %v8500_v27 }
  0xd2   :  { %5236 = vmatpush.bf16.msra.mxu0 %v8475_v29  ;;  %v8514_v29 = vld [vmem:[%s10801_s1 + $0x750] sm:$0xff] }
  0xd3   :  { %5249 = vmatpush.bf16.msra.mxu1 %v8483_v30 }
  0xd4   :  { %5262 = vmatpush.bf16.msra.mxu2 %v8491_v31  ;;  %v8522_v31 = vld [vmem:[%s10801_s1 + $0x790] sm:$0xff] }
  0xd5   :  { %5275 = vmatpush.bf16.msra.mxu3 %v8499_v32  ;;  %v8530_v32 = vld [vmem:[%s10801_s1 + $0x7d0] sm:$0xff] }
  0xd6   :  { %5237 = vmatpush.bf16.msra.mxu0 %v8474_v37  ;;  %v34_v37 = vld [vmem:[%s10802_s0 + $0x70] sm:$0xff] }
  0xd7   :  { %5250 = vmatpush.bf16.msra.mxu1 %v8482_v38  ;;  %v35_v38 = vld [vmem:[%s10802_s0 + $0x78] sm:$0xff]  ;;  %v1277_v47 = vunpack.c.h.b16 %v34_v37 }
  0xd8   :  { %5263 = vmatpush.bf16.msra.mxu2 %v8490_v41  ;;  %v8504_v41 = vld [vmem:[%s10801_s1 + $0x700] sm:$0xff]  ;;  %v1279_v48 = vunpack.c.h.b16 %v35_v38 }
  0xd9   :  { %5276 = vmatpush.bf16.msra.mxu3 %v8498_v42  ;;  %v8512_v42 = vld [vmem:[%s10801_s1 + $0x740] sm:$0xff] }
  0xda   :  { %5238 = vmatpush.bf16.msra.mxu0 %v8473_v43  ;;  %v1276_v43 = vunpack.c.l.b16 %v34_v37 }
  0xdb   :  { %5251 = vmatpush.bf16.msra.mxu1 %v8481_v44  ;;  %v1278_v44 = vunpack.c.l.b16 %v35_v38 }
  0xdc   :  { %5264 = vmatpush.bf16.msra.mxu2 %v8489_v45  ;;  %v8520_v45 = vld [vmem:[%s10801_s1 + $0x780] sm:$0xff]  ;;  %v1348_v53 = vpack.c.b16 %v1276_v43, %v1276_v43 }
  0xdd   :  { %5277 = vmatpush.bf16.msra.mxu3 %v8497_v46  ;;  %v8528_v46 = vld [vmem:[%s10801_s1 + $0x7c0] sm:$0xff]  ;;  %v1350_v54 = vpack.c.b16 %v1278_v44, %v1278_v44 }
  0xde   :  { %5239 = vmatpush.bf16.msra.mxu0 %v8472_v51  ;;  %v5033_v11 = vpop.f32.mrf.mxu0  ;;  %v8559_v51 = vld [vmem:[%s10801_s1 + $0x8b8] sm:$0xff] }
  0xdf   :  { %5252 = vmatpush.bf16.msra.mxu1 %v8480_v52  ;;  %v5034_v12 = vadd.f32 %v5033_v11, %v9580_v39  ;;  %v5046_v15 = vpop.f32.mrf.mxu1  ;;  %v8567_v52 = vld [vmem:[%s10801_s1 + $0x8f8] sm:$0xff] }
  0xe0   :  { %5265 = vmatpush.bf16.msra.mxu2 %v8488_v55  ;;  %v1349_v55 = vpack.c.b16 %v1277_v47, %v1277_v47  ;;  %v8555_v11 = vld [vmem:[%s10801_s1 + $0x898] sm:$0xff]  ;;  %v8574_v47 = vld [vmem:[%s10801_s1 + $0x930] sm:$0xff] }
  0xe1   :  { %5278 = vmatpush.bf16.msra.mxu3 %v8496_v56  ;;  %5240 = vmatmul.bf16.vlgmr.msra.gmra.mxu0 %v1344_v63  ;;  %v5047_v18 = vadd.f32 %v5046_v15, %v5034_v12  ;;  %v1351_v56 = vpack.c.b16 %v1279_v48, %v1279_v48  ;;  %v8557_v63 = vld [vmem:[%s10801_s1 + $0x8a8] sm:$0xff]  ;;  %v8563_v12 = vld [vmem:[%s10801_s1 + $0x8d8] sm:$0xff]  ;;  %v8582_v48 = vld [vmem:[%s10801_s1 + $0x970] sm:$0xff] }
  0xe2   :  { %5284 = vmatpush.bf16.msrb.mxu0 %v8511_v59  ;;  %5253 = vmatmul.bf16.vlgmr.msra.gmra.mxu1 %v1345_v1  ;;  %v8558_v59 = vld [vmem:[%s10801_s1 + $0x8b0] sm:$0xff] }
  0xe3   :  { %5297 = vmatpush.bf16.msrb.mxu1 %v8519_v60  ;;  %5266 = vmatmul.bf16.vlgmr.msra.gmra.mxu2 %v1346_v0  ;;  %v8566_v60 = vld [vmem:[%s10801_s1 + $0x8f0] sm:$0xff]  ;;  %v8565_v0 = vld [vmem:[%s10801_s1 + $0x8e8] sm:$0xff] }
  0xe4   :  { %5310 = vmatpush.bf16.msrb.mxu2 %v8527_v61  ;;  %5279 = vmatmul.bf16.vlgmr.msra.gmra.mxu3 %v1347_v2  ;;  %v8541_v61 = vld [vmem:[%s10801_s1 + $0x828] sm:$0xff] }
  0xe5   :  { %5323 = vmatpush.bf16.msrb.mxu3 %v8535_v62  ;;  %v8549_v62 = vld [vmem:[%s10801_s1 + $0x868] sm:$0xff] }
  0xe6   :  { %5285 = vmatpush.bf16.msrb.mxu0 %v8510_v3  ;;  %v5059_v23 = vpop.f32.mrf.mxu2  ;;  %v5035_v26 = vpop.f32.mrf.mxu0  ;;  %v8540_v3 = vld [vmem:[%s10801_s1 + $0x820] sm:$0xff] }
  0xe7   :  { %5298 = vmatpush.bf16.msrb.mxu1 %v8518_v4  ;;  %v5060_v24 = vadd.f32 %v5059_v23, %v5047_v18  ;;  %v5072_v25 = vpop.f32.mrf.mxu3  ;;  %v5048_v30 = vpop.f32.mrf.mxu1  ;;  %v8548_v4 = vld [vmem:[%s10801_s1 + $0x860] sm:$0xff]  ;;  %v8538_v18 = vld [vmem:[%s10801_s1 + $0x810] sm:$0xff]  ;;  %v8537_v23 = vld [vmem:[%s10801_s1 + $0x808] sm:$0xff] }
  0xe8   :  { %5311 = vmatpush.bf16.msrb.mxu2 %v8526_v5  ;;  %v8561_v26 = vld [vmem:[%s10801_s1 + $0x8c8] sm:$0xff] }
  0xe9   :  { %5324 = vmatpush.bf16.msrb.mxu3 %v8534_v6  ;;  %v9679_v27 = vadd.f32 %v5072_v25, %v5060_v24  ;;  %v8556_v6 = vld [vmem:[%s10801_s1 + $0x8a0] sm:$0xff]  ;;  %v8545_v24 = vld [vmem:[%s10801_s1 + $0x848] sm:$0xff] }
  0xea   :  { %5286 = vmatpush.bf16.msrb.mxu0 %v8509_v7  ;;  %v8564_v7 = vld [vmem:[%s10801_s1 + $0x8e0] sm:$0xff]  ;;  %v8553_v25 = vld [vmem:[%s10801_s1 + $0x888] sm:$0xff] }
  0xeb   :  { %5299 = vmatpush.bf16.msrb.mxu1 %v8517_v8 }
  0xec   :  { %5312 = vmatpush.bf16.msrb.mxu2 %v8525_v9  ;;  %v8539_v9 = vld [vmem:[%s10801_s1 + $0x818] sm:$0xff] }
  0xed   :  { %5325 = vmatpush.bf16.msrb.mxu3 %v8533_v10  ;;  %v8547_v10 = vld [vmem:[%s10801_s1 + $0x858] sm:$0xff] }
  0xee   :  { %5287 = vmatpush.bf16.msrb.mxu0 %v8508_v13  ;;  %v5061_v39 = vpop.f32.mrf.mxu2 }
  0xef   :  { %5300 = vmatpush.bf16.msrb.mxu1 %v8516_v14  ;;  %v5074_v40 = vpop.f32.mrf.mxu3  ;;  %v8575_v39 = vld [vmem:[%s10801_s1 + $0x938] sm:$0xff] }
  0xf0   :  { %5313 = vmatpush.bf16.msrb.mxu2 %v8524_v16  ;;  %v8583_v40 = vld [vmem:[%s10801_s1 + $0x978] sm:$0xff] }
  0xf1   :  { %5326 = vmatpush.bf16.msrb.mxu3 %v8532_v17 }
  0xf2   :  { %5288 = vmatpush.bf16.msrb.mxu0 %v8507_v19  ;;  %v8546_v19 = vld [vmem:[%s10801_s1 + $0x850] sm:$0xff] }
  0xf3   :  { %5301 = vmatpush.bf16.msrb.mxu1 %v8515_v20 }
  0xf4   :  { %5314 = vmatpush.bf16.msrb.mxu2 %v8523_v21  ;;  %v8554_v21 = vld [vmem:[%s10801_s1 + $0x890] sm:$0xff] }
  0xf5   :  { %5327 = vmatpush.bf16.msrb.mxu3 %v8531_v22  ;;  %v8562_v22 = vld [vmem:[%s10801_s1 + $0x8d0] sm:$0xff] }
  0xf6   :  { %5289 = vmatpush.bf16.msrb.mxu0 %v8506_v28  ;;  %v37_v28 = vld [vmem:[%s10802_s0 + $0x88] sm:$0xff] }
  0xf7   :  { %5302 = vmatpush.bf16.msrb.mxu1 %v8514_v29  ;;  %v1283_v38 = vunpack.c.h.b16 %v37_v28 }
  0xf8   :  { %5315 = vmatpush.bf16.msrb.mxu2 %v8522_v31  ;;  %v8536_v31 = vld [vmem:[%s10801_s1 + $0x800] sm:$0xff] }
  0xf9   :  { %5328 = vmatpush.bf16.msrb.mxu3 %v8530_v32  ;;  %v8544_v32 = vld [vmem:[%s10801_s1 + $0x840] sm:$0xff] }
  0xfa   :  { %5290 = vmatpush.bf16.msrb.mxu0 %v8505_v33 }
  0xfb   :  { %5303 = vmatpush.bf16.msrb.mxu1 %v8513_v34  ;;  %v1282_v34 = vunpack.c.l.b16 %v37_v28 }
  0xfc   :  { %5316 = vmatpush.bf16.msrb.mxu2 %v8521_v35  ;;  %v8552_v35 = vld [vmem:[%s10801_s1 + $0x880] sm:$0xff] }
  0xfd   :  { %5329 = vmatpush.bf16.msrb.mxu3 %v8529_v36  ;;  %v8560_v36 = vld [vmem:[%s10801_s1 + $0x8c0] sm:$0xff]  ;;  %v1354_v44 = vpack.c.b16 %v1282_v34, %v1282_v34 }
  0xfe   :  { %5291 = vmatpush.bf16.msrb.mxu0 %v8504_v41  ;;  %v5085_v1 = vpop.f32.mrf.mxu0  ;;  %v8591_v41 = vld [vmem:[%s10801_s1 + $0x9b8] sm:$0xff] }
  0xff   :  { %5304 = vmatpush.bf16.msrb.mxu1 %v8512_v42  ;;  %v5086_v2 = vadd.f32 %v5085_v1, %v9679_v27  ;;  %v5098_v5 = vpop.f32.mrf.mxu1  ;;  %v36_v27 = vld [vmem:[%s10802_s0 + $0x80] sm:$0xff]  ;;  %v8599_v42 = vld [vmem:[%s10801_s1 + $0x9f8] sm:$0xff] }
 0x100   :  { %5317 = vmatpush.bf16.msrb.mxu2 %v8520_v45  ;;  %v1280_v33 = vunpack.c.l.b16 %v36_v27  ;;  %v1281_v37 = vunpack.c.h.b16 %v36_v27  ;;  %v8587_v1 = vld [vmem:[%s10801_s1 + $0x998] sm:$0xff] }
 0x101   :  { %5330 = vmatpush.bf16.msrb.mxu3 %v8528_v46  ;;  %5292 = vmatmul.bf16.vlgmr.msrb.gmra.mxu0 %v1348_v53  ;;  %v5099_v8 = vadd.f32 %v5098_v5, %v5086_v2  ;;  %v1355_v46 = vpack.c.b16 %v1283_v38, %v1283_v38  ;;  %v8589_v53 = vld [vmem:[%s10801_s1 + $0x9a8] sm:$0xff]  ;;  %v8595_v2 = vld [vmem:[%s10801_s1 + $0x9d8] sm:$0xff]  ;;  %v8614_v38 = vld [vmem:[%s10801_s1 + $0xa70] sm:$0xff] }
 0x102   :  { %5336 = vmatpush.bf16.msra.mxu0 %v8543_v49  ;;  %5305 = vmatmul.bf16.vlgmr.msrb.gmra.mxu1 %v1349_v55  ;;  %v1352_v43 = vpack.c.b16 %v1280_v33, %v1280_v33  ;;  %v1353_v45 = vpack.c.b16 %v1281_v37, %v1281_v37  ;;  %v8590_v49 = vld [vmem:[%s10801_s1 + $0x9b0] sm:$0xff] }
 0x103   :  { %5349 = vmatpush.bf16.msra.mxu1 %v8551_v50  ;;  %5318 = vmatmul.bf16.vlgmr.msrb.gmra.mxu2 %v1350_v54  ;;  %v8598_v50 = vld [vmem:[%s10801_s1 + $0x9f0] sm:$0xff]  ;;  %v8597_v54 = vld [vmem:[%s10801_s1 + $0x9e8] sm:$0xff] }
 0x104   :  { %5362 = vmatpush.bf16.msra.mxu2 %v8559_v51  ;;  %5331 = vmatmul.bf16.vlgmr.msrb.gmra.mxu3 %v1351_v56  ;;  %v8573_v51 = vld [vmem:[%s10801_s1 + $0x928] sm:$0xff]  ;;  %v8606_v37 = vld [vmem:[%s10801_s1 + $0xa30] sm:$0xff] }
 0x105   :  { %5375 = vmatpush.bf16.msra.mxu3 %v8567_v52  ;;  %v8581_v52 = vld [vmem:[%s10801_s1 + $0x968] sm:$0xff] }
 0x106   :  { %5337 = vmatpush.bf16.msra.mxu0 %v8542_v57  ;;  %v5111_v13 = vpop.f32.mrf.mxu2  ;;  %v5087_v16 = vpop.f32.mrf.mxu0  ;;  %v8572_v57 = vld [vmem:[%s10801_s1 + $0x920] sm:$0xff] }
 0x107   :  { %5350 = vmatpush.bf16.msra.mxu1 %v8550_v58  ;;  %v5112_v14 = vadd.f32 %v5111_v13, %v5099_v8  ;;  %v5124_v15 = vpop.f32.mrf.mxu3  ;;  %v5100_v20 = vpop.f32.mrf.mxu1  ;;  %v8580_v58 = vld [vmem:[%s10801_s1 + $0x960] sm:$0xff]  ;;  %v8570_v8 = vld [vmem:[%s10801_s1 + $0x910] sm:$0xff]  ;;  %v8569_v13 = vld [vmem:[%s10801_s1 + $0x908] sm:$0xff] }
 0x108   :  { %5363 = vmatpush.bf16.msra.mxu2 %v8558_v59  ;;  %v8593_v16 = vld [vmem:[%s10801_s1 + $0x9c8] sm:$0xff] }
 0x109   :  { %5376 = vmatpush.bf16.msra.mxu3 %v8566_v60  ;;  %v9784_v17 = vadd.f32 %v5124_v15, %v5112_v14  ;;  %v8588_v60 = vld [vmem:[%s10801_s1 + $0x9a0] sm:$0xff]  ;;  %v8577_v14 = vld [vmem:[%s10801_s1 + $0x948] sm:$0xff] }
 0x10a   :  { %5338 = vmatpush.bf16.msra.mxu0 %v8541_v61  ;;  %v8596_v61 = vld [vmem:[%s10801_s1 + $0x9e0] sm:$0xff]  ;;  %v8585_v15 = vld [vmem:[%s10801_s1 + $0x988] sm:$0xff] }
 0x10b   :  { %5351 = vmatpush.bf16.msra.mxu1 %v8549_v62 }
 0x10c   :  { %5364 = vmatpush.bf16.msra.mxu2 %v8557_v63  ;;  %v8571_v63 = vld [vmem:[%s10801_s1 + $0x918] sm:$0xff] }
 0x10d   :  { %5377 = vmatpush.bf16.msra.mxu3 %v8565_v0  ;;  %v8579_v0 = vld [vmem:[%s10801_s1 + $0x958] sm:$0xff] }
 0x10e   :  { %5339 = vmatpush.bf16.msra.mxu0 %v8540_v3  ;;  %v5113_v29 = vpop.f32.mrf.mxu2 }
 0x10f   :  { %5352 = vmatpush.bf16.msra.mxu1 %v8548_v4  ;;  %v5126_v30 = vpop.f32.mrf.mxu3  ;;  %v8607_v29 = vld [vmem:[%s10801_s1 + $0xa38] sm:$0xff] }
 0x110   :  { %5365 = vmatpush.bf16.msra.mxu2 %v8556_v6  ;;  %v8615_v30 = vld [vmem:[%s10801_s1 + $0xa78] sm:$0xff] }
 0x111   :  { %5378 = vmatpush.bf16.msra.mxu3 %v8564_v7 }
 0x112   :  { %5340 = vmatpush.bf16.msra.mxu0 %v8539_v9  ;;  %v8578_v9 = vld [vmem:[%s10801_s1 + $0x950] sm:$0xff] }
 0x113   :  { %5353 = vmatpush.bf16.msra.mxu1 %v8547_v10 }
 0x114   :  { %5366 = vmatpush.bf16.msra.mxu2 %v8555_v11  ;;  %v8586_v11 = vld [vmem:[%s10801_s1 + $0x990] sm:$0xff] }
 0x115   :  { %5379 = vmatpush.bf16.msra.mxu3 %v8563_v12  ;;  %v8594_v12 = vld [vmem:[%s10801_s1 + $0x9d0] sm:$0xff] }
 0x116   :  { %5341 = vmatpush.bf16.msra.mxu0 %v8538_v18  ;;  %v39_v18 = vld [vmem:[%s10802_s0 + $0x98] sm:$0xff] }
 0x117   :  { %5354 = vmatpush.bf16.msra.mxu1 %v8546_v19  ;;  %v1287_v28 = vunpack.c.h.b16 %v39_v18 }
 0x118   :  { %5367 = vmatpush.bf16.msra.mxu2 %v8554_v21  ;;  %v8568_v21 = vld [vmem:[%s10801_s1 + $0x900] sm:$0xff] }
 0x119   :  { %5380 = vmatpush.bf16.msra.mxu3 %v8562_v22  ;;  %v8576_v22 = vld [vmem:[%s10801_s1 + $0x940] sm:$0xff] }
 0x11a   :  { %5342 = vmatpush.bf16.msra.mxu0 %v8537_v23 }
 0x11b   :  { %5355 = vmatpush.bf16.msra.mxu1 %v8545_v24  ;;  %v1286_v24 = vunpack.c.l.b16 %v39_v18 }
 0x11c   :  { %5368 = vmatpush.bf16.msra.mxu2 %v8553_v25  ;;  %v8584_v25 = vld [vmem:[%s10801_s1 + $0x980] sm:$0xff] }
 0x11d   :  { %5381 = vmatpush.bf16.msra.mxu3 %v8561_v26  ;;  %v8592_v26 = vld [vmem:[%s10801_s1 + $0x9c0] sm:$0xff]  ;;  %v1358_v34 = vpack.c.b16 %v1286_v24, %v1286_v24 }
 0x11e   :  { %5343 = vmatpush.bf16.msra.mxu0 %v8536_v31  ;;  %v5137_v55 = vpop.f32.mrf.mxu0  ;;  %v8623_v31 = vld [vmem:[%s10801_s1 + $0xab8] sm:$0xff] }
 0x11f   :  { %5356 = vmatpush.bf16.msra.mxu1 %v8544_v32  ;;  %v5138_v56 = vadd.f32 %v5137_v55, %v9784_v17  ;;  %v5150_v59 = vpop.f32.mrf.mxu1  ;;  %v38_v17 = vld [vmem:[%s10802_s0 + $0x90] sm:$0xff]  ;;  %v8631_v32 = vld [vmem:[%s10801_s1 + $0xaf8] sm:$0xff] }
 0x120   :  { %5369 = vmatpush.bf16.msra.mxu2 %v8552_v35  ;;  %v1284_v23 = vunpack.c.l.b16 %v38_v17  ;;  %v1285_v27 = vunpack.c.h.b16 %v38_v17  ;;  %v8619_v55 = vld [vmem:[%s10801_s1 + $0xa98] sm:$0xff] }
 0x121   :  { %5382 = vmatpush.bf16.msra.mxu3 %v8560_v36  ;;  %5344 = vmatmul.bf16.vlgmr.msra.gmra.mxu0 %v1352_v43  ;;  %v5151_v62 = vadd.f32 %v5150_v59, %v5138_v56  ;;  %v1359_v36 = vpack.c.b16 %v1287_v28, %v1287_v28  ;;  %v8621_v43 = vld [vmem:[%s10801_s1 + $0xaa8] sm:$0xff]  ;;  %v8627_v56 = vld [vmem:[%s10801_s1 + $0xad8] sm:$0xff]  ;;  %v8646_v28 = vld [vmem:[%s10801_s1 + $0xb70] sm:$0xff] }
 0x122   :  { %5388 = vmatpush.bf16.msrb.mxu0 %v8575_v39  ;;  %5357 = vmatmul.bf16.vlgmr.msra.gmra.mxu1 %v1353_v45  ;;  %v1356_v33 = vpack.c.b16 %v1284_v23, %v1284_v23  ;;  %v1357_v35 = vpack.c.b16 %v1285_v27, %v1285_v27  ;;  %v8622_v39 = vld [vmem:[%s10801_s1 + $0xab0] sm:$0xff] }
 0x123   :  { %5401 = vmatpush.bf16.msrb.mxu1 %v8583_v40  ;;  %5370 = vmatmul.bf16.vlgmr.msra.gmra.mxu2 %v1354_v44  ;;  %v8630_v40 = vld [vmem:[%s10801_s1 + $0xaf0] sm:$0xff]  ;;  %v8629_v44 = vld [vmem:[%s10801_s1 + $0xae8] sm:$0xff] }
 0x124   :  { %5414 = vmatpush.bf16.msrb.mxu2 %v8591_v41  ;;  %5383 = vmatmul.bf16.vlgmr.msra.gmra.mxu3 %v1355_v46  ;;  %v8605_v41 = vld [vmem:[%s10801_s1 + $0xa28] sm:$0xff]  ;;  %v8638_v27 = vld [vmem:[%s10801_s1 + $0xb30] sm:$0xff] }
 0x125   :  { %5427 = vmatpush.bf16.msrb.mxu3 %v8599_v42  ;;  %v8613_v42 = vld [vmem:[%s10801_s1 + $0xa68] sm:$0xff] }
 0x126   :  { %5389 = vmatpush.bf16.msrb.mxu0 %v8574_v47  ;;  %v5163_v3 = vpop.f32.mrf.mxu2  ;;  %v5139_v6 = vpop.f32.mrf.mxu0  ;;  %v8604_v47 = vld [vmem:[%s10801_s1 + $0xa20] sm:$0xff] }
 0x127   :  { %5402 = vmatpush.bf16.msrb.mxu1 %v8582_v48  ;;  %v5164_v4 = vadd.f32 %v5163_v3, %v5151_v62  ;;  %v5176_v5 = vpop.f32.mrf.mxu3  ;;  %v5152_v10 = vpop.f32.mrf.mxu1  ;;  %v8612_v48 = vld [vmem:[%s10801_s1 + $0xa60] sm:$0xff]  ;;  %v8602_v62 = vld [vmem:[%s10801_s1 + $0xa10] sm:$0xff]  ;;  %v8601_v3 = vld [vmem:[%s10801_s1 + $0xa08] sm:$0xff] }
 0x128   :  { %5415 = vmatpush.bf16.msrb.mxu2 %v8590_v49  ;;  %v8625_v6 = vld [vmem:[%s10801_s1 + $0xac8] sm:$0xff] }
 0x129   :  { %5428 = vmatpush.bf16.msrb.mxu3 %v8598_v50  ;;  %v9889_v7 = vadd.f32 %v5176_v5, %v5164_v4  ;;  %v8620_v50 = vld [vmem:[%s10801_s1 + $0xaa0] sm:$0xff]  ;;  %v8609_v4 = vld [vmem:[%s10801_s1 + $0xa48] sm:$0xff] }
 0x12a   :  { %5390 = vmatpush.bf16.msrb.mxu0 %v8573_v51  ;;  %v8628_v51 = vld [vmem:[%s10801_s1 + $0xae0] sm:$0xff]  ;;  %v8617_v5 = vld [vmem:[%s10801_s1 + $0xa88] sm:$0xff] }
 0x12b   :  { %5403 = vmatpush.bf16.msrb.mxu1 %v8581_v52 }
 0x12c   :  { %5416 = vmatpush.bf16.msrb.mxu2 %v8589_v53  ;;  %v8603_v53 = vld [vmem:[%s10801_s1 + $0xa18] sm:$0xff] }
 0x12d   :  { %5429 = vmatpush.bf16.msrb.mxu3 %v8597_v54  ;;  %v8611_v54 = vld [vmem:[%s10801_s1 + $0xa58] sm:$0xff] }
 0x12e   :  { %5391 = vmatpush.bf16.msrb.mxu0 %v8572_v57  ;;  %v5165_v19 = vpop.f32.mrf.mxu2 }
 0x12f   :  { %5404 = vmatpush.bf16.msrb.mxu1 %v8580_v58  ;;  %v5178_v20 = vpop.f32.mrf.mxu3  ;;  %v8639_v19 = vld [vmem:[%s10801_s1 + $0xb38] sm:$0xff] }
 0x130   :  { %5417 = vmatpush.bf16.msrb.mxu2 %v8588_v60  ;;  %v8647_v20 = vld [vmem:[%s10801_s1 + $0xb78] sm:$0xff] }
 0x131   :  { %5430 = vmatpush.bf16.msrb.mxu3 %v8596_v61 }
 0x132   :  { %5392 = vmatpush.bf16.msrb.mxu0 %v8571_v63  ;;  %v8610_v63 = vld [vmem:[%s10801_s1 + $0xa50] sm:$0xff] }
 0x133   :  { %5405 = vmatpush.bf16.msrb.mxu1 %v8579_v0 }
 0x134   :  { %5418 = vmatpush.bf16.msrb.mxu2 %v8587_v1  ;;  %v8618_v1 = vld [vmem:[%s10801_s1 + $0xa90] sm:$0xff] }
 0x135   :  { %5431 = vmatpush.bf16.msrb.mxu3 %v8595_v2  ;;  %v8626_v2 = vld [vmem:[%s10801_s1 + $0xad0] sm:$0xff] }
 0x136   :  { %5393 = vmatpush.bf16.msrb.mxu0 %v8570_v8  ;;  %v41_v8 = vld [vmem:[%s10802_s0 + $0xa8] sm:$0xff] }
 0x137   :  { %5406 = vmatpush.bf16.msrb.mxu1 %v8578_v9  ;;  %v1291_v18 = vunpack.c.h.b16 %v41_v8 }
 0x138   :  { %5419 = vmatpush.bf16.msrb.mxu2 %v8586_v11  ;;  %v8600_v11 = vld [vmem:[%s10801_s1 + $0xa00] sm:$0xff] }
 0x139   :  { %5432 = vmatpush.bf16.msrb.mxu3 %v8594_v12  ;;  %v8608_v12 = vld [vmem:[%s10801_s1 + $0xa40] sm:$0xff] }
 0x13a   :  { %5394 = vmatpush.bf16.msrb.mxu0 %v8569_v13 }
 0x13b   :  { %5407 = vmatpush.bf16.msrb.mxu1 %v8577_v14  ;;  %v1290_v14 = vunpack.c.l.b16 %v41_v8 }
 0x13c   :  { %5420 = vmatpush.bf16.msrb.mxu2 %v8585_v15  ;;  %v8616_v15 = vld [vmem:[%s10801_s1 + $0xa80] sm:$0xff] }
 0x13d   :  { %5433 = vmatpush.bf16.msrb.mxu3 %v8593_v16  ;;  %v8624_v16 = vld [vmem:[%s10801_s1 + $0xac0] sm:$0xff]  ;;  %v1362_v24 = vpack.c.b16 %v1290_v14, %v1290_v14 }
 0x13e   :  { %5395 = vmatpush.bf16.msrb.mxu0 %v8568_v21  ;;  %v5189_v45 = vpop.f32.mrf.mxu0  ;;  %v8655_v21 = vld [vmem:[%s10801_s1 + $0xbb8] sm:$0xff] }
 0x13f   :  { %5408 = vmatpush.bf16.msrb.mxu1 %v8576_v22  ;;  %v5190_v46 = vadd.f32 %v5189_v45, %v9889_v7  ;;  %v5202_v49 = vpop.f32.mrf.mxu1  ;;  %v40_v7 = vld [vmem:[%s10802_s0 + $0xa0] sm:$0xff]  ;;  %v8663_v22 = vld [vmem:[%s10801_s1 + $0xbf8] sm:$0xff] }
 0x140   :  { %5421 = vmatpush.bf16.msrb.mxu2 %v8584_v25  ;;  %v1288_v13 = vunpack.c.l.b16 %v40_v7  ;;  %v1289_v17 = vunpack.c.h.b16 %v40_v7  ;;  %v8651_v45 = vld [vmem:[%s10801_s1 + $0xb98] sm:$0xff] }
 0x141   :  { %5434 = vmatpush.bf16.msrb.mxu3 %v8592_v26  ;;  %5396 = vmatmul.bf16.vlgmr.msrb.gmra.mxu0 %v1356_v33  ;;  %v5203_v52 = vadd.f32 %v5202_v49, %v5190_v46  ;;  %v1363_v26 = vpack.c.b16 %v1291_v18, %v1291_v18  ;;  %v8653_v33 = vld [vmem:[%s10801_s1 + $0xba8] sm:$0xff]  ;;  %v8659_v46 = vld [vmem:[%s10801_s1 + $0xbd8] sm:$0xff]  ;;  %v8678_v18 = vld [vmem:[%s10801_s1 + $0xc70] sm:$0xff] }
 0x142   :  { %5440 = vmatpush.bf16.msra.mxu0 %v8607_v29  ;;  %5409 = vmatmul.bf16.vlgmr.msrb.gmra.mxu1 %v1357_v35  ;;  %v1360_v23 = vpack.c.b16 %v1288_v13, %v1288_v13  ;;  %v1361_v25 = vpack.c.b16 %v1289_v17, %v1289_v17  ;;  %v8654_v29 = vld [vmem:[%s10801_s1 + $0xbb0] sm:$0xff] }
 0x143   :  { %5453 = vmatpush.bf16.msra.mxu1 %v8615_v30  ;;  %5422 = vmatmul.bf16.vlgmr.msrb.gmra.mxu2 %v1358_v34  ;;  %v8662_v30 = vld [vmem:[%s10801_s1 + $0xbf0] sm:$0xff]  ;;  %v8661_v34 = vld [vmem:[%s10801_s1 + $0xbe8] sm:$0xff] }
 0x144   :  { %5466 = vmatpush.bf16.msra.mxu2 %v8623_v31  ;;  %5435 = vmatmul.bf16.vlgmr.msrb.gmra.mxu3 %v1359_v36  ;;  %v8637_v31 = vld [vmem:[%s10801_s1 + $0xb28] sm:$0xff]  ;;  %v8670_v17 = vld [vmem:[%s10801_s1 + $0xc30] sm:$0xff] }
 0x145   :  { %5479 = vmatpush.bf16.msra.mxu3 %v8631_v32  ;;  %v8645_v32 = vld [vmem:[%s10801_s1 + $0xb68] sm:$0xff] }
 0x146   :  { %5441 = vmatpush.bf16.msra.mxu0 %v8606_v37  ;;  %v5215_v57 = vpop.f32.mrf.mxu2  ;;  %v5191_v60 = vpop.f32.mrf.mxu0  ;;  %v8636_v37 = vld [vmem:[%s10801_s1 + $0xb20] sm:$0xff] }
 0x147   :  { %5454 = vmatpush.bf16.msra.mxu1 %v8614_v38  ;;  %v5216_v58 = vadd.f32 %v5215_v57, %v5203_v52  ;;  %v5228_v59 = vpop.f32.mrf.mxu3  ;;  %v5204_v0 = vpop.f32.mrf.mxu1  ;;  %v8644_v38 = vld [vmem:[%s10801_s1 + $0xb60] sm:$0xff]  ;;  %v8634_v52 = vld [vmem:[%s10801_s1 + $0xb10] sm:$0xff]  ;;  %v8633_v57 = vld [vmem:[%s10801_s1 + $0xb08] sm:$0xff] }
 0x148   :  { %5467 = vmatpush.bf16.msra.mxu2 %v8622_v39  ;;  %v8657_v60 = vld [vmem:[%s10801_s1 + $0xbc8] sm:$0xff] }
 0x149   :  { %5480 = vmatpush.bf16.msra.mxu3 %v8630_v40  ;;  %v9994_v61 = vadd.f32 %v5228_v59, %v5216_v58  ;;  %v8652_v40 = vld [vmem:[%s10801_s1 + $0xba0] sm:$0xff]  ;;  %v8641_v58 = vld [vmem:[%s10801_s1 + $0xb48] sm:$0xff] }
 0x14a   :  { %5442 = vmatpush.bf16.msra.mxu0 %v8605_v41  ;;  %v8660_v41 = vld [vmem:[%s10801_s1 + $0xbe0] sm:$0xff]  ;;  %v8649_v59 = vld [vmem:[%s10801_s1 + $0xb88] sm:$0xff] }
 0x14b   :  { %5455 = vmatpush.bf16.msra.mxu1 %v8613_v42 }
 0x14c   :  { %5468 = vmatpush.bf16.msra.mxu2 %v8621_v43  ;;  %v8635_v43 = vld [vmem:[%s10801_s1 + $0xb18] sm:$0xff] }
 0x14d   :  { %5481 = vmatpush.bf16.msra.mxu3 %v8629_v44  ;;  %v8643_v44 = vld [vmem:[%s10801_s1 + $0xb58] sm:$0xff] }
 0x14e   :  { %5443 = vmatpush.bf16.msra.mxu0 %v8604_v47  ;;  %v5217_v9 = vpop.f32.mrf.mxu2 }
 0x14f   :  { %5456 = vmatpush.bf16.msra.mxu1 %v8612_v48  ;;  %v5230_v10 = vpop.f32.mrf.mxu3  ;;  %v8671_v9 = vld [vmem:[%s10801_s1 + $0xc38] sm:$0xff] }
 0x150   :  { %5469 = vmatpush.bf16.msra.mxu2 %v8620_v50  ;;  %v8679_v10 = vld [vmem:[%s10801_s1 + $0xc78] sm:$0xff] }
 0x151   :  { %5482 = vmatpush.bf16.msra.mxu3 %v8628_v51 }
 0x152   :  { %5444 = vmatpush.bf16.msra.mxu0 %v8603_v53  ;;  %v8642_v53 = vld [vmem:[%s10801_s1 + $0xb50] sm:$0xff] }
 0x153   :  { %5457 = vmatpush.bf16.msra.mxu1 %v8611_v54 }
 0x154   :  { %5470 = vmatpush.bf16.msra.mxu2 %v8619_v55  ;;  %v8650_v55 = vld [vmem:[%s10801_s1 + $0xb90] sm:$0xff] }
 0x155   :  { %5483 = vmatpush.bf16.msra.mxu3 %v8627_v56  ;;  %v8658_v56 = vld [vmem:[%s10801_s1 + $0xbd0] sm:$0xff] }
 0x156   :  { %5445 = vmatpush.bf16.msra.mxu0 %v8602_v62  ;;  %v43_v62 = vld [vmem:[%s10802_s0 + $0xb8] sm:$0xff] }
 0x157   :  { %5458 = vmatpush.bf16.msra.mxu1 %v8610_v63  ;;  %v1295_v8 = vunpack.c.h.b16 %v43_v62 }
 0x158   :  { %5471 = vmatpush.bf16.msra.mxu2 %v8618_v1  ;;  %v8632_v1 = vld [vmem:[%s10801_s1 + $0xb00] sm:$0xff] }
 0x159   :  { %5484 = vmatpush.bf16.msra.mxu3 %v8626_v2  ;;  %v8640_v2 = vld [vmem:[%s10801_s1 + $0xb40] sm:$0xff] }
 0x15a   :  { %5446 = vmatpush.bf16.msra.mxu0 %v8601_v3 }
 0x15b   :  { %5459 = vmatpush.bf16.msra.mxu1 %v8609_v4  ;;  %v1294_v4 = vunpack.c.l.b16 %v43_v62 }
 0x15c   :  { %5472 = vmatpush.bf16.msra.mxu2 %v8617_v5  ;;  %v8648_v5 = vld [vmem:[%s10801_s1 + $0xb80] sm:$0xff] }
 0x15d   :  { %5485 = vmatpush.bf16.msra.mxu3 %v8625_v6  ;;  %v8656_v6 = vld [vmem:[%s10801_s1 + $0xbc0] sm:$0xff]  ;;  %v1366_v14 = vpack.c.b16 %v1294_v4, %v1294_v4 }
 0x15e   :  { %5447 = vmatpush.bf16.msra.mxu0 %v8600_v11  ;;  %v5241_v35 = vpop.f32.mrf.mxu0  ;;  %v8687_v11 = vld [vmem:[%s10801_s1 + $0xcb8] sm:$0xff] }
 0x15f   :  { %5460 = vmatpush.bf16.msra.mxu1 %v8608_v12  ;;  %v5242_v36 = vadd.f32 %v5241_v35, %v9994_v61  ;;  %v5254_v39 = vpop.f32.mrf.mxu1  ;;  %v42_v61 = vld [vmem:[%s10802_s0 + $0xb0] sm:$0xff]  ;;  %v8695_v12 = vld [vmem:[%s10801_s1 + $0xcf8] sm:$0xff] }
 0x160   :  { %5473 = vmatpush.bf16.msra.mxu2 %v8616_v15  ;;  %v1292_v3 = vunpack.c.l.b16 %v42_v61  ;;  %v1293_v7 = vunpack.c.h.b16 %v42_v61  ;;  %v8683_v35 = vld [vmem:[%s10801_s1 + $0xc98] sm:$0xff] }
 0x161   :  { %5486 = vmatpush.bf16.msra.mxu3 %v8624_v16  ;;  %5448 = vmatmul.bf16.vlgmr.msra.gmra.mxu0 %v1360_v23  ;;  %v5255_v42 = vadd.f32 %v5254_v39, %v5242_v36  ;;  %v1367_v16 = vpack.c.b16 %v1295_v8, %v1295_v8  ;;  %v8685_v23 = vld [vmem:[%s10801_s1 + $0xca8] sm:$0xff]  ;;  %v8691_v36 = vld [vmem:[%s10801_s1 + $0xcd8] sm:$0xff]  ;;  %v8710_v8 = vld [vmem:[%s10801_s1 + $0xd70] sm:$0xff] }
 0x162   :  { %5492 = vmatpush.bf16.msrb.mxu0 %v8639_v19  ;;  %5461 = vmatmul.bf16.vlgmr.msra.gmra.mxu1 %v1361_v25  ;;  %v1364_v13 = vpack.c.b16 %v1292_v3, %v1292_v3  ;;  %v1365_v15 = vpack.c.b16 %v1293_v7, %v1293_v7  ;;  %v8686_v19 = vld [vmem:[%s10801_s1 + $0xcb0] sm:$0xff] }
 0x163   :  { %5505 = vmatpush.bf16.msrb.mxu1 %v8647_v20  ;;  %5474 = vmatmul.bf16.vlgmr.msra.gmra.mxu2 %v1362_v24  ;;  %v8694_v20 = vld [vmem:[%s10801_s1 + $0xcf0] sm:$0xff]  ;;  %v8693_v24 = vld [vmem:[%s10801_s1 + $0xce8] sm:$0xff] }
 0x164   :  { %5518 = vmatpush.bf16.msrb.mxu2 %v8655_v21  ;;  %5487 = vmatmul.bf16.vlgmr.msra.gmra.mxu3 %v1363_v26  ;;  %v8669_v21 = vld [vmem:[%s10801_s1 + $0xc28] sm:$0xff]  ;;  %v8702_v7 = vld [vmem:[%s10801_s1 + $0xd30] sm:$0xff] }
 0x165   :  { %5531 = vmatpush.bf16.msrb.mxu3 %v8663_v22  ;;  %v8677_v22 = vld [vmem:[%s10801_s1 + $0xc68] sm:$0xff] }
 0x166   :  { %5493 = vmatpush.bf16.msrb.mxu0 %v8638_v27  ;;  %v5267_v47 = vpop.f32.mrf.mxu2  ;;  %v5243_v50 = vpop.f32.mrf.mxu0  ;;  %v8668_v27 = vld [vmem:[%s10801_s1 + $0xc20] sm:$0xff] }
 0x167   :  { %5506 = vmatpush.bf16.msrb.mxu1 %v8646_v28  ;;  %v5268_v48 = vadd.f32 %v5267_v47, %v5255_v42  ;;  %v5280_v49 = vpop.f32.mrf.mxu3  ;;  %v5256_v54 = vpop.f32.mrf.mxu1  ;;  %v8676_v28 = vld [vmem:[%s10801_s1 + $0xc60] sm:$0xff]  ;;  %v8666_v42 = vld [vmem:[%s10801_s1 + $0xc10] sm:$0xff]  ;;  %v8665_v47 = vld [vmem:[%s10801_s1 + $0xc08] sm:$0xff] }
 0x168   :  { %5519 = vmatpush.bf16.msrb.mxu2 %v8654_v29  ;;  %v8689_v50 = vld [vmem:[%s10801_s1 + $0xcc8] sm:$0xff] }
 0x169   :  { %5532 = vmatpush.bf16.msrb.mxu3 %v8662_v30  ;;  %v10099_v51 = vadd.f32 %v5280_v49, %v5268_v48  ;;  %v8684_v30 = vld [vmem:[%s10801_s1 + $0xca0] sm:$0xff]  ;;  %v8673_v48 = vld [vmem:[%s10801_s1 + $0xc48] sm:$0xff] }
 0x16a   :  { %5494 = vmatpush.bf16.msrb.mxu0 %v8637_v31  ;;  %v8692_v31 = vld [vmem:[%s10801_s1 + $0xce0] sm:$0xff]  ;;  %v8681_v49 = vld [vmem:[%s10801_s1 + $0xc88] sm:$0xff] }
 0x16b   :  { %5507 = vmatpush.bf16.msrb.mxu1 %v8645_v32 }
 0x16c   :  { %5520 = vmatpush.bf16.msrb.mxu2 %v8653_v33  ;;  %v8667_v33 = vld [vmem:[%s10801_s1 + $0xc18] sm:$0xff] }
 0x16d   :  { %5533 = vmatpush.bf16.msrb.mxu3 %v8661_v34  ;;  %v8675_v34 = vld [vmem:[%s10801_s1 + $0xc58] sm:$0xff] }
 0x16e   :  { %5495 = vmatpush.bf16.msrb.mxu0 %v8636_v37  ;;  %v5269_v63 = vpop.f32.mrf.mxu2 }
 0x16f   :  { %5508 = vmatpush.bf16.msrb.mxu1 %v8644_v38  ;;  %v5282_v0 = vpop.f32.mrf.mxu3  ;;  %v8703_v63 = vld [vmem:[%s10801_s1 + $0xd38] sm:$0xff] }
 0x170   :  { %5521 = vmatpush.bf16.msrb.mxu2 %v8652_v40  ;;  %v8711_v0 = vld [vmem:[%s10801_s1 + $0xd78] sm:$0xff] }
 0x171   :  { %5534 = vmatpush.bf16.msrb.mxu3 %v8660_v41 }
 0x172   :  { %5496 = vmatpush.bf16.msrb.mxu0 %v8635_v43  ;;  %v8674_v43 = vld [vmem:[%s10801_s1 + $0xc50] sm:$0xff] }
 0x173   :  { %5509 = vmatpush.bf16.msrb.mxu1 %v8643_v44 }
 0x174   :  { %5522 = vmatpush.bf16.msrb.mxu2 %v8651_v45  ;;  %v8682_v45 = vld [vmem:[%s10801_s1 + $0xc90] sm:$0xff] }
 0x175   :  { %5535 = vmatpush.bf16.msrb.mxu3 %v8659_v46  ;;  %v8690_v46 = vld [vmem:[%s10801_s1 + $0xcd0] sm:$0xff] }
 0x176   :  { %5497 = vmatpush.bf16.msrb.mxu0 %v8634_v52  ;;  %v45_v52 = vld [vmem:[%s10802_s0 + $0xc8] sm:$0xff] }
 0x177   :  { %5510 = vmatpush.bf16.msrb.mxu1 %v8642_v53  ;;  %v1299_v62 = vunpack.c.h.b16 %v45_v52 }
 0x178   :  { %5523 = vmatpush.bf16.msrb.mxu2 %v8650_v55  ;;  %v8664_v55 = vld [vmem:[%s10801_s1 + $0xc00] sm:$0xff] }
 0x179   :  { %5536 = vmatpush.bf16.msrb.mxu3 %v8658_v56  ;;  %v8672_v56 = vld [vmem:[%s10801_s1 + $0xc40] sm:$0xff] }
 0x17a   :  { %5498 = vmatpush.bf16.msrb.mxu0 %v8633_v57 }
 0x17b   :  { %5511 = vmatpush.bf16.msrb.mxu1 %v8641_v58  ;;  %v1298_v58 = vunpack.c.l.b16 %v45_v52 }
 0x17c   :  { %5524 = vmatpush.bf16.msrb.mxu2 %v8649_v59  ;;  %v8680_v59 = vld [vmem:[%s10801_s1 + $0xc80] sm:$0xff] }
 0x17d   :  { %5537 = vmatpush.bf16.msrb.mxu3 %v8657_v60  ;;  %v8688_v60 = vld [vmem:[%s10801_s1 + $0xcc0] sm:$0xff]  ;;  %v1370_v4 = vpack.c.b16 %v1298_v58, %v1298_v58 }
 0x17e   :  { %5499 = vmatpush.bf16.msrb.mxu0 %v8632_v1  ;;  %v5293_v25 = vpop.f32.mrf.mxu0  ;;  %v8719_v1 = vld [vmem:[%s10801_s1 + $0xdb8] sm:$0xff] }
 0x17f   :  { %5512 = vmatpush.bf16.msrb.mxu1 %v8640_v2  ;;  %v5294_v26 = vadd.f32 %v5293_v25, %v10099_v51  ;;  %v5306_v29 = vpop.f32.mrf.mxu1  ;;  %v44_v51 = vld [vmem:[%s10802_s0 + $0xc0] sm:$0xff]  ;;  %v8727_v2 = vld [vmem:[%s10801_s1 + $0xdf8] sm:$0xff] }
 0x180   :  { %5525 = vmatpush.bf16.msrb.mxu2 %v8648_v5  ;;  %v1296_v57 = vunpack.c.l.b16 %v44_v51  ;;  %v1297_v61 = vunpack.c.h.b16 %v44_v51  ;;  %v8715_v25 = vld [vmem:[%s10801_s1 + $0xd98] sm:$0xff] }
 0x181   :  { %5538 = vmatpush.bf16.msrb.mxu3 %v8656_v6  ;;  %5500 = vmatmul.bf16.vlgmr.msrb.gmra.mxu0 %v1364_v13  ;;  %v5307_v32 = vadd.f32 %v5306_v29, %v5294_v26  ;;  %v1371_v6 = vpack.c.b16 %v1299_v62, %v1299_v62  ;;  %v8717_v13 = vld [vmem:[%s10801_s1 + $0xda8] sm:$0xff]  ;;  %v8723_v26 = vld [vmem:[%s10801_s1 + $0xdd8] sm:$0xff]  ;;  %v8742_v62 = vld [vmem:[%s10801_s1 + $0xe70] sm:$0xff] }
 0x182   :  { %5544 = vmatpush.bf16.msra.mxu0 %v8671_v9  ;;  %5513 = vmatmul.bf16.vlgmr.msrb.gmra.mxu1 %v1365_v15  ;;  %v1368_v3 = vpack.c.b16 %v1296_v57, %v1296_v57  ;;  %v1369_v5 = vpack.c.b16 %v1297_v61, %v1297_v61  ;;  %v8718_v9 = vld [vmem:[%s10801_s1 + $0xdb0] sm:$0xff] }
 0x183   :  { %5557 = vmatpush.bf16.msra.mxu1 %v8679_v10  ;;  %5526 = vmatmul.bf16.vlgmr.msrb.gmra.mxu2 %v1366_v14  ;;  %v8726_v10 = vld [vmem:[%s10801_s1 + $0xdf0] sm:$0xff]  ;;  %v8725_v14 = vld [vmem:[%s10801_s1 + $0xde8] sm:$0xff] }
 0x184   :  { %5570 = vmatpush.bf16.msra.mxu2 %v8687_v11  ;;  %5539 = vmatmul.bf16.vlgmr.msrb.gmra.mxu3 %v1367_v16  ;;  %v8701_v11 = vld [vmem:[%s10801_s1 + $0xd28] sm:$0xff]  ;;  %v8734_v61 = vld [vmem:[%s10801_s1 + $0xe30] sm:$0xff] }
 0x185   :  { %5583 = vmatpush.bf16.msra.mxu3 %v8695_v12  ;;  %v8709_v12 = vld [vmem:[%s10801_s1 + $0xd68] sm:$0xff] }
 0x186   :  { %5545 = vmatpush.bf16.msra.mxu0 %v8670_v17  ;;  %v5319_v37 = vpop.f32.mrf.mxu2  ;;  %v5295_v40 = vpop.f32.mrf.mxu0  ;;  %v8700_v17 = vld [vmem:[%s10801_s1 + $0xd20] sm:$0xff] }
 0x187   :  { %5558 = vmatpush.bf16.msra.mxu1 %v8678_v18  ;;  %v5320_v38 = vadd.f32 %v5319_v37, %v5307_v32  ;;  %v5332_v39 = vpop.f32.mrf.mxu3  ;;  %v5308_v44 = vpop.f32.mrf.mxu1  ;;  %v8708_v18 = vld [vmem:[%s10801_s1 + $0xd60] sm:$0xff]  ;;  %v8698_v32 = vld [vmem:[%s10801_s1 + $0xd10] sm:$0xff]  ;;  %v8697_v37 = vld [vmem:[%s10801_s1 + $0xd08] sm:$0xff] }
 0x188   :  { %5571 = vmatpush.bf16.msra.mxu2 %v8686_v19  ;;  %v8721_v40 = vld [vmem:[%s10801_s1 + $0xdc8] sm:$0xff] }
 0x189   :  { %5584 = vmatpush.bf16.msra.mxu3 %v8694_v20  ;;  %v10204_v41 = vadd.f32 %v5332_v39, %v5320_v38  ;;  %v8716_v20 = vld [vmem:[%s10801_s1 + $0xda0] sm:$0xff]  ;;  %v8705_v38 = vld [vmem:[%s10801_s1 + $0xd48] sm:$0xff] }
 0x18a   :  { %5546 = vmatpush.bf16.msra.mxu0 %v8669_v21  ;;  %v8724_v21 = vld [vmem:[%s10801_s1 + $0xde0] sm:$0xff]  ;;  %v8713_v39 = vld [vmem:[%s10801_s1 + $0xd88] sm:$0xff] }
 0x18b   :  { %5559 = vmatpush.bf16.msra.mxu1 %v8677_v22 }
 0x18c   :  { %5572 = vmatpush.bf16.msra.mxu2 %v8685_v23  ;;  %v8699_v23 = vld [vmem:[%s10801_s1 + $0xd18] sm:$0xff] }
 0x18d   :  { %5585 = vmatpush.bf16.msra.mxu3 %v8693_v24  ;;  %v8707_v24 = vld [vmem:[%s10801_s1 + $0xd58] sm:$0xff] }
 0x18e   :  { %5547 = vmatpush.bf16.msra.mxu0 %v8668_v27  ;;  %v5321_v53 = vpop.f32.mrf.mxu2 }
 0x18f   :  { %5560 = vmatpush.bf16.msra.mxu1 %v8676_v28  ;;  %v5334_v54 = vpop.f32.mrf.mxu3  ;;  %v8735_v53 = vld [vmem:[%s10801_s1 + $0xe38] sm:$0xff] }
 0x190   :  { %5573 = vmatpush.bf16.msra.mxu2 %v8684_v30  ;;  %v8743_v54 = vld [vmem:[%s10801_s1 + $0xe78] sm:$0xff] }
 0x191   :  { %5586 = vmatpush.bf16.msra.mxu3 %v8692_v31 }
 0x192   :  { %5548 = vmatpush.bf16.msra.mxu0 %v8667_v33  ;;  %v8706_v33 = vld [vmem:[%s10801_s1 + $0xd50] sm:$0xff] }
 0x193   :  { %5561 = vmatpush.bf16.msra.mxu1 %v8675_v34 }
 0x194   :  { %5574 = vmatpush.bf16.msra.mxu2 %v8683_v35  ;;  %v8714_v35 = vld [vmem:[%s10801_s1 + $0xd90] sm:$0xff] }
 0x195   :  { %5587 = vmatpush.bf16.msra.mxu3 %v8691_v36  ;;  %v8722_v36 = vld [vmem:[%s10801_s1 + $0xdd0] sm:$0xff] }
 0x196   :  { %5549 = vmatpush.bf16.msra.mxu0 %v8666_v42  ;;  %v47_v42 = vld [vmem:[%s10802_s0 + $0xd8] sm:$0xff] }
 0x197   :  { %5562 = vmatpush.bf16.msra.mxu1 %v8674_v43  ;;  %v1303_v52 = vunpack.c.h.b16 %v47_v42 }
 0x198   :  { %5575 = vmatpush.bf16.msra.mxu2 %v8682_v45  ;;  %v8696_v45 = vld [vmem:[%s10801_s1 + $0xd00] sm:$0xff] }
 0x199   :  { %5588 = vmatpush.bf16.msra.mxu3 %v8690_v46  ;;  %v8704_v46 = vld [vmem:[%s10801_s1 + $0xd40] sm:$0xff] }
 0x19a   :  { %5550 = vmatpush.bf16.msra.mxu0 %v8665_v47 }
 0x19b   :  { %5563 = vmatpush.bf16.msra.mxu1 %v8673_v48  ;;  %v1302_v48 = vunpack.c.l.b16 %v47_v42 }
 0x19c   :  { %5576 = vmatpush.bf16.msra.mxu2 %v8681_v49  ;;  %v8712_v49 = vld [vmem:[%s10801_s1 + $0xd80] sm:$0xff] }
 0x19d   :  { %5589 = vmatpush.bf16.msra.mxu3 %v8689_v50  ;;  %v8720_v50 = vld [vmem:[%s10801_s1 + $0xdc0] sm:$0xff]  ;;  %v1374_v58 = vpack.c.b16 %v1302_v48, %v1302_v48 }
 0x19e   :  { %5551 = vmatpush.bf16.msra.mxu0 %v8664_v55  ;;  %v5345_v15 = vpop.f32.mrf.mxu0  ;;  %v8751_v55 = vld [vmem:[%s10801_s1 + $0xeb8] sm:$0xff] }
 0x19f   :  { %5564 = vmatpush.bf16.msra.mxu1 %v8672_v56  ;;  %v5346_v16 = vadd.f32 %v5345_v15, %v10204_v41  ;;  %v5358_v19 = vpop.f32.mrf.mxu1  ;;  %v46_v41 = vld [vmem:[%s10802_s0 + $0xd0] sm:$0xff]  ;;  %v8759_v56 = vld [vmem:[%s10801_s1 + $0xef8] sm:$0xff] }
 0x1a0   :  { %5577 = vmatpush.bf16.msra.mxu2 %v8680_v59  ;;  %v1300_v47 = vunpack.c.l.b16 %v46_v41  ;;  %v1301_v51 = vunpack.c.h.b16 %v46_v41  ;;  %v8747_v15 = vld [vmem:[%s10801_s1 + $0xe98] sm:$0xff] }
 0x1a1   :  { %5590 = vmatpush.bf16.msra.mxu3 %v8688_v60  ;;  %5552 = vmatmul.bf16.vlgmr.msra.gmra.mxu0 %v1368_v3  ;;  %v5359_v22 = vadd.f32 %v5358_v19, %v5346_v16  ;;  %v1375_v60 = vpack.c.b16 %v1303_v52, %v1303_v52  ;;  %v8749_v3 = vld [vmem:[%s10801_s1 + $0xea8] sm:$0xff]  ;;  %v8755_v16 = vld [vmem:[%s10801_s1 + $0xed8] sm:$0xff]  ;;  %v8774_v52 = vld [vmem:[%s10801_s1 + $0xf70] sm:$0xff] }
 0x1a2   :  { %5596 = vmatpush.bf16.msrb.mxu0 %v8703_v63  ;;  %5565 = vmatmul.bf16.vlgmr.msra.gmra.mxu1 %v1369_v5  ;;  %v1372_v57 = vpack.c.b16 %v1300_v47, %v1300_v47  ;;  %v1373_v59 = vpack.c.b16 %v1301_v51, %v1301_v51  ;;  %v8750_v63 = vld [vmem:[%s10801_s1 + $0xeb0] sm:$0xff] }
 0x1a3   :  { %5609 = vmatpush.bf16.msrb.mxu1 %v8711_v0  ;;  %5578 = vmatmul.bf16.vlgmr.msra.gmra.mxu2 %v1370_v4  ;;  %v8758_v0 = vld [vmem:[%s10801_s1 + $0xef0] sm:$0xff]  ;;  %v8757_v4 = vld [vmem:[%s10801_s1 + $0xee8] sm:$0xff] }
 0x1a4   :  { %5622 = vmatpush.bf16.msrb.mxu2 %v8719_v1  ;;  %5591 = vmatmul.bf16.vlgmr.msra.gmra.mxu3 %v1371_v6  ;;  %v8733_v1 = vld [vmem:[%s10801_s1 + $0xe28] sm:$0xff]  ;;  %v8766_v51 = vld [vmem:[%s10801_s1 + $0xf30] sm:$0xff] }
 0x1a5   :  { %5635 = vmatpush.bf16.msrb.mxu3 %v8727_v2  ;;  %v8741_v2 = vld [vmem:[%s10801_s1 + $0xe68] sm:$0xff] }
 0x1a6   :  { %5597 = vmatpush.bf16.msrb.mxu0 %v8702_v7  ;;  %v5371_v27 = vpop.f32.mrf.mxu2  ;;  %v5347_v30 = vpop.f32.mrf.mxu0  ;;  %v8732_v7 = vld [vmem:[%s10801_s1 + $0xe20] sm:$0xff] }
 0x1a7   :  { %5610 = vmatpush.bf16.msrb.mxu1 %v8710_v8  ;;  %v5372_v28 = vadd.f32 %v5371_v27, %v5359_v22  ;;  %v5384_v29 = vpop.f32.mrf.mxu3  ;;  %v5360_v34 = vpop.f32.mrf.mxu1  ;;  %v8740_v8 = vld [vmem:[%s10801_s1 + $0xe60] sm:$0xff]  ;;  %v8730_v22 = vld [vmem:[%s10801_s1 + $0xe10] sm:$0xff]  ;;  %v8729_v27 = vld [vmem:[%s10801_s1 + $0xe08] sm:$0xff] }
 0x1a8   :  { %5623 = vmatpush.bf16.msrb.mxu2 %v8718_v9  ;;  %v8753_v30 = vld [vmem:[%s10801_s1 + $0xec8] sm:$0xff] }
 0x1a9   :  { %5636 = vmatpush.bf16.msrb.mxu3 %v8726_v10  ;;  %v10309_v31 = vadd.f32 %v5384_v29, %v5372_v28  ;;  %v8748_v10 = vld [vmem:[%s10801_s1 + $0xea0] sm:$0xff]  ;;  %v8737_v28 = vld [vmem:[%s10801_s1 + $0xe48] sm:$0xff] }
 0x1aa   :  { %5598 = vmatpush.bf16.msrb.mxu0 %v8701_v11  ;;  %v8756_v11 = vld [vmem:[%s10801_s1 + $0xee0] sm:$0xff]  ;;  %v8745_v29 = vld [vmem:[%s10801_s1 + $0xe88] sm:$0xff] }
 0x1ab   :  { %5611 = vmatpush.bf16.msrb.mxu1 %v8709_v12 }
 0x1ac   :  { %5624 = vmatpush.bf16.msrb.mxu2 %v8717_v13  ;;  %v8731_v13 = vld [vmem:[%s10801_s1 + $0xe18] sm:$0xff] }
 0x1ad   :  { %5637 = vmatpush.bf16.msrb.mxu3 %v8725_v14  ;;  %v8739_v14 = vld [vmem:[%s10801_s1 + $0xe58] sm:$0xff] }
 0x1ae   :  { %5599 = vmatpush.bf16.msrb.mxu0 %v8700_v17  ;;  %v5373_v43 = vpop.f32.mrf.mxu2 }
 0x1af   :  { %5612 = vmatpush.bf16.msrb.mxu1 %v8708_v18  ;;  %v5386_v44 = vpop.f32.mrf.mxu3  ;;  %v8767_v43 = vld [vmem:[%s10801_s1 + $0xf38] sm:$0xff] }
 0x1b0   :  { %5625 = vmatpush.bf16.msrb.mxu2 %v8716_v20  ;;  %v8775_v44 = vld [vmem:[%s10801_s1 + $0xf78] sm:$0xff] }
 0x1b1   :  { %5638 = vmatpush.bf16.msrb.mxu3 %v8724_v21 }
 0x1b2   :  { %5600 = vmatpush.bf16.msrb.mxu0 %v8699_v23  ;;  %v8738_v23 = vld [vmem:[%s10801_s1 + $0xe50] sm:$0xff] }
 0x1b3   :  { %5613 = vmatpush.bf16.msrb.mxu1 %v8707_v24 }
 0x1b4   :  { %5626 = vmatpush.bf16.msrb.mxu2 %v8715_v25  ;;  %v8746_v25 = vld [vmem:[%s10801_s1 + $0xe90] sm:$0xff] }
 0x1b5   :  { %5639 = vmatpush.bf16.msrb.mxu3 %v8723_v26  ;;  %v8754_v26 = vld [vmem:[%s10801_s1 + $0xed0] sm:$0xff] }
 0x1b6   :  { %5601 = vmatpush.bf16.msrb.mxu0 %v8698_v32  ;;  %v49_v32 = vld [vmem:[%s10802_s0 + $0xe8] sm:$0xff] }
 0x1b7   :  { %5614 = vmatpush.bf16.msrb.mxu1 %v8706_v33  ;;  %v1307_v42 = vunpack.c.h.b16 %v49_v32 }
 0x1b8   :  { %5627 = vmatpush.bf16.msrb.mxu2 %v8714_v35  ;;  %v8728_v35 = vld [vmem:[%s10801_s1 + $0xe00] sm:$0xff] }
 0x1b9   :  { %5640 = vmatpush.bf16.msrb.mxu3 %v8722_v36  ;;  %v8736_v36 = vld [vmem:[%s10801_s1 + $0xe40] sm:$0xff] }
 0x1ba   :  { %5602 = vmatpush.bf16.msrb.mxu0 %v8697_v37 }
 0x1bb   :  { %5615 = vmatpush.bf16.msrb.mxu1 %v8705_v38  ;;  %v1306_v38 = vunpack.c.l.b16 %v49_v32 }
 0x1bc   :  { %5628 = vmatpush.bf16.msrb.mxu2 %v8713_v39  ;;  %v8744_v39 = vld [vmem:[%s10801_s1 + $0xe80] sm:$0xff] }
 0x1bd   :  { %5641 = vmatpush.bf16.msrb.mxu3 %v8721_v40  ;;  %v8752_v40 = vld [vmem:[%s10801_s1 + $0xec0] sm:$0xff]  ;;  %v1378_v48 = vpack.c.b16 %v1306_v38, %v1306_v38 }
 0x1be   :  { %5603 = vmatpush.bf16.msrb.mxu0 %v8696_v45  ;;  %v5397_v5 = vpop.f32.mrf.mxu0  ;;  %v8783_v45 = vld [vmem:[%s10801_s1 + $0xfb8] sm:$0xff] }
 0x1bf   :  { %5616 = vmatpush.bf16.msrb.mxu1 %v8704_v46  ;;  %v5398_v6 = vadd.f32 %v5397_v5, %v10309_v31  ;;  %v5410_v9 = vpop.f32.mrf.mxu1  ;;  %v48_v31 = vld [vmem:[%s10802_s0 + $0xe0] sm:$0xff]  ;;  %v8791_v46 = vld [vmem:[%s10801_s1 + $0xff8] sm:$0xff] }
 0x1c0   :  { %5629 = vmatpush.bf16.msrb.mxu2 %v8712_v49  ;;  %v1304_v37 = vunpack.c.l.b16 %v48_v31  ;;  %v1305_v41 = vunpack.c.h.b16 %v48_v31  ;;  %v8779_v5 = vld [vmem:[%s10801_s1 + $0xf98] sm:$0xff] }
 0x1c1   :  { %5642 = vmatpush.bf16.msrb.mxu3 %v8720_v50  ;;  %5604 = vmatmul.bf16.vlgmr.msrb.gmra.mxu0 %v1372_v57  ;;  %v5411_v12 = vadd.f32 %v5410_v9, %v5398_v6  ;;  %v1379_v50 = vpack.c.b16 %v1307_v42, %v1307_v42  ;;  %v8781_v57 = vld [vmem:[%s10801_s1 + $0xfa8] sm:$0xff]  ;;  %v8787_v6 = vld [vmem:[%s10801_s1 + $0xfd8] sm:$0xff]  ;;  %v8806_v42 = vld [vmem:[%s10801_s1 + $0x1070] sm:$0xff] }
 0x1c2   :  { %5648 = vmatpush.bf16.msra.mxu0 %v8735_v53  ;;  %5617 = vmatmul.bf16.vlgmr.msrb.gmra.mxu1 %v1373_v59  ;;  %v1376_v47 = vpack.c.b16 %v1304_v37, %v1304_v37  ;;  %v1377_v49 = vpack.c.b16 %v1305_v41, %v1305_v41  ;;  %v8782_v53 = vld [vmem:[%s10801_s1 + $0xfb0] sm:$0xff] }
 0x1c3   :  { %5661 = vmatpush.bf16.msra.mxu1 %v8743_v54  ;;  %5630 = vmatmul.bf16.vlgmr.msrb.gmra.mxu2 %v1374_v58  ;;  %v8790_v54 = vld [vmem:[%s10801_s1 + $0xff0] sm:$0xff]  ;;  %v8789_v58 = vld [vmem:[%s10801_s1 + $0xfe8] sm:$0xff] }
 0x1c4   :  { %5674 = vmatpush.bf16.msra.mxu2 %v8751_v55  ;;  %5643 = vmatmul.bf16.vlgmr.msrb.gmra.mxu3 %v1375_v60  ;;  %v8765_v55 = vld [vmem:[%s10801_s1 + $0xf28] sm:$0xff]  ;;  %v8798_v41 = vld [vmem:[%s10801_s1 + $0x1030] sm:$0xff] }
 0x1c5   :  { %5687 = vmatpush.bf16.msra.mxu3 %v8759_v56  ;;  %v8773_v56 = vld [vmem:[%s10801_s1 + $0xf68] sm:$0xff] }
 0x1c6   :  { %5649 = vmatpush.bf16.msra.mxu0 %v8734_v61  ;;  %v5423_v17 = vpop.f32.mrf.mxu2  ;;  %v5399_v20 = vpop.f32.mrf.mxu0  ;;  %v8764_v61 = vld [vmem:[%s10801_s1 + $0xf20] sm:$0xff] }
 0x1c7   :  { %5662 = vmatpush.bf16.msra.mxu1 %v8742_v62  ;;  %v5424_v18 = vadd.f32 %v5423_v17, %v5411_v12  ;;  %v5436_v19 = vpop.f32.mrf.mxu3  ;;  %v5412_v24 = vpop.f32.mrf.mxu1  ;;  %v8772_v62 = vld [vmem:[%s10801_s1 + $0xf60] sm:$0xff]  ;;  %v8762_v12 = vld [vmem:[%s10801_s1 + $0xf10] sm:$0xff]  ;;  %v8761_v17 = vld [vmem:[%s10801_s1 + $0xf08] sm:$0xff] }
 0x1c8   :  { %5675 = vmatpush.bf16.msra.mxu2 %v8750_v63  ;;  %v8785_v20 = vld [vmem:[%s10801_s1 + $0xfc8] sm:$0xff] }
 0x1c9   :  { %5688 = vmatpush.bf16.msra.mxu3 %v8758_v0  ;;  %v10414_v21 = vadd.f32 %v5436_v19, %v5424_v18  ;;  %v8780_v0 = vld [vmem:[%s10801_s1 + $0xfa0] sm:$0xff]  ;;  %v8769_v18 = vld [vmem:[%s10801_s1 + $0xf48] sm:$0xff] }
 0x1ca   :  { %5650 = vmatpush.bf16.msra.mxu0 %v8733_v1  ;;  %v8788_v1 = vld [vmem:[%s10801_s1 + $0xfe0] sm:$0xff]  ;;  %v8777_v19 = vld [vmem:[%s10801_s1 + $0xf88] sm:$0xff] }
 0x1cb   :  { %5663 = vmatpush.bf16.msra.mxu1 %v8741_v2 }
 0x1cc   :  { %5676 = vmatpush.bf16.msra.mxu2 %v8749_v3  ;;  %v8763_v3 = vld [vmem:[%s10801_s1 + $0xf18] sm:$0xff] }
 0x1cd   :  { %5689 = vmatpush.bf16.msra.mxu3 %v8757_v4  ;;  %v8771_v4 = vld [vmem:[%s10801_s1 + $0xf58] sm:$0xff] }
 0x1ce   :  { %5651 = vmatpush.bf16.msra.mxu0 %v8732_v7  ;;  %v5425_v33 = vpop.f32.mrf.mxu2 }
 0x1cf   :  { %5664 = vmatpush.bf16.msra.mxu1 %v8740_v8  ;;  %v5438_v34 = vpop.f32.mrf.mxu3  ;;  %v8799_v33 = vld [vmem:[%s10801_s1 + $0x1038] sm:$0xff] }
 0x1d0   :  { %5677 = vmatpush.bf16.msra.mxu2 %v8748_v10  ;;  %v8807_v34 = vld [vmem:[%s10801_s1 + $0x1078] sm:$0xff] }
 0x1d1   :  { %5690 = vmatpush.bf16.msra.mxu3 %v8756_v11 }
 0x1d2   :  { %5652 = vmatpush.bf16.msra.mxu0 %v8731_v13  ;;  %v8770_v13 = vld [vmem:[%s10801_s1 + $0xf50] sm:$0xff] }
 0x1d3   :  { %5665 = vmatpush.bf16.msra.mxu1 %v8739_v14 }
 0x1d4   :  { %5678 = vmatpush.bf16.msra.mxu2 %v8747_v15  ;;  %v8778_v15 = vld [vmem:[%s10801_s1 + $0xf90] sm:$0xff] }
 0x1d5   :  { %5691 = vmatpush.bf16.msra.mxu3 %v8755_v16  ;;  %v8786_v16 = vld [vmem:[%s10801_s1 + $0xfd0] sm:$0xff] }
 0x1d6   :  { %5653 = vmatpush.bf16.msra.mxu0 %v8730_v22  ;;  %v51_v22 = vld [vmem:[%s10802_s0 + $0xf8] sm:$0xff] }
 0x1d7   :  { %5666 = vmatpush.bf16.msra.mxu1 %v8738_v23  ;;  %v1311_v32 = vunpack.c.h.b16 %v51_v22 }
 0x1d8   :  { %5679 = vmatpush.bf16.msra.mxu2 %v8746_v25  ;;  %v8760_v25 = vld [vmem:[%s10801_s1 + $0xf00] sm:$0xff] }
 0x1d9   :  { %5692 = vmatpush.bf16.msra.mxu3 %v8754_v26  ;;  %v8768_v26 = vld [vmem:[%s10801_s1 + $0xf40] sm:$0xff] }
 0x1da   :  { %5654 = vmatpush.bf16.msra.mxu0 %v8729_v27 }
 0x1db   :  { %5667 = vmatpush.bf16.msra.mxu1 %v8737_v28  ;;  %v1310_v28 = vunpack.c.l.b16 %v51_v22 }
 0x1dc   :  { %5680 = vmatpush.bf16.msra.mxu2 %v8745_v29  ;;  %v8776_v29 = vld [vmem:[%s10801_s1 + $0xf80] sm:$0xff] }
 0x1dd   :  { %5693 = vmatpush.bf16.msra.mxu3 %v8753_v30  ;;  %v8784_v30 = vld [vmem:[%s10801_s1 + $0xfc0] sm:$0xff]  ;;  %v1382_v38 = vpack.c.b16 %v1310_v28, %v1310_v28 }
 0x1de   :  { %5655 = vmatpush.bf16.msra.mxu0 %v8728_v35  ;;  %v5449_v59 = vpop.f32.mrf.mxu0  ;;  %v8815_v35 = vld [vmem:[%s10801_s1 + $0x10b8] sm:$0xff] }
 0x1df   :  { %5668 = vmatpush.bf16.msra.mxu1 %v8736_v36  ;;  %v5450_v60 = vadd.f32 %v5449_v59, %v10414_v21  ;;  %v5462_v63 = vpop.f32.mrf.mxu1  ;;  %v50_v21 = vld [vmem:[%s10802_s0 + $0xf0] sm:$0xff]  ;;  %v8823_v36 = vld [vmem:[%s10801_s1 + $0x10f8] sm:$0xff] }
 0x1e0   :  { %5681 = vmatpush.bf16.msra.mxu2 %v8744_v39  ;;  %v1308_v27 = vunpack.c.l.b16 %v50_v21  ;;  %v1309_v31 = vunpack.c.h.b16 %v50_v21  ;;  %v8811_v59 = vld [vmem:[%s10801_s1 + $0x1098] sm:$0xff] }
 0x1e1   :  { %5694 = vmatpush.bf16.msra.mxu3 %v8752_v40  ;;  %5656 = vmatmul.bf16.vlgmr.msra.gmra.mxu0 %v1376_v47  ;;  %v5463_v2 = vadd.f32 %v5462_v63, %v5450_v60  ;;  %v1383_v40 = vpack.c.b16 %v1311_v32, %v1311_v32  ;;  %v8813_v47 = vld [vmem:[%s10801_s1 + $0x10a8] sm:$0xff]  ;;  %v8819_v60 = vld [vmem:[%s10801_s1 + $0x10d8] sm:$0xff]  ;;  %v8838_v32 = vld [vmem:[%s10801_s1 + $0x1170] sm:$0xff] }
 0x1e2   :  { %5700 = vmatpush.bf16.msrb.mxu0 %v8767_v43  ;;  %5669 = vmatmul.bf16.vlgmr.msra.gmra.mxu1 %v1377_v49  ;;  %v1380_v37 = vpack.c.b16 %v1308_v27, %v1308_v27  ;;  %v1381_v39 = vpack.c.b16 %v1309_v31, %v1309_v31  ;;  %v8814_v43 = vld [vmem:[%s10801_s1 + $0x10b0] sm:$0xff] }
 0x1e3   :  { %5713 = vmatpush.bf16.msrb.mxu1 %v8775_v44  ;;  %5682 = vmatmul.bf16.vlgmr.msra.gmra.mxu2 %v1378_v48  ;;  %v8822_v44 = vld [vmem:[%s10801_s1 + $0x10f0] sm:$0xff]  ;;  %v8821_v48 = vld [vmem:[%s10801_s1 + $0x10e8] sm:$0xff] }
 0x1e4   :  { %5726 = vmatpush.bf16.msrb.mxu2 %v8783_v45  ;;  %5695 = vmatmul.bf16.vlgmr.msra.gmra.mxu3 %v1379_v50  ;;  %v8797_v45 = vld [vmem:[%s10801_s1 + $0x1028] sm:$0xff]  ;;  %v8830_v31 = vld [vmem:[%s10801_s1 + $0x1130] sm:$0xff] }
 0x1e5   :  { %5739 = vmatpush.bf16.msrb.mxu3 %v8791_v46  ;;  %v8805_v46 = vld [vmem:[%s10801_s1 + $0x1068] sm:$0xff] }
 0x1e6   :  { %5701 = vmatpush.bf16.msrb.mxu0 %v8766_v51  ;;  %v5475_v7 = vpop.f32.mrf.mxu2  ;;  %v5451_v10 = vpop.f32.mrf.mxu0  ;;  %v8796_v51 = vld [vmem:[%s10801_s1 + $0x1020] sm:$0xff] }
 0x1e7   :  { %5714 = vmatpush.bf16.msrb.mxu1 %v8774_v52  ;;  %v5476_v8 = vadd.f32 %v5475_v7, %v5463_v2  ;;  %v5488_v9 = vpop.f32.mrf.mxu3  ;;  %v5464_v14 = vpop.f32.mrf.mxu1  ;;  %v8804_v52 = vld [vmem:[%s10801_s1 + $0x1060] sm:$0xff]  ;;  %v8794_v2 = vld [vmem:[%s10801_s1 + $0x1010] sm:$0xff]  ;;  %v8793_v7 = vld [vmem:[%s10801_s1 + $0x1008] sm:$0xff] }
 0x1e8   :  { %5727 = vmatpush.bf16.msrb.mxu2 %v8782_v53  ;;  %v8817_v10 = vld [vmem:[%s10801_s1 + $0x10c8] sm:$0xff] }
 0x1e9   :  { %5740 = vmatpush.bf16.msrb.mxu3 %v8790_v54  ;;  %v10519_v11 = vadd.f32 %v5488_v9, %v5476_v8  ;;  %v8812_v54 = vld [vmem:[%s10801_s1 + $0x10a0] sm:$0xff]  ;;  %v8801_v8 = vld [vmem:[%s10801_s1 + $0x1048] sm:$0xff] }
 0x1ea   :  { %5702 = vmatpush.bf16.msrb.mxu0 %v8765_v55  ;;  %v8820_v55 = vld [vmem:[%s10801_s1 + $0x10e0] sm:$0xff]  ;;  %v8809_v9 = vld [vmem:[%s10801_s1 + $0x1088] sm:$0xff] }
 0x1eb   :  { %5715 = vmatpush.bf16.msrb.mxu1 %v8773_v56 }
 0x1ec   :  { %5728 = vmatpush.bf16.msrb.mxu2 %v8781_v57  ;;  %v8795_v57 = vld [vmem:[%s10801_s1 + $0x1018] sm:$0xff] }
 0x1ed   :  { %5741 = vmatpush.bf16.msrb.mxu3 %v8789_v58  ;;  %v8803_v58 = vld [vmem:[%s10801_s1 + $0x1058] sm:$0xff] }
 0x1ee   :  { %5703 = vmatpush.bf16.msrb.mxu0 %v8764_v61  ;;  %v5477_v23 = vpop.f32.mrf.mxu2 }
 0x1ef   :  { %5716 = vmatpush.bf16.msrb.mxu1 %v8772_v62  ;;  %v5490_v24 = vpop.f32.mrf.mxu3  ;;  %v8831_v23 = vld [vmem:[%s10801_s1 + $0x1138] sm:$0xff] }
 0x1f0   :  { %5729 = vmatpush.bf16.msrb.mxu2 %v8780_v0  ;;  %v8839_v24 = vld [vmem:[%s10801_s1 + $0x1178] sm:$0xff] }
 0x1f1   :  { %5742 = vmatpush.bf16.msrb.mxu3 %v8788_v1 }
 0x1f2   :  { %5704 = vmatpush.bf16.msrb.mxu0 %v8763_v3  ;;  %v8802_v3 = vld [vmem:[%s10801_s1 + $0x1050] sm:$0xff] }
 0x1f3   :  { %5717 = vmatpush.bf16.msrb.mxu1 %v8771_v4 }
 0x1f4   :  { %5730 = vmatpush.bf16.msrb.mxu2 %v8779_v5  ;;  %v8810_v5 = vld [vmem:[%s10801_s1 + $0x1090] sm:$0xff] }
 0x1f5   :  { %5743 = vmatpush.bf16.msrb.mxu3 %v8787_v6  ;;  %v8818_v6 = vld [vmem:[%s10801_s1 + $0x10d0] sm:$0xff] }
 0x1f6   :  { %5705 = vmatpush.bf16.msrb.mxu0 %v8762_v12  ;;  %v53_v12 = vld [vmem:[%s10802_s0 + $0x108] sm:$0xff] }
 0x1f7   :  { %5718 = vmatpush.bf16.msrb.mxu1 %v8770_v13  ;;  %v1315_v22 = vunpack.c.h.b16 %v53_v12 }
 0x1f8   :  { %5731 = vmatpush.bf16.msrb.mxu2 %v8778_v15  ;;  %v8792_v15 = vld [vmem:[%s10801_s1 + $0x1000] sm:$0xff] }
 0x1f9   :  { %5744 = vmatpush.bf16.msrb.mxu3 %v8786_v16  ;;  %v8800_v16 = vld [vmem:[%s10801_s1 + $0x1040] sm:$0xff] }
 0x1fa   :  { %5706 = vmatpush.bf16.msrb.mxu0 %v8761_v17 }
 0x1fb   :  { %5719 = vmatpush.bf16.msrb.mxu1 %v8769_v18  ;;  %v1314_v18 = vunpack.c.l.b16 %v53_v12  ;;  %v8848_v12 = vld [vmem:[%s10801_s1 + $0x11c0] sm:$0xff] }
 0x1fc   :  { %5732 = vmatpush.bf16.msrb.mxu2 %v8777_v19  ;;  %v8808_v19 = vld [vmem:[%s10801_s1 + $0x1080] sm:$0xff] }
 0x1fd   :  { %5745 = vmatpush.bf16.msrb.mxu3 %v8785_v20  ;;  %v8816_v20 = vld [vmem:[%s10801_s1 + $0x10c0] sm:$0xff]  ;;  %v1386_v28 = vpack.c.b16 %v1314_v18, %v1314_v18 }
 0x1fe   :  { %5707 = vmatpush.bf16.msrb.mxu0 %v8760_v25  ;;  %v5501_v49 = vpop.f32.mrf.mxu0  ;;  %v8847_v25 = vld [vmem:[%s10801_s1 + $0x11b8] sm:$0xff] }
 0x1ff   :  { %5720 = vmatpush.bf16.msrb.mxu1 %v8768_v26  ;;  %v5502_v50 = vadd.f32 %v5501_v49, %v10519_v11  ;;  %v5514_v53 = vpop.f32.mrf.mxu1  ;;  %v52_v11 = vld [vmem:[%s10802_s0 + $0x100] sm:$0xff]  ;;  %v8855_v26 = vld [vmem:[%s10801_s1 + $0x11f8] sm:$0xff] }
 0x200   :  { %5733 = vmatpush.bf16.msrb.mxu2 %v8776_v29  ;;  %v1312_v17 = vunpack.c.l.b16 %v52_v11  ;;  %v1313_v21 = vunpack.c.h.b16 %v52_v11  ;;  %v8843_v49 = vld [vmem:[%s10801_s1 + $0x1198] sm:$0xff]  ;;  %v8840_v11 = vld [vmem:[%s10801_s1 + $0x1180] sm:$0xff] }
 0x201   :  { %5746 = vmatpush.bf16.msrb.mxu3 %v8784_v30  ;;  %5708 = vmatmul.bf16.vlgmr.msrb.gmra.mxu0 %v1380_v37  ;;  %v5515_v56 = vadd.f32 %v5514_v53, %v5502_v50  ;;  %v1387_v30 = vpack.c.b16 %v1315_v22, %v1315_v22  ;;  %v8845_v37 = vld [vmem:[%s10801_s1 + $0x11a8] sm:$0xff]  ;;  %v8851_v50 = vld [vmem:[%s10801_s1 + $0x11d8] sm:$0xff] }
 0x202   :  { %5752 = vmatpush.bf16.msra.mxu0 %v8799_v33  ;;  %5721 = vmatmul.bf16.vlgmr.msrb.gmra.mxu1 %v1381_v39  ;;  %v1384_v27 = vpack.c.b16 %v1312_v17, %v1312_v17  ;;  %v1385_v29 = vpack.c.b16 %v1313_v21, %v1313_v21  ;;  %v8846_v33 = vld [vmem:[%s10801_s1 + $0x11b0] sm:$0xff] }
 0x203   :  { %5765 = vmatpush.bf16.msra.mxu1 %v8807_v34  ;;  %5734 = vmatmul.bf16.vlgmr.msrb.gmra.mxu2 %v1382_v38  ;;  %v8854_v34 = vld [vmem:[%s10801_s1 + $0x11f0] sm:$0xff]  ;;  %v8853_v38 = vld [vmem:[%s10801_s1 + $0x11e8] sm:$0xff] }
 0x204   :  { %5778 = vmatpush.bf16.msra.mxu2 %v8815_v35  ;;  %5747 = vmatmul.bf16.vlgmr.msrb.gmra.mxu3 %v1383_v40  ;;  %v8829_v35 = vld [vmem:[%s10801_s1 + $0x1128] sm:$0xff] }
 0x205   :  { %5791 = vmatpush.bf16.msra.mxu3 %v8823_v36  ;;  %v8837_v36 = vld [vmem:[%s10801_s1 + $0x1168] sm:$0xff] }
 0x206   :  { %5753 = vmatpush.bf16.msra.mxu0 %v8798_v41  ;;  %v5527_v61 = vpop.f32.mrf.mxu2  ;;  %v5503_v0 = vpop.f32.mrf.mxu0  ;;  %v8828_v41 = vld [vmem:[%s10801_s1 + $0x1120] sm:$0xff] }
 0x207   :  { %5766 = vmatpush.bf16.msra.mxu1 %v8806_v42  ;;  %v5528_v62 = vadd.f32 %v5527_v61, %v5515_v56  ;;  %v5540_v63 = vpop.f32.mrf.mxu3  ;;  %v5516_v4 = vpop.f32.mrf.mxu1  ;;  %v8836_v42 = vld [vmem:[%s10801_s1 + $0x1160] sm:$0xff]  ;;  %v8826_v56 = vld [vmem:[%s10801_s1 + $0x1110] sm:$0xff]  ;;  %v8825_v61 = vld [vmem:[%s10801_s1 + $0x1108] sm:$0xff] }
 0x208   :  { %5779 = vmatpush.bf16.msra.mxu2 %v8814_v43  ;;  %v8841_v0 = vld [vmem:[%s10801_s1 + $0x1188] sm:$0xff] }
 0x209   :  { %5792 = vmatpush.bf16.msra.mxu3 %v8822_v44  ;;  %v10624_v1 = vadd.f32 %v5540_v63, %v5528_v62  ;;  %v8844_v44 = vld [vmem:[%s10801_s1 + $0x11a0] sm:$0xff]  ;;  %v8833_v62 = vld [vmem:[%s10801_s1 + $0x1148] sm:$0xff]  ;;  %v54_v63 = vld [vmem:[%s10802_s0 + $0x110] sm:$0xff] }
 0x20a   :  { %5754 = vmatpush.bf16.msra.mxu0 %v8797_v45  ;;  %v8852_v45 = vld [vmem:[%s10801_s1 + $0x11e0] sm:$0xff] }
 0x20b   :  { %5767 = vmatpush.bf16.msra.mxu1 %v8805_v46 }
 0x20c   :  { %5780 = vmatpush.bf16.msra.mxu2 %v8813_v47  ;;  %v8827_v47 = vld [vmem:[%s10801_s1 + $0x1118] sm:$0xff] }
 0x20d   :  { %5793 = vmatpush.bf16.msra.mxu3 %v8821_v48  ;;  %v8835_v48 = vld [vmem:[%s10801_s1 + $0x1158] sm:$0xff] }
 0x20e   :  { %5755 = vmatpush.bf16.msra.mxu0 %v8796_v51  ;;  %v5529_v13 = vpop.f32.mrf.mxu2 }
 0x20f   :  { %5768 = vmatpush.bf16.msra.mxu1 %v8804_v52  ;;  %v5542_v14 = vpop.f32.mrf.mxu3 }
 0x210   :  { %5781 = vmatpush.bf16.msra.mxu2 %v8812_v54 }
 0x211   :  { %5794 = vmatpush.bf16.msra.mxu3 %v8820_v55 }
 0x212   :  { %5756 = vmatpush.bf16.msra.mxu0 %v8795_v57  ;;  %v8834_v57 = vld [vmem:[%s10801_s1 + $0x1150] sm:$0xff] }
 0x213   :  { %5769 = vmatpush.bf16.msra.mxu1 %v8803_v58 }
 0x214   :  { %5782 = vmatpush.bf16.msra.mxu2 %v8811_v59  ;;  %v8842_v59 = vld [vmem:[%s10801_s1 + $0x1190] sm:$0xff] }
 0x215   :  { %5795 = vmatpush.bf16.msra.mxu3 %v8819_v60  ;;  %v8850_v60 = vld [vmem:[%s10801_s1 + $0x11d0] sm:$0xff] }
 0x216   :  { %5757 = vmatpush.bf16.msra.mxu0 %v8794_v2  ;;  %v55_v2 = vld [vmem:[%s10802_s0 + $0x118] sm:$0xff] }
 0x217   :  { %5770 = vmatpush.bf16.msra.mxu1 %v8802_v3 }
 0x218   :  { %5783 = vmatpush.bf16.msra.mxu2 %v8810_v5  ;;  %v1316_v5 = vunpack.c.l.b16 %v54_v63 }
 0x219   :  { %5796 = vmatpush.bf16.msra.mxu3 %v8818_v6  ;;  %v1317_v6 = vunpack.c.h.b16 %v54_v63 }
 0x21a   :  { %5758 = vmatpush.bf16.msra.mxu0 %v8793_v7  ;;  %v8824_v7 = vld [vmem:[%s10801_s1 + $0x1100] sm:$0xff]  ;;  %v1388_v13 = vpack.c.b16 %v1316_v5, %v1316_v5 }
 0x21b   :  { %5771 = vmatpush.bf16.msra.mxu1 %v8801_v8  ;;  %v8832_v8 = vld [vmem:[%s10801_s1 + $0x1140] sm:$0xff]  ;;  %v1389_v14 = vpack.c.b16 %v1317_v6, %v1317_v6 }
 0x21c   :  { %5784 = vmatpush.bf16.msra.mxu2 %v8809_v9  ;;  %v1318_v9 = vunpack.c.l.b16 %v55_v2 }
 0x21d   :  { %5797 = vmatpush.bf16.msra.mxu3 %v8817_v10  ;;  %v1319_v10 = vunpack.c.h.b16 %v55_v2 }
 0x21e   :  { %5759 = vmatpush.bf16.msra.mxu0 %v8792_v15  ;;  %v5553_v39 = vpop.f32.mrf.mxu0  ;;  %v1390_v15 = vpack.c.b16 %v1318_v9, %v1318_v9 }
 0x21f   :  { %5772 = vmatpush.bf16.msra.mxu1 %v8800_v16  ;;  %v5554_v40 = vadd.f32 %v5553_v39, %v10624_v1  ;;  %v5566_v43 = vpop.f32.mrf.mxu1  ;;  %v8849_v1 = vld [vmem:[%s10801_s1 + $0x11c8] sm:$0xff]  ;;  %v1391_v16 = vpack.c.b16 %v1319_v10, %v1319_v10 }
 0x220   :  { %5785 = vmatpush.bf16.msra.mxu2 %v8808_v19 }
 0x221   :  { %5798 = vmatpush.bf16.msra.mxu3 %v8816_v20  ;;  %5760 = vmatmul.bf16.vlgmr.msra.gmra.mxu0 %v1384_v27  ;;  %v5567_v46 = vadd.f32 %v5566_v43, %v5554_v40 }
 0x222   :  { %5804 = vmatpush.bf16.msrb.mxu0 %v8831_v23  ;;  %5773 = vmatmul.bf16.vlgmr.msra.gmra.mxu1 %v1385_v29 }
 0x223   :  { %5817 = vmatpush.bf16.msrb.mxu1 %v8839_v24  ;;  %5786 = vmatmul.bf16.vlgmr.msra.gmra.mxu2 %v1386_v28 }
 0x224   :  { %5830 = vmatpush.bf16.msrb.mxu2 %v8847_v25  ;;  %5799 = vmatmul.bf16.vlgmr.msra.gmra.mxu3 %v1387_v30 }
 0x225   :  { %5843 = vmatpush.bf16.msrb.mxu3 %v8855_v26 }
 0x226   :  { %5805 = vmatpush.bf16.msrb.mxu0 %v8830_v31  ;;  %v5579_v51 = vpop.f32.mrf.mxu2  ;;  %v5555_v54 = vpop.f32.mrf.mxu0 }
 0x227   :  { %5818 = vmatpush.bf16.msrb.mxu1 %v8838_v32  ;;  %v5580_v52 = vadd.f32 %v5579_v51, %v5567_v46  ;;  %v5592_v53 = vpop.f32.mrf.mxu3  ;;  %v5568_v58 = vpop.f32.mrf.mxu1 }
 0x228   :  { %5831 = vmatpush.bf16.msrb.mxu2 %v8846_v33 }
 0x229   :  { %5844 = vmatpush.bf16.msrb.mxu3 %v8854_v34  ;;  %v5593_v55 = vadd.f32 %v5592_v53, %v5580_v52  ;;  %v8860_v52 = vld [vmem:[%s10805_s3 + $0x20] sm:$0xff]  ;;  %v8859_v53 = vld [vmem:[%s10805_s3 + $0x18] sm:$0xff] }
 0x22a   :  { %5806 = vmatpush.bf16.msrb.mxu0 %v8829_v35 }
 0x22b   :  { %5819 = vmatpush.bf16.msrb.mxu1 %v8837_v36 }
 0x22c   :  { %5832 = vmatpush.bf16.msrb.mxu2 %v8845_v37 }
 0x22d   :  { %5845 = vmatpush.bf16.msrb.mxu3 %v8853_v38 }
 0x22e   :  { %5807 = vmatpush.bf16.msrb.mxu0 %v8828_v41  ;;  %v5581_v3 = vpop.f32.mrf.mxu2 }
 0x22f   :  { %5820 = vmatpush.bf16.msrb.mxu1 %v8836_v42  ;;  %v5594_v4 = vpop.f32.mrf.mxu3 }
 0x230   :  { %5833 = vmatpush.bf16.msrb.mxu2 %v8844_v44 }
 0x231   :  { %5846 = vmatpush.bf16.msrb.mxu3 %v8852_v45  ;;  %v8863_v45 = vld [vmem:[%s10805_s3 + $0x38] sm:$0xff] }
 0x232   :  { %5808 = vmatpush.bf16.msrb.mxu0 %v8827_v47 }
 0x233   :  { %5821 = vmatpush.bf16.msrb.mxu1 %v8835_v48  ;;  %v8862_v48 = vld [vmem:[%s10805_s3 + $0x30] sm:$0xff] }
 0x234   :  { %5834 = vmatpush.bf16.msrb.mxu2 %v8843_v49  ;;  %v8861_v49 = vld [vmem:[%s10805_s3 + $0x28] sm:$0xff] }
 0x235   :  { %5847 = vmatpush.bf16.msrb.mxu3 %v8851_v50 }
 0x236   :  { %5809 = vmatpush.bf16.msrb.mxu0 %v8826_v56 }
 0x237   :  { %5822 = vmatpush.bf16.msrb.mxu1 %v8834_v57  ;;  %v8857_v57 = vld [vmem:[%s10805_s3 + $0x8] sm:$0xff] }
 0x238   :  { %5835 = vmatpush.bf16.msrb.mxu2 %v8842_v59 }
 0x239   :  { %5848 = vmatpush.bf16.msrb.mxu3 %v8850_v60 }
 0x23a   :  { %5810 = vmatpush.bf16.msrb.mxu0 %v8825_v61 }
 0x23b   :  { %5823 = vmatpush.bf16.msrb.mxu1 %v8833_v62  ;;  %v8856_v62 = vld [vmem:[%s10805_s3] sm:$0xff] }
 0x23c   :  { %5836 = vmatpush.bf16.msrb.mxu2 %v8841_v0 }
 0x23d   :  { %5849 = vmatpush.bf16.msrb.mxu3 %v8849_v1 }
 0x23e   :  { %5811 = vmatpush.bf16.msrb.mxu0 %v8824_v7  ;;  %v5605_v17 = vpop.f32.mrf.mxu0 }
 0x23f   :  { %5824 = vmatpush.bf16.msrb.mxu1 %v8832_v8  ;;  %v5606_v18 = vadd.f32 %v5605_v17, %v5593_v55  ;;  %v5618_v19 = vpop.f32.mrf.mxu1  ;;  %v8858_v55 = vld [vmem:[%s10805_s3 + $0x10] sm:$0xff] }
 0x240   :  { %5837 = vmatpush.bf16.msrb.mxu2 %v8840_v11 }
 0x241   :  { %5850 = vmatpush.bf16.msrb.mxu3 %v8848_v12  ;;  %5812 = vmatmul.bf16.vlgmr.msrb.gmra.mxu0 %v1388_v13  ;;  %v5619_v20 = vadd.f32 %v5618_v19, %v5606_v18 }
 0x242   :  { %5825 = vmatmul.bf16.vlgmr.msrb.gmra.mxu1 %v1389_v14  ;;  %5926 = vmatpush.bf16.msra.mxu0 %v8863_v45 }
 0x243   :  { %5838 = vmatmul.bf16.vlgmr.msrb.gmra.mxu2 %v1390_v15 }
 0x244   :  { %5851 = vmatmul.bf16.vlgmr.msrb.gmra.mxu3 %v1391_v16 }
 0x246   :  { %v5631_v21 = vpop.f32.mrf.mxu2  ;;  %v5607_v24 = vpop.f32.mrf.mxu0  ;;  %5927 = vmatpush.bf16.msra.mxu0 %v8862_v48 }
 0x247   :  { %v5632_v22 = vadd.f32 %v5631_v21, %v5619_v20  ;;  %v5644_v23 = vpop.f32.mrf.mxu3  ;;  %v5620_v26 = vpop.f32.mrf.mxu1 }
 0x249   :  { %v5645_v25 = vadd.f32 %v5644_v23, %v5632_v22  ;;  %v8865_v23 = vld [vmem:[%s10804_s4] ss:$0 sm:$0xff] }
 0x24a   :  { %5928 = vmatpush.bf16.msra.mxu0 %v8861_v49 }
 0x24e   :  { %v5633_v27 = vpop.f32.mrf.mxu2  ;;  %5929 = vmatpush.bf16.msra.mxu0 %v8860_v52 }
 0x24f   :  { %v5646_v28 = vpop.f32.mrf.mxu3 }
 0x252   :  { %5930 = vmatpush.bf16.msra.mxu0 %v8859_v53 }
 0x256   :  { %5931 = vmatpush.bf16.msra.mxu0 %v8858_v55 }
 0x25a   :  { %5932 = vmatpush.bf16.msra.mxu0 %v8857_v57 }
 0x25e   :  { %v5657_v29 = vpop.f32.mrf.mxu0  ;;  %5933 = vmatpush.bf16.msra.mxu0 %v8856_v62 }
 0x25f   :  { %v5658_v30 = vadd.f32 %v5657_v29, %v5645_v25  ;;  %v5670_v31 = vpop.f32.mrf.mxu1 }
 0x261   :  { %v5671_v32 = vadd.f32 %v5670_v31, %v5658_v30 }
 0x266   :  { %v5683_v33 = vpop.f32.mrf.mxu2  ;;  %v5659_v36 = vpop.f32.mrf.mxu0 }
 0x267   :  { %v5684_v34 = vadd.f32 %v5683_v33, %v5671_v32  ;;  %v5696_v35 = vpop.f32.mrf.mxu3  ;;  %v5672_v38 = vpop.f32.mrf.mxu1 }
 0x269   :  { %v5697_v37 = vadd.f32 %v5696_v35, %v5684_v34 }
 0x26e   :  { %v5685_v39 = vpop.f32.mrf.mxu2 }
 0x26f   :  { %v5698_v40 = vpop.f32.mrf.mxu3 }
 0x27e   :  { %v5709_v41 = vpop.f32.mrf.mxu0 }
 0x27f   :  { %v5722_v42 = vpop.f32.mrf.mxu1  ;;  %v5710_v59 = vadd.f32 %v5709_v41, %v5697_v37 }
 0x281   :  { %v5723_v0 = vadd.f32 %v5722_v42, %v5710_v59 }
 0x286   :  { %v5735_v43 = vpop.f32.mrf.mxu2  ;;  %v5711_v46 = vpop.f32.mrf.mxu0 }
 0x287   :  { %v5748_v44 = vpop.f32.mrf.mxu3  ;;  %v5724_v47 = vpop.f32.mrf.mxu1  ;;  %v5736_v1 = vadd.f32 %v5735_v43, %v5723_v0 }
 0x289   :  { %v5749_v4 = vadd.f32 %v5748_v44, %v5736_v1 }
 0x28e   :  { %v5737_v50 = vpop.f32.mrf.mxu2 }
 0x28f   :  { %v5750_v51 = vpop.f32.mrf.mxu3 }
 0x29e   :  { %v5761_v54 = vpop.f32.mrf.mxu0 }
 0x29f   :  { %v5774_v56 = vpop.f32.mrf.mxu1  ;;  %v5762_v5 = vadd.f32 %v5761_v54, %v5749_v4 }
 0x2a1   :  { %v5775_v6 = vadd.f32 %v5774_v56, %v5762_v5 }
 0x2a6   :  { %v5787_v58 = vpop.f32.mrf.mxu2  ;;  %v5763_v61 = vpop.f32.mrf.mxu0 }
 0x2a7   :  { %v5800_v60 = vpop.f32.mrf.mxu3  ;;  %v5776_v63 = vpop.f32.mrf.mxu1  ;;  %v5788_v7 = vadd.f32 %v5787_v58, %v5775_v6 }
 0x2a9   :  { %v5801_v8 = vadd.f32 %v5800_v60, %v5788_v7 }
 0x2ae   :  { %v5789_v2 = vpop.f32.mrf.mxu2 }
 0x2af   :  { %v5802_v3 = vpop.f32.mrf.mxu3 }
 0x2be   :  { %v5813_v9 = vpop.f32.mrf.mxu0 }
 0x2bf   :  { %v5826_v10 = vpop.f32.mrf.mxu1  ;;  %v5814_v11 = vadd.f32 %v5813_v9, %v5801_v8 }
 0x2c1   :  { %v5827_v12 = vadd.f32 %v5826_v10, %v5814_v11 }
 0x2c6   :  { %v5839_v13 = vpop.f32.mrf.mxu2  ;;  %v5815_v16 = vpop.f32.mrf.mxu0 }
 0x2c7   :  { %v5852_v14 = vpop.f32.mrf.mxu3  ;;  %v5840_v15 = vadd.f32 %v5839_v13, %v5827_v12  ;;  %v5828_v17 = vpop.f32.mrf.mxu1 }
 0x2c9   :  { %v5853_v18 = vadd.f32 %v5852_v14, %v5840_v15 }
 0x2cb   :  { %v5856_v19 = vmax.f32 %v5853_v18, 0.0 }
 0x2cd   :  { %v5857_v20 = vpack.c.bf16 %v5856_v19, %v5856_v19 }
 0x2ce   :  { %v5841_v21 = vpop.f32.mrf.mxu2 }
 0x2cf   :  { %v5854_v22 = vpop.f32.mrf.mxu3  ;;  %5934 = vmatmul.bf16.vlgmr.msra.gmra.mxu0 %v5857_v20 }
 0x34c   :  { %v5935_v24 = vpop.f32.mrf.mxu0 }
 0x34d   :  { %v5936_v25 = vadd.f32 %v8865_v23, %v5935_v24 }
 0x34f   :  { %5939 = vst [vmem:[%s10806_s5] sm:$0xff] %v5936_v25 }
 0x354   :  { %v5937_v26 = vpop.f32.mrf.mxu0 }

// kernel: torch_cnn_forward.2
= control target key start
LH: loop header
LB: loop body
LE: loop exit
PB: predicated region body
PF: predicated region fallthrough
CT: control target
= control target key end

     0   :  { %s8911_s18 = smov 0   ;;  %s12982_s0 = inlined_call_operand.vmem [shape: f32[2,784,16], index: 0, kind: input, shape index: {}]   ;;  %s12983_s1 = inlined_call_operand.vmem [shape: f32[16,32], index: 1, kind: input, shape index: {}]   ;;  %s12984_s2 = inlined_call_operand.vmem [shape: f32[1,32], index: 2, kind: input, shape index: {}]   ;;  %s12985_s3 = inlined_call_operand.vmem [shape: bf16[288,64], index: 3, kind: input, shape index: {}]   ;;  %s12986_s4 = inlined_call_operand.vmem [shape: f32[1,128], index: 4, kind: input, shape index: {}]   ;;  %s12987_s5 = inlined_call_operand.vmem [shape: bf16[2,72,128], index: 5, kind: output, shape index: {}]  }
   0x1 LB: > { %s7433_s19 = sadd.s32 4294967295, %s8876_s18   ;;  %p7437_p0 = scmp.ge.s32.totalorder %s8876_s18, 1  ;;  %s8876_s18 = sphi %s8911_s18, %s15_s18  }
   0x2   : > { %p187_p1 = scmp.lt.s32.totalorder %s8876_s18, 3 }
   0x4   : > { %p188_p2 = pnand %p7437_p0, %p187_p1 }
   0x6   : > { %191 = sbr.rel (%p188_p2) target bundleno = 1323 (0x52b), region = 40 }
   0xb   : > { %v325_v0 = vld [vmem:[%s12983_s1 + $0x8] sm:$0xff]  ;;  %v324_v1 = vld [vmem:[%s12983_s1] sm:$0xff]  ;;  %p215_p3 = scmp.lt.s32.totalorder %s7433_s19, 1  ;;  %vm330_vm0 = vcmask 130048   ;;  %vm1132_vm1 = vcmask 257024   ;;  %vm1971_vm2 = vcmask 1046528  }
   0xc   : > { %639 = vmatpush.msra.mxu0 %v325_v0  ;;  %8802 = vmatpush.msra.mxu3 %v325_v0  ;;  %v8968_v18 = vld [vmem:[%s12984_s2] ss:$0 sm:$0xff]  ;;  %vm1543_vm3 = vsmask.f32 7424  ;;  %s8878_s30 = smov 64   ;;  %s8879_s6 = smov 32  }
   0xd   : > { %s13047_s19 = smov (!%p215_p3, %s7433_s19), 1  ;;  %vm2194_vm4 = vcmask 1045504   ;;  %vm2757_vm5 = vcmask 1044480   ;;  %s8880_s7 = smov 96   ;;  %vm2367_vm6 = vsmask.f32 5376 }
   0xe   : > { %640 = vmatpush.msra.mxu0 %v324_v1  ;;  %8803 = vmatpush.msra.mxu3 %v324_v1  ;;  %s8806_s24 = smul.u32 784, %s13047_s19  ;;  %vm3336_vm7 = vcmask 261120   ;;  %vm3421_vm8 = vcmask 523264   ;;  %vm3506_vm9 = vcmask 785408  }
   0xf   : > { %s8807_s21 = smul.u32 36, %s13047_s19 }
  0x10   : > { %s8931_s27 = scalar_lea.vmem %s12982_s0, %s8806_s24 }
  0x11   : > { %v226_v2 = vld [vmem:[%s8931_s27] sm:$0xff]  ;;  %v227_v3 = vld [vmem:[%s8931_s27 + $0x8] sm:$0xff]  ;;  %v228_v4 = vld [vmem:[%s8931_s27 + $0x10] sm:$0xff]  ;;  %s12892_s23 = scalar_lea.vmem %s12987_s5, %s8807_s21 }
  0x12   : > { %7440 = vmatmul.msk.f32.vlgmr.msra.gmra.mxu0 %vm330_vm0, %v226_v2  ;;  %v229_v5 = vld [vmem:[%s8931_s27 + $0x18] sm:$0xff]  ;;  %v230_v6 = vld [vmem:[%s8931_s27 + $0x20] sm:$0xff]  ;;  %v231_v7 = vld [vmem:[%s8931_s27 + $0x28] sm:$0xff] }
  0x13   : > { %v232_v8 = vld [vmem:[%s8931_s27 + $0x30] sm:$0xff]  ;;  %v233_v9 = vld [vmem:[%s8931_s27 + $0x38] sm:$0xff]  ;;  %v234_v10 = vld [vmem:[%s8931_s27 + $0x40] sm:$0xff] }
  0x14   : > { %v235_v11 = vld [vmem:[%s8931_s27 + $0x48] sm:$0xff]  ;;  %v236_v12 = vld [vmem:[%s8931_s27 + $0x50] sm:$0xff]  ;;  %v237_v13 = vld [vmem:[%s8931_s27 + $0x58] sm:$0xff] }
  0x15   : > { %v238_v14 = vld [vmem:[%s8931_s27 + $0x60] sm:$0xff]  ;;  %v239_v15 = vld [vmem:[%s8931_s27 + $0x68] sm:$0xff]  ;;  %v240_v16 = vld [vmem:[%s8931_s27 + $0x70] sm:$0xff] }
  0x16   : > { %v241_v17 = vld [vmem:[%s8931_s27 + $0x78] sm:$0xff]  ;;  %v242_v20 = vld [vmem:[%s8931_s27 + $0x80] sm:$0xff]  ;;  %v243_v25 = vld [vmem:[%s8931_s27 + $0x88] sm:$0xff] }
  0x17   : > { %v244_v30 = vld [vmem:[%s8931_s27 + $0x90] sm:$0xff]  ;;  %v245_v35 = vld [vmem:[%s8931_s27 + $0x98] sm:$0xff]  ;;  %v246_v41 = vld [vmem:[%s8931_s27 + $0xa0] sm:$0xff] }
  0x18   : > { %v316_v42 = vld [vmem:[%s8931_s27 + $0x2d0] sm:$0xff]  ;;  %v247_v53 = vld [vmem:[%s8931_s27 + $0xa8] sm:$0xff]  ;;  %v317_v59 = vld [vmem:[%s8931_s27 + $0x2d8] sm:$0xff] }
  0x19   : > { %7530 = vmatmul.msk.f32.vlgmr.msra.gmra.mxu3 %vm330_vm0, %v316_v42 }
  0x1a   : > { %7441 = vmatmul.msk.f32.gmra.mxu0 %vm330_vm0, %v227_v3  ;;  %v248_v3 = vld [vmem:[%s8931_s27 + $0xb0] sm:$0xff] }
  0x21   : > { %7531 = vmatmul.msk.f32.gmra.mxu3 %vm330_vm0, %v317_v59 }
  0x22   : > { %7442 = vmatmul.msk.f32.gmra.mxu0 %vm330_vm0, %v228_v4 }
  0x2a   : > { %7443 = vmatmul.msk.f32.gmra.mxu0 %vm330_vm0, %v229_v5  ;;  %v318_v5 = vld [vmem:[%s8931_s27 + $0x2e0] sm:$0xff] }
  0x2b   : > { %7532 = vmatmul.msk.f32.gmra.mxu3 %vm330_vm0, %v318_v5 }
  0x32   : > { %7444 = vmatmul.msk.f32.gmra.mxu0 %vm330_vm0, %v230_v6 }
  0x3a   : > { %7445 = vmatmul.msk.f32.gmra.mxu0 %vm330_vm0, %v231_v7 }
  0x42   : > { %7446 = vmatmul.msk.f32.gmra.mxu0 %vm330_vm0, %v232_v8 }
  0x4a   : > { %7447 = vmatmul.msk.f32.gmra.mxu0 %vm330_vm0, %v233_v9 }
  0x52   : > { %7448 = vmatmul.msk.f32.gmra.mxu0 %vm330_vm0, %v234_v10 }
  0x5a   : > { %7449 = vmatmul.msk.f32.gmra.mxu0 %vm330_vm0, %v235_v11 }
  0x62   : > { %7450 = vmatmul.msk.f32.gmra.mxu0 %vm330_vm0, %v236_v12 }
  0x6a   : > { %7451 = vmatmul.msk.f32.gmra.mxu0 %vm330_vm0, %v237_v13 }
  0x72   : > { %7452 = vmatmul.msk.f32.gmra.mxu0 %vm330_vm0, %v238_v14  ;;  %v249_v14 = vld [vmem:[%s8931_s27 + $0xb8] sm:$0xff] }
  0x7a   : > { %7453 = vmatmul.msk.f32.gmra.mxu0 %vm330_vm0, %v239_v15 }
  0x82   : > { %7454 = vmatmul.msk.f32.gmra.mxu0 %vm330_vm0, %v240_v16 }
  0x8a   : > { %7455 = vmatmul.msk.f32.gmra.mxu0 %vm330_vm0, %v241_v17  ;;  %v319_v17 = vld [vmem:[%s8931_s27 + $0x2e8] sm:$0xff] }
  0x8b   : > { %7533 = vmatmul.msk.f32.gmra.mxu3 %vm330_vm0, %v319_v17 }
  0x8f   : > { %v642_v19 = vpop.f32.mrf.mxu0 }
  0x90   : > { %v643_v21 = vadd.f32 %v8968_v18, %v642_v19 }
  0x92   : > { %v936_v22 = vmax.f32 %v643_v21, 0.0  ;;  %7456 = vmatmul.msk.f32.gmra.mxu0 %vm330_vm0, %v242_v20 }
  0x94   : > { %v1034_v23 = vpack.c.bf16 %v936_v22, %v936_v22 }
  0x96   : > { %1133 = vst.msk [vmem:[#allocation2] sm:$0xf] %vm1132_vm1, %v1034_v23 }
  0x97   : > { %v645_v24 = vpop.f32.mrf.mxu0 }
  0x98   : > { %v646_v26 = vadd.f32 %v8968_v18, %v645_v24 }
  0x9a   : > { %v937_v27 = vmax.f32 %v646_v26, 0.0  ;;  %7457 = vmatmul.msk.f32.gmra.mxu0 %vm330_vm0, %v243_v25 }
  0x9c   : > { %v1035_v28 = vpack.c.bf16 %v937_v27, %v937_v27 }
  0x9d   : > { %v8527_v47 = vld [vmem:[#allocation2] sm:$0xe] }
  0x9e   : > { %1134 = vst.msk [vmem:[#allocation2 + $0x4] sm:$0xf] %vm1132_vm1, %v1035_v28  ;;  %v250_v28 = vld [vmem:[%s8931_s27 + $0xc0] sm:$0xff] }
  0x9f   : > { %v648_v29 = vpop.f32.mrf.mxu0 }
  0xa0   : > { %v649_v31 = vadd.f32 %v8968_v18, %v648_v29 }
  0xa2   : > { %v938_v32 = vmax.f32 %v649_v31, 0.0  ;;  %7458 = vmatmul.msk.f32.gmra.mxu0 %vm330_vm0, %v244_v30 }
  0xa4   : > { %v1036_v33 = vpack.c.bf16 %v938_v32, %v938_v32 }
  0xa5   : > { %v8323_v39 = vld [vmem:[#allocation2] sm:$0xff]  }
  0xa6   : > { %1135 = vst.msk [vmem:[#allocation2 + $0x8] sm:$0xf] %vm1132_vm1, %v1036_v33  ;;  %v8526_v44 = vld [vmem:[#allocation2] sm:$0xf0]  ;;  %v1547_v45 = vshll.u32 %v8323_v39, 16  ;;  %v1545_v56 = vshrl.u32 %v8323_v39, 16 }
  0xa7   : > { %v651_v34 = vpop.f32.mrf.mxu0  ;;  %v8528_v48 = vor.u32 %v8527_v47, %v8526_v44 }
  0xa8   : > { %v652_v36 = vadd.f32 %v8968_v18, %v651_v34  ;;  %v1549_v51 = vrot.slane %v1547_v45, 1 }
  0xa9   : > { %v1972_v54 = vrot.slane %v8528_v48, 1 }
  0xaa   : > { %v939_v37 = vmax.f32 %v652_v36, 0.0  ;;  %7459 = vmatmul.msk.f32.gmra.mxu0 %vm330_vm0, %v245_v35  ;;  %v1550_v61 = vor.u32 %v1549_v51, %v1545_v56  ;;  %v251_v51 = vld [vmem:[%s8931_s27 + $0xc8] sm:$0xff]  ;;  %v321_v56 = vld [vmem:[%s8931_s27 + $0x2f8] sm:$0xff] }
  0xac   : > { %v1037_v38 = vpack.c.bf16 %v939_v37, %v939_v37 }
  0xae   : > { %1136 = vst.msk [vmem:[#allocation2 + $0xc] sm:$0xf] %vm1132_vm1, %v1037_v38  ;;  %v320_v38 = vld [vmem:[%s8931_s27 + $0x2f0] sm:$0xff] }
  0xaf   : > { %v654_v40 = vpop.f32.mrf.mxu0  ;;  %7534 = vmatmul.msk.f32.gmra.mxu3 %vm330_vm0, %v320_v38 }
  0xb0   : > { %v655_v43 = vadd.f32 %v8968_v18, %v654_v40 }
  0xb2   : > { %v940_v46 = vmax.f32 %v655_v43, 0.0  ;;  %7460 = vmatmul.msk.f32.gmra.mxu0 %vm330_vm0, %v246_v41 }
  0xb4   : > { %v1038_v49 = vpack.c.bf16 %v940_v46, %v940_v46 }
  0xb5   : > { %v8991_v50 = vld [vmem:[#allocation2 + $0x8] sm:$0xff] }
  0xb6   : > { %1137 = vst.msk [vmem:[#allocation2 + $0x10] sm:$0xf] %vm1132_vm1, %v1038_v49  ;;  %v1973_v55 = vrot.slane %v8991_v50, 1  ;;  %v1552_v57 = vshll.u32 %v8991_v50, 16  ;;  %v1317_v7 = vld [vmem:[#allocation2 + $0xc] sm:$0xc] }
  0xb7   : > { %v657_v52 = vpop.f32.mrf.mxu0  ;;  %v2146_v11 = vunpack.c.l.b16 %v1317_v7  ;;  %v1323_v12 = vld [vmem:[#allocation2 + $0xc] sm:$0x8]  ;;  %v1556_v47 = vshrl.u32 %v8991_v50, 16  ;;  %7535 = vmatmul.msk.f32.gmra.mxu3 %vm330_vm0, %v321_v56  ;;  %v256_v50 = vld [vmem:[%s8931_s27 + $0xf0] sm:$0xff] }
  0xb8   : > { %v658_v58 = vadd.f32 %v8968_v18, %v657_v52  ;;  %v1974_v60 = vsel %vm1971_vm2, %v1972_v54, %v1973_v55  ;;  %v9002_v62 = vrot.slane %v1552_v57, 1  ;;  %v2755_v19 = vunpack.c.l.b16 %v1323_v12 }
  0xb9   : > { %2057 = vrot.lane.b32.xlu1 %v1974_v60, %s8878_s30 }
  0xba   : > { %v941_v63 = vmax.f32 %v658_v58, 0.0  ;;  %7461 = vmatmul.msk.f32.gmra.mxu0 %vm330_vm0, %v247_v53  ;;  %v1555_v0 = vsel %vm1543_vm3, %v1550_v61, %v9002_v62  ;;  %v1558_v54 = vor.u32 %v1556_v47, %v9002_v62  ;;  %v252_v61 = vld [vmem:[%s8931_s27 + $0xd0] sm:$0xff]  ;;  %v322_v62 = vld [vmem:[%s8931_s27 + $0x300] sm:$0xff] }
  0xbb   : > { %1884 = vrot.lane.b32.xlu0 %v1555_v0, %s8879_s6 }
  0xbc   : > { %v1039_v1 = vpack.c.bf16 %v941_v63, %v941_v63 }
  0xbe   : > { %1138 = vst.msk [vmem:[#allocation2 + $0x14] sm:$0xf] %vm1132_vm1, %v1039_v1 }
  0xbf   : > { %v660_v2 = vpop.f32.mrf.mxu0  ;;  %7536 = vmatmul.msk.f32.gmra.mxu3 %vm330_vm0, %v322_v62  ;;  %v255_v62 = vld [vmem:[%s8931_s27 + $0xe8] sm:$0xff] }
  0xc0   : > { %v661_v4 = vadd.f32 %v8968_v18, %v660_v2 }
  0xc2   : > { %v942_v6 = vmax.f32 %v661_v4, 0.0  ;;  %7462 = vmatmul.msk.f32.gmra.mxu0 %vm330_vm0, %v248_v3 }
  0xc4   : > { %v1040_v8 = vpack.c.bf16 %v942_v6, %v942_v6 }
  0xc5   : > { %v9016_v9 = vld [vmem:[#allocation2 + $0x10] sm:$0xff]  }
  0xc6   : > { %1139 = vst.msk [vmem:[#allocation2 + $0x18] sm:$0xf] %vm1132_vm1, %v1040_v8  ;;  %v8328_v10 = vunpack.c.l.b16 %v9016_v9  ;;  %v1560_v42 = vshll.u32 %v9016_v9, 16  ;;  %v253_v8 = vld [vmem:[%s8931_s27 + $0xd8] sm:$0xff] }
  0xc7   : > { %v663_v13 = vpop.f32.mrf.mxu0 }
  0xc8   : > { %v664_v15 = vadd.f32 %v8968_v18, %v663_v13  ;;  %v2151_v16 = vpack.c.b16 %v8328_v10, %v2146_v11  ;;  %v2756_v21 = vpack.c.b16 %v8328_v10, %v2755_v19  ;;  %v9050_v48 = vrot.slane %v1560_v42, 1  ;;  %v323_v13 = vld [vmem:[%s8931_s27 + $0x308] sm:$0xff] }
  0xc9   : > { %7537 = vmatmul.msk.f32.gmra.mxu3 %vm330_vm0, %v323_v13 }
  0xca   : > { %v943_v20 = vmax.f32 %v664_v15, 0.0  ;;  %7463 = vmatmul.msk.f32.gmra.mxu0 %vm330_vm0, %v249_v14  ;;  %v2369_v23 = vshrl.u32 %v2151_v16, 16  ;;  %v2372_v25 = vshll.u32 %v2151_v16, 16  ;;  %v2195_v26 = vrot.slane %v2151_v16, 2  ;;  %v9086_v14 = vld [vmem:[%s12985_s3 + $0x88] sm:$0xff] }
  0xcb   : > { %v2758_v30 = vrot.slane %v2756_v21, 3  ;;  %v1563_v58 = vsel %vm1543_vm3, %v1558_v54, %v9050_v48  ;;  %8804 = vmatpush.bf16.msrb.mxu3 %v9086_v14 }
  0xcc   : > { %v1041_v22 = vpack.c.bf16 %v943_v20, %v943_v20  ;;  %v2371_v34 = vrot.slane %v2369_v23, 2  ;;  %v2374_v39 = vrot.slane %v2372_v25, 3 }
  0xcd   : > { %v9025_v24 = vld [vmem:[#allocation2 + $0x14] sm:$0xff]  }
  0xce   : > { %1140 = vst.msk [vmem:[#allocation2 + $0x1c] sm:$0xf] %vm1132_vm1, %v1041_v22  ;;  %v2196_v29 = vrot.slane %v9025_v24, 2  ;;  %v2759_v31 = vrot.slane %v9025_v24, 3  ;;  %v2377_v32 = vshrl.u32 %v9025_v24, 16  ;;  %v2380_v35 = vshll.u32 %v9025_v24, 16 }
  0xcf   : > { %v666_v27 = vpop.f32.mrf.mxu0  ;;  %v2375_v46 = vor.u32 %v2374_v39, %v2371_v34 }
  0xd0   : > { %v667_v33 = vadd.f32 %v8968_v18, %v666_v27  ;;  %v2197_v36 = vsel %vm2194_vm4, %v2195_v26, %v2196_v29  ;;  %v2760_v37 = vsel %vm2757_vm5, %v2758_v30, %v2759_v31  ;;  %v2379_v40 = vrot.slane %v2377_v32, 2  ;;  %v9102_v27 = vld [vmem:[%s12985_s3 + $0x80] sm:$0xff] }
  0xd1   : > { %2280 = vrot.lane.b32.xlu2 %v2197_v36, %s8880_s7  ;;  %v2382_v43 = vrot.slane %v2380_v35, 3  ;;  %2843 = vrot.lane.b32.xlu0 %v2760_v37, %s8879_s6  ;;  %v1564_v30 = vshrl.u32 %v9016_v9, 16  ;;  %v254_v35 = vld [vmem:[%s8931_s27 + $0xe0] sm:$0xff] }
  0xd2   : > { %v944_v41 = vmax.f32 %v667_v33, 0.0  ;;  %7464 = vmatmul.msk.f32.gmra.mxu0 %vm330_vm0, %v250_v28  ;;  %8805 = vmatpush.bf16.msrb.mxu3 %v9102_v27 }
  0xd3   : > { %v9046_v45 = vor.u32 %v2382_v43, %v2379_v40  ;;  %v1566_v54 = vor.u32 %v1564_v30, %v9050_v48 }
  0xd4   : > { %v1042_v44 = vpack.c.bf16 %v944_v41, %v944_v41 }
  0xd5   : > { %v9055_v52 = vsel %vm2367_vm6, %v2375_v46, %v9046_v45  ;;  %v9070_v1 = vld [vmem:[#allocation2 + $0x18] sm:$0xff]  }
  0xd6   : > { %1141 = vst.msk [vmem:[#allocation2 + $0x20] sm:$0xf] %vm1132_vm1, %v1042_v44  ;;  %v8333_v4 = vunpack.c.h.b16 %v9070_v1  ;;  %v1329_v6 = vld [vmem:[#allocation2 + $0x1c] sm:$0xe]  ;;  %v1568_v20 = vshll.u32 %v9070_v1, 16 }
  0xd7   : > { %v669_v49 = vpop.f32.mrf.mxu0  ;;  %v3249_v12 = vunpack.c.l.b16 %v1329_v6 }
  0xd8   : > { %v670_v53 = vadd.f32 %v8968_v18, %v669_v49  ;;  %v9111_v37 = vrot.slane %v1568_v20, 1 }
  0xd9   : > { %1886 = vrot.lane.b32.xlu0 %v1563_v58, %s8879_s6 }
  0xda   : > { %v945_v57 = vmax.f32 %v670_v53, 0.0  ;;  %7465 = vmatmul.msk.f32.gmra.mxu0 %vm330_vm0, %v251_v51 }
  0xdc   : > { %v1043_v59 = vpack.c.bf16 %v945_v57, %v945_v57 }
  0xde   : > { %1142 = vst.msk [vmem:[#allocation2 + $0x24] sm:$0xf] %vm1132_vm1, %v1043_v59 }
  0xdf   : > { %v672_v60 = vpop.f32.mrf.mxu0 }
  0xe0   : > { %v673_v63 = vadd.f32 %v8968_v18, %v672_v60 }
  0xe2   : > { %v946_v0 = vmax.f32 %v673_v63, 0.0  ;;  %7466 = vmatmul.msk.f32.gmra.mxu0 %vm330_vm0, %v252_v61  ;;  %v1571_v63 = vsel %vm1543_vm3, %v1566_v54, %v9111_v37 }
  0xe4   : > { %v1044_v2 = vpack.c.bf16 %v946_v0, %v946_v0  ;;  %v1975_v0 = vrot.slane %v9016_v9, 1 }
  0xe5   : > { %v9073_v3 = vld [vmem:[#allocation2 + $0x20] sm:$0xff]  }
  0xe6   : > { %1143 = vst.msk [vmem:[#allocation2 + $0x28] sm:$0xf] %vm1132_vm1, %v1044_v2  ;;  %v8336_v5 = vunpack.c.l.b16 %v9073_v3  ;;  %v1976_v9 = vsel %vm1971_vm2, %v1973_v55, %v1975_v0 }
  0xe7   : > { %v675_v7 = vpop.f32.mrf.mxu0 }
  0xe8   : > { %v676_v10 = vadd.f32 %v8968_v18, %v675_v7  ;;  %v9080_v11 = vpack.c.b16 %v8336_v5, %v8333_v4  ;;  %v3250_v17 = vpack.c.b16 %v8336_v5, %v3249_v12 }
  0xea   : > { %v947_v15 = vmax.f32 %v676_v10, 0.0  ;;  %7467 = vmatmul.msk.f32.gmra.mxu0 %vm330_vm0, %v253_v8  ;;  %2937 = vrot.lane.b32.xlu1 %v9080_v11, %s8878_s30  ;;  %v2386_v16 = vshrl.u32 %v9080_v11, 16  ;;  %v2389_v19 = vshll.u32 %v9080_v11, 16  ;;  %v2761_v22 = vrot.slane %v9080_v11, 3 }
  0xeb   : > { %v3251_v32 = vrot.slane %v3250_v17, 1  ;;  %v2198_v60 = vrot.slane %v9080_v11, 2  ;;  %v1576_v8 = vshll.u32 %v9073_v3, 16 }
  0xec   : > { %v1045_v21 = vpack.c.bf16 %v947_v15, %v947_v15  ;;  %v2388_v23 = vrot.slane %v2386_v16, 2  ;;  %v3024_v26 = vrot.slane %v2389_v19, 1  ;;  %v2391_v28 = vrot.slane %v2389_v19, 3 }
  0xed   : > { %v9097_v25 = vld [vmem:[#allocation2 + $0x24] sm:$0xff]   ;;  %v2762_v39 = vsel %vm2757_vm5, %v2759_v31, %v2761_v22  ;;  %v2199_v4 = vsel %vm2194_vm4, %v2196_v29, %v2198_v60  ;;  %v9171_v17 = vrot.slane %v1576_v8, 1 }
  0xee   : > { %1144 = vst.msk [vmem:[#allocation2 + $0x2c] sm:$0xf] %vm1132_vm1, %v1045_v21  ;;  %v3252_v34 = vrot.slane %v9097_v25, 1  ;;  %2939 = vrot.lane.b32.xlu0 %v9097_v25, %s8878_s30  ;;  %v2398_v36 = vshll.u32 %v9097_v25, 16  ;;  %v2395_v40 = vshrl.u32 %v9097_v25, 16  ;;  %v2392_v41 = vor.u32 %v2391_v28, %v2388_v23 }
  0xef   : > { %v678_v33 = vpop.f32.mrf.mxu0  ;;  %v3025_v44 = vor.u32 %v3024_v26, %v2386_v16  ;;  %v2763_v7 = vrot.slane %v9097_v25, 3  ;;  %v1572_v16 = vshrl.u32 %v9070_v1, 16 }
  0xf0   : > { %v679_v38 = vadd.f32 %v8968_v18, %v678_v33  ;;  %v3253_v42 = vsel %vm1971_vm2, %v3251_v32, %v3252_v34  ;;  %v2400_v43 = vrot.slane %v2398_v36, 3  ;;  %v3026_v46 = vrot.slane %v2398_v36, 1 }
  0xf1   : > { %v3971_v49 = vunpack.c.l.b16 %v3253_v42  ;;  %v3974_v51 = vunpack.c.h.b16 %v3253_v42  ;;  %v2397_v53 = vrot.slane %v2395_v40, 2  ;;  %v9129_v59 = vsel %vm2367_vm6, %v9046_v45, %v2392_v41 }
  0xf2   : > { %v948_v47 = vmax.f32 %v679_v38, 0.0  ;;  %7468 = vmatmul.msk.f32.gmra.mxu0 %vm330_vm0, %v254_v35  ;;  %2845 = vrot.lane.b32.xlu1 %v2762_v39, %s8879_s6  ;;  %v3027_v31 = vsel %vm1543_vm3, %v3025_v44, %v3026_v46  ;;  %v2764_v15 = vsel %vm2757_vm5, %v2761_v22, %v2763_v7  ;;  %v3028_v21 = vor.u32 %v3026_v46, %v2395_v40 }
  0xf3   : > { %v4222_v57 = vpack.c.b16 %v3971_v49, %v3971_v49  ;;  %v4224_v58 = vpack.c.b16 %v3974_v51, %v3974_v51  ;;  %3164 = vrot.lane.b32.xlu2 %v3027_v31, %s8880_s7  ;;  %v2401_v61 = vor.u32 %v2400_v43, %v2397_v53  ;;  %v1574_v32 = vor.u32 %v1572_v16, %v9111_v37 }
  0xf4   : > { %v1046_v56 = vpack.c.bf16 %v948_v47, %v948_v47  ;;  %v2200_v38 = vrot.slane %v9097_v25, 2  ;;  %v1977_v42 = vrot.slane %v9070_v1, 1 }
  0xf5   : > { %4558 = vst.msk [vmem:[#allocation3 + $0x8] sm:$0xf] %vm1132_vm1, %v4222_v57  ;;  %v9140_v2 = vsel %vm2367_vm6, %v2392_v41, %v2401_v61  ;;  %v1579_v39 = vsel %vm1543_vm3, %v1574_v32, %v9171_v17  ;;  %v257_v41 = vld [vmem:[%s8931_s27 + $0xf8] sm:$0xff]  ;;  %v9200_v46 = vld [vmem:[#allocation2 + $0x28] sm:$0xff]   ;;  %v1580_v57 = vshrl.u32 %v9073_v3, 16 }
  0xf6   : > { %1145 = vst.msk [vmem:[#allocation2 + $0x30] sm:$0xf] %vm1132_vm1, %v1046_v56  ;;  %1888 = vrot.lane.b32.xlu0 %v1571_v63, %s8879_s6  ;;  %v2201_v44 = vsel %vm2194_vm4, %v2198_v60, %v2200_v38  ;;  %v1978_v49 = vsel %vm1971_vm2, %v1975_v0, %v1977_v42  ;;  %v1584_v31 = vshll.u32 %v9200_v46, 16  ;;  %v258_v63 = vld [vmem:[%s8931_s27 + $0x100] sm:$0xff] }
  0xf7   : > { %v681_v48 = vpop.f32.mrf.mxu0  ;;  %4560 = vst.msk [vmem:[#allocation3 + $0x14] sm:$0xf] %vm1132_vm1, %v4224_v58 }
  0xf8   : > { %v682_v45 = vadd.f32 %v8968_v18, %v681_v48 }
  0xfa   : > { %v949_v5 = vmax.f32 %v682_v45, 0.0  ;;  %7469 = vmatmul.msk.f32.gmra.mxu0 %vm330_vm0, %v255_v62  ;;  %2282 = vrot.lane.b32.xlu1 %v2199_v4, %s8880_s7 }
  0xfb   : > { %2059 = vrot.lane.b32.xlu2 %v1976_v9, %s8878_s30 }
  0xfc   : > { %v1047_v6 = vpack.c.bf16 %v949_v5, %v949_v5  ;;  %v9226_v5 = vrot.slane %v1584_v31, 1 }
  0xfd   : > { %v9155_v10 = vld [vmem:[#allocation2 + $0x2c] sm:$0xff]  }
  0xfe   : > { %1146 = vst.msk [vmem:[#allocation2 + $0x34] sm:$0xf] %vm1132_vm1, %v1047_v6  ;;  %v3254_v29 = vrot.slane %v9155_v10, 1  ;;  %2941 = vrot.lane.b32.xlu0 %v9155_v10, %s8878_s30  ;;  %v2407_v55 = vshll.u32 %v9155_v10, 16  ;;  %v2404_v12 = vshrl.u32 %v9155_v10, 16  ;;  %v2765_v53 = vrot.slane %v9155_v10, 3 }
  0xff   : > { %v684_v24 = vpop.f32.mrf.mxu0 }
 0x100   : > { %v685_v13 = vadd.f32 %v8968_v18, %v684_v24  ;;  %v3255_v19 = vsel %vm1971_vm2, %v3252_v34, %v3254_v29  ;;  %v2409_v20 = vrot.slane %v2407_v55, 3  ;;  %v3029_v23 = vrot.slane %v2407_v55, 1 }
 0x101   : > { %v3977_v28 = vunpack.c.l.b16 %v3255_v19  ;;  %v3980_v30 = vunpack.c.h.b16 %v3255_v19  ;;  %v2406_v11 = vrot.slane %v2404_v12, 2  ;;  %v2766_v4 = vsel %vm2757_vm5, %v2763_v7, %v2765_v53 }
 0x102   : > { %v950_v26 = vmax.f32 %v685_v13, 0.0  ;;  %7470 = vmatmul.msk.f32.gmra.mxu0 %vm330_vm0, %v256_v50  ;;  %2847 = vrot.lane.b32.xlu1 %v2764_v15, %s8879_s6  ;;  %v3030_v22 = vsel %vm1543_vm3, %v3028_v21, %v3029_v23  ;;  %v3031_v8 = vor.u32 %v3029_v23, %v2404_v12  ;;  %v2202_v23 = vrot.slane %v9155_v10, 2 }
 0x103   : > { %v4226_v35 = vpack.c.b16 %v3977_v28, %v3977_v28  ;;  %v4228_v36 = vpack.c.b16 %v3980_v30, %v3980_v30  ;;  %3166 = vrot.lane.b32.xlu2 %v3030_v22, %s8880_s7  ;;  %v9181_v34 = vor.u32 %v2409_v20, %v2406_v11  ;;  %v259_v28 = vld [vmem:[%s8931_s27 + $0x108] sm:$0xff]  ;;  %v1979_v30 = vrot.slane %v9073_v3, 1  ;;  %v8319_v3 = vld [vmem:[%s12985_s3 + $0x78] sm:$0xff] }
 0x104   : > { %v1048_v33 = vpack.c.bf16 %v950_v26, %v950_v26  ;;  %6012 = vmatpush.bf16.msra.mxu2 %v8319_v3 }
 0x105   : > { %v9189_v40 = vsel %vm2367_vm6, %v2401_v61, %v9181_v34  ;;  %4562 = vst.msk [vmem:[#allocation3 + $0x20] sm:$0xf] %vm1132_vm1, %v4226_v35  ;;  %v9253_v22 = vld [vmem:[#allocation2 + $0x30] sm:$0xff]   ;;  %v1980_v35 = vsel %vm1971_vm2, %v1977_v42, %v1979_v30 }
 0x106   : > { %1147 = vst.msk [vmem:[#allocation2 + $0x38] sm:$0xf] %vm1132_vm1, %v1048_v33  ;;  %1890 = vrot.lane.b32.xlu0 %v1579_v39, %s8879_s6  ;;  %v2203_v33 = vsel %vm2194_vm4, %v2200_v38, %v2202_v23  ;;  %v1592_v39 = vshll.u32 %v9253_v22, 16  ;;  %v1588_v38 = vshrl.u32 %v9200_v46, 16  ;;  %v260_v42 = vld [vmem:[%s8931_s27 + $0x110] sm:$0xff] }
 0x107   : > { %v687_v37 = vpop.f32.mrf.mxu0  ;;  %4564 = vst.msk [vmem:[#allocation3 + $0x2c] sm:$0xf] %vm1132_vm1, %v4228_v36 }
 0x108   : > { %v688_v43 = vadd.f32 %v8968_v18, %v687_v37 }
 0x10a   : > { %v951_v47 = vmax.f32 %v688_v43, 0.0  ;;  %7471 = vmatmul.msk.f32.gmra.mxu0 %vm330_vm0, %v257_v41  ;;  %2284 = vrot.lane.b32.xlu1 %v2201_v44, %s8880_s7 }
 0x10b   : > { %2061 = vrot.lane.b32.xlu2 %v1978_v49, %s8878_s30 }
 0x10c   : > { %v1049_v51 = vpack.c.bf16 %v951_v47, %v951_v47  ;;  %v7576_v56 = vld [vmem:[#allocation3 + $0x20] sm:$0xf] }
 0x10d   : > { %v9210_v54 = vld [vmem:[#allocation2 + $0x34] sm:$0xff]  }
 0x10e   : > { %1148 = vst.msk [vmem:[#allocation2 + $0x3c] sm:$0xf] %vm1132_vm1, %v1049_v51  ;;  %v3256_v60 = vrot.slane %v9210_v54, 1  ;;  %2943 = vrot.lane.b32.xlu0 %v9210_v54, %s8878_s30  ;;  %v8183_v61 = vld [vmem:[#allocation3 + $0x28] sm:$0xf0]  ;;  %v2416_v48 = vshll.u32 %v9210_v54, 16 }
 0x10f   : > { %v690_v58 = vpop.f32.mrf.mxu0  ;;  %v2413_v62 = vshrl.u32 %v9210_v54, 16  ;;  %v7577_v45 = vor.u32 %v8183_v61, %v7576_v56  ;;  %v9286_v56 = vrot.slane %v1592_v39, 1 }
 0x110   : > { %v691_v0 = vadd.f32 %v8968_v18, %v690_v58  ;;  %v3257_v9 = vsel %vm1971_vm2, %v3254_v29, %v3256_v60  ;;  %v2418_v6 = vrot.slane %v2416_v48, 3  ;;  %v3032_v24 = vrot.slane %v2416_v48, 1 }
 0x111   : > { %8131 = vmatmul.msk.bf16.vlgmr.msrb.gmra.mxu3 %vm3336_vm7, %v7577_v45  ;;  %v3983_v55 = vunpack.c.l.b16 %v3257_v9  ;;  %v3986_v13 = vunpack.c.h.b16 %v3257_v9  ;;  %v2415_v7 = vrot.slane %v2413_v62, 2  ;;  %v1582_v29 = vor.u32 %v1580_v57, %v9171_v17 }
 0x112   : > { %v952_v50 = vmax.f32 %v691_v0, 0.0  ;;  %7472 = vmatmul.msk.f32.gmra.mxu0 %vm330_vm0, %v258_v63  ;;  %2849 = vrot.lane.b32.xlu1 %v2766_v4, %s8879_s6  ;;  %v3033_v15 = vsel %vm1543_vm3, %v3031_v8, %v3032_v24  ;;  %v3034_v61 = vor.u32 %v3032_v24, %v2413_v62 }
 0x113   : > { %3168 = vrot.lane.b32.xlu2 %v3033_v15, %s8880_s7  ;;  %v4230_v12 = vpack.c.b16 %v3983_v55, %v3983_v55  ;;  %v4232_v19 = vpack.c.b16 %v3986_v13, %v3986_v13  ;;  %v2419_v20 = vor.u32 %v2418_v6, %v2415_v7  ;;  %v1587_v21 = vsel %vm1543_vm3, %v1582_v29, %v9226_v5 }
 0x114   : > { %v1050_v16 = vpack.c.bf16 %v952_v50, %v952_v50  ;;  %v2204_v50 = vrot.slane %v9210_v54, 2  ;;  %v1981_v7 = vrot.slane %v9200_v46, 1  ;;  %v8308_v46 = vld [vmem:[%s12985_s3 + $0x20] sm:$0xff] }
 0x115   : > { %4566 = vst.msk [vmem:[#allocation3 + $0x38] sm:$0xf] %vm1132_vm1, %v4230_v12  ;;  %v9249_v17 = vsel %vm2367_vm6, %v9181_v34, %v2419_v20  ;;  %v2767_v34 = vrot.slane %v9210_v54, 3  ;;  %v9323_v12 = vld [vmem:[#allocation2 + $0x38] sm:$0xff]  }
 0x116   : > { %1149 = vst.msk [vmem:[#allocation2 + $0x40] sm:$0xf] %vm1132_vm1, %v1050_v16  ;;  %1892 = vrot.lane.b32.xlu0 %v1587_v21, %s8879_s6  ;;  %v2205_v29 = vsel %vm2194_vm4, %v2202_v23, %v2204_v50  ;;  %v1600_v23 = vshll.u32 %v9323_v12, 16 }
 0x117   : > { %v693_v26 = vpop.f32.mrf.mxu0  ;;  %4568 = vst.msk [vmem:[#allocation3 + $0x44] sm:$0xf] %vm1132_vm1, %v4232_v19  ;;  %v2768_v31 = vsel %vm2757_vm5, %v2765_v53, %v2767_v34  ;;  %v1982_v19 = vsel %vm1971_vm2, %v1979_v30, %v1981_v7 }
 0x118   : > { %v694_v11 = vadd.f32 %v8968_v18, %v693_v26 }
 0x11a   : > { %v953_v32 = vmax.f32 %v694_v11, 0.0  ;;  %7473 = vmatmul.msk.f32.gmra.mxu0 %vm330_vm0, %v259_v28  ;;  %2286 = vrot.lane.b32.xlu1 %v2203_v33, %s8880_s7  ;;  %v8311_v28 = vld [vmem:[%s12985_s3 + $0x38] sm:$0xff]  ;;  %v262_v33 = vld [vmem:[%s8931_s27 + $0x120] sm:$0xff] }
 0x11b   : > { %2063 = vrot.lane.b32.xlu2 %v1980_v35, %s8878_s30  ;;  %5793 = vmatpush.bf16.msra.mxu1 %v8311_v28 }
 0x11c   : > { %v1051_v36 = vpack.c.bf16 %v953_v32, %v953_v32  ;;  %v7588_v25 = vld [vmem:[#allocation3 + $0x38] sm:$0xf] }
 0x11d   : > { %v9270_v37 = vld [vmem:[#allocation2 + $0x3c] sm:$0xff]  }
 0x11e   : > { %1150 = vst.msk [vmem:[#allocation2 + $0x44] sm:$0xf] %vm1132_vm1, %v1051_v36  ;;  %v3258_v43 = vrot.slane %v9270_v37, 1  ;;  %2945 = vrot.lane.b32.xlu0 %v9270_v37, %s8878_s30  ;;  %v8186_v1 = vld [vmem:[#allocation3 + $0x40] sm:$0xf0]  ;;  %v2425_v44 = vshll.u32 %v9270_v37, 16 }
 0x11f   : > { %v696_v41 = vpop.f32.mrf.mxu0  ;;  %v2422_v47 = vshrl.u32 %v9270_v37, 16  ;;  %v7589_v51 = vor.u32 %v8186_v1, %v7588_v25  ;;  %v2769_v10 = vrot.slane %v9270_v37, 3  ;;  %v1596_v25 = vshrl.u32 %v9253_v22, 16 }
 0x120   : > { %v697_v49 = vadd.f32 %v8968_v18, %v696_v41  ;;  %v3259_v57 = vsel %vm1971_vm2, %v3256_v60, %v3258_v43  ;;  %v2427_v58 = vrot.slane %v2425_v44, 3  ;;  %v3035_v63 = vrot.slane %v2425_v44, 1 }
 0x121   : > { %8132 = vmatmul.msk.bf16.gmra.mxu3 %vm3336_vm7, %v7589_v51  ;;  %v3989_v0 = vunpack.c.l.b16 %v3259_v57  ;;  %v3992_v45 = vunpack.c.h.b16 %v3259_v57  ;;  %v2424_v53 = vrot.slane %v2422_v47, 2  ;;  %v1590_v60 = vor.u32 %v1588_v38, %v9226_v5  ;;  %v261_v5 = vld [vmem:[%s8931_s27 + $0x118] sm:$0xff] }
 0x122   : > { %v954_v48 = vmax.f32 %v697_v49, 0.0  ;;  %7474 = vmatmul.msk.f32.gmra.mxu0 %vm330_vm0, %v260_v42  ;;  %2851 = vrot.lane.b32.xlu1 %v2768_v31, %s8879_s6  ;;  %v3036_v4 = vsel %vm1543_vm3, %v3034_v61, %v3035_v63  ;;  %v3037_v42 = vor.u32 %v3035_v63, %v2422_v47  ;;  %v2770_v51 = vsel %vm2757_vm5, %v2767_v34, %v2769_v10 }
 0x123   : > { %3170 = vrot.lane.b32.xlu2 %v3036_v4, %s8880_s7  ;;  %v4234_v62 = vpack.c.b16 %v3989_v0, %v3989_v0  ;;  %v4236_v6 = vpack.c.b16 %v3992_v45, %v3992_v45  ;;  %v9301_v8 = vor.u32 %v2427_v58, %v2424_v53  ;;  %v1595_v24 = vsel %vm1543_vm3, %v1590_v60, %v9286_v56  ;;  %v8310_v0 = vld [vmem:[%s12985_s3 + $0x30] sm:$0xff] }
 0x124   : > { %v1052_v9 = vpack.c.bf16 %v954_v48, %v954_v48  ;;  %v9367_v31 = vrot.slane %v1600_v23, 1  ;;  %v1598_v63 = vor.u32 %v1596_v25, %v9286_v56  ;;  %v8318_v45 = vld [vmem:[%s12985_s3 + $0x70] sm:$0xff]  ;;  %v2206_v60 = vrot.slane %v9270_v37, 2  ;;  %v912_v56 = vpop.f32.mrf.mxu3  ;;  %5794 = vmatpush.bf16.msra.mxu1 %v8310_v0 }
 0x125   : > { %v9309_v55 = vsel %vm2367_vm6, %v2419_v20, %v9301_v8  ;;  %4570 = vst.msk [vmem:[#allocation3 + $0x50] sm:$0xf] %vm1132_vm1, %v4234_v62  ;;  %v263_v62 = vld [vmem:[%s8931_s27 + $0x128] sm:$0xff]  ;;  %6013 = vmatpush.bf16.msra.mxu2 %v8318_v45 }
 0x126   : > { %1151 = vst.msk [vmem:[#allocation2 + $0x48] sm:$0xf] %vm1132_vm1, %v1052_v9  ;;  %1894 = vrot.lane.b32.xlu0 %v1595_v24, %s8879_s6  ;;  %v1603_v4 = vsel %vm1543_vm3, %v1598_v63, %v9367_v31  ;;  %v913_v24 = vadd.f32 %v8968_v18, %v912_v56 }
 0x127   : > { %v699_v13 = vpop.f32.mrf.mxu0  ;;  %4572 = vst.msk [vmem:[#allocation3 + $0x5c] sm:$0xf] %vm1132_vm1, %v4236_v6  ;;  %v1983_v6 = vrot.slane %v9253_v22, 1  ;;  %v8312_v22 = vld [vmem:[%s12985_s3 + $0x40] sm:$0xff] }
 0x128   : > { %v700_v15 = vadd.f32 %v8968_v18, %v699_v13  ;;  %v8309_v13 = vld [vmem:[%s12985_s3 + $0x28] sm:$0xff] }
 0x129   : > { %v1984_v23 = vsel %vm1971_vm2, %v1981_v7, %v1983_v6  ;;  %5795 = vmatpush.bf16.msra.mxu1 %v8309_v13  ;;  %v8316_v7 = vld [vmem:[%s12985_s3 + $0x60] sm:$0xff]  ;;  %v8314_v13 = vld [vmem:[%s12985_s3 + $0x50] sm:$0xff] }
 0x12a   : > { %v955_v16 = vmax.f32 %v700_v15, 0.0  ;;  %7475 = vmatmul.msk.f32.gmra.mxu0 %vm330_vm0, %v261_v5  ;;  %2288 = vrot.lane.b32.xlu1 %v2205_v29, %s8880_s7  ;;  %v8317_v29 = vld [vmem:[%s12985_s3 + $0x68] sm:$0xff] }
 0x12b   : > { %2065 = vrot.lane.b32.xlu2 %v1982_v19, %s8878_s30  ;;  %v1026_v19 = vmax.f32 %v913_v24, 0.0  ;;  %6014 = vmatpush.bf16.msra.mxu2 %v8317_v29  ;;  %v8306_v24 = vld [vmem:[%s12985_s3 + $0x10] sm:$0xff] }
 0x12c   : > { %v1053_v20 = vpack.c.bf16 %v955_v16, %v955_v16  ;;  %v7600_v26 = vld [vmem:[#allocation3 + $0x50] sm:$0xf]  ;;  %v9403_v16 = vld [vmem:[#allocation2 + $0x40] sm:$0xff]  }
 0x12d   : > { %v9332_v21 = vld [vmem:[#allocation2 + $0x44] sm:$0xff]   ;;  %v1124_v28 = vpack.c.bf16 %v1026_v19, %v1026_v19  ;;  %5796 = vmatpush.bf16.msra.mxu1 %v8308_v46 }
 0x12e   : > { %1152 = vst.msk [vmem:[#allocation2 + $0x4c] sm:$0xf] %vm1132_vm1, %v1053_v20  ;;  %v3260_v11 = vrot.slane %v9332_v21, 1  ;;  %2947 = vrot.lane.b32.xlu0 %v9332_v21, %s8878_s30  ;;  %v8189_v32 = vld [vmem:[#allocation3 + $0x58] sm:$0xf0]  ;;  %v2434_v35 = vshll.u32 %v9332_v21, 16 }
 0x12f   : > { %v702_v30 = vpop.f32.mrf.mxu0  ;;  %v7601_v39 = vor.u32 %v8189_v32, %v7600_v26  ;;  %v2431_v38 = vshrl.u32 %v9332_v21, 16  ;;  %v1608_v26 = vshll.u32 %v9403_v16, 16  ;;  %v2771_v54 = vrot.slane %v9332_v21, 3  ;;  %1223 = vst.msk [vmem:[#allocation2 + $0x168] sm:$0xf] %vm1132_vm1, %v1124_v28  ;;  %v264_v32 = vld [vmem:[%s8931_s27 + $0x130] sm:$0xff]  ;;  %6015 = vmatpush.bf16.msra.mxu2 %v8316_v7 }
 0x130   : > { %v703_v36 = vadd.f32 %v8968_v18, %v702_v30  ;;  %v3261_v41 = vsel %vm1971_vm2, %v3258_v43, %v3260_v11  ;;  %v2436_v1 = vrot.slane %v2434_v35, 3  ;;  %v9358_v44 = vrot.slane %v2434_v35, 1  ;;  %v915_v35 = vpop.f32.mrf.mxu3  ;;  %v8305_v46 = vld [vmem:[%s12985_s3 + $0x8] sm:$0xff] }
 0x131   : > { %8133 = vmatmul.msk.bf16.gmra.mxu3 %vm3336_vm7, %v7601_v39  ;;  %v3995_v43 = vunpack.c.l.b16 %v3261_v41  ;;  %v3998_v57 = vunpack.c.h.b16 %v3261_v41  ;;  %v2433_v58 = vrot.slane %v2431_v38, 2  ;;  %v2208_v19 = vrot.slane %v9332_v21, 2 }
 0x132   : > { %v956_v49 = vmax.f32 %v703_v36, 0.0  ;;  %7476 = vmatmul.msk.f32.gmra.mxu0 %vm330_vm0, %v262_v33  ;;  %2853 = vrot.lane.b32.xlu1 %v2770_v51, %s8879_s6  ;;  %v3039_v47 = vsel %vm1543_vm3, %v3037_v42, %v9358_v44  ;;  %v1604_v33 = vshrl.u32 %v9323_v12, 16  ;;  %v1985_v28 = vrot.slane %v9323_v12, 1 }
 0x133   : > { %3172 = vrot.lane.b32.xlu2 %v3039_v47, %s8880_s7  ;;  %v4238_v48 = vpack.c.b16 %v3995_v43, %v3995_v43  ;;  %v4240_v34 = vpack.c.b16 %v3998_v57, %v3998_v57  ;;  %v9382_v53 = vor.u32 %v2436_v1, %v2433_v58  ;;  %v9439_v1 = vrot.slane %v1608_v26, 1  ;;  %v265_v26 = vld [vmem:[%s8931_s27 + $0x138] sm:$0xff] }
 0x134   : > { %v1054_v61 = vpack.c.bf16 %v956_v49, %v956_v49  ;;  %v2772_v43 = vsel %vm2757_vm5, %v2769_v10, %v2771_v54  ;;  %v916_v47 = vadd.f32 %v8968_v18, %v915_v35  ;;  %v8307_v10 = vld [vmem:[%s12985_s3 + $0x18] sm:$0xff]  ;;  %v1606_v0 = vor.u32 %v1604_v33, %v9367_v31  ;;  %v9482_v31 = vpop.permute.xlu2 %2280 }
 0x135   : > { %4574 = vst.msk [vmem:[#allocation3 + $0x68] sm:$0xf] %vm1132_vm1, %v4238_v48  ;;  %v9399_v5 = vsel %vm2367_vm6, %v9301_v8, %v9382_v53  ;;  %v2207_v8 = vsel %vm2194_vm4, %v2204_v50, %v2206_v60  ;;  %5797 = vmatpush.bf16.msra.mxu1 %v8307_v10  ;;  %v9512_v33 = vld [vmem:[#allocation2 + $0x48] sm:$0xff]  }
 0x136   : > { %1153 = vst.msk [vmem:[#allocation2 + $0x50] sm:$0xf] %vm1132_vm1, %v1054_v61  ;;  %1896 = vrot.lane.b32.xlu0 %v1603_v4, %s8879_s6  ;;  %v3040_v61 = vor.u32 %v9358_v44, %v2431_v38  ;;  %v1027_v45 = vmax.f32 %v916_v47, 0.0  ;;  %v1611_v29 = vsel %vm1543_vm3, %v1606_v0, %v9439_v1 }
 0x137   : > { %v705_v9 = vpop.f32.mrf.mxu0  ;;  %4576 = vst.msk [vmem:[#allocation3 + $0x74] sm:$0xf] %vm1132_vm1, %v4240_v34 }
 0x138   : > { %v706_v15 = vadd.f32 %v8968_v18, %v705_v9 }
 0x139   : > { %5798 = vmatpush.bf16.msra.mxu1 %v8306_v24 }
 0x13a   : > { %v957_v20 = vmax.f32 %v706_v15, 0.0  ;;  %7477 = vmatmul.msk.f32.gmra.mxu0 %vm330_vm0, %v263_v62  ;;  %2290 = vrot.lane.b32.xlu1 %v2207_v8, %s8880_s7  ;;  %v1125_v62 = vpack.c.bf16 %v1027_v45, %v1027_v45  ;;  %v9488_v8 = vpop.permute.xlu0 %1884 }
 0x13b   : > { %2067 = vrot.lane.b32.xlu2 %v1984_v23, %s8878_s30 }
 0x13c   : > { %v1055_v3 = vpack.c.bf16 %v957_v20, %v957_v20  ;;  %v7612_v30 = vld [vmem:[#allocation3 + $0x68] sm:$0xf]  ;;  %v918_v20 = vpop.f32.mrf.mxu3  ;;  %1224 = vst.msk [vmem:[#allocation2 + $0x16c] sm:$0xf] %vm1132_vm1, %v1125_v62 }
 0x13d   : > { %v9423_v50 = vld [vmem:[#allocation2 + $0x4c] sm:$0xff]   ;;  %5799 = vmatpush.bf16.msra.mxu1 %v8305_v46 }
 0x13e   : > { %1154 = vst.msk [vmem:[#allocation2 + $0x54] sm:$0xf] %vm1132_vm1, %v1055_v3  ;;  %v3262_v39 = vrot.slane %v9423_v50, 1  ;;  %2949 = vrot.lane.b32.xlu0 %v9423_v50, %s8878_s30  ;;  %v8192_v25 = vld [vmem:[#allocation3 + $0x70] sm:$0xf0]  ;;  %v2443_v41 = vshll.u32 %v9423_v50, 16 }
 0x13f   : > { %v708_v36 = vpop.f32.mrf.mxu0  ;;  %v2440_v42 = vshrl.u32 %v9423_v50, 16  ;;  %v7613_v51 = vor.u32 %v8192_v25, %v7612_v30  ;;  %v9497_v3 = vld [vmem:[%s12984_s2] ss:$0 sm:$0xff]  ;;  %v2773_v25 = vrot.slane %v9423_v50, 3 }
 0x140   : > { %v709_v49 = vadd.f32 %v8968_v18, %v708_v36  ;;  %v3263_v57 = vsel %vm1971_vm2, %v3260_v11, %v3262_v39  ;;  %v2445_v58 = vrot.slane %v2443_v41, 3  ;;  %v9457_v63 = vrot.slane %v2443_v41, 1  ;;  %v8315_v18 = vld [vmem:[%s12985_s3 + $0x58] sm:$0xff] }
 0x141   : > { %8134 = vmatmul.msk.bf16.gmra.mxu3 %vm3336_vm7, %v7613_v51  ;;  %v4001_v11 = vunpack.c.l.b16 %v3263_v57  ;;  %v4004_v34 = vunpack.c.h.b16 %v3263_v57  ;;  %v2442_v38 = vrot.slane %v2440_v42, 2  ;;  %6016 = vmatpush.bf16.msra.mxu2 %v8315_v18  ;;  %v1986_v36 = vsel %vm1971_vm2, %v1983_v6, %v1985_v28  ;;  %v266_v18 = vld [vmem:[%s8931_s27 + $0x140] sm:$0xff] }
 0x142   : > { %v958_v48 = vmax.f32 %v709_v49, 0.0  ;;  %7478 = vmatmul.msk.f32.gmra.mxu0 %vm330_vm0, %v264_v32  ;;  %2855 = vrot.lane.b32.xlu1 %v2772_v43, %s8879_s6  ;;  %v3042_v44 = vsel %vm1543_vm3, %v3040_v61, %v9457_v63  ;;  %v8313_v32 = vld [vmem:[%s12985_s3 + $0x48] sm:$0xff]  ;;  %v1616_v49 = vshll.u32 %v9512_v33, 16  ;;  %v1612_v43 = vshrl.u32 %v9403_v16, 16 }
 0x143   : > { %3174 = vrot.lane.b32.xlu2 %v3042_v44, %s8880_s7  ;;  %v4242_v56 = vpack.c.b16 %v4001_v11, %v4001_v11  ;;  %v4244_v9 = vpack.c.b16 %v4004_v34, %v4004_v34  ;;  %v9480_v15 = vor.u32 %v2445_v58, %v2442_v38  ;;  %v2844_v57 = vpop.permute.xlu0 %2843 }
 0x144   : > { %v1056_v4 = vpack.c.bf16 %v958_v48, %v958_v48  ;;  %v921_v47 = vpop.f32.mrf.mxu3  ;;  %v2774_v48 = vsel %vm2757_vm5, %v2771_v54, %v2773_v25  ;;  %v9554_v0 = vrot.slane %v1616_v49, 1 }
 0x145   : > { %4578 = vst.msk [vmem:[#allocation3 + $0x80] sm:$0xf] %vm1132_vm1, %v4242_v56  ;;  %v9505_v7 = vsel %vm2367_vm6, %v9382_v53, %v9480_v15  ;;  %6017 = vmatpush.bf16.msra.mxu2 %v8314_v13  ;;  %v2209_v53 = vsel %vm2194_vm4, %v2206_v60, %v2208_v19  ;;  %v8304_v60 = vld [vmem:[%s12985_s3] sm:$0xff]  ;;  %v9597_v49 = vld [vmem:[#allocation2 + $0x50] sm:$0xff]  }
 0x146   : > { %1155 = vst.msk [vmem:[#allocation2 + $0x58] sm:$0xf] %vm1132_vm1, %v1056_v4  ;;  %1898 = vrot.lane.b32.xlu0 %v1611_v29, %s8879_s6  ;;  %5800 = vmatpush.bf16.msra.mxu1 %v8304_v60  ;;  %v3043_v4 = vor.u32 %v9457_v63, %v2440_v42  ;;  %v8822_v13 = vld [vmem:[#allocation2] sm:$0xff]   ;;  %v1614_v63 = vor.u32 %v1612_v43, %v9439_v1  ;;  %v2058_v29 = vpop.permute.xlu1 %2057  ;;  %v2210_v1 = vrot.slane %v9423_v50, 2  ;;  %v1624_v47 = vshll.u32 %v9597_v49, 16 }
 0x147   : > { %v711_v23 = vpop.f32.mrf.mxu0  ;;  %4580 = vst.msk [vmem:[#allocation3 + $0x8c] sm:$0xf] %vm1132_vm1, %v4244_v9 }
 0x148   : > { %v712_v30 = vadd.f32 %v9497_v3, %v711_v23  ;;  %v2211_v43 = vsel %vm2194_vm4, %v2208_v19, %v2210_v1 }
 0x149   : > { %6018 = vmatpush.bf16.msra.mxu2 %v8313_v32 }
 0x14a   : > { %v959_v35 = vmax.f32 %v712_v30, 0.0  ;;  %7479 = vmatmul.msk.f32.gmra.mxu0 %vm330_vm0, %v265_v26  ;;  %2292 = vrot.lane.b32.xlu1 %v2209_v53, %s8880_s7  ;;  %v1619_v30 = vsel %vm1543_vm3, %v1614_v63, %v9554_v0 }
 0x14b   : > { %2069 = vrot.lane.b32.xlu2 %v1986_v36, %s8878_s30  ;;  %6237 = vmatpush.bf16.msrb.mxu1 %v9086_v14 }
 0x14c   : > { %v1057_v41 = vpack.c.bf16 %v959_v35, %v959_v35  ;;  %v7624_v51 = vld [vmem:[#allocation3 + $0x80] sm:$0xf]  ;;  %v924_v32 = vpop.f32.mrf.mxu3 }
 0x14d   : > { %v9530_v37 = vld [vmem:[#allocation2 + $0x54] sm:$0xff]   ;;  %v9539_v6 = vpop.permute.xlu2 %3164  ;;  %6019 = vmatpush.bf16.msra.mxu2 %v8312_v22  ;;  %v9601_v22 = vpop.permute.xlu0 %1886 }
 0x14e   : > { %1156 = vst.msk [vmem:[#allocation2 + $0x5c] sm:$0xf] %vm1132_vm1, %v1057_v41  ;;  %v3264_v61 = vrot.slane %v9530_v37, 1  ;;  %2951 = vrot.lane.b32.xlu0 %v9530_v37, %s8878_s30  ;;  %v8195_v10 = vld [vmem:[#allocation3 + $0x88] sm:$0xf0]  ;;  %v2452_v11 = vshll.u32 %v9530_v37, 16 }
 0x14f   : > { %v714_v58 = vpop.f32.mrf.mxu0  ;;  %v2449_v34 = vshrl.u32 %v9530_v37, 16  ;;  %v7625_v44 = vor.u32 %v8195_v10, %v7624_v51  ;;  %6238 = vmatpush.bf16.msrb.mxu1 %v9102_v27  ;;  %v267_v27 = vld [vmem:[%s8931_s27 + $0x148] sm:$0xff]  ;;  %v1987_v41 = vrot.slane %v9403_v16, 1  ;;  %v2775_v21 = vrot.slane %v9530_v37, 3 }
 0x150   : > { %v715_v38 = vadd.f32 %v9497_v3, %v714_v58  ;;  %v3265_v45 = vsel %vm1971_vm2, %v3262_v39, %v3264_v61  ;;  %v2454_v54 = vrot.slane %v2452_v11, 3  ;;  %v9565_v56 = vrot.slane %v2452_v11, 1 }
 0x151   : > { %8135 = vmatmul.msk.bf16.gmra.mxu3 %vm3336_vm7, %v7625_v44  ;;  %v4007_v62 = vunpack.c.l.b16 %v3265_v45  ;;  %v4010_v14 = vunpack.c.h.b16 %v3265_v45  ;;  %v2451_v24 = vrot.slane %v2449_v34, 2  ;;  %v3338_v39 = vsel %vm3336_vm7, %v8822_v13, %v9488_v8 }
 0x152   : > { %v960_v9 = vmax.f32 %v715_v38, 0.0  ;;  %7480 = vmatmul.msk.f32.gmra.mxu0 %vm330_vm0, %v266_v18  ;;  %2857 = vrot.lane.b32.xlu1 %v2774_v48, %s8879_s6  ;;  %v3045_v42 = vsel %vm1543_vm3, %v3043_v4, %v9565_v56  ;;  %v3423_v53 = vsel %vm3421_vm8, %v3338_v39, %v2058_v29  ;;  %v1988_v58 = vsel %vm1971_vm2, %v1985_v28, %v1987_v41 }
 0x153   : > { %3176 = vrot.lane.b32.xlu2 %v3045_v42, %s8880_s7  ;;  %v4246_v23 = vpack.c.b16 %v4007_v62, %v4007_v62  ;;  %v4248_v26 = vpack.c.b16 %v4010_v14, %v4010_v14  ;;  %v9578_v46 = vor.u32 %v2454_v54, %v2451_v24  ;;  %v9631_v44 = vrot.slane %v1624_v47, 1  ;;  %v268_v24 = vld [vmem:[%s8931_s27 + $0x150] sm:$0xff] }
 0x154   : > { %v1058_v20 = vpack.c.bf16 %v960_v9, %v960_v9  ;;  %v927_v45 = vpop.f32.mrf.mxu3  ;;  %v2776_v42 = vsel %vm2757_vm5, %v2773_v25, %v2775_v21 }
 0x155   : > { %v9582_v8 = vpop.permute.xlu2 %2059  ;;  %v9590_v35 = vsel %vm2367_vm6, %v9480_v15, %v9578_v46  ;;  %4582 = vst.msk [vmem:[#allocation3 + $0x98] sm:$0xf] %vm1132_vm1, %v4246_v23  ;;  %v3508_v15 = vsel %vm3506_vm9, %v3423_v53, %v9482_v31  ;;  %v3593_v31 = vsel %vm3336_vm7, %v9055_v52, %v2844_v57  ;;  %v1620_v57 = vshrl.u32 %v9512_v33, 16 }
 0x156   : > { %1157 = vst.msk [vmem:[#allocation2 + $0x60] sm:$0xf] %vm1132_vm1, %v1058_v20  ;;  %1900 = vrot.lane.b32.xlu0 %v1619_v30, %s8879_s6  ;;  %v3969_v19 = vunpack.c.l.b16 %v3508_v15  ;;  %v3972_v38 = vunpack.c.h.b16 %v3508_v15  ;;  %v3046_v30 = vor.u32 %v9565_v56, %v2449_v34 }
 0x157   : > { %v717_v36 = vpop.f32.mrf.mxu0  ;;  %4584 = vst.msk [vmem:[#allocation3 + $0xa4] sm:$0xf] %vm1132_vm1, %v4248_v26 }
 0x158   : > { %v718_v60 = vadd.f32 %v9497_v3, %v717_v36 }
 0x15a   : > { %v961_v51 = vmax.f32 %v718_v60, 0.0  ;;  %7481 = vmatmul.msk.f32.gmra.mxu0 %vm330_vm0, %v267_v27  ;;  %2294 = vrot.lane.b32.xlu1 %v2211_v43, %s8880_s7 }
 0x15b   : > { %2071 = vrot.lane.b32.xlu2 %v1988_v58, %s8878_s30 }
 0x15c   : > { %v1059_v10 = vpack.c.bf16 %v961_v51, %v961_v51  ;;  %v2938_v18 = vpop.permute.xlu1 %2937  ;;  %v7636_v52 = vld [vmem:[#allocation3 + $0x98] sm:$0xf] }
 0x15d   : > { %v3718_v48 = vsel %vm3421_vm8, %v3593_v31, %v2938_v18  ;;  %v9623_v11 = vld [vmem:[#allocation2 + $0x5c] sm:$0xff]   ;;  %v9628_v28 = vpop.permute.xlu2 %3166  ;;  %v2212_v31 = vrot.slane %v9530_v37, 2 }
 0x15e   : > { %1158 = vst.msk [vmem:[#allocation2 + $0x64] sm:$0xf] %vm1132_vm1, %v1059_v10  ;;  %v3802_v12 = vsel %vm3506_vm9, %v3718_v48, %v9539_v6  ;;  %v3266_v62 = vrot.slane %v9623_v11, 1  ;;  %2953 = vrot.lane.b32.xlu0 %v9623_v11, %s8878_s30  ;;  %v8198_v14 = vld [vmem:[#allocation3 + $0xa0] sm:$0xf0]  ;;  %v2461_v6 = vshll.u32 %v9623_v11, 16 }
 0x15f   : > { %v3970_v54 = vunpack.c.l.b16 %v3802_v12  ;;  %v3973_v4 = vunpack.c.h.b16 %v3802_v12  ;;  %v720_v9 = vpop.f32.mrf.mxu0  ;;  %v7637_v39 = vor.u32 %v8198_v14, %v7636_v52  ;;  %v2458_v63 = vshrl.u32 %v9623_v11, 16  ;;  %v9673_v18 = vld [vmem:[#allocation2 + $0x58] sm:$0xff]   ;;  %v930_v52 = vpop.f32.mrf.mxu3 }
 0x160   : > { %v721_v13 = vadd.f32 %v9497_v3, %v720_v9  ;;  %v3267_v23 = vsel %vm1971_vm2, %v3264_v61, %v3266_v62  ;;  %v2940_v26 = vpop.permute.xlu0 %2939  ;;  %v9655_v25 = vrot.slane %v2461_v6, 1  ;;  %v2463_v27 = vrot.slane %v2461_v6, 3  ;;  %v269_v48 = vld [vmem:[%s8931_s27 + $0x158] sm:$0xff] }
 0x161   : > { %v4221_v29 = vpack.c.b16 %v3970_v54, %v3969_v19  ;;  %v4223_v20 = vpack.c.b16 %v3973_v4, %v3972_v38  ;;  %8136 = vmatmul.msk.bf16.gmra.mxu3 %vm3336_vm7, %v7637_v39  ;;  %v4013_v53 = vunpack.c.l.b16 %v3267_v23  ;;  %v4016_v36 = vunpack.c.h.b16 %v3267_v23 }
 0x162   : > { %v962_v32 = vmax.f32 %v721_v13, 0.0  ;;  %7482 = vmatmul.msk.f32.gmra.mxu0 %vm330_vm0, %v268_v24  ;;  %2859 = vrot.lane.b32.xlu1 %v2776_v42, %s8879_s6  ;;  %v1622_v61 = vor.u32 %v1620_v57, %v9554_v0  ;;  %v2460_v60 = vrot.slane %v2458_v63, 2  ;;  %v3048_v15 = vsel %vm1543_vm3, %v3046_v30, %v9655_v25  ;;  %v8823_v13 = vld [vmem:[#allocation2 + $0x8] sm:$0xff] }
 0x163   : > { %4557 = vst [vmem:[#allocation3] sm:$0xff] %v4221_v29  ;;  %v4250_v51 = vpack.c.b16 %v4013_v53, %v4013_v53  ;;  %v4252_v43 = vpack.c.b16 %v4016_v36, %v4016_v36  ;;  %3178 = vrot.lane.b32.xlu2 %v3048_v15, %s8880_s7  ;;  %v1989_v10 = vrot.slane %v9512_v33, 1  ;;  %v1632_v45 = vshll.u32 %v9673_v18, 16  ;;  %v270_v15 = vld [vmem:[%s8931_s27 + $0x160] sm:$0xff] }
 0x164   : > { %4559 = vst [vmem:[#allocation3 + $0xc] sm:$0xff] %v4223_v20  ;;  %v1060_v34 = vpack.c.bf16 %v962_v32, %v962_v32  ;;  %v2846_v56 = vpop.permute.xlu1 %2845  ;;  %v1627_v58 = vsel %vm1543_vm3, %v1622_v61, %v9631_v44  ;;  %v2213_v9 = vsel %vm2194_vm4, %v2210_v1, %v2212_v31  ;;  %v2777_v1 = vrot.slane %v9623_v11, 3 }
 0x165   : > { %v3596_v47 = vsel %vm3336_vm7, %v9129_v59, %v2846_v56  ;;  %v9667_v0 = vpop.permute.xlu2 %2061  ;;  %4586 = vst.msk [vmem:[#allocation3 + $0xb0] sm:$0xf] %vm1132_vm1, %v4250_v51  ;;  %v9678_v59 = vor.u32 %v2463_v27, %v2460_v60  ;;  %v1990_v14 = vsel %vm1971_vm2, %v1987_v41, %v1989_v10  ;;  %v9715_v30 = vrot.slane %v1632_v45, 1 }
 0x166   : > { %1159 = vst.msk [vmem:[#allocation2 + $0x68] sm:$0xf] %vm1132_vm1, %v1060_v34  ;;  %1902 = vrot.lane.b32.xlu0 %v1627_v58, %s8879_s6  ;;  %v3720_v38 = vsel %vm3421_vm8, %v3596_v47, %v2940_v26  ;;  %v2778_v51 = vsel %vm2757_vm5, %v2775_v21, %v2777_v1  ;;  %v3049_v21 = vor.u32 %v9655_v25, %v2458_v63 }
 0x167   : > { %v723_v19 = vpop.f32.mrf.mxu0  ;;  %4588 = vst.msk [vmem:[#allocation3 + $0xbc] sm:$0xf] %vm1132_vm1, %v4252_v43  ;;  %v9689_v54 = vsel %vm2367_vm6, %v9578_v46, %v9678_v59  ;;  %v3340_v46 = vsel %vm3336_vm7, %v8823_v13, %v9601_v22  ;;  %v3804_v39 = vsel %vm3506_vm9, %v3720_v38, %v9628_v28  ;;  %v1628_v28 = vshrl.u32 %v9597_v49, 16 }
 0x168   : > { %v724_v12 = vadd.f32 %v9497_v3, %v723_v19  ;;  %v9683_v57 = vpop.permute.xlu0 %1888  ;;  %v3425_v16 = vsel %vm3421_vm8, %v3340_v46, %v9582_v8  ;;  %v3976_v53 = vunpack.c.l.b16 %v3804_v39  ;;  %v3979_v36 = vunpack.c.h.b16 %v3804_v39 }
 0x169   : > { %v1630_v25 = vor.u32 %v1628_v28, %v9631_v44 }
 0x16a   : > { %v963_v4 = vmax.f32 %v724_v12, 0.0  ;;  %7483 = vmatmul.msk.f32.gmra.mxu0 %vm330_vm0, %v269_v48  ;;  %v7556_v24 = vld [vmem:[#allocation3] sm:$0xf]  ;;  %v8178_v6 = vld [vmem:[#allocation3 + $0x4] sm:$0xf]  ;;  %2296 = vrot.lane.b32.xlu1 %v2213_v9, %s8880_s7 }
 0x16b   : > { %v8179_v50 = vld [vmem:[#allocation3 + $0x8] sm:$0xf0]  ;;  %v7558_v42 = vld [vmem:[#allocation3 + $0xc] sm:$0xf0]  ;;  %2073 = vrot.lane.b32.xlu2 %v1990_v14, %s8878_s30  ;;  %v1635_v44 = vsel %vm1543_vm3, %v1630_v25, %v9715_v30 }
 0x16c   : > { %v1061_v29 = vpack.c.bf16 %v963_v4, %v963_v4  ;;  %v2283_v41 = vpop.permute.xlu1 %2282  ;;  %v7557_v20 = vor.u32 %v8179_v50, %v7556_v24  ;;  %v7561_v23 = vor.u32 %v8178_v6, %v7558_v42  ;;  %v7648_v61 = vld [vmem:[#allocation3 + $0xb0] sm:$0xf] }
 0x16d   : > { %v3510_v26 = vsel %vm3506_vm9, %v3425_v16, %v2283_v41  ;;  %v9712_v22 = vld [vmem:[#allocation2 + $0x64] sm:$0xff]   ;;  %v9718_v27 = vpop.permute.xlu2 %3168 }
 0x16e   : > { %1160 = vst.msk [vmem:[#allocation2 + $0x6c] sm:$0xf] %vm1132_vm1, %v1061_v29  ;;  %v3975_v32 = vunpack.c.l.b16 %v3510_v26  ;;  %v3978_v8 = vunpack.c.h.b16 %v3510_v26  ;;  %5801 = vmatmul.bf16.vlgmr.msra.gmra.mxu1 %v7557_v20  ;;  %6020 = vmatmul.bf16.vlgmr.msra.gmra.mxu2 %v7561_v23  ;;  %v3268_v34 = vrot.slane %v9712_v22, 1  ;;  %v8201_v56 = vld [vmem:[#allocation3 + $0xb8] sm:$0xf0]  ;;  %v2470_v43 = vshll.u32 %v9712_v22, 16 }
 0x16f   : > { %v726_v60 = vpop.f32.mrf.mxu0  ;;  %2955 = vrot.lane.b32.xlu0 %v9712_v22, %s8878_s30  ;;  %v2467_v47 = vshrl.u32 %v9712_v22, 16  ;;  %v7649_v38 = vor.u32 %v8201_v56, %v7648_v61  ;;  %v9755_v29 = vld [vmem:[#allocation2 + $0x60] sm:$0xff]   ;;  %v2214_v20 = vrot.slane %v9623_v11, 2  ;;  %v271_v26 = vld [vmem:[%s8931_s27 + $0x168] sm:$0xff] }
 0x170   : > { %v4225_v58 = vpack.c.b16 %v3976_v53, %v3975_v32  ;;  %v4227_v19 = vpack.c.b16 %v3979_v36, %v3978_v8  ;;  %v727_v48 = vadd.f32 %v9497_v3, %v726_v60  ;;  %v3269_v12 = vsel %vm1971_vm2, %v3266_v62, %v3268_v34  ;;  %v2942_v52 = vpop.permute.xlu0 %2941  ;;  %v933_v62 = vpop.f32.mrf.mxu3  ;;  %v8824_v36 = vld [vmem:[#allocation2 + $0x10] sm:$0xff]  }
 0x171   : > { %v2472_v45 = vrot.slane %v2470_v43, 3  ;;  %v9740_v4 = vrot.slane %v2470_v43, 1  ;;  %8137 = vmatmul.msk.bf16.gmra.mxu3 %vm3336_vm7, %v7649_v38  ;;  %v4019_v14 = vunpack.c.l.b16 %v3269_v12  ;;  %v4022_v24 = vunpack.c.h.b16 %v3269_v12 }
 0x172   : > { %4561 = vst [vmem:[#allocation3 + $0x18] sm:$0xff] %v4225_v58  ;;  %v964_v9 = vmax.f32 %v727_v48, 0.0  ;;  %7484 = vmatmul.msk.f32.gmra.mxu0 %vm330_vm0, %v270_v15  ;;  %v2469_v6 = vrot.slane %v2467_v47, 2  ;;  %2861 = vrot.lane.b32.xlu1 %v2778_v51, %s8879_s6  ;;  %v1991_v53 = vrot.slane %v9597_v49, 1  ;;  %v1640_v8 = vshll.u32 %v9755_v29, 16 }
 0x173   : > { %4563 = vst [vmem:[#allocation3 + $0x24] sm:$0xff] %v4227_v19  ;;  %v3051_v63 = vsel %vm1543_vm3, %v3049_v21, %v9740_v4  ;;  %v4254_v39 = vpack.c.b16 %v4019_v14, %v4019_v14  ;;  %v4256_v50 = vpack.c.b16 %v4022_v24, %v4022_v24  ;;  %v3342_v61 = vsel %vm3336_vm7, %v8824_v36, %v9683_v57 }
 0x174   : > { %v1062_v13 = vpack.c.bf16 %v964_v9, %v964_v9  ;;  %v2848_v46 = vpop.permute.xlu1 %2847  ;;  %v9750_v42 = vor.u32 %v2472_v45, %v2469_v6  ;;  %3180 = vrot.lane.b32.xlu2 %v3051_v63, %s8880_s7  ;;  %v2215_v51 = vsel %vm2194_vm4, %v2212_v31, %v2214_v20  ;;  %v2779_v38 = vrot.slane %v9712_v22, 3 }
 0x175   : > { %v3599_v16 = vsel %vm3336_vm7, %v9140_v2, %v2848_v46  ;;  %v9758_v41 = vpop.permute.xlu2 %2063  ;;  %4590 = vst.msk [vmem:[#allocation3 + $0xc8] sm:$0xf] %vm1132_vm1, %v4254_v39  ;;  %v3427_v45 = vsel %vm3421_vm8, %v3342_v61, %v9667_v0  ;;  %v1992_v37 = vsel %vm1971_vm2, %v1989_v10, %v1991_v53  ;;  %v1636_v21 = vshrl.u32 %v9673_v18, 16 }
 0x176   : > { %1161 = vst.msk [vmem:[#allocation2 + $0x70] sm:$0xf] %vm1132_vm1, %v1062_v13  ;;  %v9769_v2 = vsel %vm2367_vm6, %v9678_v59, %v9750_v42  ;;  %v3722_v28 = vsel %vm3421_vm8, %v3599_v16, %v2942_v52  ;;  %v9802_v9 = vrot.slane %v1640_v8, 1  ;;  %v272_v13 = vld [vmem:[%s8931_s27 + $0x170] sm:$0xff]  ;;  %v2780_v46 = vsel %vm2757_vm5, %v2777_v1, %v2779_v38 }
 0x177   : > { %v729_v23 = vpop.f32.mrf.mxu0  ;;  %1904 = vrot.lane.b32.xlu0 %v1635_v44, %s8879_s6  ;;  %4592 = vst.msk [vmem:[#allocation3 + $0xd4] sm:$0xf] %vm1132_vm1, %v4256_v50  ;;  %v3806_v19 = vsel %vm3506_vm9, %v3722_v28, %v9718_v27  ;;  %v3052_v1 = vor.u32 %v9740_v4, %v2467_v47  ;;  %v1638_v47 = vor.u32 %v1636_v21, %v9715_v30  ;;  %v2216_v30 = vrot.slane %v9712_v22, 2 }
 0x178   : > { %v730_v32 = vadd.f32 %v9497_v3, %v729_v23  ;;  %v9778_v60 = vpop.permute.xlu0 %1890  ;;  %v3982_v14 = vunpack.c.l.b16 %v3806_v19  ;;  %v3985_v6 = vunpack.c.h.b16 %v3806_v19 }
 0x179   : > { %v7568_v56 = vld [vmem:[#allocation3 + $0x18] sm:$0xf]  ;;  %v8181_v15 = vld [vmem:[#allocation3 + $0x1c] sm:$0xf] }
 0x17a   : > { %v965_v59 = vmax.f32 %v730_v32, 0.0  ;;  %7485 = vmatmul.msk.f32.gmra.mxu0 %vm330_vm0, %v271_v26  ;;  %v8182_v43 = vld [vmem:[#allocation3 + $0x20] sm:$0xf0]  ;;  %v7570_v58 = vld [vmem:[#allocation3 + $0x24] sm:$0xf0]  ;;  %2298 = vrot.lane.b32.xlu1 %v2215_v51, %s8880_s7 }
 0x17b   : > { %v7569_v57 = vor.u32 %v8182_v43, %v7568_v56  ;;  %v7573_v48 = vor.u32 %v8181_v15, %v7570_v58 }
 0x17c   : > { %v1063_v12 = vpack.c.bf16 %v965_v59, %v965_v59  ;;  %v2285_v52 = vpop.permute.xlu1 %2284  ;;  %2075 = vrot.lane.b32.xlu2 %v1992_v37, %s8878_s30  ;;  %v7660_v10 = vld [vmem:[#allocation3 + $0xc8] sm:$0xf]  ;;  %v273_v37 = vld [vmem:[%s8931_s27 + $0x178] sm:$0xff] }
 0x17d   : > { %v3512_v31 = vsel %vm3506_vm9, %v3427_v45, %v2285_v52  ;;  %v9799_v27 = vld [vmem:[#allocation2 + $0x6c] sm:$0xff]   ;;  %v9805_v33 = vpop.permute.xlu2 %3170 }
 0x17e   : > { %1162 = vst.msk [vmem:[#allocation2 + $0x74] sm:$0xf] %vm1132_vm1, %v1063_v12  ;;  %v3981_v0 = vunpack.c.l.b16 %v3512_v31  ;;  %v3984_v24 = vunpack.c.h.b16 %v3512_v31  ;;  %5806 = vmatmul.bf16.gmra.mxu1 %v7569_v57  ;;  %6025 = vmatmul.bf16.gmra.mxu2 %v7573_v48  ;;  %v3270_v63 = vrot.slane %v9799_v27, 1  ;;  %v8204_v25 = vld [vmem:[#allocation3 + $0xd0] sm:$0xf0]  ;;  %v2479_v39 = vshll.u32 %v9799_v27, 16 }
 0x17f   : > { %v732_v62 = vpop.f32.mrf.mxu0  ;;  %2957 = vrot.lane.b32.xlu0 %v9799_v27, %s8878_s30  ;;  %v2476_v50 = vshrl.u32 %v9799_v27, 16  ;;  %v7661_v26 = vor.u32 %v8204_v25, %v7660_v10  ;;  %v1643_v12 = vsel %vm1543_vm3, %v1638_v47, %v9802_v9  ;;  %v9848_v52 = vld [vmem:[#allocation2 + $0x68] sm:$0xff]  }
 0x180   : > { %v4229_v16 = vpack.c.b16 %v3982_v14, %v3981_v0  ;;  %v4231_v44 = vpack.c.b16 %v3985_v6, %v3984_v24  ;;  %v733_v23 = vadd.f32 %v9497_v3, %v732_v62  ;;  %v3271_v28 = vsel %vm1971_vm2, %v3268_v34, %v3270_v63  ;;  %v2944_v32 = vpop.permute.xlu0 %2943  ;;  %v8825_v62 = vld [vmem:[#allocation2 + $0x18] sm:$0xff]  }
 0x181   : > { %v2481_v8 = vrot.slane %v2479_v39, 3  ;;  %v9827_v36 = vrot.slane %v2479_v39, 1  ;;  %v4025_v56 = vunpack.c.l.b16 %v3271_v28  ;;  %v4028_v15 = vunpack.c.h.b16 %v3271_v28  ;;  %8138 = vmatmul.msk.bf16.gmra.mxu3 %vm3336_vm7, %v7661_v26 }
 0x182   : > { %4565 = vst [vmem:[#allocation3 + $0x30] sm:$0xff] %v4229_v16  ;;  %v966_v61 = vmax.f32 %v733_v23, 0.0  ;;  %7486 = vmatmul.msk.f32.gmra.mxu0 %vm330_vm0, %v272_v13  ;;  %v2478_v59 = vrot.slane %v2476_v50, 2  ;;  %2863 = vrot.lane.b32.xlu1 %v2780_v46, %s8879_s6  ;;  %v1993_v0 = vrot.slane %v9673_v18, 1  ;;  %v1648_v10 = vshll.u32 %v9848_v52, 16 }
 0x183   : > { %4567 = vst [vmem:[#allocation3 + $0x3c] sm:$0xff] %v4231_v44  ;;  %v3054_v34 = vsel %vm1543_vm3, %v3052_v1, %v9827_v36  ;;  %v4258_v51 = vpack.c.b16 %v4025_v56, %v4025_v56  ;;  %v4260_v43 = vpack.c.b16 %v4028_v15, %v4028_v15  ;;  %v3344_v25 = vsel %vm3336_vm7, %v8825_v62, %v9778_v60 }
 0x184   : > { %v1064_v4 = vpack.c.bf16 %v966_v61, %v966_v61  ;;  %v9837_v58 = vor.u32 %v2481_v8, %v2478_v59  ;;  %v2850_v19 = vpop.permute.xlu1 %2849  ;;  %3182 = vrot.lane.b32.xlu2 %v3054_v34, %s8880_s7  ;;  %v2217_v13 = vsel %vm2194_vm4, %v2214_v20, %v2216_v30  ;;  %v2781_v16 = vrot.slane %v9799_v27, 3 }
 0x185   : > { %v3602_v57 = vsel %vm3336_vm7, %v9189_v40, %v2850_v19  ;;  %v9843_v48 = vpop.permute.xlu2 %2065  ;;  %4594 = vst.msk [vmem:[#allocation3 + $0xe0] sm:$0xf] %vm1132_vm1, %v4258_v51  ;;  %v1994_v11 = vsel %vm1971_vm2, %v1991_v53, %v1993_v0  ;;  %v3429_v20 = vsel %vm3421_vm8, %v3344_v25, %v9758_v41  ;;  %v9888_v8 = vrot.slane %v1648_v10, 1  ;;  %v274_v51 = vld [vmem:[%s8931_s27 + $0x180] sm:$0xff] }
 0x186   : > { %1163 = vst.msk [vmem:[#allocation2 + $0x78] sm:$0xf] %vm1132_vm1, %v1064_v4  ;;  %v9856_v31 = vsel %vm2367_vm6, %v9750_v42, %v9837_v58  ;;  %v3724_v40 = vsel %vm3421_vm8, %v3602_v57, %v2944_v32  ;;  %v2782_v56 = vsel %vm2757_vm5, %v2779_v38, %v2781_v16 }
 0x187   : > { %v735_v45 = vpop.f32.mrf.mxu0  ;;  %1906 = vrot.lane.b32.xlu0 %v1643_v12, %s8879_s6  ;;  %4596 = vst.msk [vmem:[#allocation3 + $0xec] sm:$0xf] %vm1132_vm1, %v4260_v43  ;;  %v3808_v44 = vsel %vm3506_vm9, %v3724_v40, %v9805_v33  ;;  %v1644_v33 = vshrl.u32 %v9755_v29, 16  ;;  %v3055_v12 = vor.u32 %v9827_v36, %v2476_v50 }
 0x188   : > { %v736_v21 = vadd.f32 %v9497_v3, %v735_v45  ;;  %v9862_v14 = vpop.permute.xlu0 %1892  ;;  %v3988_v49 = vunpack.c.l.b16 %v3808_v44  ;;  %v3991_v61 = vunpack.c.h.b16 %v3808_v44 }
 0x189   : > { %v7580_v24 = vld [vmem:[#allocation3 + $0x30] sm:$0xf]  ;;  %v8184_v6 = vld [vmem:[#allocation3 + $0x34] sm:$0xf]  ;;  %v1646_v36 = vor.u32 %v1644_v33, %v9802_v9  ;;  %v275_v33 = vld [vmem:[%s8931_s27 + $0x188] sm:$0xff] }
 0x18a   : > { %v967_v42 = vmax.f32 %v736_v21, 0.0  ;;  %7487 = vmatmul.msk.f32.gmra.mxu0 %vm330_vm0, %v273_v37  ;;  %v8185_v46 = vld [vmem:[#allocation3 + $0x38] sm:$0xf0]  ;;  %v7582_v39 = vld [vmem:[#allocation3 + $0x3c] sm:$0xf0]  ;;  %2300 = vrot.lane.b32.xlu1 %v2217_v13, %s8880_s7 }
 0x18b   : > { %v7581_v23 = vor.u32 %v8185_v46, %v7580_v24  ;;  %v7585_v60 = vor.u32 %v8184_v6, %v7582_v39 }
 0x18c   : > { %v1065_v26 = vpack.c.bf16 %v967_v42, %v967_v42  ;;  %v2287_v28 = vpop.permute.xlu1 %2286  ;;  %2077 = vrot.lane.b32.xlu2 %v1994_v11, %s8878_s30  ;;  %v7672_v41 = vld [vmem:[#allocation3 + $0xe0] sm:$0xf]  ;;  %v2218_v11 = vrot.slane %v9799_v27, 2 }
 0x18d   : > { %v9885_v32 = vld [vmem:[#allocation2 + $0x74] sm:$0xff]   ;;  %v3514_v1 = vsel %vm3506_vm9, %v3429_v20, %v2287_v28  ;;  %v9892_v53 = vpop.permute.xlu2 %3172 }
 0x18e   : > { %1164 = vst.msk [vmem:[#allocation2 + $0x7c] sm:$0xf] %vm1132_vm1, %v1065_v26  ;;  %5811 = vmatmul.bf16.gmra.mxu1 %v7581_v23  ;;  %6030 = vmatmul.bf16.gmra.mxu2 %v7585_v60  ;;  %v3987_v15 = vunpack.c.l.b16 %v3514_v1  ;;  %v3990_v59 = vunpack.c.h.b16 %v3514_v1  ;;  %v3272_v47 = vrot.slane %v9885_v32, 1  ;;  %v8207_v4 = vld [vmem:[#allocation3 + $0xe8] sm:$0xf0]  ;;  %v2488_v43 = vshll.u32 %v9885_v32, 16 }
 0x18f   : > { %v738_v34 = vpop.f32.mrf.mxu0  ;;  %2959 = vrot.lane.b32.xlu0 %v9885_v32, %s8878_s30  ;;  %v7673_v57 = vor.u32 %v8207_v4, %v7672_v41  ;;  %v2485_v38 = vshrl.u32 %v9885_v32, 16  ;;  %v1651_v26 = vsel %vm1543_vm3, %v1646_v36, %v9888_v8  ;;  %v9937_v28 = vld [vmem:[#allocation2 + $0x70] sm:$0xff]  }
 0x190   : > { %v739_v19 = vadd.f32 %v9497_v3, %v738_v34  ;;  %v4233_v45 = vpack.c.b16 %v3988_v49, %v3987_v15  ;;  %v4235_v37 = vpack.c.b16 %v3991_v61, %v3990_v59  ;;  %v3273_v40 = vsel %vm1971_vm2, %v3270_v63, %v3272_v47  ;;  %v2946_v21 = vpop.permute.xlu0 %2945  ;;  %v8826_v15 = vld [vmem:[#allocation2 + $0x20] sm:$0xff]  }
 0x191   : > { %v2490_v24 = vrot.slane %v2488_v43, 3  ;;  %v4031_v10 = vunpack.c.l.b16 %v3273_v40  ;;  %v4034_v62 = vunpack.c.h.b16 %v3273_v40  ;;  %8139 = vmatmul.msk.bf16.gmra.mxu3 %vm3336_vm7, %v7673_v57  ;;  %v9916_v50 = vrot.slane %v2488_v43, 1 }
 0x192   : > { %v968_v6 = vmax.f32 %v739_v19, 0.0  ;;  %7488 = vmatmul.msk.f32.gmra.mxu0 %vm330_vm0, %v274_v51  ;;  %4569 = vst [vmem:[#allocation3 + $0x48] sm:$0xff] %v4233_v45  ;;  %2865 = vrot.lane.b32.xlu1 %v2782_v56, %s8879_s6  ;;  %v2487_v25 = vrot.slane %v2485_v38, 2  ;;  %v1995_v61 = vrot.slane %v9755_v29, 1  ;;  %v1656_v56 = vshll.u32 %v9937_v28, 16 }
 0x193   : > { %4571 = vst [vmem:[#allocation3 + $0x54] sm:$0xff] %v4235_v37  ;;  %v4262_v42 = vpack.c.b16 %v4031_v10, %v4031_v10  ;;  %v4264_v13 = vpack.c.b16 %v4034_v62, %v4034_v62  ;;  %v3057_v46 = vsel %vm1543_vm3, %v3055_v12, %v9916_v50  ;;  %v3346_v59 = vsel %vm3336_vm7, %v8826_v15, %v9862_v14 }
 0x194   : > { %v1066_v63 = vpack.c.bf16 %v968_v6, %v968_v6  ;;  %v9924_v39 = vpop.f32.mrf.mxu3  ;;  %v2852_v44 = vpop.permute.xlu1 %2851  ;;  %3184 = vrot.lane.b32.xlu2 %v3057_v46, %s8880_s7  ;;  %v9927_v23 = vor.u32 %v2490_v24, %v2487_v25  ;;  %v2783_v43 = vrot.slane %v9885_v32, 3  ;;  %v1996_v22 = vsel %vm1971_vm2, %v1993_v0, %v1995_v61 }
 0x195   : > { %v3605_v9 = vsel %vm3336_vm7, %v9249_v17, %v2852_v44  ;;  %v9932_v60 = vpop.permute.xlu2 %2067  ;;  %4598 = vst.msk [vmem:[#allocation3 + $0xf8] sm:$0xf] %vm1132_vm1, %v4262_v42  ;;  %v1652_v24 = vshrl.u32 %v9848_v52, 16  ;;  %v9979_v6 = vrot.slane %v1656_v56, 1  ;;  %v276_v44 = vld [vmem:[%s8931_s27 + $0x190] sm:$0xff] }
 0x196   : > { %1165 = vst.msk [vmem:[#allocation2 + $0x80] sm:$0xf] %vm1132_vm1, %v1066_v63  ;;  %v9945_v1 = vsel %vm2367_vm6, %v9837_v58, %v9927_v23  ;;  %v3726_v17 = vsel %vm3421_vm8, %v3605_v9, %v2946_v21  ;;  %v2219_v58 = vsel %vm2194_vm4, %v2216_v30, %v2218_v11  ;;  %v3431_v21 = vsel %vm3421_vm8, %v3346_v59, %v9843_v48 }
 0x197   : > { %v741_v20 = vpop.f32.mrf.mxu0  ;;  %1908 = vrot.lane.b32.xlu0 %v1651_v26, %s8879_s6  ;;  %4600 = vst.msk [vmem:[#allocation3 + $0x104] sm:$0xf] %vm1132_vm1, %v4264_v13  ;;  %v3810_v19 = vsel %vm3506_vm9, %v3726_v17, %v9892_v53  ;;  %v2784_v36 = vsel %vm2757_vm5, %v2781_v16, %v2783_v43 }
 0x198   : > { %v742_v49 = vadd.f32 %v9497_v3, %v741_v20  ;;  %v9951_v41 = vpop.permute.xlu0 %1894  ;;  %v3994_v0 = vunpack.c.l.b16 %v3810_v19  ;;  %v3997_v10 = vunpack.c.h.b16 %v3810_v19 }
 0x199   : > { %v7592_v4 = vld [vmem:[#allocation3 + $0x48] sm:$0xf]  ;;  %v8187_v51 = vld [vmem:[#allocation3 + $0x4c] sm:$0xf] }
 0x19a   : > { %v969_v34 = vmax.f32 %v742_v49, 0.0  ;;  %7489 = vmatmul.msk.f32.gmra.mxu0 %vm330_vm0, %v275_v33  ;;  %2302 = vrot.lane.b32.xlu1 %v2219_v58, %s8880_s7  ;;  %v8188_v57 = vld [vmem:[#allocation3 + $0x50] sm:$0xf0]  ;;  %v7594_v14 = vld [vmem:[#allocation3 + $0x54] sm:$0xf0]  ;;  %v3058_v33 = vor.u32 %v9916_v50, %v2485_v38  ;;  %v1654_v50 = vor.u32 %v1652_v24, %v9888_v8 }
 0x19b   : > { %v7593_v45 = vor.u32 %v8188_v57, %v7592_v4  ;;  %v7597_v30 = vor.u32 %v8187_v51, %v7594_v14  ;;  %v10028_v24 = vld [vmem:[#allocation2 + $0x78] sm:$0xff]  }
 0x19c   : > { %v1067_v12 = vpack.c.bf16 %v969_v34, %v969_v34  ;;  %v9971_v37 = vpop.f32.mrf.mxu3  ;;  %v2289_v40 = vpop.permute.xlu1 %2288  ;;  %2079 = vrot.lane.b32.xlu2 %v1996_v22, %s8878_s30  ;;  %v7684_v48 = vld [vmem:[#allocation3 + $0xf8] sm:$0xf] }
 0x19d   : > { %v9976_v53 = vld [vmem:[#allocation2 + $0x7c] sm:$0xff]   ;;  %v3516_v18 = vsel %vm3506_vm9, %v3431_v21, %v2289_v40  ;;  %v9983_v62 = vpop.permute.xlu2 %3174  ;;  %v1659_v40 = vsel %vm1543_vm3, %v1654_v50, %v9979_v6  ;;  %v2220_v21 = vrot.slane %v9885_v32, 2 }
 0x19e   : > { %1166 = vst.msk [vmem:[#allocation2 + $0x84] sm:$0xf] %vm1132_vm1, %v1067_v12  ;;  %5816 = vmatmul.bf16.gmra.mxu1 %v7593_v45  ;;  %6035 = vmatmul.bf16.gmra.mxu2 %v7597_v30  ;;  %v3993_v25 = vunpack.c.l.b16 %v3516_v18  ;;  %v3996_v63 = vunpack.c.h.b16 %v3516_v18  ;;  %v3274_v13 = vrot.slane %v9976_v53, 1  ;;  %v8210_v46 = vld [vmem:[#allocation3 + $0x100] sm:$0xf0]  ;;  %v2497_v9 = vshll.u32 %v9976_v53, 16 }
 0x19f   : > { %v744_v42 = vpop.f32.mrf.mxu0  ;;  %2961 = vrot.lane.b32.xlu0 %v9976_v53, %s8878_s30  ;;  %v7685_v20 = vor.u32 %v8210_v46, %v7684_v48  ;;  %v2494_v16 = vshrl.u32 %v9976_v53, 16 }
 0x1a0   : > { %v745_v26 = vadd.f32 %v9497_v3, %v744_v42  ;;  %v4237_v17 = vpack.c.b16 %v3994_v0, %v3993_v25  ;;  %v4239_v49 = vpack.c.b16 %v3997_v10, %v3996_v63  ;;  %v3275_v56 = vsel %vm1971_vm2, %v3272_v47, %v3274_v13  ;;  %v2948_v15 = vpop.permute.xlu0 %2947  ;;  %v277_v0 = vld [vmem:[%s8931_s27 + $0x198] sm:$0xff]  ;;  %v8827_v42 = vld [vmem:[#allocation2 + $0x28] sm:$0xff]  }
 0x1a1   : > { %v2499_v59 = vrot.slane %v2497_v9, 3  ;;  %v4037_v58 = vunpack.c.l.b16 %v3275_v56  ;;  %v4040_v4 = vunpack.c.h.b16 %v3275_v56  ;;  %8140 = vmatmul.msk.bf16.gmra.mxu3 %vm3336_vm7, %v7685_v20  ;;  %v10007_v38 = vrot.slane %v2497_v9, 1 }
 0x1a2   : > { %v970_v34 = vmax.f32 %v745_v26, 0.0  ;;  %7490 = vmatmul.msk.f32.gmra.mxu0 %vm330_vm0, %v276_v44  ;;  %4573 = vst [vmem:[#allocation3 + $0x60] sm:$0xff] %v4237_v17  ;;  %2867 = vrot.lane.b32.xlu1 %v2784_v36, %s8879_s6  ;;  %v2496_v51 = vrot.slane %v2494_v16, 2  ;;  %v1997_v36 = vrot.slane %v9848_v52, 1  ;;  %v1664_v63 = vshll.u32 %v10028_v24, 16 }
 0x1a3   : > { %4575 = vst [vmem:[#allocation3 + $0x6c] sm:$0xff] %v4239_v49  ;;  %v4266_v19 = vpack.c.b16 %v4037_v58, %v4037_v58  ;;  %v4268_v57 = vpack.c.b16 %v4040_v4, %v4040_v4  ;;  %v3060_v14 = vsel %vm1543_vm3, %v3058_v33, %v10007_v38  ;;  %v3348_v46 = vsel %vm3336_vm7, %v8827_v42, %v9951_v41 }
 0x1a4   : > { %v1068_v47 = vpack.c.bf16 %v970_v34, %v970_v34  ;;  %v10015_v12 = vpop.f32.mrf.mxu3  ;;  %v2854_v22 = vpop.permute.xlu1 %2853  ;;  %3186 = vrot.lane.b32.xlu2 %v3060_v14, %s8880_s7  ;;  %v10018_v45 = vor.u32 %v2499_v59, %v2496_v51  ;;  %v2785_v26 = vrot.slane %v9976_v53, 3  ;;  %v1998_v27 = vsel %vm1971_vm2, %v1995_v61, %v1997_v36 }
 0x1a5   : > { %v3608_v8 = vsel %vm3336_vm7, %v9309_v55, %v2854_v22  ;;  %v10023_v30 = vpop.permute.xlu2 %2069  ;;  %4602 = vst.msk [vmem:[#allocation3 + $0x110] sm:$0xf] %vm1132_vm1, %v4266_v19  ;;  %v3433_v59 = vsel %vm3421_vm8, %v3348_v46, %v9932_v60  ;;  %v1660_v34 = vshrl.u32 %v9937_v28, 16  ;;  %v10070_v58 = vrot.slane %v1664_v63, 1 }
 0x1a6   : > { %1167 = vst.msk [vmem:[#allocation2 + $0x88] sm:$0xf] %vm1132_vm1, %v1068_v47  ;;  %v10036_v10 = vsel %vm2367_vm6, %v9927_v23, %v10018_v45  ;;  %v3728_v55 = vsel %vm3421_vm8, %v3608_v8, %v2948_v15  ;;  %v2221_v23 = vsel %vm2194_vm4, %v2218_v11, %v2220_v21  ;;  %v2786_v51 = vsel %vm2757_vm5, %v2783_v43, %v2785_v26  ;;  %v278_v8 = vld [vmem:[%s8931_s27 + $0x1a0] sm:$0xff] }
 0x1a7   : > { %v747_v18 = vpop.f32.mrf.mxu0  ;;  %1910 = vrot.lane.b32.xlu0 %v1659_v40, %s8879_s6  ;;  %4604 = vst.msk [vmem:[#allocation3 + $0x11c] sm:$0xf] %vm1132_vm1, %v4268_v57  ;;  %v3812_v20 = vsel %vm3506_vm9, %v3728_v55, %v9983_v62  ;;  %v3061_v55 = vor.u32 %v10007_v38, %v2494_v16  ;;  %v1662_v38 = vor.u32 %v1660_v34, %v9979_v6 }
 0x1a8   : > { %v748_v48 = vadd.f32 %v9497_v3, %v747_v18  ;;  %v10042_v25 = vpop.permute.xlu0 %1896  ;;  %v4000_v61 = vunpack.c.l.b16 %v3812_v20  ;;  %v4003_v4 = vunpack.c.h.b16 %v3812_v20  ;;  %v10089_v18 = vld [vmem:[%s12984_s2] ss:$0 sm:$0xff] }
 0x1a9   : > { %v7604_v3 = vld [vmem:[#allocation3 + $0x60] sm:$0xf]  ;;  %v8190_v9 = vld [vmem:[#allocation3 + $0x64] sm:$0xf]  ;;  %v1667_v34 = vsel %vm1543_vm3, %v1662_v38, %v10070_v58  ;;  %v1668_v38 = vshrl.u32 %v10028_v24, 16 }
 0x1aa   : > { %v971_v44 = vmax.f32 %v748_v48, 0.0  ;;  %7491 = vmatmul.msk.f32.gmra.mxu0 %vm330_vm0, %v277_v0  ;;  %2304 = vrot.lane.b32.xlu1 %v2221_v23, %s8880_s7  ;;  %v8191_v33 = vld [vmem:[#allocation3 + $0x68] sm:$0xf0]  ;;  %v7606_v41 = vld [vmem:[#allocation3 + $0x6c] sm:$0xf0] }
 0x1ab   : > { %v7605_v49 = vor.u32 %v8191_v33, %v7604_v3  ;;  %v7609_v11 = vor.u32 %v8190_v9, %v7606_v41 }
 0x1ac   : > { %v1069_v17 = vpack.c.bf16 %v971_v44, %v971_v44  ;;  %v10062_v56 = vpop.f32.mrf.mxu3  ;;  %v2291_v15 = vpop.permute.xlu1 %2290  ;;  %2081 = vrot.lane.b32.xlu2 %v1998_v27, %s8878_s30  ;;  %v7696_v60 = vld [vmem:[#allocation3 + $0x110] sm:$0xf] }
 0x1ad   : > { %v10067_v62 = vld [vmem:[#allocation2 + $0x84] sm:$0xff]   ;;  %v3518_v29 = vsel %vm3506_vm9, %v3433_v59, %v2291_v15  ;;  %v10074_v50 = vpop.permute.xlu2 %3176 }
 0x1ae   : > { %1168 = vst.msk [vmem:[#allocation2 + $0x8c] sm:$0xf] %vm1132_vm1, %v1069_v17  ;;  %5821 = vmatmul.bf16.gmra.mxu1 %v7605_v49  ;;  %6040 = vmatmul.bf16.gmra.mxu2 %v7609_v11  ;;  %v3999_v47 = vunpack.c.l.b16 %v3518_v29  ;;  %v4002_v19 = vunpack.c.h.b16 %v3518_v29  ;;  %v3276_v14 = vrot.slane %v10067_v62, 1  ;;  %v8213_v22 = vld [vmem:[#allocation3 + $0x118] sm:$0xf0]  ;;  %v2506_v40 = vshll.u32 %v10067_v62, 16 }
 0x1af   : > { %v750_v57 = vpop.f32.mrf.mxu0  ;;  %2963 = vrot.lane.b32.xlu0 %v10067_v62, %s8878_s30  ;;  %v7697_v43 = vor.u32 %v8213_v22, %v7696_v60  ;;  %v2503_v48 = vshrl.u32 %v10067_v62, 16  ;;  %v2222_v29 = vrot.slane %v9976_v53, 2  ;;  %v279_v60 = vld [vmem:[%s8931_s27 + $0x1a8] sm:$0xff] }
 0x1b0   : > { %v751_v0 = vadd.f32 %v10089_v18, %v750_v57  ;;  %v4241_v63 = vpack.c.b16 %v4000_v61, %v3999_v47  ;;  %v4243_v42 = vpack.c.b16 %v4003_v4, %v4002_v19  ;;  %v3277_v46 = vsel %vm1971_vm2, %v3274_v13, %v3276_v14  ;;  %v2950_v44 = vpop.permute.xlu0 %2949  ;;  %v10124_v61 = vld [vmem:[#allocation2 + $0x80] sm:$0xff]  }
 0x1b1   : > { %v2508_v23 = vrot.slane %v2506_v40, 3  ;;  %v4043_v9 = vunpack.c.l.b16 %v3277_v46  ;;  %v4046_v20 = vunpack.c.h.b16 %v3277_v46  ;;  %8141 = vmatmul.msk.bf16.gmra.mxu3 %vm3336_vm7, %v7697_v43  ;;  %v10103_v16 = vrot.slane %v2506_v40, 1 }
 0x1b2   : > { %v972_v3 = vmax.f32 %v751_v0, 0.0  ;;  %7492 = vmatmul.msk.f32.gmra.mxu0 %vm330_vm0, %v278_v8  ;;  %4577 = vst [vmem:[#allocation3 + $0x78] sm:$0xff] %v4241_v63  ;;  %2869 = vrot.lane.b32.xlu1 %v2786_v51, %s8879_s6  ;;  %v2505_v33 = vrot.slane %v2503_v48, 2  ;;  %v1999_v19 = vrot.slane %v9937_v28, 1  ;;  %v1672_v22 = vshll.u32 %v10124_v61, 16  ;;  %v8829_v8 = vld [vmem:[#allocation2 + $0x30] sm:$0xff]  }
 0x1b3   : > { %4579 = vst [vmem:[#allocation3 + $0x84] sm:$0xff] %v4243_v42  ;;  %v4270_v41 = vpack.c.b16 %v4043_v9, %v4043_v9  ;;  %v4272_v17 = vpack.c.b16 %v4046_v20, %v4046_v20  ;;  %v3063_v27 = vsel %vm1543_vm3, %v3061_v55, %v10103_v16  ;;  %v3350_v40 = vsel %vm3336_vm7, %v8829_v8, %v10042_v25 }
 0x1b4   : > { %v1070_v13 = vpack.c.bf16 %v972_v3, %v972_v3  ;;  %v10111_v49 = vpop.f32.mrf.mxu3  ;;  %v2856_v11 = vpop.permute.xlu1 %2855  ;;  %3188 = vrot.lane.b32.xlu2 %v3063_v27, %s8880_s7  ;;  %v10114_v15 = vor.u32 %v2508_v23, %v2505_v33  ;;  %v2787_v63 = vrot.slane %v10067_v62, 3  ;;  %v2000_v32 = vsel %vm1971_vm2, %v1997_v36, %v1999_v19 }
 0x1b5   : > { %v3611_v6 = vsel %vm3336_vm7, %v9399_v5, %v2856_v11  ;;  %v10119_v59 = vpop.permute.xlu2 %2071  ;;  %4606 = vst.msk [vmem:[#allocation3 + $0x128] sm:$0xf] %vm1132_vm1, %v4270_v41  ;;  %v3435_v20 = vsel %vm3421_vm8, %v3350_v40, %v10023_v30  ;;  %v10166_v33 = vrot.slane %v1672_v22, 1 }
 0x1b6   : > { %1169 = vst.msk [vmem:[#allocation2 + $0x90] sm:$0xf] %vm1132_vm1, %v1070_v13  ;;  %v10132_v51 = vsel %vm2367_vm6, %v10018_v45, %v10114_v15  ;;  %v3730_v5 = vsel %vm3421_vm8, %v3611_v6, %v2950_v44  ;;  %v2223_v45 = vsel %vm2194_vm4, %v2220_v21, %v2222_v29  ;;  %v2788_v30 = vsel %vm2757_vm5, %v2785_v26, %v2787_v63 }
 0x1b7   : > { %v753_v4 = vpop.f32.mrf.mxu0  ;;  %1912 = vrot.lane.b32.xlu0 %v1667_v34, %s8879_s6  ;;  %4608 = vst.msk [vmem:[#allocation3 + $0x134] sm:$0xf] %vm1132_vm1, %v4272_v17  ;;  %v3814_v42 = vsel %vm3506_vm9, %v3730_v5, %v10074_v50  ;;  %v3064_v26 = vor.u32 %v10103_v16, %v2503_v48  ;;  %v1670_v16 = vor.u32 %v1668_v38, %v10070_v58 }
 0x1b8   : > { %v754_v47 = vadd.f32 %v10089_v18, %v753_v4  ;;  %v10138_v57 = vpop.permute.xlu0 %1898  ;;  %v4006_v36 = vunpack.c.l.b16 %v3814_v42  ;;  %v4009_v13 = vunpack.c.h.b16 %v3814_v42 }
 0x1b9   : > { %v7616_v43 = vld [vmem:[#allocation3 + $0x78] sm:$0xf]  ;;  %v8193_v55 = vld [vmem:[#allocation3 + $0x7c] sm:$0xf]  ;;  %v1675_v38 = vsel %vm1543_vm3, %v1670_v16, %v10166_v33 }
 0x1ba   : > { %v973_v0 = vmax.f32 %v754_v47, 0.0  ;;  %7493 = vmatmul.msk.f32.gmra.mxu0 %vm330_vm0, %v279_v60  ;;  %2306 = vrot.lane.b32.xlu1 %v2223_v45, %s8880_s7  ;;  %v8194_v46 = vld [vmem:[#allocation3 + $0x80] sm:$0xf0]  ;;  %v7618_v25 = vld [vmem:[#allocation3 + $0x84] sm:$0xf0] }
 0x1bb   : > { %v7617_v23 = vor.u32 %v8194_v46, %v7616_v43  ;;  %v7621_v21 = vor.u32 %v8193_v55, %v7618_v25  ;;  %v280_v60 = vld [vmem:[%s8931_s27 + $0x1b0] sm:$0xff] }
 0x1bc   : > { %v1071_v44 = vpack.c.bf16 %v973_v0, %v973_v0  ;;  %v10158_v3 = vpop.f32.mrf.mxu3  ;;  %v2293_v9 = vpop.permute.xlu1 %2292  ;;  %2083 = vrot.lane.b32.xlu2 %v2000_v32, %s8878_s30  ;;  %v7708_v41 = vld [vmem:[#allocation3 + $0x128] sm:$0xf] }
 0x1bd   : > { %v10163_v50 = vld [vmem:[#allocation2 + $0x8c] sm:$0xff]   ;;  %v3520_v52 = vsel %vm3506_vm9, %v3435_v20, %v2293_v9  ;;  %v3179_v6 = vpop.permute.xlu2 %3178 }
 0x1be   : > { %1170 = vst.msk [vmem:[#allocation2 + $0x94] sm:$0xf] %vm1132_vm1, %v1071_v44  ;;  %5826 = vmatmul.bf16.gmra.mxu1 %v7617_v23  ;;  %6045 = vmatmul.bf16.gmra.mxu2 %v7621_v21  ;;  %v4005_v17 = vunpack.c.l.b16 %v3520_v52  ;;  %v4008_v27 = vunpack.c.h.b16 %v3520_v52  ;;  %v3278_v34 = vrot.slane %v10163_v50, 1  ;;  %v8216_v4 = vld [vmem:[#allocation3 + $0x130] sm:$0xf0]  ;;  %v2515_v5 = vshll.u32 %v10163_v50, 16 }
 0x1bf   : > { %v756_v11 = vpop.f32.mrf.mxu0  ;;  %2965 = vrot.lane.b32.xlu0 %v10163_v50, %s8878_s30  ;;  %v7709_v22 = vor.u32 %v8216_v4, %v7708_v41  ;;  %v2512_v8 = vshrl.u32 %v10163_v50, 16  ;;  %v2001_v4 = vrot.slane %v10028_v24, 1 }
 0x1c0   : > { %v757_v47 = vadd.f32 %v10089_v18, %v756_v11  ;;  %v4245_v40 = vpack.c.b16 %v4006_v36, %v4005_v17  ;;  %v4247_v0 = vpack.c.b16 %v4009_v13, %v4008_v27  ;;  %v3279_v45 = vsel %vm1971_vm2, %v3276_v14, %v3278_v34  ;;  %v2952_v43 = vpop.permute.xlu0 %2951  ;;  %v10211_v13 = vld [vmem:[#allocation2 + $0x88] sm:$0xff]   ;;  %v281_v17 = vld [vmem:[%s8931_s27 + $0x1b8] sm:$0xff] }
 0x1c1   : > { %v2517_v55 = vrot.slane %v2515_v5, 3  ;;  %v4049_v46 = vunpack.c.l.b16 %v3279_v45  ;;  %v4052_v25 = vunpack.c.h.b16 %v3279_v45  ;;  %8142 = vmatmul.msk.bf16.gmra.mxu3 %vm3336_vm7, %v7709_v22  ;;  %v10192_v48 = vrot.slane %v2515_v5, 1 }
 0x1c2   : > { %v974_v42 = vmax.f32 %v757_v47, 0.0  ;;  %7494 = vmatmul.msk.f32.gmra.mxu0 %vm330_vm0, %v280_v60  ;;  %4581 = vst [vmem:[#allocation3 + $0x90] sm:$0xff] %v4245_v40  ;;  %2871 = vrot.lane.b32.xlu1 %v2788_v30, %s8879_s6  ;;  %v2514_v44 = vrot.slane %v2512_v8, 2  ;;  %v2224_v36 = vrot.slane %v10067_v62, 2  ;;  %v1680_v5 = vshll.u32 %v10211_v13, 16  ;;  %v8830_v47 = vld [vmem:[#allocation2 + $0x38] sm:$0xff]  }
 0x1c3   : > { %4583 = vst [vmem:[#allocation3 + $0x9c] sm:$0xff] %v4247_v0  ;;  %v4274_v32 = vpack.c.b16 %v4049_v46, %v4049_v46  ;;  %v4276_v23 = vpack.c.b16 %v4052_v25, %v4052_v25  ;;  %v3066_v21 = vsel %vm1543_vm3, %v3064_v26, %v10192_v48  ;;  %v3352_v22 = vsel %vm3336_vm7, %v8830_v47, %v10138_v57 }
 0x1c4   : > { %v1072_v14 = vpack.c.bf16 %v974_v42, %v974_v42  ;;  %v10200_v9 = vpop.f32.mrf.mxu3  ;;  %v2858_v20 = vpop.permute.xlu1 %2857  ;;  %3190 = vrot.lane.b32.xlu2 %v3066_v21, %s8880_s7  ;;  %v10203_v52 = vor.u32 %v2517_v55, %v2514_v44  ;;  %v2789_v45 = vrot.slane %v10163_v50, 3  ;;  %v2002_v46 = vsel %vm1971_vm2, %v1999_v19, %v2001_v4 }
 0x1c5   : > { %v3614_v58 = vsel %vm3336_vm7, %v9505_v7, %v2858_v20  ;;  %4610 = vst.msk [vmem:[#allocation3 + $0x140] sm:$0xf] %vm1132_vm1, %v4274_v32  ;;  %v10214_v30 = vpop.permute.xlu2 %2073  ;;  %v3437_v44 = vsel %vm3421_vm8, %v3352_v22, %v10119_v59  ;;  %v10254_v32 = vrot.slane %v1680_v5, 1 }
 0x1c6   : > { %1171 = vst.msk [vmem:[#allocation2 + $0x98] sm:$0xf] %vm1132_vm1, %v1072_v14  ;;  %v10221_v27 = vsel %vm2367_vm6, %v10114_v15, %v10203_v52  ;;  %v3732_v7 = vsel %vm3421_vm8, %v3614_v58, %v2952_v43  ;;  %v2225_v15 = vsel %vm2194_vm4, %v2222_v29, %v2224_v36  ;;  %v1676_v14 = vshrl.u32 %v10124_v61, 16 }
 0x1c7   : > { %v759_v41 = vpop.f32.mrf.mxu0  ;;  %1914 = vrot.lane.b32.xlu0 %v1675_v38, %s8879_s6  ;;  %4612 = vst.msk [vmem:[#allocation3 + $0x14c] sm:$0xf] %vm1132_vm1, %v4276_v23  ;;  %v3816_v43 = vsel %vm3506_vm9, %v3732_v7, %v3179_v6  ;;  %v2790_v59 = vsel %vm2757_vm5, %v2787_v63, %v2789_v45  ;;  %v3067_v63 = vor.u32 %v10192_v48, %v2512_v8 }
 0x1c8   : > { %v760_v11 = vadd.f32 %v10089_v18, %v759_v41  ;;  %v10227_v60 = vpop.permute.xlu0 %1900  ;;  %v4012_v19 = vunpack.c.l.b16 %v3816_v43  ;;  %v4015_v23 = vunpack.c.h.b16 %v3816_v43  ;;  %v1678_v48 = vor.u32 %v1676_v14, %v10166_v33 }
 0x1c9   : > { %v7628_v40 = vld [vmem:[#allocation3 + $0x90] sm:$0xf]  ;;  %v8196_v0 = vld [vmem:[#allocation3 + $0x94] sm:$0xf] }
 0x1ca   : > { %v975_v26 = vmax.f32 %v760_v11, 0.0  ;;  %7495 = vmatmul.msk.f32.gmra.mxu0 %vm330_vm0, %v281_v17  ;;  %2308 = vrot.lane.b32.xlu1 %v2225_v15, %s8880_s7  ;;  %v8197_v55 = vld [vmem:[#allocation3 + $0x98] sm:$0xf0]  ;;  %v7630_v42 = vld [vmem:[#allocation3 + $0x9c] sm:$0xf0]  ;;  %v1683_v14 = vsel %vm1543_vm3, %v1678_v48, %v10254_v32 }
 0x1cb   : > { %v7629_v53 = vor.u32 %v8197_v55, %v7628_v40  ;;  %v7633_v25 = vor.u32 %v8196_v0, %v7630_v42  ;;  %v282_v11 = vld [vmem:[%s8931_s27 + $0x1c0] sm:$0xff] }
 0x1cc   : > { %v1073_v57 = vpack.c.bf16 %v975_v26, %v975_v26  ;;  %v10246_v29 = vpop.f32.mrf.mxu3  ;;  %v2295_v16 = vpop.permute.xlu1 %2294  ;;  %2085 = vrot.lane.b32.xlu2 %v2002_v46, %s8878_s30  ;;  %v7720_v21 = vld [vmem:[#allocation3 + $0x140] sm:$0xf] }
 0x1cd   : > { %v10251_v6 = vld [vmem:[#allocation2 + $0x94] sm:$0xff]   ;;  %v3522_v28 = vsel %vm3506_vm9, %v3437_v44, %v2295_v16 }
 0x1ce   : > { %1172 = vst.msk [vmem:[#allocation2 + $0x9c] sm:$0xf] %vm1132_vm1, %v1073_v57  ;;  %5831 = vmatmul.bf16.gmra.mxu1 %v7629_v53  ;;  %6050 = vmatmul.bf16.gmra.mxu2 %v7633_v25  ;;  %v4011_v20 = vunpack.c.l.b16 %v3522_v28  ;;  %v4014_v58 = vunpack.c.h.b16 %v3522_v28  ;;  %v3181_v41 = vpop.permute.xlu2 %3180  ;;  %v3280_v17 = vrot.slane %v10251_v6, 1  ;;  %v8219_v7 = vld [vmem:[#allocation3 + $0x148] sm:$0xf0]  ;;  %v2524_v5 = vshll.u32 %v10251_v6, 16 }
 0x1cf   : > { %v762_v38 = vpop.f32.mrf.mxu0  ;;  %2967 = vrot.lane.b32.xlu0 %v10251_v6, %s8878_s30  ;;  %v7721_v22 = vor.u32 %v8219_v7, %v7720_v21  ;;  %v2521_v26 = vshrl.u32 %v10251_v6, 16  ;;  %v2226_v21 = vrot.slane %v10163_v50, 2 }
 0x1d0   : > { %v763_v47 = vadd.f32 %v10089_v18, %v762_v38  ;;  %v4249_v15 = vpack.c.b16 %v4012_v19, %v4011_v20  ;;  %v4251_v40 = vpack.c.b16 %v4015_v23, %v4014_v58  ;;  %v3281_v0 = vsel %vm1971_vm2, %v3278_v34, %v3280_v17  ;;  %v2954_v43 = vpop.permute.xlu0 %2953  ;;  %v283_v38 = vld [vmem:[%s8931_s27 + $0x1c8] sm:$0xff] }
 0x1d1   : > { %v2526_v55 = vrot.slane %v2524_v5, 3  ;;  %v4055_v57 = vunpack.c.l.b16 %v3281_v0  ;;  %v4058_v46 = vunpack.c.h.b16 %v3281_v0  ;;  %8143 = vmatmul.msk.bf16.gmra.mxu3 %vm3336_vm7, %v7721_v22  ;;  %v10280_v8 = vrot.slane %v2524_v5, 1 }
 0x1d2   : > { %v976_v42 = vmax.f32 %v763_v47, 0.0  ;;  %7496 = vmatmul.msk.f32.gmra.mxu0 %vm330_vm0, %v282_v11  ;;  %4585 = vst [vmem:[#allocation3 + $0xa8] sm:$0xff] %v4249_v15  ;;  %2873 = vrot.lane.b32.xlu1 %v2790_v59, %s8879_s6  ;;  %v2523_v53 = vrot.slane %v2521_v26, 2  ;;  %v10299_v59 = vld [vmem:[#allocation2 + $0x90] sm:$0xff]   ;;  %v2003_v5 = vrot.slane %v10124_v61, 1 }
 0x1d3   : > { %4587 = vst [vmem:[#allocation3 + $0xb4] sm:$0xff] %v4251_v40  ;;  %v4278_v25 = vpack.c.b16 %v4055_v57, %v4055_v57  ;;  %v4280_v16 = vpack.c.b16 %v4058_v46, %v4058_v46  ;;  %v3069_v44 = vsel %vm1543_vm3, %v3067_v63, %v10280_v8  ;;  %v1688_v22 = vshll.u32 %v10299_v59, 16  ;;  %v8831_v63 = vld [vmem:[#allocation2 + $0x40] sm:$0xff]  }
 0x1d4   : > { %v1074_v34 = vpack.c.bf16 %v976_v42, %v976_v42  ;;  %v10288_v28 = vpop.f32.mrf.mxu3  ;;  %v2860_v19 = vpop.permute.xlu1 %2859  ;;  %3192 = vrot.lane.b32.xlu2 %v3069_v44, %s8880_s7  ;;  %v10291_v23 = vor.u32 %v2526_v55, %v2523_v53  ;;  %v3354_v15 = vsel %vm3336_vm7, %v8831_v63, %v10227_v60  ;;  %v2791_v55 = vrot.slane %v10251_v6, 3  ;;  %v284_v63 = vld [vmem:[%s8931_s27 + $0x1d0] sm:$0xff] }
 0x1d5   : > { %v3617_v33 = vsel %vm3336_vm7, %v9590_v35, %v2860_v19  ;;  %4614 = vst.msk [vmem:[#allocation3 + $0x158] sm:$0xf] %vm1132_vm1, %v4278_v25  ;;  %v2004_v48 = vsel %vm1971_vm2, %v2001_v4, %v2003_v5  ;;  %v3439_v25 = vsel %vm3421_vm8, %v3354_v15, %v10214_v30  ;;  %v10342_v44 = vrot.slane %v1688_v22, 1 }
 0x1d6   : > { %1173 = vst.msk [vmem:[#allocation2 + $0xa0] sm:$0xf] %vm1132_vm1, %v1074_v34  ;;  %v10302_v58 = vpop.permute.xlu2 %2075  ;;  %v10309_v7 = vsel %vm2367_vm6, %v10203_v52, %v10291_v23  ;;  %v3734_v35 = vsel %vm3421_vm8, %v3617_v33, %v2954_v43  ;;  %v2227_v52 = vsel %vm2194_vm4, %v2224_v36, %v2226_v21  ;;  %v2792_v30 = vsel %vm2757_vm5, %v2789_v45, %v2791_v55 }
 0x1d7   : > { %v765_v20 = vpop.f32.mrf.mxu0  ;;  %1916 = vrot.lane.b32.xlu0 %v1683_v14, %s8879_s6  ;;  %4616 = vst.msk [vmem:[#allocation3 + $0x164] sm:$0xf] %vm1132_vm1, %v4280_v16  ;;  %v3818_v42 = vsel %vm3506_vm9, %v3734_v35, %v3181_v41  ;;  %v1684_v16 = vshrl.u32 %v10211_v13, 16  ;;  %v3070_v45 = vor.u32 %v10280_v8, %v2521_v26  ;;  %v1692_v61 = vshrl.u32 %v10299_v59, 16 }
 0x1d8   : > { %v766_v11 = vadd.f32 %v10089_v18, %v765_v20  ;;  %v10315_v47 = vpop.permute.xlu0 %1902  ;;  %v4018_v4 = vunpack.c.l.b16 %v3818_v42  ;;  %v4021_v19 = vunpack.c.h.b16 %v3818_v42 }
 0x1d9   : > { %v7640_v0 = vld [vmem:[#allocation3 + $0xa8] sm:$0xf]  ;;  %v8199_v43 = vld [vmem:[#allocation3 + $0xac] sm:$0xf]  ;;  %v1686_v8 = vor.u32 %v1684_v16, %v10254_v32 }
 0x1da   : > { %v977_v40 = vmax.f32 %v766_v11, 0.0  ;;  %7497 = vmatmul.msk.f32.gmra.mxu0 %vm330_vm0, %v283_v38  ;;  %2310 = vrot.lane.b32.xlu1 %v2227_v52, %s8880_s7  ;;  %v8200_v57 = vld [vmem:[#allocation3 + $0xb0] sm:$0xf0]  ;;  %v7642_v46 = vld [vmem:[#allocation3 + $0xb4] sm:$0xf0] }
 0x1db   : > { %v7641_v62 = vor.u32 %v8200_v57, %v7640_v0  ;;  %v7645_v53 = vor.u32 %v8199_v43, %v7642_v46  ;;  %v1691_v16 = vsel %vm1543_vm3, %v1686_v8, %v10342_v44 }
 0x1dc   : > { %v1075_v60 = vpack.c.bf16 %v977_v40, %v977_v40  ;;  %v10334_v36 = vpop.f32.mrf.mxu3  ;;  %v2297_v34 = vpop.permute.xlu1 %2296  ;;  %2087 = vrot.lane.b32.xlu2 %v2004_v48, %s8878_s30  ;;  %v7732_v33 = vld [vmem:[#allocation3 + $0x158] sm:$0xf] }
 0x1dd   : > { %v10339_v41 = vld [vmem:[#allocation2 + $0x9c] sm:$0xff]   ;;  %v3524_v24 = vsel %vm3506_vm9, %v3439_v25, %v2297_v34 }
 0x1de   : > { %1174 = vst.msk [vmem:[#allocation2 + $0xa4] sm:$0xf] %vm1132_vm1, %v1075_v60  ;;  %5836 = vmatmul.bf16.gmra.mxu1 %v7641_v62  ;;  %6055 = vmatmul.bf16.gmra.mxu2 %v7645_v53  ;;  %v4017_v14 = vunpack.c.l.b16 %v3524_v24  ;;  %v4020_v20 = vunpack.c.h.b16 %v3524_v24  ;;  %v3183_v35 = vpop.permute.xlu2 %3182  ;;  %v3282_v11 = vrot.slane %v10339_v41, 1  ;;  %v8222_v22 = vld [vmem:[#allocation3 + $0x160] sm:$0xf0]  ;;  %v2533_v15 = vshll.u32 %v10339_v41, 16 }
 0x1df   : > { %v768_v38 = vpop.f32.mrf.mxu0  ;;  %2969 = vrot.lane.b32.xlu0 %v10339_v41, %s8878_s30  ;;  %v7733_v52 = vor.u32 %v8222_v22, %v7732_v33  ;;  %v2530_v0 = vshrl.u32 %v10339_v41, 16  ;;  %v285_v22 = vld [vmem:[%s8931_s27 + $0x1d8] sm:$0xff] }
 0x1e0   : > { %v769_v40 = vadd.f32 %v10089_v18, %v768_v38  ;;  %v4253_v43 = vpack.c.b16 %v4018_v4, %v4017_v14  ;;  %v4255_v42 = vpack.c.b16 %v4021_v19, %v4020_v20  ;;  %v3283_v57 = vsel %vm1971_vm2, %v3280_v17, %v3282_v11 }
 0x1e1   : > { %v2956_v46 = vpop.permute.xlu0 %2955  ;;  %v2535_v60 = vrot.slane %v2533_v15, 3  ;;  %v4061_v62 = vunpack.c.l.b16 %v3283_v57  ;;  %v4064_v53 = vunpack.c.h.b16 %v3283_v57  ;;  %8144 = vmatmul.msk.bf16.gmra.mxu3 %vm3336_vm7, %v7733_v52  ;;  %v10368_v26 = vrot.slane %v2533_v15, 1  ;;  %v10393_v15 = vld [vmem:[#allocation2 + $0x98] sm:$0xff]  }
 0x1e2   : > { %v978_v48 = vmax.f32 %v769_v40, 0.0  ;;  %7498 = vmatmul.msk.f32.gmra.mxu0 %vm330_vm0, %v284_v63  ;;  %4589 = vst [vmem:[#allocation3 + $0xc0] sm:$0xff] %v4253_v43  ;;  %2875 = vrot.lane.b32.xlu1 %v2792_v30, %s8879_s6  ;;  %v2532_v34 = vrot.slane %v2530_v0, 2  ;;  %v2228_v30 = vrot.slane %v10251_v6, 2  ;;  %v2005_v63 = vrot.slane %v10211_v13, 1  ;;  %v8832_v43 = vld [vmem:[#allocation2 + $0x48] sm:$0xff]  }
 0x1e3   : > { %4591 = vst [vmem:[#allocation3 + $0xcc] sm:$0xff] %v4255_v42  ;;  %v4282_v25 = vpack.c.b16 %v4061_v62, %v4061_v62  ;;  %v4284_v24 = vpack.c.b16 %v4064_v53, %v4064_v53  ;;  %v3072_v4 = vsel %vm1543_vm3, %v3070_v45, %v10368_v26  ;;  %v3356_v42 = vsel %vm3336_vm7, %v8832_v43, %v10315_v47 }
 0x1e4   : > { %v1076_v17 = vpack.c.bf16 %v978_v48, %v978_v48  ;;  %v10376_v19 = vpop.f32.mrf.mxu3  ;;  %v2862_v33 = vpop.permute.xlu1 %2861  ;;  %3194 = vrot.lane.b32.xlu2 %v3072_v4, %s8880_s7  ;;  %v10379_v14 = vor.u32 %v2535_v60, %v2532_v34  ;;  %v2006_v47 = vsel %vm1971_vm2, %v2003_v5, %v2005_v63 }
 0x1e5   : > { %v3620_v32 = vsel %vm3336_vm7, %v9689_v54, %v2862_v33  ;;  %4618 = vst.msk [vmem:[#allocation3 + $0x170] sm:$0xf] %vm1132_vm1, %v4282_v25  ;;  %v2793_v25 = vrot.slane %v10339_v41, 3 }
 0x1e6   : > { %1175 = vst.msk [vmem:[#allocation2 + $0xa8] sm:$0xf] %vm1132_vm1, %v1076_v17  ;;  %v10388_v38 = vpop.permute.xlu2 %2077  ;;  %v10398_v54 = vsel %vm2367_vm6, %v10291_v23, %v10379_v14  ;;  %v3736_v40 = vsel %vm3421_vm8, %v3620_v32, %v2956_v46  ;;  %v2229_v23 = vsel %vm2194_vm4, %v2226_v21, %v2228_v30  ;;  %v1696_v46 = vshll.u32 %v10393_v15, 16 }
 0x1e7   : > { %v771_v20 = vpop.f32.mrf.mxu0  ;;  %1918 = vrot.lane.b32.xlu0 %v1691_v16, %s8879_s6  ;;  %4620 = vst.msk [vmem:[#allocation3 + $0x17c] sm:$0xf] %vm1132_vm1, %v4284_v24  ;;  %v3820_v62 = vsel %vm3506_vm9, %v3736_v40, %v3183_v35  ;;  %v3441_v35 = vsel %vm3421_vm8, %v3356_v42, %v10302_v58 }
 0x1e8   : > { %v772_v52 = vadd.f32 %v10089_v18, %v771_v20  ;;  %v4024_v32 = vunpack.c.l.b16 %v3820_v62  ;;  %v4027_v16 = vunpack.c.h.b16 %v3820_v62 }
 0x1e9   : > { %v10403_v45 = vpop.permute.xlu0 %1904  ;;  %v7652_v60 = vld [vmem:[#allocation3 + $0xc0] sm:$0xf]  ;;  %v8202_v48 = vld [vmem:[#allocation3 + $0xc4] sm:$0xf] }
 0x1ea   : > { %v979_v57 = vmax.f32 %v772_v52, 0.0  ;;  %7499 = vmatmul.msk.f32.gmra.mxu0 %vm330_vm0, %v285_v22  ;;  %2312 = vrot.lane.b32.xlu1 %v2229_v23, %s8880_s7  ;;  %v8203_v8 = vld [vmem:[#allocation3 + $0xc8] sm:$0xf0]  ;;  %v7654_v34 = vld [vmem:[#allocation3 + $0xcc] sm:$0xf0]  ;;  %v10432_v22 = vrot.slane %v1696_v46, 1  ;;  %v2794_v46 = vsel %vm2757_vm5, %v2791_v55, %v2793_v25 }
 0x1eb   : > { %v5802_v53 = vpop.f32.mrf.mxu1  ;;  %v7653_v17 = vor.u32 %v8203_v8, %v7652_v60  ;;  %v7657_v21 = vor.u32 %v8202_v48, %v7654_v34  ;;  %v286_v23 = vld [vmem:[%s8931_s27 + $0x1e0] sm:$0xff] }
 0x1ec   : > { %v1077_v50 = vpack.c.bf16 %v979_v57, %v979_v57  ;;  %v10422_v24 = vpop.f32.mrf.mxu3  ;;  %v2299_v4 = vpop.permute.xlu1 %2298  ;;  %2089 = vrot.lane.b32.xlu2 %v2006_v47, %s8878_s30  ;;  %v7744_v20 = vld [vmem:[#allocation3 + $0x170] sm:$0xf] }
 0x1ed   : > { %v10427_v33 = vld [vmem:[#allocation2 + $0xa4] sm:$0xff]   ;;  %v3526_v5 = vsel %vm3506_vm9, %v3441_v35, %v2299_v4 }
 0x1ee   : > { %1176 = vst.msk [vmem:[#allocation2 + $0xac] sm:$0xf] %vm1132_vm1, %v1077_v50  ;;  %5841 = vmatmul.bf16.gmra.mxu1 %v7653_v17  ;;  %6060 = vmatmul.bf16.gmra.mxu2 %v7657_v21  ;;  %v4023_v40 = vunpack.c.l.b16 %v3526_v5  ;;  %v4026_v58 = vunpack.c.h.b16 %v3526_v5  ;;  %v10434_v43 = vpop.permute.xlu2 %3184  ;;  %v3284_v42 = vrot.slane %v10427_v33, 1  ;;  %v8225_v57 = vld [vmem:[#allocation3 + $0x178] sm:$0xf0]  ;;  %v2542_v60 = vshll.u32 %v10427_v33, 16 }
 0x1ef   : > { %v774_v52 = vpop.f32.mrf.mxu0  ;;  %2971 = vrot.lane.b32.xlu0 %v10427_v33, %s8878_s30  ;;  %v7745_v62 = vor.u32 %v8225_v57, %v7744_v20  ;;  %v12990_v47 = vshrl.u32 %v10427_v33, 16  ;;  %v1694_v57 = vor.u32 %v1692_v61, %v10342_v44 }
 0x1f0   : > { %v775_v48 = vadd.f32 %v10089_v18, %v774_v52  ;;  %v4257_v8 = vpack.c.b16 %v4024_v32, %v4023_v40  ;;  %v4259_v34 = vpack.c.b16 %v4027_v16, %v4026_v58  ;;  %v3285_v50 = vsel %vm1971_vm2, %v3282_v11, %v3284_v42 }
 0x1f1   : > { %v6021_v17 = vpop.f32.mrf.mxu2  ;;  %v2958_v21 = vpop.permute.xlu0 %2957  ;;  %v2544_v4 = vrot.slane %v2542_v60, 3  ;;  %v4067_v5 = vunpack.c.l.b16 %v3285_v50  ;;  %v4070_v20 = vunpack.c.h.b16 %v3285_v50  ;;  %8145 = vmatmul.msk.bf16.gmra.mxu3 %vm3336_vm7, %v7745_v62  ;;  %v3073_v11 = vor.u32 %v10368_v26, %v2530_v0 }
 0x1f2   : > { %v980_v35 = vmax.f32 %v775_v48, 0.0  ;;  %v10453_v52 = vadd.f32 %v6021_v17, %v5802_v53  ;;  %7500 = vmatmul.msk.f32.gmra.mxu0 %vm330_vm0, %v286_v23  ;;  %4593 = vst [vmem:[#allocation3 + $0xd8] sm:$0xff] %v4257_v8  ;;  %2877 = vrot.lane.b32.xlu1 %v2794_v46, %s8879_s6  ;;  %v10461_v32 = vrot.slane %v2542_v60, 1  ;;  %v2541_v16 = vrot.slane %v12990_v47, 2  ;;  %v287_v8 = vld [vmem:[%s8931_s27 + $0x1e8] sm:$0xff] }
 0x1f3   : > { %v5804_v55 = vpop.f32.mrf.mxu1  ;;  %4595 = vst [vmem:[#allocation3 + $0xe4] sm:$0xff] %v4259_v34  ;;  %v4286_v40 = vpack.c.b16 %v4067_v5, %v4067_v5  ;;  %v4288_v58 = vpack.c.b16 %v4070_v20, %v4070_v20  ;;  %v12989_v0 = vrot.slane %v10339_v41, 2  ;;  %v1699_v44 = vsel %vm1543_vm3, %v1694_v57, %v10432_v22  ;;  %v10484_v34 = vld [vmem:[#allocation2 + $0xa0] sm:$0xff]  }
 0x1f4   : > { %13013 = vst [vmem:[#allocation6_spill] sm:$0xff] %v10453_v52  ;;  %v1078_v53 = vpack.c.bf16 %v980_v35, %v980_v35  ;;  %v10466_v23 = vpop.f32.mrf.mxu3  ;;  %v2864_v48 = vpop.permute.xlu1 %2863  ;;  %v3075_v62 = vsel %vm1543_vm3, %v3073_v11, %v10461_v32  ;;  %v10471_v26 = vor.u32 %v2544_v4, %v2541_v16  ;;  %v12988_v20 = vrot.slane %v10299_v59, 1  ;;  %v8833_v11 = vld [vmem:[#allocation2 + $0x50] sm:$0xff]  }
 0x1f5   : > { %v3623_v60 = vsel %vm3336_vm7, %v9769_v2, %v2864_v48  ;;  %3196 = vrot.lane.b32.xlu2 %v3075_v62, %s8880_s7  ;;  %4622 = vst.msk [vmem:[#allocation3 + $0x188] sm:$0xf] %vm1132_vm1, %v4286_v40  ;;  %v2231_v35 = vsel %vm2194_vm4, %v2228_v30, %v12989_v0 }
 0x1f6   : > { %1177 = vst.msk [vmem:[#allocation2 + $0xb0] sm:$0xf] %vm1132_vm1, %v1078_v53  ;;  %v10480_v46 = vpop.permute.xlu2 %2079  ;;  %v10489_v50 = vsel %vm2367_vm6, %v10379_v14, %v10471_v26  ;;  %v3738_v2 = vsel %vm3421_vm8, %v3623_v60, %v2958_v21  ;;  %v3358_v14 = vsel %vm3336_vm7, %v8833_v11, %v10403_v45 }
 0x1f7   : > { %v777_v61 = vpop.f32.mrf.mxu0  ;;  %1920 = vrot.lane.b32.xlu0 %v1699_v44, %s8879_s6  ;;  %4624 = vst.msk [vmem:[#allocation3 + $0x194] sm:$0xf] %vm1132_vm1, %v4288_v58  ;;  %v1704_v58 = vshll.u32 %v10484_v34, 16  ;;  %v3822_v6 = vsel %vm3506_vm9, %v3738_v2, %v10434_v43  ;;  %v2008_v43 = vsel %vm1971_vm2, %v2005_v63, %v12988_v20 }
 0x1f8   : > { %v778_v17 = vadd.f32 %v10089_v18, %v777_v61  ;;  %v4033_v11 = vunpack.c.h.b16 %v3822_v6 }
 0x1f9   : > { %v6023_v4 = vpop.f32.mrf.mxu2  ;;  %v10499_v5 = vpop.permute.xlu0 %1906  ;;  %v7664_v21 = vld [vmem:[#allocation3 + $0xd8] sm:$0xf]  ;;  %v8205_v40 = vld [vmem:[#allocation3 + $0xdc] sm:$0xf] }
 0x1fa   : > { %v981_v16 = vmax.f32 %v778_v17, 0.0  ;;  %v10504_v53 = vadd.f32 %v6023_v4, %v5804_v55  ;;  %7501 = vmatmul.msk.f32.gmra.mxu0 %vm330_vm0, %v287_v8  ;;  %2314 = vrot.lane.b32.xlu1 %v2231_v35, %s8880_s7  ;;  %v8206_v57 = vld [vmem:[#allocation3 + $0xe0] sm:$0xf0]  ;;  %v7666_v48 = vld [vmem:[#allocation3 + $0xe4] sm:$0xf0]  ;;  %v2795_v55 = vrot.slane %v10427_v33, 3  ;;  %v3443_v8 = vsel %vm3421_vm8, %v3358_v14, %v10388_v38 }
 0x1fb   : > { %v5807_v30 = vpop.f32.mrf.mxu1  ;;  %v7665_v60 = vor.u32 %v8206_v57, %v7664_v21  ;;  %v7669_v45 = vor.u32 %v8205_v40, %v7666_v48  ;;  %v1700_v17 = vshrl.u32 %v10393_v15, 16  ;;  %v4030_v35 = vunpack.c.l.b16 %v3822_v6  ;;  %v288_v48 = vld [vmem:[%s8931_s27 + $0x1f0] sm:$0xff] }
 0x1fc   : > { %13014 = vst [vmem:[#allocation7_spill] sm:$0xff] %v10504_v53  ;;  %v1079_v62 = vpack.c.bf16 %v981_v16, %v981_v16  ;;  %v10512_v44 = vpop.f32.mrf.mxu3  ;;  %v2301_v61 = vpop.permute.xlu1 %2300  ;;  %v7756_v38 = vld [vmem:[#allocation3 + $0x188] sm:$0xf]  ;;  %v10527_v14 = vrot.slane %v1704_v58, 1  ;;  %v2796_v58 = vsel %vm2757_vm5, %v2793_v25, %v2795_v55 }
 0x1fd   : > { %v10521_v2 = vld [vmem:[#allocation2 + $0xac] sm:$0xff]   ;;  %v3528_v4 = vsel %vm3506_vm9, %v3443_v8, %v2301_v61  ;;  %2091 = vrot.lane.b32.xlu2 %v2008_v43, %s8878_s30 }
 0x1fe   : > { %1178 = vst.msk [vmem:[#allocation2 + $0xb4] sm:$0xf] %vm1132_vm1, %v1079_v62  ;;  %5846 = vmatmul.bf16.gmra.mxu1 %v7665_v60  ;;  %v4029_v13 = vunpack.c.l.b16 %v3528_v4  ;;  %v4032_v16 = vunpack.c.h.b16 %v3528_v4  ;;  %6065 = vmatmul.bf16.gmra.mxu2 %v7669_v45  ;;  %v10529_v21 = vpop.permute.xlu2 %3186  ;;  %v3286_v40 = vrot.slane %v10521_v2, 1  ;;  %v8228_v57 = vld [vmem:[#allocation3 + $0x190] sm:$0xf0]  ;;  %v2551_v6 = vshll.u32 %v10521_v2, 16 }
 0x1ff   : > { %v780_v63 = vpop.f32.mrf.mxu0  ;;  %2973 = vrot.lane.b32.xlu0 %v10521_v2, %s8878_s30  ;;  %v7757_v60 = vor.u32 %v8228_v57, %v7756_v38  ;;  %v12993_v45 = vshrl.u32 %v10521_v2, 16 }
 0x200   : > { %v781_v62 = vadd.f32 %v10089_v18, %v780_v63  ;;  %v4261_v61 = vpack.c.b16 %v4030_v35, %v4029_v13  ;;  %v4263_v8 = vpack.c.b16 %v4033_v11, %v4032_v16  ;;  %v3287_v43 = vsel %vm1971_vm2, %v3284_v42, %v3286_v40 }
 0x201   : > { %v6026_v4 = vpop.f32.mrf.mxu2  ;;  %v2960_v20 = vpop.permute.xlu0 %2959  ;;  %v2553_v63 = vrot.slane %v2551_v6, 3  ;;  %v4073_v57 = vunpack.c.l.b16 %v3287_v43  ;;  %v4076_v0 = vunpack.c.h.b16 %v3287_v43  ;;  %8146 = vmatmul.msk.bf16.gmra.mxu3 %vm3336_vm7, %v7757_v60  ;;  %v13015_v35 = vshrl.u32 %v10427_v33, 16 }
 0x202   : > { %v982_v38 = vmax.f32 %v781_v62, 0.0  ;;  %v6027_v47 = vadd.f32 %v6026_v4, %v5807_v30  ;;  %7502 = vmatmul.msk.f32.gmra.mxu0 %vm330_vm0, %v288_v48  ;;  %4597 = vst [vmem:[#allocation3 + $0xf0] sm:$0xff] %v4261_v61  ;;  %2879 = vrot.lane.b32.xlu1 %v2796_v58, %s8879_s6  ;;  %v10554_v42 = vrot.slane %v2551_v6, 1  ;;  %v2550_v13 = vrot.slane %v12993_v45, 2 }
 0x203   : > { %v5809_v25 = vpop.f32.mrf.mxu1  ;;  %v3076_v11 = vor.u32 %v10461_v32, %v13015_v35  ;;  %4599 = vst [vmem:[#allocation3 + $0xfc] sm:$0xff] %v4263_v8  ;;  %v4290_v30 = vpack.c.b16 %v4073_v57, %v4073_v57  ;;  %v4292_v62 = vpack.c.b16 %v4076_v0, %v4076_v0  ;;  %v1702_v48 = vor.u32 %v1700_v17, %v10432_v22  ;;  %v289_v17 = vld [vmem:[%s8931_s27 + $0x1f8] sm:$0xff]  ;;  %v10578_v8 = vld [vmem:[#allocation2 + $0xa8] sm:$0xff]  }
 0x204   : > { %v1080_v16 = vpack.c.bf16 %v982_v38, %v982_v38  ;;  %v6246_v60 = vadd.f32 %v9924_v39, %v6027_v47  ;;  %v10560_v58 = vpop.f32.mrf.mxu3  ;;  %v2866_v61 = vpop.permute.xlu1 %2865  ;;  %v12992_v6 = vrot.slane %v10427_v33, 2  ;;  %v10565_v43 = vor.u32 %v2553_v63, %v2550_v13  ;;  %v8834_v13 = vld [vmem:[#allocation2 + $0x58] sm:$0xff]  }
 0x205   : > { %v3078_v32 = vsel %vm1543_vm3, %v3076_v11, %v10554_v42  ;;  %v3626_v0 = vsel %vm3336_vm7, %v9856_v31, %v2866_v61  ;;  %v1707_v39 = vsel %vm1543_vm3, %v1702_v48, %v10527_v14  ;;  %4626 = vst.msk [vmem:[#allocation3 + $0x1a0] sm:$0xf] %vm1132_vm1, %v4290_v30  ;;  %v13016_v57 = vrot.slane %v10339_v41, 2 }
 0x206   : > { %1179 = vst.msk [vmem:[#allocation2 + $0xb8] sm:$0xf] %vm1132_vm1, %v1080_v16  ;;  %3198 = vrot.lane.b32.xlu2 %v3078_v32, %s8880_s7  ;;  %v10574_v47 = vpop.permute.xlu2 %2081  ;;  %v10583_v4 = vsel %vm2367_vm6, %v10471_v26, %v10565_v43  ;;  %v3740_v31 = vsel %vm3421_vm8, %v3626_v0, %v2960_v20  ;;  %v12991_v26 = vrot.slane %v10393_v15, 1  ;;  %v3360_v16 = vsel %vm3336_vm7, %v8834_v13, %v10499_v5 }
 0x207   : > { %v783_v22 = vpop.f32.mrf.mxu0  ;;  %1922 = vrot.lane.b32.xlu0 %v1707_v39, %s8879_s6  ;;  %4628 = vst.msk [vmem:[#allocation3 + $0x1ac] sm:$0xf] %vm1132_vm1, %v4292_v62  ;;  %v2233_v35 = vsel %vm2194_vm4, %v13016_v57, %v12992_v6  ;;  %v1712_v48 = vshll.u32 %v10578_v8, 16  ;;  %v3824_v41 = vsel %vm3506_vm9, %v3740_v31, %v10529_v21  ;;  %v12997_v0 = vrot.slane %v10521_v2, 3 }
 0x208   : > { %v784_v63 = vadd.f32 %v10089_v18, %v783_v22  ;;  %6452 = vst.msk [vmem:[#allocation4 + $0x10] sm:$0xff] %vm3421_vm8, %v6246_v60  ;;  %v13017_v21 = vrot.slane %v10299_v59, 1  ;;  %v4036_v13 = vunpack.c.l.b16 %v3824_v41 }
 0x209   : > { %v6028_v38 = vpop.f32.mrf.mxu2  ;;  %v10594_v11 = vpop.permute.xlu0 %1908  ;;  %v7676_v18 = vld [vmem:[#allocation3 + $0xf0] sm:$0xf]  ;;  %v8208_v62 = vld [vmem:[#allocation3 + $0xf4] sm:$0xf] }
 0x20a   : > { %v983_v20 = vmax.f32 %v784_v63, 0.0  ;;  %v6029_v30 = vadd.f32 %v6028_v38, %v5809_v25  ;;  %7503 = vmatmul.msk.f32.gmra.mxu0 %vm330_vm0, %v289_v17  ;;  %2316 = vrot.lane.b32.xlu1 %v2233_v35, %s8880_s7  ;;  %v8209_v61 = vld [vmem:[#allocation3 + $0xf8] sm:$0xf0]  ;;  %v7678_v32 = vld [vmem:[#allocation3 + $0xfc] sm:$0xf0]  ;;  %v3445_v38 = vsel %vm3421_vm8, %v3360_v16, %v10480_v46  ;;  %v2010_v31 = vsel %vm1971_vm2, %v13017_v21, %v12991_v26 }
 0x20b   : > { %v5812_v60 = vpop.f32.mrf.mxu1  ;;  %v7677_v25 = vor.u32 %v8209_v61, %v7676_v18  ;;  %v7681_v22 = vor.u32 %v8208_v62, %v7678_v32  ;;  %v1708_v35 = vshrl.u32 %v10484_v34, 16  ;;  %v10621_v16 = vrot.slane %v1712_v48, 1  ;;  %v290_v32 = vld [vmem:[%s8931_s27 + $0x200] sm:$0xff] }
 0x20c   : > { %v1081_v39 = vpack.c.bf16 %v983_v20, %v983_v20  ;;  %v6248_v5 = vadd.f32 %v9971_v37, %v6029_v30  ;;  %v10606_v17 = vpop.f32.mrf.mxu3  ;;  %v2303_v63 = vpop.permute.xlu1 %2302  ;;  %v4039_v20 = vunpack.c.h.b16 %v3824_v41  ;;  %v7768_v46 = vld [vmem:[#allocation3 + $0x1a0] sm:$0xf]  ;;  %v10634_v48 = vld [vmem:[%s12984_s2] ss:$0 sm:$0xff] }
 0x20d   : > { %v10615_v57 = vld [vmem:[#allocation2 + $0xb4] sm:$0xff]   ;;  %v3530_v37 = vsel %vm3506_vm9, %v3445_v38, %v2303_v63 }
 0x20e   : > { %1180 = vst.msk [vmem:[#allocation2 + $0xbc] sm:$0xf] %vm1132_vm1, %v1081_v39  ;;  %2093 = vrot.lane.b32.xlu2 %v2010_v31, %s8878_s30  ;;  %5851 = vmatmul.bf16.gmra.mxu1 %v7677_v25  ;;  %v4035_v59 = vunpack.c.l.b16 %v3530_v37  ;;  %v4038_v30 = vunpack.c.h.b16 %v3530_v37  ;;  %v10624_v62 = vpop.permute.xlu2 %3188  ;;  %v3288_v61 = vrot.slane %v10615_v57, 1  ;;  %v8231_v41 = vld [vmem:[#allocation3 + $0x1a8] sm:$0xf0]  ;;  %v2560_v39 = vshll.u32 %v10615_v57, 16 }
 0x20f   : > { %6453 = vst.msk [vmem:[#allocation4 + $0x18] sm:$0xff] %vm3421_vm8, %v6248_v5  ;;  %6070 = vmatmul.bf16.gmra.mxu2 %v7681_v22  ;;  %v786_v18 = vpop.f32.mrf.mxu0  ;;  %2975 = vrot.lane.b32.xlu0 %v10615_v57, %s8878_s30  ;;  %v7769_v25 = vor.u32 %v8231_v41, %v7768_v46  ;;  %v2798_v22 = vsel %vm2757_vm5, %v2795_v55, %v12997_v0  ;;  %v12996_v63 = vshrl.u32 %v10615_v57, 16 }
 0x210   : > { %v787_v5 = vadd.f32 %v10634_v48, %v786_v18  ;;  %v4265_v38 = vpack.c.b16 %v4036_v13, %v4035_v59  ;;  %v4267_v21 = vpack.c.b16 %v4039_v20, %v4038_v30  ;;  %v3289_v31 = vsel %vm1971_vm2, %v3286_v40, %v3288_v61 }
 0x211   : > { %v6031_v37 = vpop.f32.mrf.mxu2  ;;  %v2962_v26 = vpop.permute.xlu0 %2961  ;;  %v2562_v18 = vrot.slane %v2560_v39, 3  ;;  %v4079_v41 = vunpack.c.l.b16 %v3289_v31  ;;  %v4082_v6 = vunpack.c.h.b16 %v3289_v31  ;;  %8147 = vmatmul.msk.bf16.gmra.mxu3 %vm3336_vm7, %v7769_v25  ;;  %v13018_v13 = vshrl.u32 %v10521_v2, 16 }
 0x212   : > { %v984_v46 = vmax.f32 %v787_v5, 0.0  ;;  %v6032_v45 = vadd.f32 %v6031_v37, %v5812_v60  ;;  %7504 = vmatmul.msk.f32.gmra.mxu0 %vm330_vm0, %v290_v32  ;;  %4601 = vst [vmem:[#allocation3 + $0x108] sm:$0xff] %v4265_v38  ;;  %2881 = vrot.lane.b32.xlu1 %v2798_v22, %s8879_s6  ;;  %v10654_v40 = vrot.slane %v2560_v39, 1  ;;  %v2559_v59 = vrot.slane %v12996_v63, 2 }
 0x213   : > { %v5814_v55 = vpop.f32.mrf.mxu1  ;;  %v3079_v20 = vor.u32 %v10554_v42, %v13018_v13  ;;  %4603 = vst [vmem:[#allocation3 + $0x114] sm:$0xff] %v4267_v21  ;;  %v4294_v60 = vpack.c.b16 %v4079_v41, %v4079_v41  ;;  %v4296_v5 = vpack.c.b16 %v4082_v6, %v4082_v6  ;;  %v1710_v32 = vor.u32 %v1708_v35, %v10527_v14  ;;  %v291_v35 = vld [vmem:[%s8931_s27 + $0x208] sm:$0xff]  ;;  %v8836_v13 = vld [vmem:[#allocation2 + $0x60] sm:$0xff]  }
 0x214   : > { %v1082_v30 = vpack.c.bf16 %v984_v46, %v984_v46  ;;  %v6251_v25 = vadd.f32 %v10015_v12, %v6032_v45  ;;  %v10660_v22 = vpop.f32.mrf.mxu3  ;;  %v2868_v38 = vpop.permute.xlu1 %2867  ;;  %v10664_v39 = vor.u32 %v2562_v18, %v2559_v59  ;;  %v12995_v12 = vrot.slane %v10521_v2, 2 }
 0x215   : > { %v3081_v42 = vsel %vm1543_vm3, %v3079_v20, %v10654_v40  ;;  %v3629_v21 = vsel %vm3336_vm7, %v9945_v1, %v2868_v38  ;;  %v1715_v14 = vsel %vm1543_vm3, %v1710_v32, %v10621_v16  ;;  %4630 = vst.msk [vmem:[#allocation3 + $0x1b8] sm:$0xf] %vm1132_vm1, %v4294_v60  ;;  %v12994_v41 = vrot.slane %v10484_v34, 1  ;;  %v10698_v32 = vld [vmem:[#allocation2 + $0xb0] sm:$0xff]  }
 0x216   : > { %1181 = vst.msk [vmem:[#allocation2 + $0xc0] sm:$0xf] %vm1132_vm1, %v1082_v30  ;;  %3200 = vrot.lane.b32.xlu2 %v3081_v42, %s8880_s7  ;;  %v10674_v6 = vpop.permute.xlu2 %2083  ;;  %v3742_v31 = vsel %vm3421_vm8, %v3629_v21, %v2962_v26  ;;  %v10684_v37 = vsel %vm2367_vm6, %v10565_v43, %v10664_v39  ;;  %v3362_v20 = vsel %vm3336_vm7, %v8836_v13, %v10594_v11  ;;  %v13019_v43 = vrot.slane %v10427_v33, 2 }
 0x217   : > { %v789_v45 = vpop.f32.mrf.mxu0  ;;  %1924 = vrot.lane.b32.xlu0 %v1715_v14, %s8879_s6  ;;  %4632 = vst.msk [vmem:[#allocation3 + $0x1c4] sm:$0xf] %vm1132_vm1, %v4296_v5  ;;  %v1716_v42 = vshrl.u32 %v10578_v8, 16 }
 0x218   : > { %v790_v1 = vadd.f32 %v10634_v48, %v789_v45  ;;  %6454 = vst.msk [vmem:[#allocation4 + $0x20] sm:$0xff] %vm3421_vm8, %v6251_v25  ;;  %v2235_v30 = vsel %vm2194_vm4, %v13019_v43, %v12995_v12  ;;  %v3826_v25 = vsel %vm3506_vm9, %v3742_v31, %v10624_v62  ;;  %v13020_v62 = vrot.slane %v10393_v15, 1 }
 0x219   : > { %v6033_v18 = vpop.f32.mrf.mxu2  ;;  %v10687_v46 = vpop.permute.xlu0 %1910  ;;  %v7688_v60 = vld [vmem:[#allocation3 + $0x108] sm:$0xf]  ;;  %v8211_v5 = vld [vmem:[#allocation3 + $0x10c] sm:$0xf]  ;;  %v4045_v43 = vunpack.c.h.b16 %v3826_v25 }
 0x21a   : > { %v985_v59 = vmax.f32 %v790_v1, 0.0  ;;  %v6034_v26 = vadd.f32 %v6033_v18, %v5814_v55  ;;  %7505 = vmatmul.msk.f32.gmra.mxu0 %vm330_vm0, %v291_v35  ;;  %2318 = vrot.lane.b32.xlu1 %v2235_v30, %s8880_s7  ;;  %v8212_v38 = vld [vmem:[#allocation3 + $0x110] sm:$0xf0]  ;;  %v7690_v55 = vld [vmem:[#allocation3 + $0x114] sm:$0xf0]  ;;  %v3447_v18 = vsel %vm3421_vm8, %v3362_v20, %v10574_v47  ;;  %v2012_v31 = vsel %vm1971_vm2, %v13020_v62, %v12994_v41 }
 0x21b   : > { %v5817_v11 = vpop.f32.mrf.mxu1  ;;  %v7689_v33 = vor.u32 %v8212_v38, %v7688_v60  ;;  %v7693_v45 = vor.u32 %v8211_v5, %v7690_v55  ;;  %v2799_v20 = vrot.slane %v10615_v57, 3  ;;  %v292_v55 = vld [vmem:[%s8931_s27 + $0x210] sm:$0xff] }
 0x21c   : > { %v1083_v21 = vpack.c.bf16 %v985_v59, %v985_v59  ;;  %v6253_v14 = vadd.f32 %v10062_v56, %v6034_v26  ;;  %v10705_v35 = vpop.f32.mrf.mxu3  ;;  %v2305_v1 = vpop.permute.xlu1 %2304  ;;  %v1720_v59 = vshll.u32 %v10698_v32, 16  ;;  %v4042_v26 = vunpack.c.l.b16 %v3826_v25  ;;  %v7780_v47 = vld [vmem:[#allocation3 + $0x1b8] sm:$0xf] }
 0x21d   : > { %v10714_v13 = vld [vmem:[#allocation2 + $0xbc] sm:$0xff]   ;;  %v3532_v56 = vsel %vm3506_vm9, %v3447_v18, %v2305_v1 }
 0x21e   : > { %1182 = vst.msk [vmem:[#allocation2 + $0xc4] sm:$0xf] %vm1132_vm1, %v1083_v21  ;;  %2095 = vrot.lane.b32.xlu2 %v2012_v31, %s8878_s30  ;;  %5856 = vmatmul.bf16.gmra.mxu1 %v7689_v33  ;;  %v4041_v15 = vunpack.c.l.b16 %v3532_v56  ;;  %v4044_v30 = vunpack.c.h.b16 %v3532_v56  ;;  %v10722_v5 = vpop.permute.xlu2 %3190  ;;  %v3290_v38 = vrot.slane %v10714_v13, 1  ;;  %v8234_v25 = vld [vmem:[#allocation3 + $0x1c0] sm:$0xf0]  ;;  %v2569_v21 = vshll.u32 %v10714_v13, 16 }
 0x21f   : > { %6455 = vst.msk [vmem:[#allocation4 + $0x28] sm:$0xff] %vm3421_vm8, %v6253_v14  ;;  %6075 = vmatmul.bf16.gmra.mxu2 %v7693_v45  ;;  %v792_v60 = vpop.f32.mrf.mxu0  ;;  %2977 = vrot.lane.b32.xlu0 %v10714_v13, %s8878_s30  ;;  %v7781_v1 = vor.u32 %v8234_v25, %v7780_v47  ;;  %v1718_v14 = vor.u32 %v1716_v42, %v10621_v16  ;;  %v13000_v18 = vshrl.u32 %v10714_v13, 16  ;;  %v10737_v12 = vrot.slane %v1720_v59, 1 }
 0x220   : > { %v793_v33 = vadd.f32 %v10634_v48, %v792_v60  ;;  %v4269_v45 = vpack.c.b16 %v4042_v26, %v4041_v15  ;;  %v4271_v62 = vpack.c.b16 %v4045_v43, %v4044_v30  ;;  %v3291_v31 = vsel %vm1971_vm2, %v3288_v61, %v3290_v38 }
 0x221   : > { %v6036_v56 = vpop.f32.mrf.mxu2  ;;  %v2964_v41 = vpop.permute.xlu0 %2963  ;;  %v4085_v0 = vunpack.c.l.b16 %v3291_v31  ;;  %v4088_v60 = vunpack.c.h.b16 %v3291_v31  ;;  %8148 = vmatmul.msk.bf16.gmra.mxu3 %vm3336_vm7, %v7781_v1  ;;  %v13021_v16 = vrot.slane %v10521_v2, 3  ;;  %v2571_v59 = vrot.slane %v2569_v21, 3 }
 0x222   : > { %v986_v63 = vmax.f32 %v793_v33, 0.0  ;;  %7506 = vmatmul.msk.f32.gmra.mxu0 %vm330_vm0, %v292_v55  ;;  %4605 = vst [vmem:[#allocation3 + $0x120] sm:$0xff] %v4269_v45  ;;  %v6037_v26 = vadd.f32 %v6036_v56, %v5817_v11  ;;  %v13022_v43 = vshrl.u32 %v10615_v57, 16  ;;  %v10750_v15 = vrot.slane %v2569_v21, 1  ;;  %v293_v56 = vld [vmem:[%s8931_s27 + $0x218] sm:$0xff] }
 0x223   : > { %v2800_v42 = vsel %vm2757_vm5, %v13021_v16, %v2799_v20  ;;  %v5819_v61 = vpop.f32.mrf.mxu1  ;;  %4607 = vst [vmem:[#allocation3 + $0x12c] sm:$0xff] %v4271_v62  ;;  %v4298_v25 = vpack.c.b16 %v4085_v0, %v4085_v0  ;;  %v4300_v55 = vpack.c.b16 %v4088_v60, %v4088_v60  ;;  %v2568_v33 = vrot.slane %v13000_v18, 2  ;;  %v10776_v16 = vld [vmem:[#allocation2 + $0xb8] sm:$0xff]  }
 0x224   : > { %2883 = vrot.lane.b32.xlu1 %v2800_v42, %s8879_s6  ;;  %v3082_v47 = vor.u32 %v10654_v40, %v13022_v43  ;;  %v1084_v30 = vpack.c.bf16 %v986_v63, %v986_v63  ;;  %v6256_v11 = vadd.f32 %v10111_v49, %v6037_v26  ;;  %v10755_v1 = vpop.f32.mrf.mxu3  ;;  %v2870_v45 = vpop.permute.xlu1 %2869  ;;  %v1723_v0 = vsel %vm1543_vm3, %v1718_v14, %v10737_v12 }
 0x225   : > { %v3632_v40 = vsel %vm3336_vm7, %v10036_v10, %v2870_v45  ;;  %v12998_v63 = vrot.slane %v10615_v57, 2  ;;  %v10766_v21 = vor.u32 %v2571_v59, %v2568_v33  ;;  %4634 = vst.msk [vmem:[#allocation3 + $0x1d0] sm:$0xf] %vm1132_vm1, %v4298_v25  ;;  %v12999_v26 = vrot.slane %v10578_v8, 1 }
 0x226   : > { %v3084_v31 = vsel %vm1543_vm3, %v3082_v47, %v10750_v15  ;;  %1183 = vst.msk [vmem:[#allocation2 + $0xc8] sm:$0xf] %vm1132_vm1, %v1084_v30  ;;  %v10769_v62 = vpop.permute.xlu2 %2085  ;;  %v3744_v10 = vsel %vm3421_vm8, %v3632_v40, %v2964_v41  ;;  %v1724_v59 = vshrl.u32 %v10698_v32, 16  ;;  %v8837_v47 = vld [vmem:[#allocation2 + $0x68] sm:$0xff]  }
 0x227   : > { %3202 = vrot.lane.b32.xlu2 %v3084_v31, %s8880_s7  ;;  %v795_v49 = vpop.f32.mrf.mxu0  ;;  %1926 = vrot.lane.b32.xlu0 %v1723_v0, %s8879_s6  ;;  %4636 = vst.msk [vmem:[#allocation3 + $0x1dc] sm:$0xf] %vm1132_vm1, %v4300_v55  ;;  %v10786_v43 = vsel %vm2367_vm6, %v10664_v39, %v10766_v21  ;;  %v3364_v41 = vsel %vm3336_vm7, %v8837_v47, %v10687_v46  ;;  %v13023_v55 = vrot.slane %v10521_v2, 2  ;;  %v10796_v31 = vld [vmem:[#allocation4 + $0x11] sm:$0xff]  ;;  %v1728_v0 = vshll.u32 %v10776_v16, 16 }
 0x228   : > { %v796_v60 = vadd.f32 %v10634_v48, %v795_v49  ;;  %6456 = vst.msk [vmem:[#allocation4 + $0x30] sm:$0xff] %vm3421_vm8, %v6256_v11  ;;  %v3828_v39 = vsel %vm3506_vm9, %v3744_v10, %v10722_v5  ;;  %v3449_v5 = vsel %vm3421_vm8, %v3364_v41, %v10674_v6  ;;  %v13024_v10 = vrot.slane %v10484_v34, 1 }
 0x229   : > { %v6038_v14 = vpop.f32.mrf.mxu2  ;;  %v10779_v42 = vpop.permute.xlu0 %1912  ;;  %v2237_v33 = vsel %vm2194_vm4, %v13023_v55, %v12998_v63  ;;  %v7700_v11 = vld [vmem:[#allocation3 + $0x120] sm:$0xf]  ;;  %v8214_v45 = vld [vmem:[#allocation3 + $0x124] sm:$0xf]  ;;  %v4048_v41 = vunpack.c.l.b16 %v3828_v39 }
 0x22a   : > { %v987_v30 = vmax.f32 %v796_v60, 0.0  ;;  %v6039_v25 = vadd.f32 %v6038_v14, %v5819_v61  ;;  %7507 = vmatmul.msk.f32.gmra.mxu0 %vm330_vm0, %v293_v56  ;;  %v8215_v40 = vld [vmem:[#allocation3 + $0x128] sm:$0xf0]  ;;  %v7702_v61 = vld [vmem:[#allocation3 + $0x12c] sm:$0xf0]  ;;  %v10803_v14 = vld [vmem:[#allocation4 + $0x10] sm:$0xff] }
 0x22b   : > { %v5822_v46 = vpop.f32.mrf.mxu1  ;;  %v7701_v2 = vor.u32 %v8215_v40, %v7700_v11  ;;  %v7705_v60 = vor.u32 %v8214_v45, %v7702_v61  ;;  %v4051_v11 = vunpack.c.h.b16 %v3828_v39 }
 0x22c   : > { %2320 = vrot.lane.b32.xlu1 %v2237_v33, %s8880_s7  ;;  %v1085_v49 = vpack.c.bf16 %v987_v30, %v987_v30  ;;  %v6258_v56 = vadd.f32 %v10158_v3, %v6039_v25  ;;  %v10805_v47 = vpop.f32.mrf.mxu3  ;;  %v2307_v55 = vpop.permute.xlu1 %2306  ;;  %v2014_v33 = vsel %vm1971_vm2, %v13024_v10, %v12999_v26  ;;  %v2801_v3 = vrot.slane %v10714_v13, 3  ;;  %v7792_v34 = vld [vmem:[#allocation3 + $0x1d0] sm:$0xf] }
 0x22d   : > { %v10814_v63 = vld [vmem:[#allocation2 + $0xc4] sm:$0xff]   ;;  %v1726_v30 = vor.u32 %v1724_v59, %v10737_v12  ;;  %v6696_v25 = vmax.f32 %v10803_v14, %v10796_v31  ;;  %v3534_v6 = vsel %vm3506_vm9, %v3449_v5, %v2307_v55 }
 0x22e   : > { %1184 = vst.msk [vmem:[#allocation2 + $0xcc] sm:$0xf] %vm1132_vm1, %v1085_v49  ;;  %5861 = vmatmul.bf16.gmra.mxu1 %v7701_v2  ;;  %v4047_v45 = vunpack.c.l.b16 %v3534_v6  ;;  %v4050_v40 = vunpack.c.h.b16 %v3534_v6  ;;  %v10824_v59 = vpop.permute.xlu2 %3192  ;;  %v3292_v31 = vrot.slane %v10814_v63, 1  ;;  %v8237_v61 = vld [vmem:[#allocation3 + $0x1d8] sm:$0xf0]  ;;  %v2578_v39 = vshll.u32 %v10814_v63, 16 }
 0x22f   : > { %2097 = vrot.lane.b32.xlu2 %v2014_v33, %s8878_s30  ;;  %6457 = vst.msk [vmem:[#allocation4 + $0x38] sm:$0xff] %vm3421_vm8, %v6258_v56  ;;  %6080 = vmatmul.bf16.gmra.mxu2 %v7705_v60  ;;  %v798_v12 = vpop.f32.mrf.mxu0  ;;  %v294_v49 = vld [vmem:[%s8931_s27 + $0x220] sm:$0xff]  ;;  %v7793_v55 = vor.u32 %v8237_v61, %v7792_v34  ;;  %v10832_v56 = vrot.slane %v1728_v0, 1  ;;  %v2802_v34 = vsel %vm2757_vm5, %v2799_v20, %v2801_v3 }
 0x230   : > { %2979 = vrot.lane.b32.xlu0 %v10814_v63, %s8878_s30  ;;  %v6776_v14 = vld [vmem:[#allocation4 + $0x2c] sm:$0xff]  ;;  %v799_v2 = vadd.f32 %v10634_v48, %v798_v12  ;;  %v4273_v10 = vpack.c.b16 %v4048_v41, %v4047_v45  ;;  %v4275_v33 = vpack.c.b16 %v4051_v11, %v4050_v40  ;;  %v3293_v6 = vsel %vm1971_vm2, %v3290_v38, %v3292_v31 }
 0x231   : > { %v6856_v5 = vld [vmem:[#allocation4 + $0x2d] sm:$0xff]  ;;  %v6041_v26 = vpop.f32.mrf.mxu2  ;;  %v2966_v0 = vpop.permute.xlu0 %2965  ;;  %v4091_v60 = vunpack.c.l.b16 %v3293_v6  ;;  %v4094_v18 = vunpack.c.h.b16 %v3293_v6  ;;  %8149 = vmatmul.msk.bf16.gmra.mxu3 %vm3336_vm7, %v7793_v55  ;;  %v2580_v11 = vrot.slane %v2578_v39, 3  ;;  %v13025_v45 = vshrl.u32 %v10714_v13, 16 }
 0x232   : > { %v6936_v12 = vmax.f32 %v6776_v14, %v6856_v5  ;;  %v988_v61 = vmax.f32 %v799_v2, 0.0  ;;  %7508 = vmatmul.msk.f32.gmra.mxu0 %vm330_vm0, %v294_v49  ;;  %4609 = vst [vmem:[#allocation3 + $0x138] sm:$0xff] %v4273_v10  ;;  %v6042_v41 = vadd.f32 %v6041_v26, %v5822_v46  ;;  %v10851_v20 = vrot.slane %v2578_v39, 1 }
 0x233   : > { %v5824_v38 = vpop.f32.mrf.mxu1  ;;  %v3085_v40 = vor.u32 %v10750_v15, %v13025_v45  ;;  %4611 = vst [vmem:[#allocation3 + $0x144] sm:$0xff] %v4275_v33  ;;  %v4302_v2 = vpack.c.b16 %v4091_v60, %v4091_v60  ;;  %v4304_v5 = vpack.c.b16 %v4094_v18, %v4094_v18  ;;  %v13026_v55 = vshrl.u32 %v10814_v63, 16 }
 0x234   : > { %2885 = vrot.lane.b32.xlu1 %v2802_v34, %s8879_s6  ;;  %v1086_v14 = vpack.c.bf16 %v988_v61, %v988_v61  ;;  %v6261_v26 = vadd.f32 %v10200_v9, %v6042_v41  ;;  %v10856_v46 = vpop.f32.mrf.mxu3  ;;  %v2872_v49 = vpop.permute.xlu1 %2871  ;;  %v1731_v15 = vsel %vm1543_vm3, %v1726_v30, %v10832_v56  ;;  %v2238_v39 = vrot.slane %v10714_v13, 2  ;;  %v295_v30 = vld [vmem:[%s8931_s27 + $0x228] sm:$0xff] }
 0x235   : > { %v2577_v6 = vrot.slane %v13026_v55, 2  ;;  %v3087_v10 = vsel %vm1543_vm3, %v3085_v40, %v10851_v20  ;;  %v3635_v18 = vsel %vm3336_vm7, %v10132_v51, %v2872_v49  ;;  %v7016_v9 = vmax.f32 %v6696_v25, %v6936_v12  ;;  %4638 = vst.msk [vmem:[#allocation3 + $0x1e8] sm:$0xf] %vm1132_vm1, %v4302_v2  ;;  %v10877_v51 = vld [vmem:[#allocation2 + $0xc0] sm:$0xff]  }
 0x236   : > { %1185 = vst.msk [vmem:[#allocation2 + $0xd0] sm:$0xf] %vm1132_vm1, %v1086_v14  ;;  %v10870_v34 = vpop.permute.xlu2 %2087  ;;  %v3746_v61 = vsel %vm3421_vm8, %v3635_v18, %v2966_v0  ;;  %v13027_v25 = vrot.slane %v10615_v57, 2  ;;  %v2015_v40 = vrot.slane %v10698_v32, 1  ;;  %v8838_v14 = vld [vmem:[#allocation2 + $0x70] sm:$0xff]  }
 0x237   : > { %3204 = vrot.lane.b32.xlu2 %v3087_v10, %s8880_s7  ;;  %v10867_v60 = vor.u32 %v2580_v11, %v2577_v6  ;;  %v801_v33 = vpop.f32.mrf.mxu0  ;;  %4640 = vst.msk [vmem:[#allocation3 + $0x1f4] sm:$0xf] %vm1132_vm1, %v4304_v5  ;;  %v3366_v2 = vsel %vm3336_vm7, %v8838_v14, %v10779_v42 }
 0x238   : > { %1928 = vrot.lane.b32.xlu0 %v1731_v15, %s8879_s6  ;;  %v802_v41 = vadd.f32 %v10634_v48, %v801_v33  ;;  %6458 = vst.msk [vmem:[#allocation4 + $0x40] sm:$0xff] %vm3421_vm8, %v6261_v26  ;;  %v2239_v12 = vsel %vm2194_vm4, %v13027_v25, %v2238_v39  ;;  %v3830_v26 = vsel %vm3506_vm9, %v3746_v61, %v10824_v59  ;;  %v1736_v15 = vshll.u32 %v10877_v51, 16 }
 0x239   : > { %v6043_v11 = vpop.f32.mrf.mxu2  ;;  %v10885_v45 = vpop.permute.xlu0 %1914  ;;  %v10891_v0 = vsel %vm2367_vm6, %v10766_v21, %v10867_v60  ;;  %v7712_v57 = vld [vmem:[#allocation3 + $0x138] sm:$0xf]  ;;  %v8217_v6 = vld [vmem:[#allocation3 + $0x13c] sm:$0xf]  ;;  %7096 = vst.msk [vmem:[#allocation5 + $0x10] sm:$0xff] %vm3421_vm8, %v7016_v9  ;;  %v3451_v9 = vsel %vm3421_vm8, %v3366_v2, %v10769_v62  ;;  %v13028_v59 = vrot.slane %v10578_v8, 1  ;;  %v4057_v14 = vunpack.c.h.b16 %v3830_v26 }
 0x23a   : > { %v989_v5 = vmax.f32 %v802_v41, 0.0  ;;  %v6044_v55 = vadd.f32 %v6043_v11, %v5824_v38  ;;  %7509 = vmatmul.msk.f32.gmra.mxu0 %vm330_vm0, %v295_v30  ;;  %v8218_v21 = vld [vmem:[#allocation3 + $0x140] sm:$0xf0]  ;;  %v7714_v10 = vld [vmem:[#allocation3 + $0x144] sm:$0xf0]  ;;  %v2803_v25 = vrot.slane %v10814_v63, 3 }
 0x23b   : > { %v5827_v49 = vpop.f32.mrf.mxu1  ;;  %v7713_v38 = vor.u32 %v8218_v21, %v7712_v57  ;;  %v7717_v33 = vor.u32 %v8217_v6, %v7714_v10  ;;  %v2016_v61 = vsel %vm1971_vm2, %v13028_v59, %v2015_v40  ;;  %v1732_v2 = vshrl.u32 %v10776_v16, 16  ;;  %v296_v21 = vld [vmem:[%s8931_s27 + $0x230] sm:$0xff] }
 0x23c   : > { %2322 = vrot.lane.b32.xlu1 %v2239_v12, %s8880_s7  ;;  %v1087_v18 = vpack.c.bf16 %v989_v5, %v989_v5  ;;  %v6263_v42 = vadd.f32 %v10246_v29, %v6044_v55  ;;  %v10902_v30 = vpop.f32.mrf.mxu3  ;;  %v2309_v41 = vpop.permute.xlu1 %2308  ;;  %v4054_v12 = vunpack.c.l.b16 %v3830_v26  ;;  %v7804_v62 = vld [vmem:[#allocation3 + $0x1e8] sm:$0xf] }
 0x23d   : > { %v10911_v11 = vld [vmem:[#allocation2 + $0xcc] sm:$0xff]   ;;  %v3536_v29 = vsel %vm3506_vm9, %v3451_v9, %v2309_v41  ;;  %v10927_v41 = vrot.slane %v1736_v15, 1 }
 0x23e   : > { %1186 = vst.msk [vmem:[#allocation2 + $0xd4] sm:$0xf] %vm1132_vm1, %v1087_v18  ;;  %5866 = vmatmul.bf16.gmra.mxu1 %v7713_v38  ;;  %v4053_v8 = vunpack.c.l.b16 %v3536_v29  ;;  %v4056_v5 = vunpack.c.h.b16 %v3536_v29  ;;  %v10919_v57 = vpop.permute.xlu2 %3194  ;;  %v3294_v6 = vrot.slane %v10911_v11, 1  ;;  %v8240_v26 = vld [vmem:[#allocation3 + $0x1f0] sm:$0xf0]  ;;  %v2587_v10 = vshll.u32 %v10911_v11, 16 }
 0x23f   : > { %2099 = vrot.lane.b32.xlu2 %v2016_v61, %s8878_s30  ;;  %6459 = vst.msk [vmem:[#allocation4 + $0x48] sm:$0xff] %vm3421_vm8, %v6263_v42  ;;  %6085 = vmatmul.bf16.gmra.mxu2 %v7717_v33  ;;  %v804_v55 = vpop.f32.mrf.mxu0  ;;  %v7805_v38 = vor.u32 %v8240_v26, %v7804_v62  ;;  %v2804_v61 = vsel %vm2757_vm5, %v2801_v3, %v2803_v25  ;;  %v2584_v3 = vshrl.u32 %v10911_v11, 16  ;;  %v2805_v32 = vrot.slane %v10911_v11, 3 }
 0x240   : > { %2981 = vrot.lane.b32.xlu0 %v10911_v11, %s8878_s30  ;;  %v805_v18 = vadd.f32 %v10634_v48, %v804_v55  ;;  %v4277_v42 = vpack.c.b16 %v4054_v12, %v4053_v8  ;;  %v4279_v9 = vpack.c.b16 %v4057_v14, %v4056_v5  ;;  %v3295_v33 = vsel %vm1971_vm2, %v3292_v31, %v3294_v6 }
 0x241   : > { %v6046_v59 = vpop.f32.mrf.mxu2  ;;  %v2968_v29 = vpop.permute.xlu0 %2967  ;;  %v4097_v62 = vunpack.c.l.b16 %v3295_v33  ;;  %v4100_v15 = vunpack.c.h.b16 %v3295_v33  ;;  %8150 = vmatmul.msk.bf16.gmra.mxu3 %vm3336_vm7, %v7805_v38  ;;  %v13029_v14 = vshrl.u32 %v10814_v63, 16  ;;  %v10945_v5 = vrot.slane %v2587_v10, 1 }
 0x242   : > { %v990_v55 = vmax.f32 %v805_v18, 0.0  ;;  %7510 = vmatmul.msk.f32.gmra.mxu0 %vm330_vm0, %v296_v21  ;;  %4613 = vst [vmem:[#allocation3 + $0x150] sm:$0xff] %v4277_v42  ;;  %v6047_v12 = vadd.f32 %v6046_v59, %v5827_v49  ;;  %v1734_v38 = vor.u32 %v1732_v2, %v10832_v56  ;;  %v13001_v59 = vrot.slane %v10814_v63, 2 }
 0x243   : > { %v5829_v31 = vpop.f32.mrf.mxu1  ;;  %v3088_v8 = vor.u32 %v10851_v20, %v13029_v14  ;;  %4615 = vst [vmem:[#allocation3 + $0x15c] sm:$0xff] %v4279_v9  ;;  %v4306_v18 = vpack.c.b16 %v4097_v62, %v4097_v62  ;;  %v4308_v21 = vpack.c.b16 %v4100_v15, %v4100_v15  ;;  %v2589_v56 = vrot.slane %v2587_v10, 3  ;;  %v297_v62 = vld [vmem:[%s8931_s27 + $0x238] sm:$0xff] }
 0x244   : > { %2887 = vrot.lane.b32.xlu1 %v2804_v61, %s8879_s6  ;;  %v1088_v26 = vpack.c.bf16 %v990_v55, %v990_v55  ;;  %v10949_v42 = vpop.f32.mrf.mxu3  ;;  %v2874_v49 = vpop.permute.xlu1 %2873  ;;  %v6266_v20 = vadd.f32 %v10288_v28, %v6047_v12  ;;  %v1739_v9 = vsel %vm1543_vm3, %v1734_v38, %v10927_v41  ;;  %v2586_v28 = vrot.slane %v2584_v3, 2 }
 0x245   : > { %v3090_v33 = vsel %vm1543_vm3, %v3088_v8, %v10945_v5  ;;  %v3638_v61 = vsel %vm3336_vm7, %v10221_v27, %v2874_v49  ;;  %4642 = vst.msk [vmem:[#allocation3 + $0x200] sm:$0xf] %vm1132_vm1, %v4306_v18  ;;  %v2241_v10 = vsel %vm2194_vm4, %v2238_v39, %v13001_v59  ;;  %v2017_v8 = vrot.slane %v10776_v16, 1  ;;  %v8839_v18 = vld [vmem:[#allocation2 + $0x78] sm:$0xff]  }
 0x246   : > { %1187 = vst.msk [vmem:[#allocation2 + $0xd8] sm:$0xf] %vm1132_vm1, %v1088_v26  ;;  %v10961_v55 = vpop.permute.xlu2 %2089  ;;  %v3748_v27 = vsel %vm3421_vm8, %v3638_v61, %v2968_v29  ;;  %v10979_v26 = vld [vmem:[#allocation2 + $0xc8] sm:$0xff]   ;;  %v3368_v29 = vsel %vm3336_vm7, %v8839_v18, %v10885_v45 }
 0x247   : > { %3206 = vrot.lane.b32.xlu2 %v3090_v33, %s8880_s7  ;;  %v807_v2 = vpop.f32.mrf.mxu0  ;;  %4644 = vst.msk [vmem:[#allocation3 + $0x20c] sm:$0xf] %vm1132_vm1, %v4308_v21  ;;  %v3832_v39 = vsel %vm3506_vm9, %v3748_v27, %v10919_v57  ;;  %v2018_v57 = vsel %vm1971_vm2, %v2015_v40, %v2017_v8  ;;  %v1740_v40 = vshrl.u32 %v10877_v51, 16 }
 0x248   : > { %1930 = vrot.lane.b32.xlu0 %v1739_v9, %s8879_s6  ;;  %v808_v15 = vadd.f32 %v10634_v48, %v807_v2  ;;  %6460 = vst.msk [vmem:[#allocation4 + $0x50] sm:$0xff] %vm3421_vm8, %v6266_v20  ;;  %v10988_v2 = vor.u32 %v2589_v56, %v2586_v28  ;;  %v1744_v56 = vshll.u32 %v10979_v26, 16  ;;  %v4063_v18 = vunpack.c.h.b16 %v3832_v39 }
 0x249   : > { %v6048_v12 = vpop.f32.mrf.mxu2  ;;  %v10976_v14 = vpop.permute.xlu0 %1916  ;;  %v7724_v49 = vld [vmem:[#allocation3 + $0x150] sm:$0xf]  ;;  %v8220_v13 = vld [vmem:[#allocation3 + $0x154] sm:$0xf] }
 0x24a   : > { %v991_v38 = vmax.f32 %v808_v15, 0.0  ;;  %v6049_v21 = vadd.f32 %v6048_v12, %v5829_v31  ;;  %7511 = vmatmul.msk.f32.gmra.mxu0 %vm330_vm0, %v297_v62  ;;  %v8221_v61 = vld [vmem:[#allocation3 + $0x158] sm:$0xf0]  ;;  %v7726_v9 = vld [vmem:[#allocation3 + $0x15c] sm:$0xf0]  ;;  %v3453_v12 = vsel %vm3421_vm8, %v3368_v29, %v10870_v34 }
 0x24b   : > { %v5832_v33 = vpop.f32.mrf.mxu1  ;;  %v7725_v20 = vor.u32 %v8221_v61, %v7724_v49  ;;  %v7729_v15 = vor.u32 %v8220_v13, %v7726_v9 }
 0x24c   : > { %2324 = vrot.lane.b32.xlu1 %v2241_v10, %s8880_s7  ;;  %v1089_v59 = vpack.c.bf16 %v991_v38, %v991_v38  ;;  %v6268_v45 = vadd.f32 %v10334_v36, %v6049_v21  ;;  %v10991_v31 = vpop.f32.mrf.mxu3  ;;  %v2311_v62 = vpop.permute.xlu1 %2310  ;;  %v11004_v36 = vsel %vm2367_vm6, %v10867_v60, %v10988_v2  ;;  %v4060_v10 = vunpack.c.l.b16 %v3832_v39  ;;  %v298_v38 = vld [vmem:[%s8931_s27 + $0x240] sm:$0xff] }
 0x24d   : > { %v3538_v28 = vsel %vm3506_vm9, %v3453_v12, %v2311_v62  ;;  %v11009_v34 = vld [vmem:[#allocation2 + $0xd4] sm:$0xff]   ;;  %v11022_v12 = vrot.slane %v1744_v56, 1 }
 0x24e   : > { %1188 = vst.msk [vmem:[#allocation2 + $0xdc] sm:$0xf] %vm1132_vm1, %v1089_v59  ;;  %5871 = vmatmul.bf16.gmra.mxu1 %v7725_v20  ;;  %v4059_v27 = vunpack.c.l.b16 %v3538_v28  ;;  %v4062_v60 = vunpack.c.h.b16 %v3538_v28  ;;  %v7816_v59 = vld [vmem:[#allocation3 + $0x200] sm:$0xf]  ;;  %v3296_v13 = vrot.slane %v11009_v34, 1  ;;  %v2596_v9 = vshll.u32 %v11009_v34, 16 }
 0x24f   : > { %2101 = vrot.lane.b32.xlu2 %v2018_v57, %s8878_s30  ;;  %6461 = vst.msk [vmem:[#allocation4 + $0x58] sm:$0xff] %vm3421_vm8, %v6268_v45  ;;  %6090 = vmatmul.bf16.gmra.mxu2 %v7729_v15  ;;  %v810_v29 = vpop.f32.mrf.mxu0  ;;  %v11016_v49 = vpop.permute.xlu2 %3196  ;;  %v8243_v61 = vld [vmem:[#allocation3 + $0x208] sm:$0xf0] }
 0x250   : > { %v811_v21 = vadd.f32 %v10634_v48, %v810_v29  ;;  %2983 = vrot.lane.b32.xlu0 %v11009_v34, %s8878_s30  ;;  %v4281_v45 = vpack.c.b16 %v4060_v10, %v4059_v27  ;;  %v4283_v20 = vpack.c.b16 %v4063_v18, %v4062_v60  ;;  %v7817_v39 = vor.u32 %v8243_v61, %v7816_v59 }
 0x251   : > { %v6051_v62 = vpop.f32.mrf.mxu2  ;;  %v2970_v15 = vpop.permute.xlu0 %2969  ;;  %v3297_v28 = vsel %vm1971_vm2, %v3294_v6, %v3296_v13  ;;  %v2806_v27 = vsel %vm2757_vm5, %v2803_v25, %v2805_v32  ;;  %v13004_v18 = vshrl.u32 %v11009_v34, 16  ;;  %v11041_v59 = vrot.slane %v2596_v9, 1 }
 0x252   : > { %v992_v57 = vmax.f32 %v811_v21, 0.0  ;;  %v6052_v29 = vadd.f32 %v6051_v62, %v5832_v33  ;;  %7512 = vmatmul.msk.f32.gmra.mxu0 %vm330_vm0, %v298_v38  ;;  %4617 = vst [vmem:[#allocation3 + $0x168] sm:$0xff] %v4281_v45  ;;  %v4103_v10 = vunpack.c.l.b16 %v3297_v28  ;;  %v4106_v56 = vunpack.c.h.b16 %v3297_v28  ;;  %8151 = vmatmul.msk.bf16.gmra.mxu3 %vm3336_vm7, %v7817_v39 }
 0x253   : > { %v5834_v60 = vpop.f32.mrf.mxu1  ;;  %4619 = vst [vmem:[#allocation3 + $0x174] sm:$0xff] %v4283_v20  ;;  %v3091_v33 = vor.u32 %v10945_v5, %v2584_v3  ;;  %v1742_v45 = vor.u32 %v1740_v40, %v10927_v41  ;;  %v13002_v3 = vrot.slane %v10911_v11, 2  ;;  %v2598_v28 = vrot.slane %v2596_v9, 3  ;;  %v299_v40 = vld [vmem:[%s8931_s27 + $0x248] sm:$0xff]  ;;  %v6541_v9 = vld [vmem:[#allocation4 + $0x38] sm:$0xff] }
 0x254   : > { %2889 = vrot.lane.b32.xlu1 %v2806_v27, %s8879_s6  ;;  %v1090_v6 = vpack.c.bf16 %v992_v57, %v992_v57  ;;  %v4310_v38 = vpack.c.b16 %v4103_v10, %v4103_v10  ;;  %v4312_v25 = vpack.c.b16 %v4106_v56, %v4106_v56  ;;  %v11043_v21 = vpop.f32.mrf.mxu3  ;;  %v2876_v61 = vpop.permute.xlu1 %2875  ;;  %v6271_v20 = vadd.f32 %v10376_v19, %v6052_v29  ;;  %v6621_v29 = vld [vmem:[#allocation4 + $0x39] sm:$0xff] }
 0x255   : > { %v3641_v39 = vsel %vm3336_vm7, %v10309_v7, %v2876_v61  ;;  %v3093_v5 = vsel %vm1543_vm3, %v3091_v33, %v11041_v59  ;;  %v1747_v41 = vsel %vm1543_vm3, %v1742_v45, %v11022_v12  ;;  %v2595_v19 = vrot.slane %v13004_v18, 2 }
 0x256   : > { %v6781_v62 = vld [vmem:[#allocation4 + $0x54] sm:$0xff]  ;;  %1189 = vst.msk [vmem:[#allocation2 + $0xe0] sm:$0xf] %vm1132_vm1, %v1090_v6  ;;  %v3750_v7 = vsel %vm3421_vm8, %v3641_v39, %v2970_v15  ;;  %v13003_v45 = vrot.slane %v10877_v51, 1 }
 0x257   : > { %v6861_v57 = vld [vmem:[#allocation4 + $0x55] sm:$0xff]  ;;  %3208 = vrot.lane.b32.xlu2 %v3093_v5, %s8880_s7  ;;  %v813_v27 = vpop.f32.mrf.mxu0  ;;  %4646 = vst.msk [vmem:[#allocation3 + $0x218] sm:$0xf] %vm1132_vm1, %v4310_v38  ;;  %v11062_v56 = vpop.permute.xlu2 %2091  ;;  %v8840_v5 = vld [vmem:[#allocation2 + $0x80] sm:$0xff]  }
 0x258   : > { %v814_v10 = vadd.f32 %v10634_v48, %v813_v27  ;;  %1932 = vrot.lane.b32.xlu0 %v1747_v41, %s8879_s6  ;;  %v6941_v6 = vmax.f32 %v6781_v62, %v6861_v57  ;;  %4648 = vst.msk [vmem:[#allocation3 + $0x224] sm:$0xf] %vm1132_vm1, %v4312_v25  ;;  %v3370_v38 = vsel %vm3336_vm7, %v8840_v5, %v10976_v14  ;;  %v13030_v62 = vrot.slane %v10814_v63, 2 }
 0x259   : > { %v6053_v33 = vpop.f32.mrf.mxu2  ;;  %v11066_v61 = vpop.permute.xlu0 %1918  ;;  %6462 = vst.msk [vmem:[#allocation4 + $0x60] sm:$0xff] %vm3421_vm8, %v6271_v20  ;;  %v7736_v39 = vld [vmem:[#allocation3 + $0x168] sm:$0xf]  ;;  %v8223_v57 = vld [vmem:[#allocation3 + $0x16c] sm:$0xf]  ;;  %v6701_v27 = vmax.f32 %v6541_v9, %v6621_v29  ;;  %v3834_v41 = vsel %vm3506_vm9, %v3750_v7, %v11016_v49  ;;  %v3455_v49 = vsel %vm3421_vm8, %v3370_v38, %v10961_v55  ;;  %v2020_v7 = vsel %vm1971_vm2, %v2017_v8, %v13003_v45 }
 0x25a   : > { %v993_v48 = vmax.f32 %v814_v10, 0.0  ;;  %v6054_v15 = vadd.f32 %v6053_v33, %v5834_v60  ;;  %7513 = vmatmul.msk.f32.gmra.mxu0 %vm330_vm0, %v299_v40  ;;  %v2243_v25 = vsel %vm2194_vm4, %v13030_v62, %v13002_v3  ;;  %v8224_v20 = vld [vmem:[#allocation3 + $0x170] sm:$0xf0]  ;;  %v7738_v10 = vld [vmem:[#allocation3 + $0x174] sm:$0xf0]  ;;  %v13005_v60 = vrot.slane %v11009_v34, 3 }
 0x25b   : > { %v5837_v14 = vpop.f32.mrf.mxu1  ;;  %v11082_v40 = vld [vmem:[#allocation2 + $0xd0] sm:$0xff]   ;;  %v11084_v33 = vor.u32 %v2598_v28, %v2595_v19  ;;  %v7737_v62 = vor.u32 %v8224_v20, %v7736_v39  ;;  %v7741_v3 = vor.u32 %v8223_v57, %v7738_v10  ;;  %v7021_v28 = vmax.f32 %v6701_v27, %v6941_v6  ;;  %v11114_v27 = vld [vmem:[%s12984_s2] ss:$0 sm:$0xff] }
 0x25c   : > { %2326 = vrot.lane.b32.xlu1 %v2243_v25, %s8880_s7  ;;  %v1091_v63 = vpack.c.bf16 %v993_v48, %v993_v48  ;;  %v6273_v5 = vadd.f32 %v10422_v24, %v6054_v15  ;;  %v11087_v29 = vpop.f32.mrf.mxu3  ;;  %v2313_v9 = vpop.permute.xlu1 %2312  ;;  %v4066_v55 = vunpack.c.l.b16 %v3834_v41  ;;  %v4069_v38 = vunpack.c.h.b16 %v3834_v41  ;;  %v300_v39 = vld [vmem:[%s8931_s27 + $0x250] sm:$0xff] }
 0x25d   : > { %v11096_v25 = vld [vmem:[#allocation2 + $0xdc] sm:$0xff]   ;;  %v11101_v24 = vsel %vm2367_vm6, %v10988_v2, %v11084_v33  ;;  %v3540_v19 = vsel %vm3506_vm9, %v3455_v49, %v2313_v9  ;;  %v1752_v16 = vshll.u32 %v11082_v40, 16  ;;  %v2808_v10 = vsel %vm2757_vm5, %v2805_v32, %v13005_v60  ;;  %7101 = vst.msk [vmem:[#allocation5 + $0x38] sm:$0xff] %vm3421_vm8, %v7021_v28 }
 0x25e   : > { %1190 = vst.msk [vmem:[#allocation2 + $0xe4] sm:$0xf] %vm1132_vm1, %v1091_v63  ;;  %5876 = vmatmul.bf16.gmra.mxu1 %v7737_v62  ;;  %v4065_v8 = vunpack.c.l.b16 %v3540_v19  ;;  %v4068_v48 = vunpack.c.h.b16 %v3540_v19  ;;  %v13006_v15 = vrot.slane %v11096_v25, 1  ;;  %v7828_v6 = vld [vmem:[#allocation3 + $0x218] sm:$0xf]  ;;  %v2605_v57 = vshll.u32 %v11096_v25, 16 }
 0x25f   : > { %6463 = vst.msk [vmem:[#allocation4 + $0x68] sm:$0xff] %vm3421_vm8, %v6273_v5  ;;  %2103 = vrot.lane.b32.xlu2 %v2020_v7, %s8878_s30  ;;  %6095 = vmatmul.bf16.gmra.mxu2 %v7741_v3  ;;  %v816_v2 = vpop.f32.mrf.mxu0  ;;  %v8246_v3 = vld [vmem:[#allocation3 + $0x220] sm:$0xf0]  ;;  %v1748_v63 = vshrl.u32 %v10979_v26, 16  ;;  %v6622_v5 = vld [vmem:[#allocation4 + $0x41] sm:$0xff]  ;;  %v13031_v28 = vshrl.u32 %v11009_v34, 16 }
 0x260   : > { %v817_v41 = vadd.f32 %v11114_v27, %v816_v2  ;;  %v11117_v20 = vpop.permute.xlu2 %3198  ;;  %2985 = vrot.lane.b32.xlu0 %v11096_v25, %s8878_s30  ;;  %v6782_v62 = vld [vmem:[#allocation4 + $0x5c] sm:$0xff]  ;;  %v4285_v9 = vpack.c.b16 %v4066_v55, %v4065_v8  ;;  %v4287_v49 = vpack.c.b16 %v4069_v38, %v4068_v48  ;;  %v3299_v7 = vsel %vm1971_vm2, %v3296_v13, %v13006_v15 }
 0x261   : > { %v6056_v19 = vpop.f32.mrf.mxu2  ;;  %v7829_v2 = vor.u32 %v8246_v3, %v7828_v6  ;;  %v2972_v45 = vpop.permute.xlu0 %2971  ;;  %v6862_v18 = vld [vmem:[#allocation4 + $0x5d] sm:$0xff]  ;;  %v4109_v32 = vunpack.c.l.b16 %v3299_v7  ;;  %v4112_v60 = vunpack.c.h.b16 %v3299_v7  ;;  %v3094_v55 = vor.u32 %v11041_v59, %v13031_v28 }
 0x262   : > { %v994_v53 = vmax.f32 %v817_v41, 0.0  ;;  %7514 = vmatmul.msk.f32.gmra.mxu0 %vm330_vm0, %v300_v39  ;;  %v6542_v38 = vld [vmem:[#allocation4 + $0x40] sm:$0xff]  ;;  %v6942_v8 = vmax.f32 %v6782_v62, %v6862_v18  ;;  %4621 = vst [vmem:[#allocation3 + $0x180] sm:$0xff] %v4285_v9  ;;  %v6057_v48 = vadd.f32 %v6056_v19, %v5837_v14  ;;  %v11139_v6 = vrot.slane %v2605_v57, 1 }
 0x263   : > { %8152 = vmatmul.msk.bf16.gmra.mxu3 %vm3336_vm7, %v7829_v2  ;;  %v5839_v13 = vpop.f32.mrf.mxu1  ;;  %v11141_v41 = vrot.slane %v1752_v16, 1  ;;  %v6702_v3 = vmax.f32 %v6542_v38, %v6622_v5  ;;  %4623 = vst [vmem:[#allocation3 + $0x18c] sm:$0xff] %v4287_v49  ;;  %v4314_v7 = vpack.c.b16 %v4109_v32, %v4109_v32  ;;  %v4316_v15 = vpack.c.b16 %v4112_v60, %v4112_v60  ;;  %v6623_v16 = vld [vmem:[#allocation4 + $0x49] sm:$0xff] }
 0x264   : > { %2891 = vrot.lane.b32.xlu1 %v2808_v10, %s8879_s6  ;;  %v1092_v39 = vpack.c.bf16 %v994_v53, %v994_v53  ;;  %v6276_v59 = vadd.f32 %v10466_v23, %v6057_v48  ;;  %v11144_v28 = vpop.f32.mrf.mxu3  ;;  %v2878_v18 = vpop.permute.xlu1 %2877  ;;  %v3096_v14 = vsel %vm1543_vm3, %v3094_v55, %v11139_v6  ;;  %v1750_v10 = vor.u32 %v1748_v63, %v11022_v12  ;;  %v301_v63 = vld [vmem:[%s8931_s27 + $0x258] sm:$0xff]  ;;  %v6543_v2 = vld [vmem:[#allocation4 + $0x48] sm:$0xff] }
 0x265   : > { %v2602_v62 = vshrl.u32 %v11096_v25, 16  ;;  %v3644_v53 = vsel %vm3336_vm7, %v10398_v54, %v2878_v18  ;;  %v2244_v23 = vrot.slane %v11009_v34, 2  ;;  %v7022_v60 = vmax.f32 %v6702_v3, %v6942_v8  ;;  %4650 = vst.msk [vmem:[#allocation3 + $0x230] sm:$0xf] %vm1132_vm1, %v4314_v7 }
 0x266   : > { %v6783_v9 = vld [vmem:[#allocation4 + $0x64] sm:$0xff]  ;;  %1191 = vst.msk [vmem:[#allocation2 + $0xe8] sm:$0xf] %vm1132_vm1, %v1092_v39  ;;  %v2607_v49 = vrot.slane %v2605_v57, 3  ;;  %v1755_v12 = vsel %vm1543_vm3, %v1750_v10, %v11141_v41  ;;  %v3752_v54 = vsel %vm3421_vm8, %v3644_v53, %v2972_v45  ;;  %v6703_v8 = vmax.f32 %v6543_v2, %v6623_v16  ;;  %v8842_v45 = vld [vmem:[#allocation2 + $0x88] sm:$0xff]  }
 0x267   : > { %v6863_v5 = vld [vmem:[#allocation4 + $0x65] sm:$0xff]  ;;  %3210 = vrot.lane.b32.xlu2 %v3096_v14, %s8880_s7  ;;  %v819_v19 = vpop.f32.mrf.mxu0  ;;  %4652 = vst.msk [vmem:[#allocation3 + $0x23c] sm:$0xf] %vm1132_vm1, %v4316_v15  ;;  %v2021_v39 = vrot.slane %v10979_v26, 1  ;;  %v2604_v15 = vrot.slane %v2602_v62, 2  ;;  %v3372_v7 = vsel %vm3336_vm7, %v8842_v45, %v11066_v61  ;;  %v3836_v53 = vsel %vm3506_vm9, %v3752_v54, %v11117_v20 }
 0x268   : > { %v6943_v32 = vmax.f32 %v6783_v9, %v6863_v5  ;;  %v820_v55 = vadd.f32 %v11114_v27, %v819_v19  ;;  %v11162_v38 = vpop.permute.xlu2 %2093  ;;  %1934 = vrot.lane.b32.xlu0 %v1755_v12, %s8879_s6  ;;  %v11165_v57 = vld [vmem:[#allocation2 + $0xd8] sm:$0xff]   ;;  %6464 = vst.msk [vmem:[#allocation4 + $0x70] sm:$0xff] %vm3421_vm8, %v6276_v59  ;;  %v13032_v59 = vrot.slane %v10911_v11, 2  ;;  %v3457_v20 = vsel %vm3421_vm8, %v3372_v7, %v11062_v56 }
 0x269   : > { %v6058_v48 = vpop.f32.mrf.mxu2  ;;  %v11168_v3 = vpop.permute.xlu0 %1920  ;;  %v7748_v16 = vld [vmem:[#allocation3 + $0x180] sm:$0xf]  ;;  %v8226_v9 = vld [vmem:[#allocation3 + $0x184] sm:$0xf]  ;;  %7102 = vst.msk [vmem:[#allocation5 + $0x40] sm:$0xff] %vm3421_vm8, %v7022_v60  ;;  %v1760_v19 = vshll.u32 %v11165_v57, 16  ;;  %v11186_v12 = vor.u32 %v2607_v49, %v2604_v15 }
 0x26a   : > { %v995_v18 = vmax.f32 %v820_v55, 0.0  ;;  %v6059_v14 = vadd.f32 %v6058_v48, %v5839_v13  ;;  %7515 = vmatmul.msk.f32.gmra.mxu0 %vm330_vm0, %v301_v63  ;;  %v2245_v10 = vsel %vm2194_vm4, %v13032_v59, %v2244_v23  ;;  %v8227_v5 = vld [vmem:[#allocation3 + $0x188] sm:$0xf0]  ;;  %v7750_v13 = vld [vmem:[#allocation3 + $0x18c] sm:$0xf0]  ;;  %v7023_v63 = vmax.f32 %v6703_v8, %v6943_v32 }
 0x26b   : > { %v5842_v61 = vpop.f32.mrf.mxu1  ;;  %v7749_v55 = vor.u32 %v8227_v5, %v7748_v16  ;;  %v7753_v48 = vor.u32 %v8226_v9, %v7750_v13  ;;  %v13033_v54 = vrot.slane %v10877_v51, 1  ;;  %v2809_v32 = vrot.slane %v11096_v25, 3  ;;  %v302_v9 = vld [vmem:[%s8931_s27 + $0x260] sm:$0xff] }
 0x26c   : > { %2328 = vrot.lane.b32.xlu1 %v2245_v10, %s8880_s7  ;;  %v1093_v11 = vpack.c.bf16 %v995_v18, %v995_v18  ;;  %v6278_v2 = vadd.f32 %v10512_v44, %v6059_v14  ;;  %v11189_v45 = vpop.f32.mrf.mxu3  ;;  %v2315_v60 = vpop.permute.xlu1 %2314  ;;  %v11204_v44 = vsel %vm2367_vm6, %v11084_v33, %v11186_v12  ;;  %7103 = vst.msk [vmem:[#allocation5 + $0x48] sm:$0xff] %vm3421_vm8, %v7023_v63  ;;  %v4072_v8 = vunpack.c.l.b16 %v3836_v53  ;;  %v7840_v15 = vld [vmem:[#allocation3 + $0x230] sm:$0xf] }
 0x26d   : > { %v2022_v59 = vsel %vm1971_vm2, %v13033_v54, %v2021_v39  ;;  %v11198_v49 = vld [vmem:[#allocation2 + $0xe4] sm:$0xff]   ;;  %v3542_v56 = vsel %vm3506_vm9, %v3457_v20, %v2315_v60  ;;  %v4075_v51 = vunpack.c.h.b16 %v3836_v53  ;;  %v1756_v7 = vshrl.u32 %v11082_v40, 16 }
 0x26e   : > { %1192 = vst.msk [vmem:[#allocation2 + $0xec] sm:$0xf] %vm1132_vm1, %v1093_v11  ;;  %5881 = vmatmul.bf16.gmra.mxu1 %v7749_v55  ;;  %v4071_v18 = vunpack.c.l.b16 %v3542_v56  ;;  %v4074_v14 = vunpack.c.h.b16 %v3542_v56  ;;  %v3300_v10 = vrot.slane %v11198_v49, 1  ;;  %v8249_v16 = vld [vmem:[#allocation3 + $0x238] sm:$0xf0]  ;;  %v2614_v5 = vshll.u32 %v11198_v49, 16 }
 0x26f   : > { %6465 = vst.msk [vmem:[#allocation4 + $0x78] sm:$0xff] %vm3421_vm8, %v6278_v2  ;;  %2105 = vrot.lane.b32.xlu2 %v2022_v59, %s8878_s30  ;;  %6100 = vmatmul.bf16.gmra.mxu2 %v7753_v48  ;;  %v822_v33 = vpop.f32.mrf.mxu0  ;;  %v7841_v63 = vor.u32 %v8249_v16, %v7840_v15  ;;  %v11218_v11 = vrot.slane %v1760_v19, 1  ;;  %v13034_v48 = vrot.slane %v11096_v25, 1  ;;  %v13035_v54 = vrot.slane %v11009_v34, 3 }
 0x270   : > { %v823_v53 = vadd.f32 %v11114_v27, %v822_v33  ;;  %v3201_v13 = vpop.permute.xlu2 %3200  ;;  %2987 = vrot.lane.b32.xlu0 %v11198_v49, %s8878_s30  ;;  %v4289_v2 = vpack.c.b16 %v4072_v8, %v4071_v18  ;;  %v4291_v55 = vpack.c.b16 %v4075_v51, %v4074_v14  ;;  %v3097_v18 = vor.u32 %v11139_v6, %v2602_v62 }
 0x271   : > { %v3301_v60 = vsel %vm1971_vm2, %v13034_v48, %v3300_v10  ;;  %v6061_v20 = vpop.f32.mrf.mxu2  ;;  %v2810_v59 = vsel %vm2757_vm5, %v13035_v54, %v2809_v32  ;;  %v2974_v56 = vpop.permute.xlu0 %2973  ;;  %v11236_v14 = vrot.slane %v2614_v5, 1  ;;  %v2611_v16 = vshrl.u32 %v11198_v49, 16 }
 0x272   : > { %v996_v33 = vmax.f32 %v823_v53, 0.0  ;;  %v4115_v15 = vunpack.c.l.b16 %v3301_v60  ;;  %v4118_v19 = vunpack.c.h.b16 %v3301_v60  ;;  %7516 = vmatmul.msk.f32.gmra.mxu0 %vm330_vm0, %v302_v9  ;;  %4625 = vst [vmem:[#allocation3 + $0x198] sm:$0xff] %v4289_v2  ;;  %v6062_v8 = vadd.f32 %v6061_v20, %v5842_v61 }
 0x273   : > { %8153 = vmatmul.msk.bf16.gmra.mxu3 %vm3336_vm7, %v7841_v63  ;;  %v5844_v51 = vpop.f32.mrf.mxu1  ;;  %4627 = vst [vmem:[#allocation3 + $0x1a4] sm:$0xff] %v4291_v55  ;;  %v3099_v63 = vsel %vm1543_vm3, %v3097_v18, %v11236_v14  ;;  %v1758_v60 = vor.u32 %v1756_v7, %v11141_v41  ;;  %v2246_v20 = vrot.slane %v11096_v25, 2  ;;  %v2616_v18 = vrot.slane %v2614_v5, 3 }
 0x274   : > { %2893 = vrot.lane.b32.xlu1 %v2810_v59, %s8879_s6  ;;  %v1094_v53 = vpack.c.bf16 %v996_v33, %v996_v33  ;;  %v4318_v48 = vpack.c.b16 %v4115_v15, %v4115_v15  ;;  %v4320_v9 = vpack.c.b16 %v4118_v19, %v4118_v19  ;;  %v11239_v2 = vpop.f32.mrf.mxu3  ;;  %v2880_v61 = vpop.permute.xlu1 %2879  ;;  %v6281_v6 = vadd.f32 %v10560_v58, %v6062_v8  ;;  %v303_v59 = vld [vmem:[%s8931_s27 + $0x268] sm:$0xff] }
 0x275   : > { %v3647_v62 = vsel %vm3336_vm7, %v10489_v50, %v2880_v61  ;;  %v1763_v54 = vsel %vm1543_vm3, %v1758_v60, %v11218_v11  ;;  %v2613_v33 = vrot.slane %v2611_v16, 2  ;;  %v11261_v50 = vld [vmem:[#allocation2 + $0xe0] sm:$0xff]   ;;  %v2247_v19 = vsel %vm2194_vm4, %v2244_v23, %v2246_v20 }
 0x276   : > { %1193 = vst.msk [vmem:[#allocation2 + $0xf0] sm:$0xf] %vm1132_vm1, %v1094_v53  ;;  %v3754_v41 = vsel %vm3421_vm8, %v3647_v62, %v2974_v56  ;;  %v2023_v56 = vrot.slane %v11082_v40, 1  ;;  %v8843_v53 = vld [vmem:[#allocation2 + $0x90] sm:$0xff]   ;;  %v1768_v5 = vshll.u32 %v11261_v50, 16 }
 0x277   : > { %3212 = vrot.lane.b32.xlu2 %v3099_v63, %s8880_s7  ;;  %v825_v55 = vpop.f32.mrf.mxu0  ;;  %4654 = vst.msk [vmem:[#allocation3 + $0x248] sm:$0xf] %vm1132_vm1, %v4318_v48  ;;  %v3374_v48 = vsel %vm3336_vm7, %v8843_v53, %v11168_v3  ;;  %v3838_v34 = vsel %vm3506_vm9, %v3754_v41, %v3201_v13  ;;  %v2811_v41 = vrot.slane %v11198_v49, 3 }
 0x278   : > { %v826_v58 = vadd.f32 %v11114_v27, %v825_v55  ;;  %v11258_v7 = vpop.permute.xlu2 %2095  ;;  %1936 = vrot.lane.b32.xlu0 %v1763_v54, %s8879_s6  ;;  %4656 = vst.msk [vmem:[#allocation3 + $0x254] sm:$0xf] %vm1132_vm1, %v4320_v9  ;;  %v11279_v54 = vor.u32 %v2616_v18, %v2613_v33  ;;  %v3459_v13 = vsel %vm3421_vm8, %v3374_v48, %v11162_v38  ;;  %v1764_v18 = vshrl.u32 %v11165_v57, 16 }
 0x279   : > { %v6063_v15 = vpop.f32.mrf.mxu2  ;;  %v11269_v8 = vpop.permute.xlu0 %1922  ;;  %6466 = vst.msk [vmem:[#allocation4 + $0x80] sm:$0xff] %vm3421_vm8, %v6281_v6  ;;  %v7760_v63 = vld [vmem:[#allocation3 + $0x198] sm:$0xf]  ;;  %v8229_v60 = vld [vmem:[#allocation3 + $0x19c] sm:$0xf]  ;;  %v2024_v33 = vsel %vm1971_vm2, %v2021_v39, %v2023_v56  ;;  %v4078_v53 = vunpack.c.l.b16 %v3838_v34 }
 0x27a   : > { %v997_v61 = vmax.f32 %v826_v58, 0.0  ;;  %v6064_v9 = vadd.f32 %v6063_v15, %v5844_v51  ;;  %7517 = vmatmul.msk.f32.gmra.mxu0 %vm330_vm0, %v303_v59  ;;  %v8230_v62 = vld [vmem:[#allocation3 + $0x1a0] sm:$0xf0]  ;;  %v7762_v55 = vld [vmem:[#allocation3 + $0x1a4] sm:$0xf0] }
 0x27b   : > { %v5847_v23 = vpop.f32.mrf.mxu1  ;;  %v7761_v58 = vor.u32 %v8230_v62, %v7760_v63  ;;  %v7765_v51 = vor.u32 %v8229_v60, %v7762_v55  ;;  %v304_v60 = vld [vmem:[%s8931_s27 + $0x270] sm:$0xff] }
 0x27c   : > { %2330 = vrot.lane.b32.xlu1 %v2247_v19, %s8880_s7  ;;  %v1095_v3 = vpack.c.bf16 %v997_v61, %v997_v61  ;;  %v6283_v6 = vadd.f32 %v10606_v17, %v6064_v9  ;;  %v11282_v15 = vpop.f32.mrf.mxu3  ;;  %v2317_v59 = vpop.permute.xlu1 %2316  ;;  %v11290_v19 = vsel %vm2367_vm6, %v11186_v12, %v11279_v54  ;;  %v4081_v61 = vunpack.c.h.b16 %v3838_v34 }
 0x27d   : > { %v3544_v17 = vsel %vm3506_vm9, %v3459_v13, %v2317_v59  ;;  %v11299_v38 = vld [vmem:[#allocation2 + $0xec] sm:$0xff]  }
 0x27e   : > { %1194 = vst.msk [vmem:[#allocation2 + $0xf4] sm:$0xf] %vm1132_vm1, %v1095_v3  ;;  %5886 = vmatmul.bf16.gmra.mxu1 %v7761_v58  ;;  %v4077_v12 = vunpack.c.l.b16 %v3544_v17  ;;  %v4080_v48 = vunpack.c.h.b16 %v3544_v17  ;;  %v7852_v63 = vld [vmem:[#allocation3 + $0x248] sm:$0xf]  ;;  %v3302_v62 = vrot.slane %v11299_v38, 1  ;;  %v13009_v3 = vshll.u32 %v11299_v38, 16 }
 0x27f   : > { %6467 = vst.msk [vmem:[#allocation4 + $0x88] sm:$0xff] %vm3421_vm8, %v6283_v6  ;;  %2107 = vrot.lane.b32.xlu2 %v2024_v33, %s8878_s30  ;;  %6105 = vmatmul.bf16.gmra.mxu2 %v7765_v51  ;;  %v828_v9 = vpop.f32.mrf.mxu0  ;;  %v8252_v55 = vld [vmem:[#allocation3 + $0x250] sm:$0xf0]  ;;  %v11310_v6 = vrot.slane %v1768_v5, 1  ;;  %v2812_v51 = vsel %vm2757_vm5, %v2809_v32, %v2811_v41  ;;  %v3100_v5 = vor.u32 %v11236_v14, %v2611_v16  ;;  %v2620_v25 = vshrl.u32 %v11299_v38, 16 }
 0x280   : > { %v829_v26 = vadd.f32 %v11114_v27, %v828_v9  ;;  %2989 = vrot.lane.b32.xlu0 %v11299_v38, %s8878_s30  ;;  %v4293_v34 = vpack.c.b16 %v4078_v53, %v4077_v12  ;;  %v4295_v58 = vpack.c.b16 %v4081_v61, %v4080_v48  ;;  %v7853_v59 = vor.u32 %v8252_v55, %v7852_v63 }
 0x281   : > { %v3203_v39 = vpop.permute.xlu2 %3202  ;;  %v2976_v13 = vpop.permute.xlu0 %2975  ;;  %v3303_v33 = vsel %vm1971_vm2, %v3300_v10, %v3302_v62  ;;  %v11328_v12 = vrot.slane %v13009_v3, 1 }
 0x282   : > { %v998_v17 = vmax.f32 %v829_v26, 0.0  ;;  %v6066_v9 = vpop.f32.mrf.mxu2  ;;  %7518 = vmatmul.msk.f32.gmra.mxu0 %vm330_vm0, %v304_v60  ;;  %4629 = vst [vmem:[#allocation3 + $0x1b0] sm:$0xff] %v4293_v34  ;;  %v4121_v32 = vunpack.c.l.b16 %v3303_v33  ;;  %v4124_v53 = vunpack.c.h.b16 %v3303_v33  ;;  %v1766_v26 = vor.u32 %v1764_v18, %v11218_v11 }
 0x283   : > { %v6067_v48 = vadd.f32 %v6066_v9, %v5847_v23  ;;  %8154 = vmatmul.msk.bf16.gmra.mxu3 %vm3336_vm7, %v7853_v59  ;;  %v5849_v10 = vpop.f32.mrf.mxu1  ;;  %4631 = vst [vmem:[#allocation3 + $0x1bc] sm:$0xff] %v4295_v58  ;;  %v3102_v63 = vsel %vm1543_vm3, %v3100_v5, %v11328_v12  ;;  %v13008_v58 = vrot.slane %v11198_v49, 2  ;;  %v13007_v33 = vrot.slane %v11165_v57, 1  ;;  %v8844_v9 = vld [vmem:[#allocation2 + $0x98] sm:$0xff]  }
 0x284   : > { %2895 = vrot.lane.b32.xlu1 %v2812_v51, %s8879_s6  ;;  %v1096_v61 = vpack.c.bf16 %v998_v17, %v998_v17  ;;  %v4322_v14 = vpack.c.b16 %v4121_v32, %v4121_v32  ;;  %v4324_v16 = vpack.c.b16 %v4124_v53, %v4124_v53  ;;  %v2882_v60 = vpop.permute.xlu1 %2881  ;;  %v11337_v55 = vpop.f32.mrf.mxu3  ;;  %v1771_v51 = vsel %vm1543_vm3, %v1766_v26, %v11310_v6  ;;  %v305_v17 = vld [vmem:[%s8931_s27 + $0x278] sm:$0xff] }
 0x285   : > { %v6286_v23 = vadd.f32 %v10660_v22, %v6067_v48  ;;  %v3650_v34 = vsel %vm3336_vm7, %v10583_v4, %v2882_v60  ;;  %v3376_v5 = vsel %vm3336_vm7, %v8844_v9, %v11269_v8  ;;  %v2249_v53 = vsel %vm2194_vm4, %v2246_v20, %v13008_v58 }
 0x286   : > { %1195 = vst.msk [vmem:[#allocation2 + $0xf8] sm:$0xf] %vm1132_vm1, %v1096_v61  ;;  %v3756_v11 = vsel %vm3421_vm8, %v3650_v34, %v2976_v13  ;;  %v2813_v26 = vrot.slane %v11299_v38, 3 }
 0x287   : > { %3214 = vrot.lane.b32.xlu2 %v3102_v63, %s8880_s7  ;;  %v831_v59 = vpop.f32.mrf.mxu0  ;;  %4658 = vst.msk [vmem:[#allocation3 + $0x260] sm:$0xf] %vm1132_vm1, %v4322_v14  ;;  %v3840_v63 = vsel %vm3506_vm9, %v3756_v11, %v3203_v39  ;;  %v3461_v39 = vsel %vm3421_vm8, %v3376_v5, %v11258_v7 }
 0x288   : > { %v832_v22 = vadd.f32 %v11114_v27, %v831_v59  ;;  %1938 = vrot.lane.b32.xlu0 %v1771_v51, %s8879_s6  ;;  %4660 = vst.msk [vmem:[#allocation3 + $0x26c] sm:$0xf] %vm1132_vm1, %v4324_v16 }
 0x289   : > { %v11349_v18 = vpop.permute.xlu2 %2097  ;;  %v11353_v4 = vpop.permute.xlu0 %1924  ;;  %6468 = vst.msk [vmem:[#allocation4 + $0x90] sm:$0xff] %vm3421_vm8, %v6286_v23  ;;  %v7772_v48 = vld [vmem:[#allocation3 + $0x1b0] sm:$0xf]  ;;  %v8232_v61 = vld [vmem:[#allocation3 + $0x1b4] sm:$0xf]  ;;  %v11368_v23 = vld [vmem:[#allocation2 + $0xe8] sm:$0xff]  }
 0x28a   : > { %v999_v32 = vmax.f32 %v832_v22, 0.0  ;;  %v6068_v13 = vpop.f32.mrf.mxu2  ;;  %7519 = vmatmul.msk.f32.gmra.mxu0 %vm330_vm0, %v305_v17  ;;  %v8233_v16 = vld [vmem:[#allocation3 + $0x1b8] sm:$0xf0]  ;;  %v7774_v60 = vld [vmem:[#allocation3 + $0x1bc] sm:$0xf0]  ;;  %v1772_v22 = vshrl.u32 %v11261_v50, 16 }
 0x28b   : > { %v6069_v14 = vadd.f32 %v6068_v13, %v5849_v10  ;;  %v5852_v8 = vpop.f32.mrf.mxu1  ;;  %v7773_v59 = vor.u32 %v8233_v16, %v7772_v48  ;;  %v7777_v51 = vor.u32 %v8232_v61, %v7774_v60  ;;  %v2026_v10 = vsel %vm1971_vm2, %v2023_v56, %v13007_v33  ;;  %v306_v48 = vld [vmem:[%s8931_s27 + $0x280] sm:$0xff] }
 0x28c   : > { %2332 = vrot.lane.b32.xlu1 %v2249_v53, %s8880_s7  ;;  %v1097_v34 = vpack.c.bf16 %v999_v32, %v999_v32  ;;  %v2319_v17 = vpop.permute.xlu1 %2318  ;;  %v4087_v32 = vunpack.c.h.b16 %v3840_v63  ;;  %v1776_v7 = vshll.u32 %v11368_v23, 16 }
 0x28d   : > { %v6288_v20 = vadd.f32 %v10705_v35, %v6069_v14  ;;  %v11379_v11 = vld [vmem:[#allocation2 + $0xf4] sm:$0xff]   ;;  %v3546_v9 = vsel %vm3506_vm9, %v3461_v39, %v2319_v17  ;;  %v4084_v35 = vunpack.c.l.b16 %v3840_v63  ;;  %v11390_v14 = vpop.f32.mrf.mxu3 }
 0x28e   : > { %1196 = vst.msk [vmem:[#allocation2 + $0xfc] sm:$0xf] %vm1132_vm1, %v1097_v34  ;;  %5891 = vmatmul.bf16.gmra.mxu1 %v7773_v59  ;;  %v4083_v5 = vunpack.c.l.b16 %v3546_v9  ;;  %v4086_v40 = vunpack.c.h.b16 %v3546_v9  ;;  %v3304_v13 = vrot.slane %v11379_v11, 1  ;;  %v7864_v53 = vld [vmem:[#allocation3 + $0x260] sm:$0xf]  ;;  %v2814_v34 = vsel %vm2757_vm5, %v2811_v41, %v2813_v26 }
 0x28f   : > { %6469 = vst.msk [vmem:[#allocation4 + $0x98] sm:$0xff] %vm3421_vm8, %v6288_v20  ;;  %2109 = vrot.lane.b32.xlu2 %v2026_v10, %s8878_s30  ;;  %6110 = vmatmul.bf16.gmra.mxu2 %v7777_v51  ;;  %v834_v56 = vpop.f32.mrf.mxu0  ;;  %v8255_v60 = vld [vmem:[#allocation3 + $0x268] sm:$0xf0]  ;;  %v3103_v59 = vor.u32 %v11328_v12, %v2620_v25  ;;  %v2622_v51 = vrot.slane %v2620_v25, 2  ;;  %v6628_v20 = vld [vmem:[#allocation4 + $0x71] sm:$0xff]  ;;  %v13036_v12 = vshll.u32 %v11299_v38, 16 }
 0x290   : > { %v835_v63 = vadd.f32 %v11114_v27, %v834_v56  ;;  %2991 = vrot.lane.b32.xlu0 %v11379_v11, %s8878_s30  ;;  %v6788_v17 = vld [vmem:[#allocation4 + $0x8c] sm:$0xff]  ;;  %v4297_v39 = vpack.c.b16 %v4084_v35, %v4083_v5  ;;  %v4299_v10 = vpack.c.b16 %v4087_v32, %v4086_v40  ;;  %v3305_v9 = vsel %vm1971_vm2, %v3302_v62, %v3304_v13 }
 0x291   : > { %v11393_v16 = vpop.permute.xlu2 %3204  ;;  %v7865_v56 = vor.u32 %v8255_v60, %v7864_v53  ;;  %v2978_v33 = vpop.permute.xlu0 %2977  ;;  %v6868_v58 = vld [vmem:[#allocation4 + $0x8d] sm:$0xff]  ;;  %v4127_v3 = vunpack.c.l.b16 %v3305_v9  ;;  %v4130_v52 = vunpack.c.h.b16 %v3305_v9  ;;  %v2625_v25 = vrot.slane %v13036_v12, 3 }
 0x292   : > { %v1000_v61 = vmax.f32 %v835_v63, 0.0  ;;  %v6071_v41 = vpop.f32.mrf.mxu2  ;;  %7520 = vmatmul.msk.f32.gmra.mxu0 %vm330_vm0, %v306_v48  ;;  %v6548_v35 = vld [vmem:[#allocation4 + $0x70] sm:$0xff]  ;;  %v6948_v32 = vmax.f32 %v6788_v17, %v6868_v58  ;;  %4633 = vst [vmem:[#allocation3 + $0x1c8] sm:$0xff] %v4297_v39  ;;  %v13037_v40 = vshll.u32 %v11379_v11, 16  ;;  %v11417_v63 = vrot.slane %v1776_v7, 1 }
 0x293   : > { %v6072_v5 = vadd.f32 %v6071_v41, %v5852_v8  ;;  %8155 = vmatmul.msk.bf16.gmra.mxu3 %vm3336_vm7, %v7865_v56  ;;  %v5854_v62 = vpop.f32.mrf.mxu1  ;;  %v6708_v60 = vmax.f32 %v6548_v35, %v6628_v20  ;;  %4635 = vst [vmem:[#allocation3 + $0x1d4] sm:$0xff] %v4299_v10  ;;  %v4326_v9 = vpack.c.b16 %v4127_v3, %v4127_v3  ;;  %v2629_v39 = vshrl.u32 %v11379_v11, 16  ;;  %v6629_v56 = vld [vmem:[#allocation4 + $0x79] sm:$0xff] }
 0x294   : > { %2897 = vrot.lane.b32.xlu1 %v2814_v34, %s8879_s6  ;;  %v11415_v53 = vrot.slane %v13037_v40, 1  ;;  %v1098_v48 = vpack.c.bf16 %v1000_v61, %v1000_v61  ;;  %v4328_v12 = vpack.c.b16 %v4130_v52, %v4130_v52  ;;  %v1774_v34 = vor.u32 %v1772_v22, %v11310_v6  ;;  %v6549_v20 = vld [vmem:[#allocation4 + $0x78] sm:$0xff] }
 0x295   : > { %v6291_v58 = vadd.f32 %v10755_v1, %v6072_v5  ;;  %v2250_v52 = vrot.slane %v11299_v38, 2  ;;  %v11428_v3 = vor.u32 %v2625_v25, %v2622_v51  ;;  %v7028_v1 = vmax.f32 %v6708_v60, %v6948_v32  ;;  %4662 = vst.msk [vmem:[#allocation3 + $0x278] sm:$0xf] %vm1132_vm1, %v4326_v9  ;;  %v8845_v60 = vld [vmem:[#allocation2 + $0xa0] sm:$0xff]   ;;  %v11454_v9 = vpop.f32.mrf.mxu3 }
 0x296   : > { %v2884_v17 = vpop.permute.xlu1 %2883  ;;  %v3105_v8 = vsel %vm1543_vm3, %v3103_v59, %v11415_v53  ;;  %v6789_v41 = vld [vmem:[#allocation4 + $0x94] sm:$0xff]  ;;  %1197 = vst.msk [vmem:[#allocation2 + $0x100] sm:$0xf] %vm1132_vm1, %v1098_v48  ;;  %v1779_v22 = vsel %vm1543_vm3, %v1774_v34, %v11417_v63  ;;  %v13010_v35 = vrot.slane %v11261_v50, 1  ;;  %v6709_v32 = vmax.f32 %v6549_v20, %v6629_v56 }
 0x297   : > { %v3653_v7 = vsel %vm3336_vm7, %v10684_v37, %v2884_v17  ;;  %v6869_v61 = vld [vmem:[#allocation4 + $0x95] sm:$0xff]  ;;  %3216 = vrot.lane.b32.xlu2 %v3105_v8, %s8880_s7  ;;  %v837_v6 = vpop.f32.mrf.mxu0  ;;  %4664 = vst.msk [vmem:[#allocation3 + $0x284] sm:$0xf] %vm1132_vm1, %v4328_v12  ;;  %v11448_v40 = vsel %vm2367_vm6, %v11279_v54, %v11428_v3  ;;  %v3378_v48 = vsel %vm3336_vm7, %v8845_v60, %v11353_v4 }
 0x298   : > { %v307_v59 = vld [vmem:[%s8931_s27 + $0x288] sm:$0xff]  ;;  %v6949_v10 = vmax.f32 %v6789_v41, %v6869_v61  ;;  %v3758_v37 = vsel %vm3421_vm8, %v3653_v7, %v2978_v33  ;;  %v838_v51 = vadd.f32 %v11114_v27, %v837_v6  ;;  %1940 = vrot.lane.b32.xlu0 %v1779_v22, %s8879_s6  ;;  %6470 = vst.msk [vmem:[#allocation4 + $0xa0] sm:$0xff] %vm3421_vm8, %v6291_v58  ;;  %v2631_v33 = vrot.slane %v2629_v39, 2  ;;  %v11466_v6 = vld [vmem:[#allocation2 + $0xf0] sm:$0xff]  }
 0x299   : > { %v11438_v25 = vpop.permute.xlu2 %2099  ;;  %v11443_v5 = vpop.permute.xlu0 %1926  ;;  %v13038_v58 = vrot.slane %v11198_v49, 2  ;;  %v7784_v8 = vld [vmem:[#allocation3 + $0x1c8] sm:$0xf]  ;;  %v8235_v34 = vld [vmem:[#allocation3 + $0x1cc] sm:$0xf]  ;;  %7108 = vst.msk [vmem:[#allocation5 + $0x70] sm:$0xff] %vm3421_vm8, %v7028_v1  ;;  %v3842_v56 = vsel %vm3506_vm9, %v3758_v37, %v11393_v16 }
 0x29a   : > { %v1001_v12 = vmax.f32 %v838_v51, 0.0  ;;  %v6073_v17 = vpop.f32.mrf.mxu2  ;;  %7521 = vmatmul.msk.f32.gmra.mxu0 %vm330_vm0, %v307_v59  ;;  %v8236_v7 = vld [vmem:[#allocation3 + $0x1d0] sm:$0xf0]  ;;  %v7786_v61 = vld [vmem:[#allocation3 + $0x1d4] sm:$0xf0]  ;;  %v13039_v22 = vshll.u32 %v11379_v11, 16  ;;  %v7029_v59 = vmax.f32 %v6709_v32, %v6949_v10 }
 0x29b   : > { %v2251_v54 = vsel %vm2194_vm4, %v13038_v58, %v2250_v52  ;;  %v6074_v4 = vadd.f32 %v6073_v17, %v5854_v62  ;;  %v5857_v41 = vpop.f32.mrf.mxu1  ;;  %v13040_v1 = vrot.slane %v11165_v57, 1  ;;  %v7785_v16 = vor.u32 %v8236_v7, %v7784_v8  ;;  %v11475_v37 = vld [vmem:[#allocation4 + $0x81] sm:$0xff] }
 0x29c   : > { %2334 = vrot.lane.b32.xlu1 %v2251_v54, %s8880_s7  ;;  %v2634_v49 = vrot.slane %v13039_v22, 3  ;;  %v1099_v20 = vpack.c.bf16 %v1001_v12, %v1001_v12  ;;  %v7789_v62 = vor.u32 %v8235_v34, %v7786_v61  ;;  %v3463_v58 = vsel %vm3421_vm8, %v3378_v48, %v11349_v18  ;;  %7109 = vst.msk [vmem:[#allocation5 + $0x78] sm:$0xff] %vm3421_vm8, %v7029_v59  ;;  %v6550_v57 = vld [vmem:[#allocation4 + $0x80] sm:$0xff]  ;;  %v7876_v34 = vld [vmem:[#allocation3 + $0x278] sm:$0xf]  ;;  %v308_v22 = vld [vmem:[%s8931_s27 + $0x290] sm:$0xff] }
 0x29d   : > { %v2028_v51 = vsel %vm1971_vm2, %v13040_v1, %v13010_v35  ;;  %v6293_v60 = vadd.f32 %v10805_v47, %v6074_v4  ;;  %v11480_v54 = vld [vmem:[#allocation2 + $0xfc] sm:$0xff]   ;;  %v2815_v10 = vrot.slane %v11379_v11, 3  ;;  %v4090_v8 = vunpack.c.l.b16 %v3842_v56 }
 0x29e   : > { %v2321_v17 = vpop.permute.xlu1 %2320  ;;  %v11483_v32 = vor.u32 %v2634_v49, %v2631_v33  ;;  %1198 = vst.msk [vmem:[#allocation2 + $0x104] sm:$0xf] %vm1132_vm1, %v1099_v20  ;;  %v4093_v47 = vunpack.c.h.b16 %v3842_v56  ;;  %5896 = vmatmul.bf16.gmra.mxu1 %v7785_v16  ;;  %v1784_v18 = vshll.u32 %v11466_v6, 16  ;;  %v3306_v7 = vrot.slane %v11480_v54, 1  ;;  %v8258_v61 = vld [vmem:[#allocation3 + $0x280] sm:$0xf0] }
 0x29f   : > { %v3548_v12 = vsel %vm3506_vm9, %v3463_v58, %v2321_v17  ;;  %6471 = vst.msk [vmem:[#allocation4 + $0xa8] sm:$0xff] %vm3421_vm8, %v6293_v60  ;;  %2111 = vrot.lane.b32.xlu2 %v2028_v51, %s8878_s30  ;;  %6115 = vmatmul.bf16.gmra.mxu2 %v7789_v62  ;;  %v840_v33 = vpop.f32.mrf.mxu0  ;;  %v2641_v49 = vshll.u32 %v11480_v54, 16  ;;  %v6710_v56 = vmax.f32 %v6550_v57, %v11475_v37  ;;  %v6790_v59 = vld [vmem:[#allocation4 + $0x9c] sm:$0xff]  ;;  %v1780_v51 = vshrl.u32 %v11368_v23, 16 }
 0x2a0   : > { %v4089_v48 = vunpack.c.l.b16 %v3548_v12  ;;  %v4092_v4 = vunpack.c.h.b16 %v3548_v12  ;;  %v841_v20 = vadd.f32 %v11114_v27, %v840_v33  ;;  %2993 = vrot.lane.b32.xlu0 %v11480_v54, %s8878_s30  ;;  %v7877_v16 = vor.u32 %v8258_v61, %v7876_v34  ;;  %v6870_v62 = vld [vmem:[#allocation4 + $0x9d] sm:$0xff] }
 0x2a1   : > { %v11496_v1 = vpop.permute.xlu2 %3206  ;;  %v3307_v37 = vsel %vm1971_vm2, %v3304_v13, %v3306_v7  ;;  %v2816_v58 = vsel %vm2757_vm5, %v2813_v26, %v2815_v10  ;;  %v6950_v12 = vmax.f32 %v6790_v59, %v6870_v62  ;;  %v11519_v26 = vrot.slane %v2641_v49, 1 }
 0x2a2   : > { %v4301_v60 = vpack.c.b16 %v4090_v8, %v4089_v48  ;;  %v4303_v17 = vpack.c.b16 %v4093_v47, %v4092_v4  ;;  %v2980_v57 = vpop.permute.xlu0 %2979  ;;  %v1002_v34 = vmax.f32 %v841_v20, 0.0  ;;  %v4133_v33 = vunpack.c.l.b16 %v3307_v37  ;;  %v6076_v35 = vpop.f32.mrf.mxu2  ;;  %7522 = vmatmul.msk.f32.gmra.mxu0 %vm330_vm0, %v308_v22 }
 0x2a3   : > { %v4136_v61 = vunpack.c.h.b16 %v3307_v37  ;;  %v6077_v8 = vadd.f32 %v6076_v35, %v5857_v41  ;;  %8156 = vmatmul.msk.bf16.gmra.mxu3 %vm3336_vm7, %v7877_v16  ;;  %v5859_v13 = vpop.f32.mrf.mxu1  ;;  %v3106_v47 = vor.u32 %v11415_v53, %v2629_v39  ;;  %v11521_v48 = vrot.slane %v1784_v18, 1  ;;  %v11523_v4 = vpop.f32.mrf.mxu3  ;;  %v309_v37 = vld [vmem:[%s8931_s27 + $0x298] sm:$0xff] }
 0x2a4   : > { %4637 = vst [vmem:[#allocation3 + $0x1e0] sm:$0xff] %v4301_v60  ;;  %2899 = vrot.lane.b32.xlu1 %v2816_v58, %s8879_s6  ;;  %v1100_v22 = vpack.c.bf16 %v1002_v34, %v1002_v34  ;;  %v4330_v35 = vpack.c.b16 %v4133_v33, %v4133_v33  ;;  %v11528_v59 = vsel %vm2367_vm6, %v11428_v3, %v11483_v32  ;;  %v2638_v16 = vshrl.u32 %v11480_v54, 16  ;;  %v8846_v33 = vld [vmem:[#allocation2 + $0xa8] sm:$0xff]  }
 0x2a5   : > { %4639 = vst [vmem:[#allocation3 + $0x1ec] sm:$0xff] %v4303_v17  ;;  %v4332_v41 = vpack.c.b16 %v4136_v61, %v4136_v61  ;;  %v6296_v53 = vadd.f32 %v10856_v46, %v6077_v8  ;;  %v3108_v20 = vsel %vm1543_vm3, %v3106_v47, %v11519_v26  ;;  %v1782_v18 = vor.u32 %v1780_v51, %v11417_v63 }
 0x2a6   : > { %v2886_v39 = vpop.permute.xlu1 %2885  ;;  %1199 = vst.msk [vmem:[#allocation2 + $0x108] sm:$0xf] %vm1132_vm1, %v1100_v22  ;;  %v2252_v60 = vrot.slane %v11379_v11, 2  ;;  %v7030_v17 = vmax.f32 %v6710_v56, %v6950_v12  ;;  %v2029_v63 = vrot.slane %v11368_v23, 1  ;;  %v11554_v12 = vld [vmem:[#allocation2 + $0xf8] sm:$0xff]   ;;  %v2640_v34 = vrot.slane %v2638_v16, 2 }
 0x2a7   : > { %v3656_v62 = vsel %vm3336_vm7, %v10786_v43, %v2886_v39  ;;  %4666 = vst.msk [vmem:[#allocation3 + $0x290] sm:$0xf] %vm1132_vm1, %v4330_v35  ;;  %3218 = vrot.lane.b32.xlu2 %v3108_v20, %s8880_s7  ;;  %v843_v46 = vpop.f32.mrf.mxu0  ;;  %v1787_v3 = vsel %vm1543_vm3, %v1782_v18, %v11521_v48  ;;  %v3380_v61 = vsel %vm3336_vm7, %v8846_v33, %v11443_v5 }
 0x2a8   : > { %4668 = vst.msk [vmem:[#allocation3 + $0x29c] sm:$0xf] %vm1132_vm1, %v4332_v41  ;;  %v3760_v51 = vsel %vm3421_vm8, %v3656_v62, %v2980_v57  ;;  %v844_v43 = vadd.f32 %v11114_v27, %v843_v46  ;;  %1942 = vrot.lane.b32.xlu0 %v1787_v3, %s8879_s6  ;;  %v2253_v27 = vsel %vm2194_vm4, %v2250_v52, %v2252_v60  ;;  %v2643_v52 = vrot.slane %v2641_v49, 3 }
 0x2a9   : > { %v11548_v58 = vpop.permute.xlu2 %2101  ;;  %6472 = vst.msk [vmem:[#allocation4 + $0xb0] sm:$0xff] %vm3421_vm8, %v6296_v53  ;;  %v3844_v35 = vsel %vm3506_vm9, %v3760_v51, %v11496_v1  ;;  %v13041_v53 = vrot.slane %v11261_v50, 1  ;;  %v1792_v1 = vshll.u32 %v11554_v12, 16  ;;  %v3465_v3 = vsel %vm3421_vm8, %v3380_v61, %v11438_v25 }
 0x2aa   : > { %v11552_v56 = vpop.permute.xlu0 %1928  ;;  %v1003_v57 = vmax.f32 %v844_v43, 0.0  ;;  %v6078_v8 = vpop.f32.mrf.mxu2  ;;  %7523 = vmatmul.msk.f32.gmra.mxu0 %vm330_vm0, %v309_v37  ;;  %7110 = vst.msk [vmem:[#allocation5 + $0x80] sm:$0xff] %vm3421_vm8, %v7030_v17  ;;  %v2817_v50 = vrot.slane %v11480_v54, 3  ;;  %v11584_v51 = vor.u32 %v2643_v52, %v2640_v34  ;;  %v4096_v33 = vunpack.c.l.b16 %v3844_v35 }
 0x2ab   : > { %v7796_v47 = vld [vmem:[#allocation3 + $0x1e0] sm:$0xf]  ;;  %v8238_v22 = vld [vmem:[#allocation3 + $0x1e4] sm:$0xf]  ;;  %v6079_v41 = vadd.f32 %v6078_v8, %v5859_v13  ;;  %v5862_v5 = vpop.f32.mrf.mxu1  ;;  %v2030_v39 = vsel %vm1971_vm2, %v13041_v53, %v2029_v63  ;;  %v11586_v43 = vpop.f32.mrf.mxu3  ;;  %v1788_v8 = vshrl.u32 %v11466_v6, 16 }
 0x2ac   : > { %2336 = vrot.lane.b32.xlu1 %v2253_v27, %s8880_s7  ;;  %v8239_v38 = vld [vmem:[#allocation3 + $0x1e8] sm:$0xf0]  ;;  %v7798_v20 = vld [vmem:[#allocation3 + $0x1ec] sm:$0xf0]  ;;  %v1101_v18 = vpack.c.bf16 %v1003_v57, %v1003_v57  ;;  %v4099_v57 = vunpack.c.h.b16 %v3844_v35  ;;  %v11599_v35 = vld [vmem:[%s12984_s2] ss:$0 sm:$0xff] }
 0x2ad   : > { %v7797_v62 = vor.u32 %v8239_v38, %v7796_v47  ;;  %v7801_v17 = vor.u32 %v8238_v22, %v7798_v20  ;;  %v6298_v13 = vadd.f32 %v10902_v30, %v6079_v41  ;;  %v11581_v37 = vld [vmem:[#allocation2 + $0x104] sm:$0xff]  }
 0x2ae   : > { %v2323_v46 = vpop.permute.xlu1 %2322  ;;  %1200 = vst.msk [vmem:[#allocation2 + $0x10c] sm:$0xf] %vm1132_vm1, %v1101_v18  ;;  %v7888_v30 = vld [vmem:[#allocation3 + $0x290] sm:$0xf]  ;;  %v3308_v27 = vrot.slane %v11581_v37, 1  ;;  %v310_v22 = vld [vmem:[%s8931_s27 + $0x2a0] sm:$0xff] }
 0x2af   : > { %v3550_v49 = vsel %vm3506_vm9, %v3465_v3, %v2323_v46  ;;  %5901 = vmatmul.bf16.gmra.mxu1 %v7797_v62  ;;  %6473 = vst.msk [vmem:[#allocation4 + $0xb8] sm:$0xff] %vm3421_vm8, %v6298_v13  ;;  %2113 = vrot.lane.b32.xlu2 %v2030_v39, %s8878_s30  ;;  %v846_v34 = vpop.f32.mrf.mxu0  ;;  %v8261_v47 = vld [vmem:[#allocation3 + $0x298] sm:$0xf0]  ;;  %v2650_v41 = vshll.u32 %v11581_v37, 16  ;;  %v11604_v39 = vrot.slane %v1792_v1, 1 }
 0x2b0   : > { %v4095_v25 = vunpack.c.l.b16 %v3550_v49  ;;  %v4098_v61 = vunpack.c.h.b16 %v3550_v49  ;;  %6120 = vmatmul.bf16.gmra.mxu2 %v7801_v17  ;;  %v847_v53 = vadd.f32 %v11599_v35, %v846_v34  ;;  %2995 = vrot.lane.b32.xlu0 %v11581_v37, %s8878_s30  ;;  %v7889_v38 = vor.u32 %v8261_v47, %v7888_v30 }
 0x2b1   : > { %v3209_v18 = vpop.permute.xlu2 %3208  ;;  %v3309_v62 = vsel %vm1971_vm2, %v3306_v7, %v3308_v27  ;;  %v2818_v17 = vsel %vm2757_vm5, %v2815_v10, %v2817_v50  ;;  %v11622_v30 = vrot.slane %v2650_v41, 1  ;;  %v2647_v10 = vshrl.u32 %v11581_v37, 16 }
 0x2b2   : > { %v4305_v20 = vpack.c.b16 %v4096_v33, %v4095_v25  ;;  %v4307_v52 = vpack.c.b16 %v4099_v57, %v4098_v61  ;;  %v2982_v13 = vpop.permute.xlu0 %2981  ;;  %v1004_v46 = vmax.f32 %v847_v53, 0.0  ;;  %v4139_v3 = vunpack.c.l.b16 %v3309_v62  ;;  %v6081_v49 = vpop.f32.mrf.mxu2  ;;  %7524 = vmatmul.msk.f32.gmra.mxu0 %vm330_vm0, %v310_v22 }
 0x2b3   : > { %v4142_v1 = vunpack.c.h.b16 %v3309_v62  ;;  %v6082_v33 = vadd.f32 %v6081_v49, %v5862_v5  ;;  %8157 = vmatmul.msk.bf16.gmra.mxu3 %vm3336_vm7, %v7889_v38  ;;  %v5864_v7 = vpop.f32.mrf.mxu1  ;;  %v3109_v57 = vor.u32 %v11519_v26, %v2638_v16  ;;  %v1790_v22 = vor.u32 %v1788_v8, %v11521_v48  ;;  %v311_v8 = vld [vmem:[%s8931_s27 + $0x2a8] sm:$0xff]  ;;  %v8848_v49 = vld [vmem:[#allocation2 + $0xb0] sm:$0xff]  }
 0x2b4   : > { %4641 = vst [vmem:[#allocation3 + $0x1f8] sm:$0xff] %v4305_v20  ;;  %2901 = vrot.lane.b32.xlu1 %v2818_v17, %s8879_s6  ;;  %v1102_v25 = vpack.c.bf16 %v1004_v46, %v1004_v46  ;;  %v4334_v61 = vpack.c.b16 %v4139_v3, %v4139_v3  ;;  %v2254_v16 = vrot.slane %v11480_v54, 2  ;;  %v11635_v38 = vsel %vm2367_vm6, %v11483_v32, %v11584_v51  ;;  %v11649_v32 = vld [vmem:[#allocation2 + $0x100] sm:$0xff]  }
 0x2b5   : > { %4643 = vst [vmem:[#allocation3 + $0x204] sm:$0xff] %v4307_v52  ;;  %v4336_v34 = vpack.c.b16 %v4142_v1, %v4142_v1  ;;  %v3111_v5 = vsel %vm1543_vm3, %v3109_v57, %v11622_v30  ;;  %v6301_v53 = vadd.f32 %v10949_v42, %v6082_v33  ;;  %v1795_v48 = vsel %vm1543_vm3, %v1790_v22, %v11604_v39 }
 0x2b6   : > { %v2888_v47 = vpop.permute.xlu1 %2887  ;;  %1201 = vst.msk [vmem:[#allocation2 + $0x110] sm:$0xf] %vm1132_vm1, %v1102_v25  ;;  %v2649_v42 = vrot.slane %v2647_v10, 2  ;;  %v2031_v3 = vrot.slane %v11466_v6, 1  ;;  %v2652_v1 = vrot.slane %v2650_v41, 3  ;;  %v3382_v33 = vsel %vm3336_vm7, %v8848_v49, %v11552_v56 }
 0x2b7   : > { %v3659_v26 = vsel %vm3336_vm7, %v10891_v0, %v2888_v47  ;;  %3220 = vrot.lane.b32.xlu2 %v3111_v5, %s8880_s7  ;;  %v849_v20 = vpop.f32.mrf.mxu0  ;;  %v11644_v0 = vpop.f32.mrf.mxu3  ;;  %4670 = vst.msk [vmem:[#allocation3 + $0x2a8] sm:$0xf] %vm1132_vm1, %v4334_v61  ;;  %v1800_v22 = vshll.u32 %v11649_v32, 16 }
 0x2b8   : > { %v850_v52 = vadd.f32 %v11599_v35, %v849_v20  ;;  %1944 = vrot.lane.b32.xlu0 %v1795_v48, %s8879_s6  ;;  %4672 = vst.msk [vmem:[#allocation3 + $0x2b4] sm:$0xf] %vm1132_vm1, %v4336_v34  ;;  %v3762_v62 = vsel %vm3421_vm8, %v3659_v26, %v2982_v13  ;;  %v2255_v13 = vsel %vm2194_vm4, %v2252_v60, %v2254_v16 }
 0x2b9   : > { %v11653_v17 = vpop.permute.xlu2 %2103  ;;  %6474 = vst.msk [vmem:[#allocation4 + $0xc0] sm:$0xff] %vm3421_vm8, %v6301_v53  ;;  %v11669_v53 = vor.u32 %v2652_v1, %v2649_v42  ;;  %v3846_v26 = vsel %vm3506_vm9, %v3762_v62, %v3209_v18  ;;  %v1796_v42 = vshrl.u32 %v11554_v12, 16 }
 0x2ba   : > { %v11655_v46 = vpop.permute.xlu0 %1930  ;;  %v1005_v57 = vmax.f32 %v850_v52, 0.0  ;;  %v6083_v25 = vpop.f32.mrf.mxu2  ;;  %7525 = vmatmul.msk.f32.gmra.mxu0 %vm330_vm0, %v311_v8  ;;  %v2819_v52 = vrot.slane %v11581_v37, 3  ;;  %v4102_v62 = vunpack.c.l.b16 %v3846_v26 }
 0x2bb   : > { %v7808_v61 = vld [vmem:[#allocation3 + $0x1f8] sm:$0xf]  ;;  %v8241_v34 = vld [vmem:[#allocation3 + $0x1fc] sm:$0xf]  ;;  %v6084_v47 = vadd.f32 %v6083_v25, %v5864_v7  ;;  %v5867_v41 = vpop.f32.mrf.mxu1  ;;  %v3467_v7 = vsel %vm3421_vm8, %v3382_v33, %v11548_v58  ;;  %v11679_v49 = vsel %vm2367_vm6, %v11584_v51, %v11669_v53  ;;  %v4105_v33 = vunpack.c.h.b16 %v3846_v26 }
 0x2bc   : > { %2338 = vrot.lane.b32.xlu1 %v2255_v13, %s8880_s7  ;;  %v8242_v5 = vld [vmem:[#allocation3 + $0x200] sm:$0xf0]  ;;  %v7810_v56 = vld [vmem:[#allocation3 + $0x204] sm:$0xf0]  ;;  %v1103_v20 = vpack.c.bf16 %v1005_v57, %v1005_v57 }
 0x2bd   : > { %v7809_v48 = vor.u32 %v8242_v5, %v7808_v61  ;;  %v7813_v8 = vor.u32 %v8241_v34, %v7810_v56  ;;  %v6303_v11 = vadd.f32 %v10991_v31, %v6084_v47  ;;  %v2032_v31 = vsel %vm1971_vm2, %v2029_v63, %v2031_v3  ;;  %v11688_v58 = vld [vmem:[#allocation2 + $0x10c] sm:$0xff]  }
 0x2be   : > { %v2325_v60 = vpop.permute.xlu1 %2324  ;;  %1202 = vst.msk [vmem:[#allocation2 + $0x114] sm:$0xf] %vm1132_vm1, %v1103_v20  ;;  %v7900_v25 = vld [vmem:[#allocation3 + $0x2a8] sm:$0xf]  ;;  %v3310_v63 = vrot.slane %v11688_v58, 1  ;;  %v2659_v34 = vshll.u32 %v11688_v58, 16 }
 0x2bf   : > { %v3552_v18 = vsel %vm3506_vm9, %v3467_v7, %v2325_v60  ;;  %5906 = vmatmul.bf16.gmra.mxu1 %v7809_v48  ;;  %6475 = vst.msk [vmem:[#allocation4 + $0xc8] sm:$0xff] %vm3421_vm8, %v6303_v11  ;;  %2115 = vrot.lane.b32.xlu2 %v2032_v31, %s8878_s30  ;;  %v852_v57 = vpop.f32.mrf.mxu0  ;;  %v312_v13 = vld [vmem:[%s8931_s27 + $0x2b0] sm:$0xff]  ;;  %v8264_v61 = vld [vmem:[#allocation3 + $0x2b0] sm:$0xf0]  ;;  %v11699_v47 = vrot.slane %v1800_v22, 1  ;;  %v2820_v48 = vsel %vm2757_vm5, %v2817_v50, %v2819_v52  ;;  %v11719_v50 = vpop.f32.mrf.mxu3 }
 0x2c0   : > { %v4101_v51 = vunpack.c.l.b16 %v3552_v18  ;;  %v4104_v1 = vunpack.c.h.b16 %v3552_v18  ;;  %6125 = vmatmul.bf16.gmra.mxu2 %v7813_v8  ;;  %v853_v23 = vadd.f32 %v11599_v35, %v852_v57  ;;  %2997 = vrot.lane.b32.xlu0 %v11688_v58, %s8878_s30  ;;  %v7901_v20 = vor.u32 %v8264_v61, %v7900_v25 }
 0x2c1   : > { %v3211_v26 = vpop.permute.xlu2 %3210  ;;  %v3311_v11 = vsel %vm1971_vm2, %v3308_v27, %v3310_v63  ;;  %v3112_v7 = vor.u32 %v11622_v30, %v2647_v10  ;;  %v11717_v18 = vrot.slane %v2659_v34, 1 }
 0x2c2   : > { %v4309_v5 = vpack.c.b16 %v4102_v62, %v4101_v51  ;;  %v4311_v56 = vpack.c.b16 %v4105_v33, %v4104_v1  ;;  %v1006_v8 = vmax.f32 %v853_v23, 0.0  ;;  %v6086_v60 = vpop.f32.mrf.mxu2  ;;  %7526 = vmatmul.msk.f32.gmra.mxu0 %vm330_vm0, %v312_v13  ;;  %v2984_v22 = vpop.permute.xlu0 %2983  ;;  %v4145_v31 = vunpack.c.l.b16 %v3311_v11  ;;  %v6635_v1 = vld [vmem:[#allocation4 + $0xa9] sm:$0xff] }
 0x2c3   : > { %v4148_v51 = vunpack.c.h.b16 %v3311_v11  ;;  %v6087_v62 = vadd.f32 %v6086_v60, %v5867_v41  ;;  %8158 = vmatmul.msk.bf16.gmra.mxu3 %vm3336_vm7, %v7901_v20  ;;  %v5869_v27 = vpop.f32.mrf.mxu1  ;;  %v3114_v30 = vsel %vm1543_vm3, %v3112_v7, %v11717_v18  ;;  %v1798_v13 = vor.u32 %v1796_v42, %v11604_v39  ;;  %v6555_v23 = vld [vmem:[#allocation4 + $0xa8] sm:$0xff]  ;;  %v313_v39 = vld [vmem:[%s8931_s27 + $0x2b8] sm:$0xff] }
 0x2c4   : > { %4645 = vst [vmem:[#allocation3 + $0x210] sm:$0xff] %v4309_v5  ;;  %2903 = vrot.lane.b32.xlu1 %v2820_v48, %s8879_s6  ;;  %v1104_v33 = vpack.c.bf16 %v1006_v8, %v1006_v8  ;;  %v4338_v10 = vpack.c.b16 %v4145_v31, %v4145_v31  ;;  %v6715_v20 = vmax.f32 %v6555_v23, %v6635_v1  ;;  %v2033_v42 = vrot.slane %v11554_v12, 1  ;;  %v8849_v31 = vld [vmem:[#allocation2 + $0xb8] sm:$0xff]  }
 0x2c5   : > { %4647 = vst [vmem:[#allocation3 + $0x21c] sm:$0xff] %v4311_v56  ;;  %v4340_v57 = vpack.c.b16 %v4148_v51, %v4148_v51  ;;  %v6306_v41 = vadd.f32 %v11043_v21, %v6087_v62  ;;  %v13011_v56 = vrot.slane %v11581_v37, 2  ;;  %v1803_v11 = vsel %vm1543_vm3, %v1798_v13, %v11699_v47 }
 0x2c6   : > { %v2890_v25 = vpop.permute.xlu1 %2889  ;;  %v6795_v61 = vld [vmem:[#allocation4 + $0xc4] sm:$0xff]  ;;  %1203 = vst.msk [vmem:[#allocation2 + $0x118] sm:$0xf] %vm1132_vm1, %v1104_v33  ;;  %v3384_v51 = vsel %vm3336_vm7, %v8849_v31, %v11655_v46  ;;  %v2034_v23 = vsel %vm1971_vm2, %v2031_v3, %v2033_v42  ;;  %v13042_v12 = vrot.slane %v11581_v37, 2 }
 0x2c7   : > { %v3662_v5 = vsel %vm3336_vm7, %v11004_v36, %v2890_v25  ;;  %v6875_v48 = vld [vmem:[#allocation4 + $0xc5] sm:$0xff]  ;;  %3222 = vrot.lane.b32.xlu2 %v3114_v30, %s8880_s7  ;;  %v855_v8 = vpop.f32.mrf.mxu0  ;;  %4674 = vst.msk [vmem:[#allocation3 + $0x2c0] sm:$0xf] %vm1132_vm1, %v4338_v10  ;;  %v3469_v3 = vsel %vm3421_vm8, %v3384_v51, %v11653_v17 }
 0x2c8   : > { %v6955_v60 = vmax.f32 %v6795_v61, %v6875_v48  ;;  %v3764_v21 = vsel %vm3421_vm8, %v3662_v5, %v2984_v22  ;;  %v856_v36 = vadd.f32 %v11599_v35, %v855_v8  ;;  %1946 = vrot.lane.b32.xlu0 %v1803_v11, %s8879_s6  ;;  %4676 = vst.msk [vmem:[#allocation3 + $0x2cc] sm:$0xf] %vm1132_vm1, %v4340_v57 }
 0x2c9   : > { %v11741_v7 = vpop.permute.xlu2 %2105  ;;  %6476 = vst.msk [vmem:[#allocation4 + $0xd0] sm:$0xff] %vm3421_vm8, %v6306_v41  ;;  %v2257_v22 = vsel %vm2194_vm4, %v2254_v16, %v13011_v56  ;;  %v3848_v25 = vsel %vm3506_vm9, %v3764_v21, %v3211_v26  ;;  %v13012_v16 = vrot.slane %v11688_v58, 3  ;;  %v11762_v41 = vld [vmem:[#allocation2 + $0x108] sm:$0xff]   ;;  %v2656_v26 = vshrl.u32 %v11688_v58, 16 }
 0x2ca   : > { %v1007_v62 = vmax.f32 %v856_v36, 0.0  ;;  %v6088_v1 = vpop.f32.mrf.mxu2  ;;  %7527 = vmatmul.msk.f32.gmra.mxu0 %vm330_vm0, %v313_v39  ;;  %v11752_v33 = vpop.permute.xlu0 %1932  ;;  %v7035_v57 = vmax.f32 %v6715_v20, %v6955_v60  ;;  %v1804_v39 = vshrl.u32 %v11649_v32, 16  ;;  %v2035_v60 = vrot.slane %v11649_v32, 1 }
 0x2cb   : > { %v7820_v30 = vld [vmem:[#allocation3 + $0x210] sm:$0xf]  ;;  %v8244_v10 = vld [vmem:[#allocation3 + $0x214] sm:$0xf]  ;;  %v6089_v46 = vadd.f32 %v6088_v1, %v5869_v27  ;;  %v5872_v13 = vpop.f32.mrf.mxu1  ;;  %v11766_v27 = vpop.f32.mrf.mxu3  ;;  %v4108_v36 = vunpack.c.l.b16 %v3848_v25  ;;  %v4111_v31 = vunpack.c.h.b16 %v3848_v25 }
 0x2cc   : > { %2340 = vrot.lane.b32.xlu1 %v2257_v22, %s8880_s7  ;;  %v8245_v54 = vld [vmem:[#allocation3 + $0x218] sm:$0xf0]  ;;  %v7822_v61 = vld [vmem:[#allocation3 + $0x21c] sm:$0xf0]  ;;  %v1105_v5 = vpack.c.bf16 %v1007_v62, %v1007_v62  ;;  %7115 = vst.msk [vmem:[#allocation5 + $0xa8] sm:$0xff] %vm3421_vm8, %v7035_v57 }
 0x2cd   : > { %v7821_v20 = vor.u32 %v8245_v54, %v7820_v30  ;;  %v7825_v48 = vor.u32 %v8244_v10, %v7822_v61  ;;  %v6308_v8 = vadd.f32 %v11087_v29, %v6089_v46  ;;  %v11771_v11 = vld [vmem:[#allocation2 + $0x114] sm:$0xff]   ;;  %v1808_v29 = vshll.u32 %v11762_v41, 16  ;;  %v314_v30 = vld [vmem:[%s8931_s27 + $0x2c0] sm:$0xff] }
 0x2ce   : > { %v2327_v6 = vpop.permute.xlu1 %2326  ;;  %1204 = vst.msk [vmem:[#allocation2 + $0x11c] sm:$0xf] %vm1132_vm1, %v1105_v5  ;;  %v3312_v1 = vrot.slane %v11771_v11, 1  ;;  %v7912_v22 = vld [vmem:[#allocation3 + $0x2c0] sm:$0xf]  ;;  %v2668_v10 = vshll.u32 %v11771_v11, 16  ;;  %v2822_v46 = vsel %vm2757_vm5, %v2819_v52, %v13012_v16 }
 0x2cf   : > { %v3554_v21 = vsel %vm3506_vm9, %v3469_v3, %v2327_v6  ;;  %5911 = vmatmul.bf16.gmra.mxu1 %v7821_v20  ;;  %6477 = vst.msk [vmem:[#allocation4 + $0xd8] sm:$0xff] %vm3421_vm8, %v6308_v8  ;;  %2117 = vrot.lane.b32.xlu2 %v2034_v23, %s8878_s30  ;;  %v858_v51 = vpop.f32.mrf.mxu0  ;;  %v8267_v25 = vld [vmem:[#allocation3 + $0x2c8] sm:$0xf0]  ;;  %v3115_v23 = vor.u32 %v11717_v18, %v2656_v26  ;;  %v2658_v54 = vrot.slane %v2656_v26, 2  ;;  %v6636_v3 = vld [vmem:[#allocation4 + $0xb1] sm:$0xff]  ;;  %v2661_v26 = vrot.slane %v2659_v34, 3 }
 0x2d0   : > { %v4107_v62 = vunpack.c.l.b16 %v3554_v21  ;;  %v4110_v17 = vunpack.c.h.b16 %v3554_v21  ;;  %6130 = vmatmul.bf16.gmra.mxu2 %v7825_v48  ;;  %v859_v57 = vadd.f32 %v11599_v35, %v858_v51  ;;  %2999 = vrot.lane.b32.xlu0 %v11771_v11, %s8878_s30  ;;  %v6796_v61 = vld [vmem:[#allocation4 + $0xcc] sm:$0xff]  ;;  %v3313_v8 = vsel %vm1971_vm2, %v3310_v63, %v3312_v1 }
 0x2d1   : > { %v11792_v48 = vpop.permute.xlu2 %3212  ;;  %v7913_v6 = vor.u32 %v8267_v25, %v7912_v22  ;;  %v6876_v21 = vld [vmem:[#allocation4 + $0xcd] sm:$0xff]  ;;  %v4151_v56 = vunpack.c.l.b16 %v3313_v8  ;;  %v4154_v52 = vunpack.c.h.b16 %v3313_v8  ;;  %v1806_v34 = vor.u32 %v1804_v39, %v11699_v47  ;;  %v6637_v8 = vld [vmem:[#allocation4 + $0xb9] sm:$0xff] }
 0x2d2   : > { %v4313_v5 = vpack.c.b16 %v4108_v36, %v4107_v62  ;;  %v4315_v20 = vpack.c.b16 %v4111_v31, %v4110_v17  ;;  %v1008_v51 = vmax.f32 %v859_v57, 0.0  ;;  %v6091_v16 = vpop.f32.mrf.mxu2  ;;  %7528 = vmatmul.msk.f32.gmra.mxu0 %vm330_vm0, %v314_v30  ;;  %v2986_v18 = vpop.permute.xlu0 %2985  ;;  %v6956_v36 = vmax.f32 %v6796_v61, %v6876_v21  ;;  %v6556_v22 = vld [vmem:[#allocation4 + $0xb0] sm:$0xff] }
 0x2d3   : > { %v6092_v31 = vadd.f32 %v6091_v16, %v5872_v13  ;;  %8159 = vmatmul.msk.bf16.gmra.mxu3 %vm3336_vm7, %v7913_v6  ;;  %v5874_v63 = vpop.f32.mrf.mxu1  ;;  %v11806_v62 = vrot.slane %v2668_v10, 1  ;;  %v11808_v17 = vrot.slane %v1808_v29, 1  ;;  %v4342_v57 = vpack.c.b16 %v4151_v56, %v4151_v56  ;;  %v11821_v39 = vpop.f32.mrf.mxu3 }
 0x2d4   : > { %4649 = vst [vmem:[#allocation3 + $0x228] sm:$0xff] %v4313_v5  ;;  %2905 = vrot.lane.b32.xlu1 %v2822_v46, %s8879_s6  ;;  %v1106_v30 = vpack.c.bf16 %v1008_v51, %v1008_v51  ;;  %v4344_v25 = vpack.c.b16 %v4154_v52, %v4154_v52  ;;  %v6716_v61 = vmax.f32 %v6556_v22, %v6636_v3  ;;  %v2665_v5 = vshrl.u32 %v11771_v11, 16  ;;  %v315_v3 = vld [vmem:[%s8931_s27 + $0x2c8] sm:$0xff]  ;;  %v6557_v51 = vld [vmem:[#allocation4 + $0xb8] sm:$0xff] }
 0x2d5   : > { %4651 = vst [vmem:[#allocation3 + $0x234] sm:$0xff] %v4315_v20  ;;  %v6311_v13 = vadd.f32 %v11144_v28, %v6092_v31  ;;  %v3117_v46 = vsel %vm1543_vm3, %v3115_v23, %v11806_v62  ;;  %v2258_v20 = vrot.slane %v11688_v58, 2  ;;  %v11819_v47 = vor.u32 %v2661_v26, %v2658_v54  ;;  %v11840_v22 = vld [vmem:[#allocation2 + $0x110] sm:$0xff]  }
 0x2d6   : > { %v2892_v16 = vpop.permute.xlu1 %2891  ;;  %v6797_v29 = vld [vmem:[#allocation4 + $0xd4] sm:$0xff]  ;;  %1205 = vst.msk [vmem:[#allocation2 + $0x120] sm:$0xf] %vm1132_vm1, %v1106_v30  ;;  %v1811_v6 = vsel %vm1543_vm3, %v1806_v34, %v11808_v17  ;;  %v7036_v21 = vmax.f32 %v6716_v61, %v6956_v36  ;;  %v6717_v26 = vmax.f32 %v6557_v51, %v6637_v8  ;;  %v2036_v36 = vsel %vm1971_vm2, %v2033_v42, %v2035_v60 }
 0x2d7   : > { %v3665_v56 = vsel %vm3336_vm7, %v11101_v24, %v2892_v16  ;;  %v6877_v28 = vld [vmem:[#allocation4 + $0xd5] sm:$0xff]  ;;  %4678 = vst.msk [vmem:[#allocation3 + $0x2d8] sm:$0xf] %vm1132_vm1, %v4342_v57  ;;  %3224 = vrot.lane.b32.xlu2 %v3117_v46, %s8880_s7  ;;  %v861_v23 = vpop.f32.mrf.mxu0  ;;  %v2667_v30 = vrot.slane %v2665_v5, 2  ;;  %v8850_v57 = vld [vmem:[#allocation2 + $0xc0] sm:$0xff]   ;;  %v2259_v42 = vsel %vm2194_vm4, %v13042_v12, %v2258_v20  ;;  %v2670_v46 = vrot.slane %v2668_v10, 3 }
 0x2d8   : > { %v6957_v52 = vmax.f32 %v6797_v29, %v6877_v28  ;;  %4680 = vst.msk [vmem:[#allocation3 + $0x2e4] sm:$0xf] %vm1132_vm1, %v4344_v25  ;;  %v3766_v24 = vsel %vm3421_vm8, %v3665_v56, %v2986_v18  ;;  %v862_v54 = vadd.f32 %v11599_v35, %v861_v23  ;;  %1948 = vrot.lane.b32.xlu0 %v1811_v6, %s8879_s6  ;;  %v1816_v51 = vshll.u32 %v11840_v22, 16 }
 0x2d9   : > { %6478 = vst.msk [vmem:[#allocation4 + $0xe0] sm:$0xff] %vm3421_vm8, %v6311_v13  ;;  %v11833_v31 = vpop.permute.xlu2 %2107  ;;  %v11845_v18 = vsel %vm2367_vm6, %v11669_v53, %v11819_v47  ;;  %v3386_v25 = vsel %vm3336_vm7, %v8850_v57, %v11752_v33  ;;  %v3850_v33 = vsel %vm3506_vm9, %v3766_v24, %v11792_v48  ;;  %v2823_v24 = vrot.slane %v11771_v11, 3 }
 0x2da   : > { %v1009_v34 = vmax.f32 %v862_v54, 0.0  ;;  %v6093_v61 = vpop.f32.mrf.mxu2  ;;  %7529 = vmatmul.msk.f32.gmra.mxu0 %vm330_vm0, %v315_v3  ;;  %v11857_v13 = vpop.permute.xlu0 %1934  ;;  %v7037_v23 = vmax.f32 %v6717_v26, %v6957_v52  ;;  %7116 = vst.msk [vmem:[#allocation5 + $0xb0] sm:$0xff] %vm3421_vm8, %v7036_v21  ;;  %v3471_v48 = vsel %vm3421_vm8, %v3386_v25, %v11741_v7  ;;  %v11872_v57 = vor.u32 %v2670_v46, %v2667_v30 }
 0x2db   : > { %v7832_v53 = vld [vmem:[#allocation3 + $0x228] sm:$0xf]  ;;  %v8247_v16 = vld [vmem:[#allocation3 + $0x22c] sm:$0xf]  ;;  %v6094_v8 = vadd.f32 %v6093_v61, %v5874_v63  ;;  %v5877_v29 = vpop.f32.mrf.mxu1  ;;  %v4114_v52 = vunpack.c.l.b16 %v3850_v33  ;;  %v4117_v26 = vunpack.c.h.b16 %v3850_v33  ;;  %v11885_v46 = vrot.slane %v1816_v51, 1  ;;  %v11887_v33 = vpop.f32.mrf.mxu3 }
 0x2dc   : > { %2342 = vrot.lane.b32.xlu1 %v2259_v42, %s8880_s7  ;;  %v8248_v56 = vld [vmem:[#allocation3 + $0x230] sm:$0xf0]  ;;  %v7834_v28 = vld [vmem:[#allocation3 + $0x234] sm:$0xf0]  ;;  %v1107_v37 = vpack.c.bf16 %v1009_v34, %v1009_v34  ;;  %7117 = vst.msk [vmem:[#allocation5 + $0xb8] sm:$0xff] %vm3421_vm8, %v7037_v23  ;;  %v1812_v34 = vshrl.u32 %v11762_v41, 16 }
 0x2dd   : > { %v7833_v6 = vor.u32 %v8248_v56, %v7832_v53  ;;  %v7837_v3 = vor.u32 %v8247_v16, %v7834_v28  ;;  %v6313_v54 = vadd.f32 %v11189_v45, %v6094_v8  ;;  %v11869_v63 = vld [vmem:[#allocation2 + $0x11c] sm:$0xff]   ;;  %v13043_v23 = vrot.slane %v11688_v58, 3 }
 0x2de   : > { %v2329_v10 = vpop.permute.xlu1 %2328  ;;  %1206 = vst.msk [vmem:[#allocation2 + $0x124] sm:$0xf] %vm1132_vm1, %v1107_v37  ;;  %v7924_v45 = vld [vmem:[#allocation3 + $0x2d8] sm:$0xf]  ;;  %v3314_v61 = vrot.slane %v11869_v63, 1  ;;  %v2677_v42 = vshll.u32 %v11869_v63, 16 }
 0x2df   : > { %v3556_v21 = vsel %vm3506_vm9, %v3471_v48, %v2329_v10  ;;  %5916 = vmatmul.bf16.gmra.mxu1 %v7833_v6  ;;  %6479 = vst.msk [vmem:[#allocation4 + $0xe8] sm:$0xff] %vm3421_vm8, %v6313_v54  ;;  %2119 = vrot.lane.b32.xlu2 %v2036_v36, %s8878_s30  ;;  %v864_v30 = vpop.f32.mrf.mxu0  ;;  %v8270_v12 = vld [vmem:[#allocation3 + $0x2e0] sm:$0xf0]  ;;  %v2824_v37 = vsel %vm2757_vm5, %v13043_v23, %v2823_v24 }
 0x2e0   : > { %v4113_v7 = vunpack.c.l.b16 %v3556_v21  ;;  %v4116_v25 = vunpack.c.h.b16 %v3556_v21  ;;  %6135 = vmatmul.bf16.gmra.mxu2 %v7837_v3  ;;  %v865_v53 = vadd.f32 %v11599_v35, %v864_v30  ;;  %3001 = vrot.lane.b32.xlu0 %v11869_v63, %s8878_s30  ;;  %v7925_v16 = vor.u32 %v8270_v12, %v7924_v45 }
 0x2e1   : > { %v3215_v36 = vpop.permute.xlu2 %3214  ;;  %v3315_v28 = vsel %vm1971_vm2, %v3312_v1, %v3314_v61  ;;  %v3118_v1 = vor.u32 %v11806_v62, %v2665_v5  ;;  %v1814_v12 = vor.u32 %v1812_v34, %v11808_v17  ;;  %v2260_v62 = vrot.slane %v11771_v11, 2  ;;  %v11928_v34 = vld [vmem:[#allocation2 + $0x118] sm:$0xff]  }
 0x2e2   : > { %v4317_v8 = vpack.c.b16 %v4114_v52, %v4113_v7  ;;  %v4319_v56 = vpack.c.b16 %v4117_v26, %v4116_v25  ;;  %v1010_v6 = vmax.f32 %v865_v53, 0.0  ;;  %v4157_v3 = vunpack.c.l.b16 %v3315_v28  ;;  %v6096_v54 = vpop.f32.mrf.mxu2  ;;  %v2988_v10 = vpop.permute.xlu0 %2987 }
 0x2e3   : > { %v4160_v51 = vunpack.c.h.b16 %v3315_v28  ;;  %v6097_v48 = vadd.f32 %v6096_v54, %v5877_v29  ;;  %8160 = vmatmul.msk.bf16.gmra.mxu3 %vm3336_vm7, %v7925_v16  ;;  %v5879_v21 = vpop.f32.mrf.mxu1  ;;  %v11904_v52 = vrot.slane %v2677_v42, 1  ;;  %v2674_v26 = vshrl.u32 %v11869_v63, 16 }
 0x2e4   : > { %4653 = vst [vmem:[#allocation3 + $0x240] sm:$0xff] %v4317_v8  ;;  %2907 = vrot.lane.b32.xlu1 %v2824_v37, %s8879_s6  ;;  %v1108_v45 = vpack.c.bf16 %v1010_v6, %v1010_v6  ;;  %v4346_v7 = vpack.c.b16 %v4157_v3, %v4157_v3  ;;  %v11917_v5 = vsel %vm2367_vm6, %v11819_v47, %v11872_v57  ;;  %v2037_v28 = vrot.slane %v11762_v41, 1  ;;  %v8851_v37 = vld [vmem:[#allocation2 + $0xc8] sm:$0xff]  }
 0x2e5   : > { %4655 = vst [vmem:[#allocation3 + $0x24c] sm:$0xff] %v4319_v56  ;;  %v4348_v25 = vpack.c.b16 %v4160_v51, %v4160_v51  ;;  %v3120_v29 = vsel %vm1543_vm3, %v3118_v1, %v11904_v52  ;;  %v6316_v53 = vadd.f32 %v11239_v2, %v6097_v48  ;;  %v1819_v17 = vsel %vm1543_vm3, %v1814_v12, %v11885_v46 }
 0x2e6   : > { %v2894_v30 = vpop.permute.xlu1 %2893  ;;  %1207 = vst.msk [vmem:[#allocation2 + $0x128] sm:$0xf] %vm1132_vm1, %v1108_v45  ;;  %v2676_v2 = vrot.slane %v2674_v26, 2  ;;  %v2679_v23 = vrot.slane %v2677_v42, 3  ;;  %v3388_v6 = vsel %vm3336_vm7, %v8851_v37, %v11857_v13  ;;  %v2261_v54 = vsel %vm2194_vm4, %v2258_v20, %v2260_v62  ;;  %v11945_v45 = vpop.f32.mrf.mxu3 }
 0x2e7   : > { %v3668_v16 = vsel %vm3336_vm7, %v11204_v44, %v2894_v30  ;;  %3226 = vrot.lane.b32.xlu2 %v3120_v29, %s8880_s7  ;;  %v867_v8 = vpop.f32.mrf.mxu0  ;;  %4682 = vst.msk [vmem:[#allocation3 + $0x2f0] sm:$0xf] %vm1132_vm1, %v4346_v7  ;;  %v1824_v30 = vshll.u32 %v11928_v34, 16 }
 0x2e8   : > { %v868_v44 = vadd.f32 %v11599_v35, %v867_v8  ;;  %1950 = vrot.lane.b32.xlu0 %v1819_v17, %s8879_s6  ;;  %4684 = vst.msk [vmem:[#allocation3 + $0x2fc] sm:$0xf] %vm1132_vm1, %v4348_v25  ;;  %v3768_v47 = vsel %vm3421_vm8, %v3668_v16, %v2988_v10  ;;  %v11949_v29 = vor.u32 %v2679_v23, %v2676_v2  ;;  %v2825_v17 = vrot.slane %v11869_v63, 3 }
 0x2e9   : > { %v11932_v56 = vpop.permute.xlu2 %2109  ;;  %6480 = vst.msk [vmem:[#allocation4 + $0xf0] sm:$0xff] %vm3421_vm8, %v6316_v53  ;;  %v3852_v58 = vsel %vm3506_vm9, %v3768_v47, %v3215_v36 }
 0x2ea   : > { %v1011_v3 = vmax.f32 %v868_v44, 0.0  ;;  %v6098_v51 = vpop.f32.mrf.mxu2  ;;  %v11943_v10 = vpop.permute.xlu0 %1936  ;;  %v11959_v44 = vsel %vm2367_vm6, %v11872_v57, %v11949_v29  ;;  %v4120_v57 = vunpack.c.l.b16 %v3852_v58  ;;  %v4123_v37 = vunpack.c.h.b16 %v3852_v58 }
 0x2eb   : > { %v7844_v48 = vld [vmem:[#allocation3 + $0x240] sm:$0xf]  ;;  %v8250_v1 = vld [vmem:[#allocation3 + $0x244] sm:$0xf]  ;;  %v6099_v42 = vadd.f32 %v6098_v51, %v5879_v21  ;;  %v5882_v13 = vpop.f32.mrf.mxu1  ;;  %v3473_v21 = vsel %vm3421_vm8, %v3388_v6, %v11833_v31  ;;  %v1820_v31 = vshrl.u32 %v11840_v22, 16  ;;  %v2826_v58 = vsel %vm2757_vm5, %v2823_v24, %v2825_v17 }
 0x2ec   : > { %2344 = vrot.lane.b32.xlu1 %v2261_v54, %s8880_s7  ;;  %v8251_v7 = vld [vmem:[#allocation3 + $0x248] sm:$0xf0]  ;;  %v7846_v25 = vld [vmem:[#allocation3 + $0x24c] sm:$0xf0]  ;;  %v1109_v12 = vpack.c.bf16 %v1011_v3, %v1011_v3 }
 0x2ed   : > { %v7845_v20 = vor.u32 %v8251_v7, %v7844_v48  ;;  %v7849_v53 = vor.u32 %v8250_v1, %v7846_v25  ;;  %v6318_v16 = vadd.f32 %v11282_v15, %v6099_v42  ;;  %v2038_v15 = vsel %vm1971_vm2, %v2035_v60, %v2037_v28  ;;  %v11968_v2 = vld [vmem:[#allocation2 + $0x124] sm:$0xff]  }
 0x2ee   : > { %v2331_v8 = vpop.permute.xlu1 %2330  ;;  %1208 = vst.msk [vmem:[#allocation2 + $0x12c] sm:$0xf] %vm1132_vm1, %v1109_v12  ;;  %v7936_v3 = vld [vmem:[#allocation3 + $0x2f0] sm:$0xf]  ;;  %v3316_v60 = vrot.slane %v11968_v2, 1  ;;  %v2686_v54 = vshll.u32 %v11968_v2, 16 }
 0x2ef   : > { %v3558_v36 = vsel %vm3506_vm9, %v3473_v21, %v2331_v8  ;;  %5921 = vmatmul.bf16.gmra.mxu1 %v7845_v20  ;;  %6481 = vst.msk [vmem:[#allocation4 + $0xf8] sm:$0xff] %vm3421_vm8, %v6318_v16  ;;  %2121 = vrot.lane.b32.xlu2 %v2038_v15, %s8878_s30  ;;  %v870_v6 = vpop.f32.mrf.mxu0  ;;  %v8273_v51 = vld [vmem:[#allocation3 + $0x2f8] sm:$0xf0]  ;;  %v11978_v48 = vrot.slane %v1824_v30, 1  ;;  %v3121_v16 = vor.u32 %v11904_v52, %v2674_v26 }
 0x2f0   : > { %v4119_v47 = vunpack.c.l.b16 %v3558_v36  ;;  %v4122_v23 = vunpack.c.h.b16 %v3558_v36  ;;  %6140 = vmatmul.bf16.gmra.mxu2 %v7849_v53  ;;  %v871_v32 = vadd.f32 %v11599_v35, %v870_v6  ;;  %3003 = vrot.lane.b32.xlu0 %v11968_v2, %s8878_s30  ;;  %v7937_v25 = vor.u32 %v8273_v51, %v7936_v3 }
 0x2f1   : > { %v3217_v7 = vpop.permute.xlu2 %3216  ;;  %v3317_v20 = vsel %vm1971_vm2, %v3314_v61, %v3316_v60  ;;  %v11995_v8 = vrot.slane %v2686_v54, 1  ;;  %v2262_v3 = vrot.slane %v11869_v63, 2 }
 0x2f2   : > { %v4321_v1 = vpack.c.b16 %v4120_v57, %v4119_v47  ;;  %v4323_v42 = vpack.c.b16 %v4123_v37, %v4122_v23  ;;  %v1012_v12 = vmax.f32 %v871_v32, 0.0  ;;  %v6101_v53 = vpop.f32.mrf.mxu2  ;;  %v2990_v30 = vpop.permute.xlu0 %2989  ;;  %v4163_v21 = vunpack.c.l.b16 %v3317_v20 }
 0x2f3   : > { %v4166_v24 = vunpack.c.h.b16 %v3317_v20  ;;  %v6102_v36 = vadd.f32 %v6101_v53, %v5882_v13  ;;  %8161 = vmatmul.msk.bf16.gmra.mxu3 %vm3336_vm7, %v7937_v25  ;;  %v5884_v15 = vpop.f32.mrf.mxu1  ;;  %v3123_v47 = vsel %vm1543_vm3, %v3121_v16, %v11995_v8  ;;  %v12001_v57 = vpop.f32.mrf.mxu3  ;;  %v1822_v37 = vor.u32 %v1820_v31, %v11885_v46  ;;  %v8852_v31 = vld [vmem:[#allocation2 + $0xd0] sm:$0xff]  }
 0x2f4   : > { %4657 = vst [vmem:[#allocation3 + $0x258] sm:$0xff] %v4321_v1  ;;  %2909 = vrot.lane.b32.xlu1 %v2826_v58, %s8879_s6  ;;  %v1110_v61 = vpack.c.bf16 %v1012_v12, %v1012_v12  ;;  %v4350_v52 = vpack.c.b16 %v4163_v21, %v4163_v21 }
 0x2f5   : > { %4659 = vst [vmem:[#allocation3 + $0x264] sm:$0xff] %v4323_v42  ;;  %v4352_v26 = vpack.c.b16 %v4166_v24, %v4166_v24  ;;  %v6321_v13 = vadd.f32 %v11337_v55, %v6102_v36  ;;  %v1827_v51 = vsel %vm1543_vm3, %v1822_v37, %v11978_v48  ;;  %v3390_v42 = vsel %vm3336_vm7, %v8852_v31, %v11943_v10 }
 0x2f6   : > { %v2896_v23 = vpop.permute.xlu1 %2895  ;;  %1209 = vst.msk [vmem:[#allocation2 + $0x130] sm:$0xf] %vm1132_vm1, %v1110_v61  ;;  %v2827_v36 = vrot.slane %v11968_v2, 3  ;;  %v12033_v61 = vld [vmem:[#allocation2 + $0x120] sm:$0xff]  }
 0x2f7   : > { %v3671_v6 = vsel %vm3336_vm7, %v11290_v19, %v2896_v23  ;;  %3228 = vrot.lane.b32.xlu2 %v3123_v47, %s8880_s7  ;;  %v873_v32 = vpop.f32.mrf.mxu0  ;;  %4686 = vst.msk [vmem:[#allocation3 + $0x308] sm:$0xf] %vm1132_vm1, %v4350_v52  ;;  %v2039_v19 = vrot.slane %v11840_v22, 1 }
 0x2f8   : > { %v3770_v1 = vsel %vm3421_vm8, %v3671_v6, %v2990_v30  ;;  %v874_v46 = vadd.f32 %v11599_v35, %v873_v32  ;;  %1952 = vrot.lane.b32.xlu0 %v1827_v51, %s8879_s6  ;;  %4688 = vst.msk [vmem:[#allocation3 + $0x314] sm:$0xf] %vm1132_vm1, %v4352_v26  ;;  %v2263_v35 = vsel %vm2194_vm4, %v2260_v62, %v2262_v3  ;;  %v2683_v62 = vshrl.u32 %v11968_v2, 16 }
 0x2f9   : > { %v12017_v55 = vpop.permute.xlu2 %2111  ;;  %6482 = vst.msk [vmem:[#allocation4 + $0x100] sm:$0xff] %vm3421_vm8, %v6321_v13  ;;  %v3854_v30 = vsel %vm3506_vm9, %v3770_v1, %v3217_v7  ;;  %v3475_v7 = vsel %vm3421_vm8, %v3390_v42, %v11932_v56  ;;  %v1828_v13 = vshrl.u32 %v11928_v34, 16  ;;  %v1832_v51 = vshll.u32 %v12033_v61, 16 }
 0x2fa   : > { %v1013_v25 = vmax.f32 %v874_v46, 0.0  ;;  %v6103_v58 = vpop.f32.mrf.mxu2  ;;  %v12028_v12 = vpop.permute.xlu0 %1938  ;;  %v4126_v32 = vunpack.c.l.b16 %v3854_v30 }
 0x2fb   : > { %v7856_v20 = vld [vmem:[#allocation3 + $0x258] sm:$0xf]  ;;  %v8253_v53 = vld [vmem:[#allocation3 + $0x25c] sm:$0xf]  ;;  %v6104_v16 = vadd.f32 %v6103_v58, %v5884_v15  ;;  %v5887_v10 = vpop.f32.mrf.mxu1  ;;  %v2040_v15 = vsel %vm1971_vm2, %v2037_v28, %v2039_v19  ;;  %v12050_v56 = vpop.f32.mrf.mxu3 }
 0x2fc   : > { %2346 = vrot.lane.b32.xlu1 %v2263_v35, %s8880_s7  ;;  %v8254_v21 = vld [vmem:[#allocation3 + $0x260] sm:$0xf0]  ;;  %v7858_v24 = vld [vmem:[#allocation3 + $0x264] sm:$0xf0]  ;;  %v1111_v47 = vpack.c.bf16 %v1013_v25, %v1013_v25  ;;  %v12059_v25 = vld [vmem:[%s12984_s2] ss:$0 sm:$0xff] }
 0x2fd   : > { %v7857_v11 = vor.u32 %v8254_v21, %v7856_v20  ;;  %v7861_v52 = vor.u32 %v8253_v53, %v7858_v24  ;;  %v6323_v26 = vadd.f32 %v11390_v14, %v6104_v16  ;;  %v12044_v37 = vld [vmem:[#allocation2 + $0x12c] sm:$0xff]   ;;  %v4129_v14 = vunpack.c.h.b16 %v3854_v30 }
 0x2fe   : > { %v2333_v23 = vpop.permute.xlu1 %2332  ;;  %1210 = vst.msk [vmem:[#allocation2 + $0x134] sm:$0xf] %vm1132_vm1, %v1111_v47  ;;  %v3318_v46 = vrot.slane %v12044_v37, 1  ;;  %v7948_v31 = vld [vmem:[#allocation3 + $0x308] sm:$0xf]  ;;  %v2695_v42 = vshll.u32 %v12044_v37, 16  ;;  %v2828_v20 = vsel %vm2757_vm5, %v2825_v17, %v2827_v36  ;;  %v3124_v53 = vor.u32 %v11995_v8, %v2683_v62 }
 0x2ff   : > { %v3560_v6 = vsel %vm3506_vm9, %v3475_v7, %v2333_v23  ;;  %5926 = vmatmul.bf16.gmra.mxu1 %v7857_v11  ;;  %6483 = vst.msk [vmem:[#allocation4 + $0x108] sm:$0xff] %vm3421_vm8, %v6323_v26  ;;  %2123 = vrot.lane.b32.xlu2 %v2040_v15, %s8878_s30  ;;  %v876_v28 = vpop.f32.mrf.mxu0  ;;  %v8276_v35 = vld [vmem:[#allocation3 + $0x310] sm:$0xf0]  ;;  %v2685_v30 = vrot.slane %v2683_v62, 2  ;;  %v2688_v62 = vrot.slane %v2686_v54, 3  ;;  %v1830_v54 = vor.u32 %v1828_v13, %v11978_v48 }
 0x300   : > { %v4125_v41 = vunpack.c.l.b16 %v3560_v6  ;;  %v4128_v1 = vunpack.c.h.b16 %v3560_v6  ;;  %6145 = vmatmul.bf16.gmra.mxu2 %v7861_v52  ;;  %v877_v58 = vadd.f32 %v12059_v25, %v876_v28  ;;  %3005 = vrot.lane.b32.xlu0 %v12044_v37, %s8878_s30  ;;  %v6802_v16 = vld [vmem:[#allocation4 + $0xfc] sm:$0xff]  ;;  %v3319_v11 = vsel %vm1971_vm2, %v3316_v60, %v3318_v46 }
 0x301   : > { %v12070_v47 = vpop.permute.xlu2 %3218  ;;  %v7949_v52 = vor.u32 %v8276_v35, %v7948_v31  ;;  %v6642_v26 = vld [vmem:[#allocation4 + $0xe1] sm:$0xff]  ;;  %v4169_v15 = vunpack.c.l.b16 %v3319_v11  ;;  %v4172_v17 = vunpack.c.h.b16 %v3319_v11  ;;  %v12083_v60 = vrot.slane %v2695_v42, 1 }
 0x302   : > { %v4325_v21 = vpack.c.b16 %v4126_v32, %v4125_v41  ;;  %v4327_v24 = vpack.c.b16 %v4129_v14, %v4128_v1  ;;  %v6882_v23 = vld [vmem:[#allocation4 + $0xfd] sm:$0xff]  ;;  %v1014_v7 = vmax.f32 %v877_v58, 0.0  ;;  %v6106_v6 = vpop.f32.mrf.mxu2  ;;  %v2992_v8 = vpop.permute.xlu0 %2991  ;;  %v12085_v1 = vrot.slane %v1832_v51, 1 }
 0x303   : > { %v6962_v32 = vmax.f32 %v6802_v16, %v6882_v23  ;;  %v6107_v14 = vadd.f32 %v6106_v6, %v5887_v10  ;;  %8162 = vmatmul.msk.bf16.gmra.mxu3 %vm3336_vm7, %v7949_v52  ;;  %v5889_v41 = vpop.f32.mrf.mxu1  ;;  %v6562_v28 = vld [vmem:[#allocation4 + $0xe0] sm:$0xff]  ;;  %v4354_v58 = vpack.c.b16 %v4169_v15, %v4169_v15  ;;  %v4356_v35 = vpack.c.b16 %v4172_v17, %v4172_v17  ;;  %v6643_v52 = vld [vmem:[#allocation4 + $0xe9] sm:$0xff] }
 0x304   : > { %4661 = vst [vmem:[#allocation3 + $0x270] sm:$0xff] %v4325_v21  ;;  %2911 = vrot.lane.b32.xlu1 %v2828_v20, %s8879_s6  ;;  %v1112_v31 = vpack.c.bf16 %v1014_v7, %v1014_v7  ;;  %v6722_v16 = vmax.f32 %v6562_v28, %v6642_v26  ;;  %v3126_v20 = vsel %vm1543_vm3, %v3124_v53, %v12083_v60  ;;  %v2692_v11 = vshrl.u32 %v12044_v37, 16  ;;  %v6563_v26 = vld [vmem:[#allocation4 + $0xe8] sm:$0xff]  ;;  %v8854_v28 = vld [vmem:[#allocation2 + $0xd8] sm:$0xff]  }
 0x305   : > { %4663 = vst [vmem:[#allocation3 + $0x27c] sm:$0xff] %v4327_v24  ;;  %v6326_v10 = vadd.f32 %v11454_v9, %v6107_v14  ;;  %v2264_v24 = vrot.slane %v11968_v2, 2  ;;  %v12096_v7 = vor.u32 %v2688_v62, %v2685_v30  ;;  %v1835_v13 = vsel %vm1543_vm3, %v1830_v54, %v12085_v1  ;;  %v12107_v62 = vpop.f32.mrf.mxu3 }
 0x306   : > { %v2898_v21 = vpop.permute.xlu1 %2897  ;;  %v6803_v23 = vld [vmem:[#allocation4 + $0x104] sm:$0xff]  ;;  %1211 = vst.msk [vmem:[#allocation2 + $0x138] sm:$0xf] %vm1132_vm1, %v1112_v31  ;;  %v7042_v53 = vmax.f32 %v6722_v16, %v6962_v32  ;;  %v2041_v30 = vrot.slane %v11928_v34, 1  ;;  %v6723_v6 = vmax.f32 %v6563_v26, %v6643_v52  ;;  %v3392_v31 = vsel %vm3336_vm7, %v8854_v28, %v12028_v12 }
 0x307   : > { %v3674_v51 = vsel %vm3336_vm7, %v11448_v40, %v2898_v21  ;;  %v6883_v48 = vld [vmem:[#allocation4 + $0x105] sm:$0xff]  ;;  %4690 = vst.msk [vmem:[#allocation3 + $0x320] sm:$0xf] %vm1132_vm1, %v4354_v58  ;;  %3230 = vrot.lane.b32.xlu2 %v3126_v20, %s8880_s7  ;;  %v879_v9 = vpop.f32.mrf.mxu0  ;;  %v12115_v32 = vsel %vm2367_vm6, %v11949_v29, %v12096_v7  ;;  %v2265_v54 = vsel %vm2194_vm4, %v2262_v3, %v2264_v24  ;;  %v2697_v21 = vrot.slane %v2695_v42, 3 }
 0x308   : > { %v6963_v15 = vmax.f32 %v6803_v23, %v6883_v48  ;;  %4692 = vst.msk [vmem:[#allocation3 + $0x32c] sm:$0xf] %vm1132_vm1, %v4356_v35  ;;  %v3772_v40 = vsel %vm3421_vm8, %v3674_v51, %v2992_v8  ;;  %v880_v17 = vadd.f32 %v12059_v25, %v879_v9  ;;  %1954 = vrot.lane.b32.xlu0 %v1835_v13, %s8879_s6  ;;  %v2694_v8 = vrot.slane %v2692_v11, 2  ;;  %v12133_v48 = vld [vmem:[#allocation2 + $0x128] sm:$0xff]  }
 0x309   : > { %6484 = vst.msk [vmem:[#allocation4 + $0x110] sm:$0xff] %vm3421_vm8, %v6326_v10  ;;  %v12110_v14 = vpop.permute.xlu2 %2113  ;;  %v3856_v20 = vsel %vm3506_vm9, %v3772_v40, %v12070_v47  ;;  %v2042_v42 = vsel %vm1971_vm2, %v2039_v19, %v2041_v30  ;;  %v3477_v40 = vsel %vm3421_vm8, %v3392_v31, %v12017_v55  ;;  %v1840_v28 = vshll.u32 %v12133_v48, 16 }
 0x30a   : > { %v1015_v58 = vmax.f32 %v880_v17, 0.0  ;;  %v6108_v35 = vpop.f32.mrf.mxu2  ;;  %v12126_v16 = vpop.permute.xlu0 %1940  ;;  %v7043_v63 = vmax.f32 %v6723_v6, %v6963_v15  ;;  %7122 = vst.msk [vmem:[#allocation5 + $0xe0] sm:$0xff] %vm3421_vm8, %v7042_v53  ;;  %v2829_v53 = vrot.slane %v12044_v37, 3  ;;  %v12149_v17 = vor.u32 %v2697_v21, %v2694_v8 }
 0x30b   : > { %v7868_v10 = vld [vmem:[#allocation3 + $0x270] sm:$0xf]  ;;  %v8256_v29 = vld [vmem:[#allocation3 + $0x274] sm:$0xf]  ;;  %v6109_v52 = vadd.f32 %v6108_v35, %v5889_v41  ;;  %v5892_v12 = vpop.f32.mrf.mxu1  ;;  %v12141_v41 = vld [vmem:[#allocation4 + $0xf1] sm:$0xff]  ;;  %v4132_v19 = vunpack.c.l.b16 %v3856_v20  ;;  %v4135_v6 = vunpack.c.h.b16 %v3856_v20 }
 0x30c   : > { %2348 = vrot.lane.b32.xlu1 %v2265_v54, %s8880_s7  ;;  %v8257_v23 = vld [vmem:[#allocation3 + $0x278] sm:$0xf0]  ;;  %v7870_v51 = vld [vmem:[#allocation3 + $0x27c] sm:$0xf0]  ;;  %v1113_v3 = vpack.c.bf16 %v1015_v58, %v1015_v58  ;;  %7123 = vst.msk [vmem:[#allocation5 + $0xe8] sm:$0xff] %vm3421_vm8, %v7043_v63 }
 0x30d   : > { %v7869_v9 = vor.u32 %v8257_v23, %v7868_v10  ;;  %v7873_v47 = vor.u32 %v8256_v29, %v7870_v51  ;;  %v6328_v13 = vadd.f32 %v11523_v4, %v6109_v52  ;;  %v12146_v15 = vld [vmem:[#allocation2 + $0x134] sm:$0xff]   ;;  %v6564_v58 = vld [vmem:[#allocation4 + $0xf0] sm:$0xff]  ;;  %v1836_v23 = vshrl.u32 %v12033_v61, 16 }
 0x30e   : > { %v2335_v26 = vpop.permute.xlu1 %2334  ;;  %1212 = vst.msk [vmem:[#allocation2 + $0x13c] sm:$0xf] %vm1132_vm1, %v1113_v3  ;;  %v7960_v4 = vld [vmem:[#allocation3 + $0x320] sm:$0xf]  ;;  %v3320_v35 = vrot.slane %v12146_v15, 1  ;;  %v2704_v10 = vshll.u32 %v12146_v15, 16  ;;  %v6724_v29 = vmax.f32 %v6564_v58, %v12141_v41  ;;  %v3127_v58 = vor.u32 %v12083_v60, %v2692_v11 }
 0x30f   : > { %v3562_v22 = vsel %vm3506_vm9, %v3477_v40, %v2335_v26  ;;  %5931 = vmatmul.bf16.gmra.mxu1 %v7869_v9  ;;  %6485 = vst.msk [vmem:[#allocation4 + $0x118] sm:$0xff] %vm3421_vm8, %v6328_v13  ;;  %2125 = vrot.lane.b32.xlu2 %v2042_v42, %s8878_s30  ;;  %v882_v8 = vpop.f32.mrf.mxu0  ;;  %v8279_v54 = vld [vmem:[#allocation3 + $0x328] sm:$0xf0]  ;;  %v1838_v11 = vor.u32 %v1836_v23, %v12085_v1  ;;  %v2043_v1 = vrot.slane %v12033_v61, 1 }
 0x310   : > { %v4131_v55 = vunpack.c.l.b16 %v3562_v22  ;;  %v4134_v31 = vunpack.c.h.b16 %v3562_v22  ;;  %6150 = vmatmul.bf16.gmra.mxu2 %v7873_v47  ;;  %v6804_v21 = vld [vmem:[#allocation4 + $0x10c] sm:$0xff]  ;;  %v883_v20 = vadd.f32 %v12059_v25, %v882_v8  ;;  %3007 = vrot.lane.b32.xlu0 %v12146_v15, %s8878_s30  ;;  %v7961_v52 = vor.u32 %v8279_v54, %v7960_v4 }
 0x311   : > { %v6884_v51 = vld [vmem:[#allocation4 + $0x10d] sm:$0xff]  ;;  %v3221_v42 = vpop.permute.xlu2 %3220  ;;  %v3321_v9 = vsel %vm1971_vm2, %v3318_v46, %v3320_v35  ;;  %v2830_v47 = vsel %vm2757_vm5, %v2827_v36, %v2829_v53  ;;  %v12183_v36 = vrot.slane %v2704_v10, 1  ;;  %v2044_v2 = vsel %vm1971_vm2, %v2041_v30, %v2043_v1 }
 0x312   : > { %v4329_v63 = vpack.c.b16 %v4132_v19, %v4131_v55  ;;  %v4331_v3 = vpack.c.b16 %v4135_v6, %v4134_v31  ;;  %v6964_v41 = vmax.f32 %v6804_v21, %v6884_v51  ;;  %v1016_v13 = vmax.f32 %v883_v20, 0.0  ;;  %v6111_v22 = vpop.f32.mrf.mxu2  ;;  %v2994_v19 = vpop.permute.xlu0 %2993 }
 0x313   : > { %v4175_v26 = vunpack.c.l.b16 %v3321_v9  ;;  %v4178_v40 = vunpack.c.h.b16 %v3321_v9  ;;  %v12174_v6 = vpop.f32.mrf.mxu3  ;;  %v6112_v4 = vadd.f32 %v6111_v22, %v5892_v12  ;;  %8163 = vmatmul.msk.bf16.gmra.mxu3 %vm3336_vm7, %v7961_v52  ;;  %v5894_v46 = vpop.f32.mrf.mxu1  ;;  %v12185_v55 = vrot.slane %v1840_v28, 1 }
 0x314   : > { %4665 = vst [vmem:[#allocation3 + $0x288] sm:$0xff] %v4329_v63  ;;  %2913 = vrot.lane.b32.xlu1 %v2830_v47, %s8879_s6  ;;  %v1114_v31 = vpack.c.bf16 %v1016_v13, %v1016_v13  ;;  %v12190_v12 = vsel %vm2367_vm6, %v12096_v7, %v12149_v17  ;;  %v3129_v60 = vsel %vm1543_vm3, %v3127_v58, %v12183_v36  ;;  %v2701_v28 = vshrl.u32 %v12146_v15, 16  ;;  %v8855_v47 = vld [vmem:[#allocation2 + $0xe0] sm:$0xff]  }
 0x315   : > { %4667 = vst [vmem:[#allocation3 + $0x294] sm:$0xff] %v4331_v3  ;;  %v4358_v8 = vpack.c.b16 %v4175_v26, %v4175_v26  ;;  %v4360_v54 = vpack.c.b16 %v4178_v40, %v4178_v40  ;;  %v6331_v21 = vadd.f32 %v11586_v43, %v6112_v4  ;;  %v2266_v51 = vrot.slane %v12044_v37, 2 }
 0x316   : > { %v2900_v20 = vpop.permute.xlu1 %2899  ;;  %1213 = vst.msk [vmem:[#allocation2 + $0x140] sm:$0xf] %vm1132_vm1, %v1114_v31  ;;  %v7044_v63 = vmax.f32 %v6724_v29, %v6964_v41  ;;  %v1843_v7 = vsel %vm1543_vm3, %v1838_v11, %v12185_v55  ;;  %v12213_v29 = vld [vmem:[#allocation2 + $0x130] sm:$0xff]   ;;  %v2703_v9 = vrot.slane %v2701_v28, 2  ;;  %v3394_v41 = vsel %vm3336_vm7, %v8855_v47, %v12126_v16 }
 0x317   : > { %v3677_v52 = vsel %vm3336_vm7, %v11528_v59, %v2900_v20  ;;  %4694 = vst.msk [vmem:[#allocation3 + $0x338] sm:$0xf] %vm1132_vm1, %v4358_v8  ;;  %3232 = vrot.lane.b32.xlu2 %v3129_v60, %s8880_s7  ;;  %v885_v43 = vpop.f32.mrf.mxu0  ;;  %v2267_v40 = vsel %vm2194_vm4, %v2264_v24, %v2266_v51  ;;  %v3479_v34 = vsel %vm3421_vm8, %v3394_v41, %v12110_v14  ;;  %v2831_v30 = vrot.slane %v12146_v15, 3 }
 0x318   : > { %4696 = vst.msk [vmem:[#allocation3 + $0x344] sm:$0xf] %vm1132_vm1, %v4360_v54  ;;  %v3774_v23 = vsel %vm3421_vm8, %v3677_v52, %v2994_v19  ;;  %v886_v3 = vadd.f32 %v12059_v25, %v885_v43  ;;  %1956 = vrot.lane.b32.xlu0 %v1843_v7, %s8879_s6  ;;  %v2706_v54 = vrot.slane %v2704_v10, 3 }
 0x319   : > { %6486 = vst.msk [vmem:[#allocation4 + $0x120] sm:$0xff] %vm3421_vm8, %v6331_v21  ;;  %v12211_v59 = vpop.permute.xlu2 %2115  ;;  %v3858_v58 = vsel %vm3506_vm9, %v3774_v23, %v3221_v42  ;;  %v1848_v42 = vshll.u32 %v12213_v29, 16 }
 0x31a   : > { %v1017_v13 = vmax.f32 %v886_v3, 0.0  ;;  %v6113_v26 = vpop.f32.mrf.mxu2  ;;  %v12224_v22 = vpop.permute.xlu0 %1942  ;;  %7124 = vst.msk [vmem:[#allocation5 + $0xf0] sm:$0xff] %vm3421_vm8, %v7044_v63  ;;  %v12245_v43 = vor.u32 %v2706_v54, %v2703_v9  ;;  %v4138_v7 = vunpack.c.l.b16 %v3858_v58  ;;  %v4141_v23 = vunpack.c.h.b16 %v3858_v58 }
 0x31b   : > { %v7880_v19 = vld [vmem:[#allocation3 + $0x288] sm:$0xf]  ;;  %v8259_v4 = vld [vmem:[#allocation3 + $0x28c] sm:$0xf]  ;;  %v6114_v31 = vadd.f32 %v6113_v26, %v5894_v46  ;;  %v5897_v16 = vpop.f32.mrf.mxu1  ;;  %v12237_v46 = vpop.f32.mrf.mxu3 }
 0x31c   : > { %2350 = vrot.lane.b32.xlu1 %v2267_v40, %s8880_s7  ;;  %v8260_v8 = vld [vmem:[#allocation3 + $0x290] sm:$0xf0]  ;;  %v7882_v24 = vld [vmem:[#allocation3 + $0x294] sm:$0xf0]  ;;  %v1115_v21 = vpack.c.bf16 %v1017_v13, %v1017_v13 }
 0x31d   : > { %v7881_v20 = vor.u32 %v8260_v8, %v7880_v19  ;;  %v7885_v60 = vor.u32 %v8259_v4, %v7882_v24  ;;  %v6333_v11 = vadd.f32 %v11644_v0, %v6114_v31  ;;  %v12242_v63 = vld [vmem:[#allocation2 + $0x13c] sm:$0xff]   ;;  %v1844_v0 = vshrl.u32 %v12133_v48, 16 }
 0x31e   : > { %v2337_v52 = vpop.permute.xlu1 %2336  ;;  %1214 = vst.msk [vmem:[#allocation2 + $0x144] sm:$0xf] %vm1132_vm1, %v1115_v21  ;;  %v7972_v3 = vld [vmem:[#allocation3 + $0x338] sm:$0xf]  ;;  %v3322_v9 = vrot.slane %v12242_v63, 1  ;;  %v2713_v26 = vshll.u32 %v12242_v63, 16  ;;  %v2832_v24 = vsel %vm2757_vm5, %v2829_v53, %v2831_v30 }
 0x31f   : > { %v3564_v10 = vsel %vm3506_vm9, %v3479_v34, %v2337_v52  ;;  %5936 = vmatmul.bf16.gmra.mxu1 %v7881_v20  ;;  %6487 = vst.msk [vmem:[#allocation4 + $0x128] sm:$0xff] %vm3421_vm8, %v6333_v11  ;;  %2127 = vrot.lane.b32.xlu2 %v2044_v2, %s8878_s30  ;;  %v888_v41 = vpop.f32.mrf.mxu0  ;;  %v8282_v13 = vld [vmem:[#allocation3 + $0x340] sm:$0xf0]  ;;  %v12257_v4 = vrot.slane %v1848_v42, 1  ;;  %v2710_v53 = vshrl.u32 %v12242_v63, 16 }
 0x320   : > { %v4137_v47 = vunpack.c.l.b16 %v3564_v10  ;;  %v4140_v14 = vunpack.c.h.b16 %v3564_v10  ;;  %6155 = vmatmul.bf16.gmra.mxu2 %v7885_v60  ;;  %v889_v40 = vadd.f32 %v12059_v25, %v888_v41  ;;  %3009 = vrot.lane.b32.xlu0 %v12242_v63, %s8878_s30  ;;  %v7973_v19 = vor.u32 %v8282_v13, %v7972_v3 }
 0x321   : > { %v3223_v8 = vpop.permute.xlu2 %3222  ;;  %v3323_v2 = vsel %vm1971_vm2, %v3320_v35, %v3322_v9  ;;  %v3130_v35 = vor.u32 %v12183_v36, %v2701_v28  ;;  %v12274_v34 = vrot.slane %v2713_v26, 1  ;;  %v2268_v36 = vrot.slane %v12146_v15, 2 }
 0x322   : > { %v4333_v58 = vpack.c.b16 %v4138_v7, %v4137_v47  ;;  %v4335_v31 = vpack.c.b16 %v4141_v23, %v4140_v14  ;;  %v1018_v54 = vmax.f32 %v889_v40, 0.0  ;;  %v4181_v21 = vunpack.c.l.b16 %v3323_v2  ;;  %v6116_v60 = vpop.f32.mrf.mxu2  ;;  %v2996_v42 = vpop.permute.xlu0 %2995 }
 0x323   : > { %v4184_v20 = vunpack.c.h.b16 %v3323_v2  ;;  %v6117_v11 = vadd.f32 %v6116_v60, %v5897_v16  ;;  %8164 = vmatmul.msk.bf16.gmra.mxu3 %vm3336_vm7, %v7973_v19  ;;  %v5899_v52 = vpop.f32.mrf.mxu1  ;;  %v3132_v16 = vsel %vm1543_vm3, %v3130_v35, %v12274_v34  ;;  %v1846_v47 = vor.u32 %v1844_v0, %v12185_v55  ;;  %v12289_v13 = vpop.f32.mrf.mxu3  ;;  %v8856_v2 = vld [vmem:[#allocation2 + $0xe8] sm:$0xff]  }
 0x324   : > { %4669 = vst [vmem:[#allocation3 + $0x2a0] sm:$0xff] %v4333_v58  ;;  %2915 = vrot.lane.b32.xlu1 %v2832_v24, %s8879_s6  ;;  %v1116_v10 = vpack.c.bf16 %v1018_v54, %v1018_v54  ;;  %v4362_v7 = vpack.c.b16 %v4181_v21, %v4181_v21  ;;  %v12287_v28 = vsel %vm2367_vm6, %v12149_v17, %v12245_v43  ;;  %v12300_v17 = vld [vmem:[#allocation2 + $0x138] sm:$0xff]   ;;  %v2045_v58 = vrot.slane %v12133_v48, 1 }
 0x325   : > { %4671 = vst [vmem:[#allocation3 + $0x2ac] sm:$0xff] %v4335_v31  ;;  %v4364_v23 = vpack.c.b16 %v4184_v20, %v4184_v20  ;;  %v6336_v14 = vadd.f32 %v11719_v50, %v6117_v11  ;;  %v1851_v50 = vsel %vm1543_vm3, %v1846_v47, %v12257_v4  ;;  %v2715_v31 = vrot.slane %v2713_v26, 3 }
 0x326   : > { %v2902_v3 = vpop.permute.xlu1 %2901  ;;  %1215 = vst.msk [vmem:[#allocation2 + $0x148] sm:$0xf] %vm1132_vm1, %v1116_v10  ;;  %v3396_v24 = vsel %vm3336_vm7, %v8856_v2, %v12224_v22  ;;  %v2269_v20 = vsel %vm2194_vm4, %v2266_v51, %v2268_v36  ;;  %v1860_v48 = vshrl.u32 %v12300_v17, 16 }
 0x327   : > { %v3680_v41 = vsel %vm3336_vm7, %v11635_v38, %v2902_v3  ;;  %3234 = vrot.lane.b32.xlu2 %v3132_v16, %s8880_s7  ;;  %v891_v40 = vpop.f32.mrf.mxu0  ;;  %v2712_v38 = vrot.slane %v2710_v53, 2  ;;  %4698 = vst.msk [vmem:[#allocation3 + $0x350] sm:$0xf] %vm1132_vm1, %v4362_v7  ;;  %v1856_v7 = vshll.u32 %v12300_v17, 16 }
 0x328   : > { %v892_v55 = vadd.f32 %v12059_v25, %v891_v40  ;;  %1958 = vrot.lane.b32.xlu0 %v1851_v50, %s8879_s6  ;;  %4700 = vst.msk [vmem:[#allocation3 + $0x35c] sm:$0xf] %vm1132_vm1, %v4364_v23  ;;  %v3776_v0 = vsel %vm3421_vm8, %v3680_v41, %v2996_v42  ;;  %v2833_v41 = vrot.slane %v12242_v63, 3 }
 0x329   : > { %v12304_v19 = vpop.permute.xlu2 %2117  ;;  %6488 = vst.msk [vmem:[#allocation4 + $0x130] sm:$0xff] %vm3421_vm8, %v6336_v14  ;;  %v12319_v23 = vor.u32 %v2715_v31, %v2712_v38  ;;  %v3860_v3 = vsel %vm3506_vm9, %v3776_v0, %v3223_v8 }
 0x32a   : > { %v1019_v54 = vmax.f32 %v892_v55, 0.0  ;;  %v6118_v21 = vpop.f32.mrf.mxu2  ;;  %v12315_v60 = vpop.permute.xlu0 %1944  ;;  %v4147_v0 = vunpack.c.h.b16 %v3860_v3 }
 0x32b   : > { %v7892_v42 = vld [vmem:[#allocation3 + $0x2a0] sm:$0xf]  ;;  %v8262_v11 = vld [vmem:[#allocation3 + $0x2a4] sm:$0xf]  ;;  %v6119_v35 = vadd.f32 %v6118_v21, %v5899_v52  ;;  %v3481_v52 = vsel %vm3421_vm8, %v3396_v24, %v12211_v59  ;;  %v12329_v40 = vsel %vm2367_vm6, %v12245_v43, %v12319_v23  ;;  %v1852_v59 = vshrl.u32 %v12213_v29, 16 }
 0x32c   : > { %2352 = vrot.lane.b32.xlu1 %v2269_v20, %s8880_s7  ;;  %v5902_v26 = vpop.f32.mrf.mxu1  ;;  %v8263_v10 = vld [vmem:[#allocation3 + $0x2a8] sm:$0xf0]  ;;  %v7894_v22 = vld [vmem:[#allocation3 + $0x2ac] sm:$0xf0]  ;;  %v1117_v16 = vpack.c.bf16 %v1019_v54, %v1019_v54  ;;  %v4144_v43 = vunpack.c.l.b16 %v3860_v3  ;;  %v12348_v21 = vrot.slane %v1856_v7, 1  ;;  %v12350_v20 = vpop.f32.mrf.mxu3 }
 0x32d   : > { %v7893_v37 = vor.u32 %v8263_v10, %v7892_v42  ;;  %v7897_v47 = vor.u32 %v8262_v11, %v7894_v22  ;;  %v6338_v51 = vadd.f32 %v11766_v27, %v6119_v35  ;;  %v2046_v27 = vsel %vm1971_vm2, %v2043_v1, %v2045_v58  ;;  %v12338_v50 = vld [vmem:[#allocation2 + $0x144] sm:$0xff]  }
 0x32e   : > { %v2339_v14 = vpop.permute.xlu1 %2338  ;;  %1216 = vst.msk [vmem:[#allocation2 + $0x14c] sm:$0xf] %vm1132_vm1, %v1117_v16  ;;  %v7984_v2 = vld [vmem:[#allocation3 + $0x350] sm:$0xf]  ;;  %v3324_v1 = vrot.slane %v12338_v50, 1  ;;  %v2722_v54 = vshll.u32 %v12338_v50, 16  ;;  %v2834_v22 = vsel %vm2757_vm5, %v2831_v30, %v2833_v41 }
 0x32f   : > { %v3566_v8 = vsel %vm3506_vm9, %v3481_v52, %v2339_v14  ;;  %5941 = vmatmul.bf16.gmra.mxu1 %v7893_v37  ;;  %6489 = vst.msk [vmem:[#allocation4 + $0x138] sm:$0xff] %vm3421_vm8, %v6338_v51  ;;  %2129 = vrot.lane.b32.xlu2 %v2046_v27, %s8878_s30  ;;  %v894_v31 = vpop.f32.mrf.mxu0  ;;  %v8285_v24 = vld [vmem:[#allocation3 + $0x358] sm:$0xf0] }
 0x330   : > { %v4143_v38 = vunpack.c.l.b16 %v3566_v8  ;;  %v4146_v55 = vunpack.c.h.b16 %v3566_v8  ;;  %6160 = vmatmul.bf16.gmra.mxu2 %v7897_v47  ;;  %v895_v61 = vadd.f32 %v12059_v25, %v894_v31  ;;  %3011 = vrot.lane.b32.xlu0 %v12338_v50, %s8878_s30  ;;  %v7985_v10 = vor.u32 %v8285_v24, %v7984_v2 }
 0x331   : > { %v3225_v35 = vpop.permute.xlu2 %3224  ;;  %v3325_v7 = vsel %vm1971_vm2, %v3322_v9, %v3324_v1  ;;  %v3133_v47 = vor.u32 %v12274_v34, %v2710_v53  ;;  %v12367_v51 = vrot.slane %v2722_v54, 1  ;;  %v6649_v9 = vld [vmem:[#allocation4 + $0x119] sm:$0xff] }
 0x332   : > { %v4337_v42 = vpack.c.b16 %v4144_v43, %v4143_v38  ;;  %v4339_v11 = vpack.c.b16 %v4147_v0, %v4146_v55  ;;  %v1020_v3 = vmax.f32 %v895_v61, 0.0  ;;  %v2998_v37 = vpop.permute.xlu0 %2997  ;;  %v4187_v14 = vunpack.c.l.b16 %v3325_v7  ;;  %v6569_v0 = vld [vmem:[#allocation4 + $0x118] sm:$0xff] }
 0x333   : > { %v6121_v16 = vpop.f32.mrf.mxu2  ;;  %v4190_v30 = vunpack.c.h.b16 %v3325_v7  ;;  %8165 = vmatmul.msk.bf16.gmra.mxu3 %vm3336_vm7, %v7985_v10  ;;  %v3135_v38 = vsel %vm1543_vm3, %v3133_v47, %v12367_v51  ;;  %v1854_v55 = vor.u32 %v1852_v59, %v12257_v4  ;;  %v2270_v61 = vrot.slane %v12242_v63, 2  ;;  %v12391_v7 = vld [vmem:[#allocation2 + $0x140] sm:$0xff]  }
 0x334   : > { %4673 = vst [vmem:[#allocation3 + $0x2b8] sm:$0xff] %v4337_v42  ;;  %v6122_v52 = vadd.f32 %v6121_v16, %v5902_v26  ;;  %2917 = vrot.lane.b32.xlu1 %v2834_v22, %s8879_s6  ;;  %v5904_v8 = vpop.f32.mrf.mxu1  ;;  %v1118_v27 = vpack.c.bf16 %v1020_v3, %v1020_v3  ;;  %v4366_v34 = vpack.c.b16 %v4187_v14, %v4187_v14  ;;  %v2047_v4 = vrot.slane %v12213_v29, 1  ;;  %v8857_v16 = vld [vmem:[#allocation2 + $0xf0] sm:$0xff]  }
 0x335   : > { %4675 = vst [vmem:[#allocation3 + $0x2c4] sm:$0xff] %v4339_v11  ;;  %v4368_v53 = vpack.c.b16 %v4190_v30, %v4190_v30  ;;  %v6729_v24 = vmax.f32 %v6569_v0, %v6649_v9  ;;  %v1859_v10 = vsel %vm1543_vm3, %v1854_v55, %v12348_v21  ;;  %v2835_v3 = vrot.slane %v12338_v50, 3 }
 0x336   : > { %v2904_v43 = vpop.permute.xlu1 %2903  ;;  %v6809_v31 = vld [vmem:[#allocation4 + $0x134] sm:$0xff]  ;;  %1217 = vst.msk [vmem:[#allocation2 + $0x150] sm:$0xf] %vm1132_vm1, %v1118_v27  ;;  %v6341_v26 = vadd.f32 %v11821_v39, %v6122_v52  ;;  %v3398_v47 = vsel %vm3336_vm7, %v8857_v16, %v12315_v60  ;;  %v2271_v30 = vsel %vm2194_vm4, %v2268_v36, %v2270_v61  ;;  %v2048_v15 = vsel %vm1971_vm2, %v2045_v58, %v2047_v4 }
 0x337   : > { %v3683_v2 = vsel %vm3336_vm7, %v11679_v49, %v2904_v43  ;;  %v6889_v42 = vld [vmem:[#allocation4 + $0x135] sm:$0xff]  ;;  %3236 = vrot.lane.b32.xlu2 %v3135_v38, %s8880_s7  ;;  %v897_v11 = vpop.f32.mrf.mxu0  ;;  %4702 = vst.msk [vmem:[#allocation3 + $0x368] sm:$0xf] %vm1132_vm1, %v4366_v34  ;;  %v12403_v34 = vpop.f32.mrf.mxu3  ;;  %v1864_v58 = vshll.u32 %v12391_v7, 16 }
 0x338   : > { %v6969_v59 = vmax.f32 %v6809_v31, %v6889_v42  ;;  %v3778_v39 = vsel %vm3421_vm8, %v3683_v2, %v2998_v37  ;;  %v898_v22 = vadd.f32 %v12059_v25, %v897_v11  ;;  %1960 = vrot.lane.b32.xlu0 %v1859_v10, %s8879_s6  ;;  %4704 = vst.msk [vmem:[#allocation3 + $0x374] sm:$0xf] %vm1132_vm1, %v4368_v53  ;;  %v2719_v2 = vshrl.u32 %v12338_v50, 16 }
 0x339   : > { %v12388_v49 = vpop.permute.xlu2 %2119  ;;  %6490 = vst.msk [vmem:[#allocation4 + $0x140] sm:$0xff] %vm3421_vm8, %v6341_v26  ;;  %v3862_v53 = vsel %vm3506_vm9, %v3778_v39, %v3225_v35 }
 0x33a   : > { %v1021_v14 = vmax.f32 %v898_v22, 0.0  ;;  %v12401_v52 = vpop.permute.xlu0 %1946  ;;  %v7049_v38 = vmax.f32 %v6729_v24, %v6969_v59  ;;  %v3483_v24 = vsel %vm3421_vm8, %v3398_v47, %v12304_v19  ;;  %v4150_v10 = vunpack.c.l.b16 %v3862_v53 }
 0x33b   : > { %v6123_v37 = vpop.f32.mrf.mxu2  ;;  %v7904_v9 = vld [vmem:[#allocation3 + $0x2b8] sm:$0xf]  ;;  %v8265_v27 = vld [vmem:[#allocation3 + $0x2bc] sm:$0xf]  ;;  %v4153_v59 = vunpack.c.h.b16 %v3862_v53 }
 0x33c   : > { %v6124_v60 = vadd.f32 %v6123_v37, %v5904_v8  ;;  %2354 = vrot.lane.b32.xlu1 %v2271_v30, %s8880_s7  ;;  %v5907_v43 = vpop.f32.mrf.mxu1  ;;  %v8266_v36 = vld [vmem:[#allocation3 + $0x2c0] sm:$0xf0]  ;;  %v7906_v55 = vld [vmem:[#allocation3 + $0x2c4] sm:$0xf0]  ;;  %v1119_v0 = vpack.c.bf16 %v1021_v14, %v1021_v14  ;;  %7129 = vst.msk [vmem:[#allocation5 + $0x118] sm:$0xff] %vm3421_vm8, %v7049_v38 }
 0x33d   : > { %v7905_v31 = vor.u32 %v8266_v36, %v7904_v9  ;;  %v7909_v26 = vor.u32 %v8265_v27, %v7906_v55  ;;  %v12417_v42 = vld [vmem:[#allocation2 + $0x14c] sm:$0xff]  ;;  %v2721_v9 = vrot.slane %v2719_v2, 2  ;;  %v2724_v27 = vrot.slane %v2722_v54, 3 }
 0x33e   : > { %v6343_v35 = vadd.f32 %v11887_v33, %v6124_v60  ;;  %v2341_v8 = vpop.permute.xlu1 %2340  ;;  %1218 = vst.msk [vmem:[#allocation2 + $0x154] sm:$0xf] %vm1132_vm1, %v1119_v0  ;;  %v2836_v33 = vsel %vm2757_vm5, %v2833_v41, %v2835_v3  ;;  %v3326_v16 = vrot.slane %v12417_v42, 1  ;;  %v7996_v47 = vld [vmem:[#allocation3 + $0x368] sm:$0xf]  ;;  %v2731_v14 = vshll.u32 %v12417_v42, 16 }
 0x33f   : > { %v3568_v11 = vsel %vm3506_vm9, %v3483_v24, %v2341_v8  ;;  %5946 = vmatmul.bf16.gmra.mxu1 %v7905_v31  ;;  %2131 = vrot.lane.b32.xlu2 %v2048_v15, %s8878_s30  ;;  %v900_v22 = vpop.f32.mrf.mxu0  ;;  %v8288_v30 = vld [vmem:[#allocation3 + $0x370] sm:$0xf0]  ;;  %v3136_v41 = vor.u32 %v12367_v51, %v2719_v2  ;;  %v2728_v54 = vshrl.u32 %v12417_v42, 16 }
 0x340   : > { %6491 = vst.msk [vmem:[#allocation4 + $0x148] sm:$0xff] %vm3421_vm8, %v6343_v35  ;;  %v4149_v19 = vunpack.c.l.b16 %v3568_v11  ;;  %v4152_v39 = vunpack.c.h.b16 %v3568_v11  ;;  %6165 = vmatmul.bf16.gmra.mxu2 %v7909_v26  ;;  %v901_v37 = vadd.f32 %v12059_v25, %v900_v22  ;;  %3013 = vrot.lane.b32.xlu0 %v12417_v42, %s8878_s30  ;;  %v6810_v38 = vld [vmem:[#allocation4 + $0x13c] sm:$0xff]  ;;  %v3327_v36 = vsel %vm1971_vm2, %v3324_v1, %v3326_v16 }
 0x341   : > { %v12438_v15 = vpop.permute.xlu2 %3226  ;;  %v7997_v55 = vor.u32 %v8288_v30, %v7996_v47  ;;  %v6650_v0 = vld [vmem:[#allocation4 + $0x121] sm:$0xff]  ;;  %v4193_v51 = vunpack.c.l.b16 %v3327_v36  ;;  %v4196_v2 = vunpack.c.h.b16 %v3327_v36  ;;  %v12450_v1 = vrot.slane %v1864_v58, 1 }
 0x342   : > { %v4341_v53 = vpack.c.b16 %v4150_v10, %v4149_v19  ;;  %v4343_v60 = vpack.c.b16 %v4153_v59, %v4152_v39  ;;  %v6890_v31 = vld [vmem:[#allocation4 + $0x13d] sm:$0xff]  ;;  %v1022_v26 = vmax.f32 %v901_v37, 0.0  ;;  %v3000_v8 = vpop.permute.xlu0 %2999  ;;  %v12448_v59 = vrot.slane %v2731_v14, 1  ;;  %v6651_v39 = vld [vmem:[#allocation4 + $0x129] sm:$0xff] }
 0x343   : > { %v6126_v35 = vpop.f32.mrf.mxu2  ;;  %v6970_v24 = vmax.f32 %v6810_v38, %v6890_v31  ;;  %8166 = vmatmul.msk.bf16.gmra.mxu3 %vm3336_vm7, %v7997_v55  ;;  %v6570_v19 = vld [vmem:[#allocation4 + $0x120] sm:$0xff]  ;;  %v4370_v47 = vpack.c.b16 %v4193_v51, %v4193_v51  ;;  %v4372_v37 = vpack.c.b16 %v4196_v2, %v4196_v2  ;;  %v1862_v30 = vor.u32 %v1860_v48, %v12348_v21  ;;  %v6571_v55 = vld [vmem:[#allocation4 + $0x128] sm:$0xff] }
 0x344   : > { %4677 = vst [vmem:[#allocation3 + $0x2d0] sm:$0xff] %v4341_v53  ;;  %v6127_v11 = vadd.f32 %v6126_v35, %v5907_v43  ;;  %2919 = vrot.lane.b32.xlu1 %v2836_v33, %s8879_s6  ;;  %v5909_v10 = vpop.f32.mrf.mxu1  ;;  %v1120_v22 = vpack.c.bf16 %v1022_v26, %v1022_v26  ;;  %v6730_v38 = vmax.f32 %v6570_v19, %v6650_v0  ;;  %v12453_v53 = vpop.f32.mrf.mxu3  ;;  %v2272_v58 = vrot.slane %v12338_v50, 2 }
 0x345   : > { %4679 = vst [vmem:[#allocation3 + $0x2dc] sm:$0xff] %v4343_v60  ;;  %v3138_v33 = vsel %vm1543_vm3, %v3136_v41, %v12448_v59  ;;  %v2049_v21 = vrot.slane %v12300_v17, 1  ;;  %v2725_v48 = vor.u32 %v2724_v27, %v2721_v9  ;;  %v2730_v0 = vrot.slane %v2728_v54, 2  ;;  %v12473_v27 = vld [vmem:[#allocation2 + $0x16c] sm:$0x1] }
 0x346   : > { %v6346_v43 = vadd.f32 %v11945_v45, %v6127_v11  ;;  %v2906_v36 = vpop.permute.xlu1 %2905  ;;  %1219 = vst.msk [vmem:[#allocation2 + $0x158] sm:$0xf] %vm1132_vm1, %v1120_v22  ;;  %v6731_v45 = vmax.f32 %v6571_v55, %v6651_v39  ;;  %v1867_v51 = vsel %vm1543_vm3, %v1862_v30, %v12450_v1  ;;  %v7050_v2 = vmax.f32 %v6730_v38, %v6970_v24 }
 0x347   : > { %v6811_v31 = vld [vmem:[#allocation4 + $0x144] sm:$0xff]  ;;  %v3686_v60 = vsel %vm3336_vm7, %v11845_v18, %v2906_v36  ;;  %4706 = vst.msk [vmem:[#allocation3 + $0x380] sm:$0xf] %vm1132_vm1, %v4370_v47  ;;  %3238 = vrot.lane.b32.xlu2 %v3138_v33, %s8880_s7  ;;  %v903_v41 = vpop.f32.mrf.mxu0  ;;  %v2733_v35 = vrot.slane %v2731_v14, 3  ;;  %v2273_v14 = vsel %vm2194_vm4, %v2270_v61, %v2272_v58  ;;  %v1868_v24 = vshrl.u32 %v12391_v7, 16 }
 0x348   : > { %v6891_v26 = vld [vmem:[#allocation4 + $0x145] sm:$0xff]  ;;  %4708 = vst.msk [vmem:[#allocation3 + $0x38c] sm:$0xf] %vm1132_vm1, %v4372_v37  ;;  %v3780_v18 = vsel %vm3421_vm8, %v3686_v60, %v3000_v8  ;;  %v904_v9 = vadd.f32 %v12059_v25, %v903_v41  ;;  %1962 = vrot.lane.b32.xlu0 %v1867_v51, %s8879_s6  ;;  %v12486_v8 = vsel %vm2367_vm6, %v12319_v23, %v2725_v48  ;;  %v3022_v60 = vunpack.c.l.b16 %v12473_v27  ;;  %v1315_v51 = vld [vmem:[#allocation2 + $0x150] sm:$0x1] }
 0x349   : > { %v6971_v11 = vmax.f32 %v6811_v31, %v6891_v26  ;;  %6492 = vst.msk [vmem:[#allocation4 + $0x150] sm:$0xff] %vm3421_vm8, %v6346_v43  ;;  %v12476_v19 = vpop.permute.xlu2 %2121  ;;  %v8858_v25 = vld [vmem:[#allocation2 + $0xf8] sm:$0xff]   ;;  %v12492_v63 = vor.u32 %v2733_v35, %v2730_v0  ;;  %v3864_v61 = vsel %vm3506_vm9, %v3780_v18, %v12438_v15  ;;  %v12502_v31 = vld [vmem:[#allocation2 + $0x148] sm:$0xff]  }
 0x34a   : > { %v3400_v39 = vsel %vm3336_vm7, %v8858_v25, %v12401_v52  ;;  %v1023_v22 = vmax.f32 %v904_v9, 0.0  ;;  %v12490_v37 = vpop.permute.xlu0 %1948  ;;  %v2050_v52 = vsel %vm1971_vm2, %v2047_v4, %v2049_v21  ;;  %7130 = vst.msk [vmem:[#allocation5 + $0x120] sm:$0xff] %vm3421_vm8, %v7050_v2  ;;  %v4159_v18 = vunpack.c.h.b16 %v3864_v61 }
 0x34b   : > { %v6128_v47 = vpop.f32.mrf.mxu2  ;;  %v7916_v30 = vld [vmem:[#allocation3 + $0x2d0] sm:$0xf]  ;;  %v8268_v38 = vld [vmem:[#allocation3 + $0x2d4] sm:$0xf]  ;;  %v7051_v43 = vmax.f32 %v6731_v45, %v6971_v11  ;;  %v2837_v45 = vrot.slane %v12417_v42, 3  ;;  %v3485_v4 = vsel %vm3421_vm8, %v3400_v39, %v12388_v49  ;;  %v12515_v35 = vsel %vm2367_vm6, %v2725_v48, %v12492_v63 }
 0x34c   : > { %v6129_v36 = vadd.f32 %v6128_v47, %v5909_v10  ;;  %2356 = vrot.lane.b32.xlu1 %v2273_v14, %s8880_s7  ;;  %v5912_v23 = vpop.f32.mrf.mxu1  ;;  %v8269_v33 = vld [vmem:[#allocation3 + $0x2d8] sm:$0xf0]  ;;  %v7918_v55 = vld [vmem:[#allocation3 + $0x2dc] sm:$0xf0]  ;;  %v1121_v0 = vpack.c.bf16 %v1023_v22, %v1023_v22  ;;  %v4156_v11 = vunpack.c.l.b16 %v3864_v61  ;;  %v12520_v14 = vpop.f32.mrf.mxu3 }
 0x34d   : > { %v7917_v15 = vor.u32 %v8269_v33, %v7916_v30  ;;  %v7921_v10 = vor.u32 %v8268_v38, %v7918_v55  ;;  %7131 = vst.msk [vmem:[#allocation5 + $0x128] sm:$0xff] %vm3421_vm8, %v7051_v43  ;;  %v12511_v41 = vld [vmem:[#allocation2 + $0x154] sm:$0xff]  ;;  %v8859_v30 = vld [vmem:[%s12984_s2] ss:$0 sm:$0xff]  ;;  %v2838_v61 = vsel %vm2757_vm5, %v2835_v3, %v2837_v45 }
 0x34e   : > { %v6348_v26 = vadd.f32 %v12001_v57, %v6129_v36  ;;  %v2343_v29 = vpop.permute.xlu1 %2342  ;;  %1220 = vst.msk [vmem:[#allocation2 + $0x15c] sm:$0xf] %vm1132_vm1, %v1121_v0  ;;  %v8008_v9 = vld [vmem:[#allocation3 + $0x380] sm:$0xf]  ;;  %v1872_v57 = vshll.u32 %v12502_v31, 16  ;;  %v2740_v22 = vshll.u32 %v12511_v41, 16  ;;  %v1541_v36 = vunpack.c.l.b16 %v1315_v51 }
 0x34f   : > { %v3570_v2 = vsel %vm3506_vm9, %v3485_v4, %v2343_v29  ;;  %5951 = vmatmul.bf16.gmra.mxu1 %v7917_v15  ;;  %2133 = vrot.lane.b32.xlu2 %v2050_v52, %s8878_s30  ;;  %v906_v48 = vpop.f32.mrf.mxu0  ;;  %v8291_v39 = vld [vmem:[#allocation3 + $0x388] sm:$0xf0]  ;;  %v3328_v47 = vrot.slane %v12511_v41, 1  ;;  %v3139_v0 = vor.u32 %v12448_v59, %v2728_v54  ;;  %v2737_v4 = vshrl.u32 %v12511_v41, 16 }
 0x350   : > { %6493 = vst.msk [vmem:[#allocation4 + $0x158] sm:$0xff] %vm3421_vm8, %v6348_v26  ;;  %v4155_v49 = vunpack.c.l.b16 %v3570_v2  ;;  %v4158_v25 = vunpack.c.h.b16 %v3570_v2  ;;  %6170 = vmatmul.bf16.gmra.mxu2 %v7921_v10  ;;  %v907_v38 = vadd.f32 %v8859_v30, %v906_v48  ;;  %3015 = vrot.lane.b32.xlu0 %v12511_v41, %s8878_s30  ;;  %v8009_v43 = vor.u32 %v8291_v39, %v8008_v9 }
 0x351   : > { %v12536_v55 = vpop.permute.xlu2 %3228  ;;  %v12541_v15 = vrot.slane %v2740_v22, 1  ;;  %v3329_v3 = vsel %vm1971_vm2, %v3326_v16, %v3328_v47  ;;  %v12551_v59 = vrot.slane %v1872_v57, 1  ;;  %v2274_v16 = vrot.slane %v12417_v42, 2 }
 0x352   : > { %v4345_v52 = vpack.c.b16 %v4156_v11, %v4155_v49  ;;  %v4347_v33 = vpack.c.b16 %v4159_v18, %v4158_v25  ;;  %v1024_v10 = vmax.f32 %v907_v38, 0.0  ;;  %v3002_v29 = vpop.permute.xlu0 %3001  ;;  %v4199_v2 = vunpack.c.l.b16 %v3329_v3 }
 0x353   : > { %v6131_v26 = vpop.f32.mrf.mxu2  ;;  %8167 = vmatmul.msk.bf16.gmra.mxu3 %vm3336_vm7, %v8009_v43  ;;  %v4202_v11 = vunpack.c.h.b16 %v3329_v3  ;;  %v3141_v9 = vsel %vm1543_vm3, %v3139_v0, %v12541_v15  ;;  %v12560_v39 = vpack.c.b16 %v1541_v36, %v1541_v36  ;;  %v2051_v43 = vrot.slane %v12391_v7, 1 }
 0x354   : > { %4681 = vst [vmem:[#allocation3 + $0x2e8] sm:$0xff] %v4345_v52  ;;  %v6132_v51 = vadd.f32 %v6131_v26, %v5912_v23  ;;  %2921 = vrot.lane.b32.xlu1 %v2838_v61, %s8879_s6  ;;  %v5914_v54 = vpop.f32.mrf.mxu1  ;;  %v1122_v18 = vpack.c.bf16 %v1024_v10, %v1024_v10  ;;  %v1870_v23 = vor.u32 %v1868_v24, %v12450_v1  ;;  %v2739_v52 = vrot.slane %v2737_v4, 2  ;;  %v12578_v0 = vpop.f32.mrf.mxu3  ;;  %v8860_v10 = vld [vmem:[#allocation2 + $0x100] sm:$0xff]  }
 0x355   : > { %4683 = vst [vmem:[#allocation3 + $0x2f4] sm:$0xff] %v4347_v33  ;;  %v4374_v48 = vpack.c.b16 %v4199_v2, %v4199_v2  ;;  %v1322_v57 = vld [vmem:[#allocation2 + $0x15c] sm:$0x7]  ;;  %v4376_v24 = vpack.c.b16 %v4202_v11, %v4202_v11  ;;  %v2742_v36 = vrot.slane %v2740_v22, 3  ;;  %v3402_v26 = vsel %vm3336_vm7, %v8860_v10, %v12490_v37 }
 0x356   : > { %v6351_v49 = vadd.f32 %v12050_v56, %v6132_v51  ;;  %v2908_v25 = vpop.permute.xlu1 %2907  ;;  %v2365_v61 = vunpack.c.l.b16 %v1322_v57  ;;  %1221 = vst.msk [vmem:[#allocation2 + $0x160] sm:$0xf] %vm1132_vm1, %v1122_v18  ;;  %v1875_v1 = vsel %vm1543_vm3, %v1870_v23, %v12551_v59  ;;  %v1880_v51 = vshll.u32 %v12560_v39, 16 }
 0x357   : > { %v3689_v38 = vsel %vm3336_vm7, %v11917_v5, %v2908_v25  ;;  %3240 = vrot.lane.b32.xlu2 %v3141_v9, %s8880_s7  ;;  %v909_v56 = vpop.f32.mrf.mxu0  ;;  %v2275_v5 = vsel %vm2194_vm4, %v2272_v58, %v2274_v16  ;;  %4710 = vst.msk [vmem:[#allocation3 + $0x398] sm:$0xf] %vm1132_vm1, %v4374_v48  ;;  %v2052_v25 = vsel %vm1971_vm2, %v2049_v21, %v2051_v43 }
 0x358   : > { %6494 = vst.msk [vmem:[#allocation4 + $0x160] sm:$0xff] %vm3421_vm8, %v6351_v49  ;;  %v910_v33 = vadd.f32 %v8859_v30, %v909_v56  ;;  %1964 = vrot.lane.b32.xlu0 %v1875_v1, %s8879_s6  ;;  %v3782_v3 = vsel %vm3421_vm8, %v3689_v38, %v3002_v29  ;;  %v2839_v30 = vrot.slane %v12511_v41, 3  ;;  %v12590_v9 = vpack.c.b16 %v2365_v61, %v2365_v61 }
 0x359   : > { %v12583_v22 = vpop.permute.xlu2 %2123  ;;  %v12592_v49 = vor.u32 %v2742_v36, %v2739_v52  ;;  %4712 = vst.msk [vmem:[#allocation3 + $0x3a4] sm:$0xf] %vm1132_vm1, %v4376_v24  ;;  %v12604_v57 = vpack.c.b16 %v3022_v60, %v3022_v60  ;;  %v3487_v21 = vsel %vm3421_vm8, %v3402_v26, %v12476_v19  ;;  %v1876_v1 = vshrl.u32 %v12502_v31, 16 }
 0x35a   : > { %v1025_v2 = vmax.f32 %v910_v33, 0.0  ;;  %v12588_v11 = vpop.permute.xlu0 %1950  ;;  %v2749_v24 = vshll.u32 %v12590_v9, 16  ;;  %v2840_v10 = vsel %vm2757_vm5, %v2837_v45, %v2839_v30 }
 0x35b   : > { %v6133_v50 = vpop.f32.mrf.mxu2  ;;  %v7928_v58 = vld [vmem:[#allocation3 + $0x2e8] sm:$0xf]  ;;  %v8271_v18 = vld [vmem:[#allocation3 + $0x2ec] sm:$0xf]  ;;  %v12615_v27 = vsel %vm2367_vm6, %v12492_v63, %v12592_v49 }
 0x35c   : > { %v6134_v37 = vadd.f32 %v6133_v50, %v5914_v54  ;;  %2358 = vrot.lane.b32.xlu1 %v2275_v5, %s8880_s7  ;;  %v5917_v29 = vpop.f32.mrf.mxu1  ;;  %v8272_v23 = vld [vmem:[#allocation3 + $0x2f0] sm:$0xf0]  ;;  %v7930_v48 = vld [vmem:[#allocation3 + $0x2f4] sm:$0xf0]  ;;  %v3866_v54 = vsel %vm3506_vm9, %v3782_v3, %v12536_v55  ;;  %v1123_v38 = vpack.c.bf16 %v1025_v2, %v1025_v2  ;;  %v1882_v3 = vrot.slane %v1880_v51, 1  ;;  %v12642_v51 = vpop.f32.mrf.mxu3 }
 0x35d   : > { %v7929_v61 = vor.u32 %v8272_v23, %v7928_v58  ;;  %v7933_v52 = vor.u32 %v8271_v18, %v7930_v48  ;;  %v12619_v55 = vld [vmem:[#allocation2 + $0x15c] sm:$0xff]  ;;  %v4162_v36 = vunpack.c.l.b16 %v3866_v54  ;;  %v4165_v5 = vunpack.c.h.b16 %v3866_v54 }
 0x35e   : > { %v6353_v56 = vadd.f32 %v12107_v62, %v6134_v37  ;;  %v2345_v17 = vpop.permute.xlu1 %2344  ;;  %1222 = vst.msk [vmem:[#allocation2 + $0x164] sm:$0xf] %vm1132_vm1, %v1123_v38  ;;  %v2746_v62 = vshrl.u32 %v12590_v9, 16  ;;  %v3330_v63 = vrot.slane %v12619_v55, 1  ;;  %v3144_v26 = vshll.u32 %v12619_v55, 16 }
 0x35f   : > { %v3572_v60 = vsel %vm3506_vm9, %v3487_v21, %v2345_v17  ;;  %5956 = vmatmul.bf16.gmra.mxu1 %v7929_v61  ;;  %2135 = vrot.lane.b32.xlu2 %v2052_v25, %s8878_s30  ;;  %v8020_v18 = vld [vmem:[#allocation3 + $0x398] sm:$0xf]  ;;  %v3142_v38 = vor.u32 %v12541_v15, %v2737_v4  ;;  %v2751_v61 = vrot.slane %v2749_v24, 3 }
 0x360   : > { %6495 = vst.msk [vmem:[#allocation4 + $0x168] sm:$0xff] %vm3421_vm8, %v6353_v56  ;;  %v4161_v19 = vunpack.c.l.b16 %v3572_v60  ;;  %v4164_v33 = vunpack.c.h.b16 %v3572_v60  ;;  %6175 = vmatmul.bf16.gmra.mxu2 %v7933_v52  ;;  %3017 = vrot.lane.b32.xlu0 %v12619_v55, %s8878_s30  ;;  %v2748_v37 = vrot.slane %v2746_v62, 2  ;;  %v3331_v25 = vsel %vm1971_vm2, %v3328_v47, %v3330_v63  ;;  %v8294_v48 = vld [vmem:[#allocation3 + $0x3a0] sm:$0xf0] }
 0x361   : > { %v3231_v58 = vpop.permute.xlu2 %3230  ;;  %v12640_v45 = vrot.slane %v3144_v26, 1  ;;  %v4205_v52 = vunpack.c.l.b16 %v3331_v25  ;;  %v4208_v56 = vunpack.c.h.b16 %v3331_v25  ;;  %v8021_v47 = vor.u32 %v8294_v48, %v8020_v18 }
 0x362   : > { %v4349_v2 = vpack.c.b16 %v4162_v36, %v4161_v19  ;;  %v4351_v50 = vpack.c.b16 %v4165_v5, %v4164_v33  ;;  %v3004_v54 = vpop.permute.xlu0 %3003  ;;  %v1878_v62 = vor.u32 %v1876_v1, %v12551_v59  ;;  %v2752_v15 = vor.u32 %v2751_v61, %v2748_v37 }
 0x363   : > { %v6136_v23 = vpop.f32.mrf.mxu2  ;;  %v3147_v60 = vsel %vm1543_vm3, %v3142_v38, %v12640_v45  ;;  %v4378_v4 = vpack.c.b16 %v4205_v52, %v4205_v52  ;;  %v4380_v19 = vpack.c.b16 %v4208_v56, %v4208_v56  ;;  %v2276_v33 = vrot.slane %v12511_v41, 2  ;;  %8168 = vmatmul.msk.bf16.gmra.mxu3 %vm3336_vm7, %v8021_v47 }
 0x364   : > { %4685 = vst [vmem:[#allocation3 + $0x300] sm:$0xff] %v4349_v2  ;;  %v6137_v17 = vadd.f32 %v6136_v23, %v5917_v29  ;;  %2923 = vrot.lane.b32.xlu1 %v2840_v10, %s8879_s6  ;;  %v5919_v21 = vpop.f32.mrf.mxu1  ;;  %v12657_v10 = vsel %vm2367_vm6, %v12592_v49, %v2752_v15  ;;  %v2053_v59 = vrot.slane %v12502_v31, 1  ;;  %v3334_v49 = vrot.slane %v12604_v57, 1  ;;  %v8861_v2 = vld [vmem:[#allocation2 + $0x108] sm:$0xff]  }
 0x365   : > { %4687 = vst [vmem:[#allocation3 + $0x30c] sm:$0xff] %v4351_v50  ;;  %v12650_v5 = vld [vmem:[#allocation2 + $0x164] sm:$0xff]  ;;  %v3404_v50 = vsel %vm3336_vm7, %v8861_v2, %v12588_v11  ;;  %v2277_v18 = vsel %vm2194_vm4, %v2274_v16, %v2276_v33 }
 0x366   : > { %v6356_v24 = vadd.f32 %v12174_v6, %v6137_v17  ;;  %v2910_v36 = vpop.permute.xlu1 %2909  ;;  %4714 = vst.msk [vmem:[#allocation3 + $0x3b0] sm:$0xf] %vm1132_vm1, %v4378_v4  ;;  %v1883_v6 = vsel %vm1543_vm3, %v1878_v62, %v1882_v3  ;;  %v3332_v1 = vrot.slane %v12650_v5, 1  ;;  %v2054_v42 = vsel %vm1971_vm2, %v2051_v43, %v2053_v59 }
 0x367   : > { %v3692_v29 = vsel %vm3336_vm7, %v11959_v44, %v2910_v36  ;;  %3242 = vrot.lane.b32.xlu2 %v3147_v60, %s8880_s7  ;;  %4716 = vst.msk [vmem:[#allocation3 + $0x3bc] sm:$0xf] %vm1132_vm1, %v4380_v19  ;;  %v1321_v44 = vld [vmem:[#allocation2 + $0x15c] sm:$0x3]  ;;  %v12689_v19 = vpop.f32.mrf.mxu3  ;;  %v2841_v36 = vrot.slane %v12590_v9, 3  ;;  %v3156_v31 = vshrl.u32 %v12650_v5, 16 }
 0x368   : > { %v3784_v26 = vsel %vm3421_vm8, %v3692_v29, %v3004_v54  ;;  %1966 = vrot.lane.b32.xlu0 %v1883_v6, %s8879_s6  ;;  %6496 = vst.msk [vmem:[#allocation4 + $0x170] sm:$0xff] %vm3421_vm8, %v6356_v24  ;;  %v3333_v37 = vsel %vm1971_vm2, %v3330_v63, %v3332_v1  ;;  %v3335_v11 = vsel %vm1971_vm2, %v3332_v1, %v3334_v49  ;;  %v2150_v47 = vunpack.c.l.b16 %v1321_v44  ;;  %v6656_v29 = vld [vmem:[#allocation4 + $0x151] sm:$0xff]  ;;  %v6658_v41 = vld [vmem:[#allocation4 + $0x161] sm:$0xff] }
 0x369   : > { %v12671_v3 = vpop.permute.xlu2 %2125  ;;  %v4211_v38 = vunpack.c.l.b16 %v3333_v37  ;;  %v4214_v61 = vunpack.c.h.b16 %v3333_v37  ;;  %v3868_v52 = vsel %vm3506_vm9, %v3784_v26, %v3231_v58  ;;  %v3489_v24 = vsel %vm3421_vm8, %v3404_v50, %v12583_v22  ;;  %v6576_v50 = vld [vmem:[#allocation4 + $0x150] sm:$0xff] }
 0x36a   : > { %v12679_v23 = vpop.permute.xlu0 %1952  ;;  %v4217_v7 = vunpack.c.l.b16 %v3335_v11  ;;  %v4168_v6 = vunpack.c.l.b16 %v3868_v52  ;;  %v3152_v1 = vshll.u32 %v12650_v5, 16  ;;  %v4220_v26 = vunpack.c.h.b16 %v3335_v11 }
 0x36b   : > { %v6138_v25 = vpop.f32.mrf.mxu2  ;;  %v7940_v48 = vld [vmem:[#allocation3 + $0x300] sm:$0xf]  ;;  %v8274_v54 = vld [vmem:[#allocation3 + $0x304] sm:$0xf]  ;;  %v4382_v15 = vpack.c.b16 %v4211_v38, %v4211_v38  ;;  %v4384_v4 = vpack.c.b16 %v4214_v61, %v4214_v61  ;;  %v4171_v49 = vunpack.c.h.b16 %v3868_v52  ;;  %v3148_v37 = vshrl.u32 %v12619_v55, 16 }
 0x36c   : > { %v6139_v56 = vadd.f32 %v6138_v25, %v5919_v21  ;;  %2360 = vrot.lane.b32.xlu1 %v2277_v18, %s8880_s7  ;;  %v5922_v17 = vpop.f32.mrf.mxu1  ;;  %v8275_v16 = vld [vmem:[#allocation3 + $0x308] sm:$0xf0]  ;;  %v7942_v63 = vld [vmem:[#allocation3 + $0x30c] sm:$0xf0]  ;;  %v4386_v2 = vpack.c.b16 %v4217_v7, %v4217_v7  ;;  %v4388_v25 = vpack.c.b16 %v4220_v26, %v4220_v26  ;;  %v2193_v52 = vpack.c.b16 %v2150_v47, %v2150_v47 }
 0x36d   : > { %v7941_v60 = vor.u32 %v8275_v16, %v7940_v48  ;;  %v7945_v62 = vor.u32 %v8274_v54, %v7942_v63  ;;  %4718 = vst.msk [vmem:[#allocation3 + $0x3c8] sm:$0xf] %vm1132_vm1, %v4382_v15  ;;  %v8032_v22 = vld [vmem:[#allocation3 + $0x3b0] sm:$0xf]  ;;  %v6736_v48 = vmax.f32 %v6576_v50, %v6656_v29  ;;  %v2842_v63 = vsel %vm2757_vm5, %v2839_v30, %v2841_v36 }
 0x36e   : > { %v6358_v58 = vadd.f32 %v12237_v46, %v6139_v56  ;;  %v2347_v21 = vpop.permute.xlu1 %2346  ;;  %v8297_v9 = vld [vmem:[#allocation3 + $0x3b8] sm:$0xf0]  ;;  %4720 = vst.msk [vmem:[#allocation3 + $0x3d4] sm:$0xf] %vm1132_vm1, %v4384_v4  ;;  %v3150_v47 = vor.u32 %v3148_v37, %v12640_v45  ;;  %v2278_v36 = vrot.slane %v2193_v52, 2  ;;  %v6577_v45 = vld [vmem:[#allocation4 + $0x158] sm:$0xff] }
 0x36f   : > { %v3574_v43 = vsel %vm3506_vm9, %v3489_v24, %v2347_v21  ;;  %5961 = vmatmul.bf16.gmra.mxu1 %v7941_v60  ;;  %2137 = vrot.lane.b32.xlu2 %v2054_v42, %s8878_s30  ;;  %v6816_v18 = vld [vmem:[#allocation4 + $0x16c] sm:$0xff]  ;;  %4722 = vst.msk [vmem:[#allocation3 + $0x3e0] sm:$0xf] %vm1132_vm1, %v4386_v2  ;;  %v8033_v16 = vor.u32 %v8297_v9, %v8032_v22  ;;  %v12720_v29 = vpop.f32.mrf.mxu3  ;;  %v2055_v2 = vrot.slane %v12560_v39, 1 }
 0x370   : > { %6497 = vst.msk [vmem:[#allocation4 + $0x178] sm:$0xff] %vm3421_vm8, %v6358_v58  ;;  %v4167_v46 = vunpack.c.l.b16 %v3574_v43  ;;  %v4170_v44 = vunpack.c.h.b16 %v3574_v43  ;;  %6180 = vmatmul.bf16.gmra.mxu2 %v7945_v62  ;;  %3019 = vrot.lane.b32.xlu0 %v12650_v5, %s8878_s30  ;;  %v6896_v54 = vld [vmem:[#allocation4 + $0x16d] sm:$0xff]  ;;  %v12708_v62 = vrot.slane %v3152_v1, 1  ;;  %v6657_v58 = vld [vmem:[#allocation4 + $0x159] sm:$0xff]  ;;  %v2279_v22 = vsel %vm2194_vm4, %v2276_v33, %v2278_v36 }
 0x371   : > { %v3233_v11 = vpop.permute.xlu2 %3232  ;;  %v6976_v56 = vmax.f32 %v6816_v18, %v6896_v54  ;;  %4724 = vst.msk [vmem:[#allocation3 + $0x3ec] sm:$0xf] %vm1132_vm1, %v4388_v25 }
 0x372   : > { %v4353_v38 = vpack.c.b16 %v4168_v6, %v4167_v46  ;;  %v4355_v61 = vpack.c.b16 %v4171_v49, %v4170_v44  ;;  %v3006_v60 = vpop.permute.xlu0 %3005  ;;  %v6737_v6 = vmax.f32 %v6577_v45, %v6657_v58  ;;  %v8862_v46 = vld [vmem:[#allocation2 + $0x110] sm:$0xff]  }
 0x373   : > { %v6141_v42 = vpop.f32.mrf.mxu2  ;;  %v7056_v4 = vmax.f32 %v6736_v48, %v6976_v56  ;;  %8169 = vmatmul.msk.bf16.gmra.mxu3 %vm3336_vm7, %v8033_v16  ;;  %v3406_v44 = vsel %vm3336_vm7, %v8862_v46, %v12679_v23 }
 0x374   : > { %4689 = vst [vmem:[#allocation3 + $0x318] sm:$0xff] %v4353_v38  ;;  %v6142_v55 = vadd.f32 %v6141_v42, %v5922_v17  ;;  %2925 = vrot.lane.b32.xlu1 %v2842_v63, %s8879_s6  ;;  %v5924_v15 = vpop.f32.mrf.mxu1  ;;  %v3155_v17 = vsel %vm1543_vm3, %v3150_v47, %v12708_v62  ;;  %v3491_v39 = vsel %vm3421_vm8, %v3406_v44, %v12671_v3  ;;  %v7231_v3 = vld [vmem:[#allocation5 + $0xaa] ss:$4 sm:$0x3f] }
 0x375   : > { %4691 = vst [vmem:[#allocation3 + $0x324] sm:$0xff] %v4355_v61  ;;  %v2056_v63 = vsel %vm1971_vm2, %v2053_v59, %v2055_v2  ;;  %v3160_v59 = vshll.u32 %v12604_v57, 16  ;;  %v8300_v36 = vld [vmem:[#allocation3 + $0x3d0] sm:$0xf0] }
 0x376   : > { %v6361_v21 = vadd.f32 %v12289_v13, %v6142_v55  ;;  %v2912_v24 = vpop.permute.xlu1 %2911  ;;  %7136 = vst.msk [vmem:[#allocation5 + $0x150] sm:$0xff] %vm3421_vm8, %v7056_v4  ;;  %v7193_v13 = vld [vmem:[#allocation5 + $0x3a] ss:$4 sm:$0x3f] }
 0x377   : > { %v6817_v7 = vld [vmem:[#allocation4 + $0x174] sm:$0xff]  ;;  %v3695_v30 = vsel %vm3336_vm7, %v12115_v32, %v2912_v24  ;;  %3244 = vrot.lane.b32.xlu2 %v3155_v17, %s8880_s7  ;;  %v3162_v46 = vrot.slane %v3160_v59, 1 }
 0x378   : > { %v6897_v43 = vld [vmem:[#allocation4 + $0x175] sm:$0xff]  ;;  %6498 = vst.msk [vmem:[#allocation4 + $0x180] sm:$0xff] %vm3421_vm8, %v6361_v21  ;;  %7195 = vrot.lane.b32.xlu0 %v7193_v13, %s8878_s30  ;;  %v3786_v32 = vsel %vm3421_vm8, %v3695_v30, %v3006_v60  ;;  %v12751_v21 = vpop.f32.mrf.mxu3 }
 0x379   : > { %v6977_v1 = vmax.f32 %v6817_v7, %v6897_v43  ;;  %v12726_v26 = vpop.permute.xlu2 %2127  ;;  %v3870_v23 = vsel %vm3506_vm9, %v3786_v32, %v3233_v11  ;;  %v6578_v11 = vld [vmem:[#allocation4 + $0x160] sm:$0xff]  ;;  %v8044_v17 = vld [vmem:[#allocation3 + $0x3c8] sm:$0xf] }
 0x37a   : > { %v12733_v9 = vpop.permute.xlu0 %1954  ;;  %v6738_v4 = vmax.f32 %v6578_v11, %v6658_v41  ;;  %v7212_v43 = vld [vmem:[#allocation5 + $0x72] ss:$4 sm:$0x3f]  ;;  %v8045_v57 = vor.u32 %v8300_v36, %v8044_v17 }
 0x37b   : > { %v6143_v49 = vpop.f32.mrf.mxu2  ;;  %v7952_v50 = vld [vmem:[#allocation3 + $0x318] sm:$0xf]  ;;  %v8277_v18 = vld [vmem:[#allocation3 + $0x31c] sm:$0xf]  ;;  %v7057_v37 = vmax.f32 %v6737_v6, %v6977_v1  ;;  %v3158_v6 = vor.u32 %v3156_v31, %v12708_v62 }
 0x37c   : > { %v6144_v25 = vadd.f32 %v6143_v49, %v5924_v15  ;;  %2362 = vrot.lane.b32.xlu1 %v2279_v22, %s8880_s7  ;;  %v5927_v48 = vpop.f32.mrf.mxu1  ;;  %v8278_v54 = vld [vmem:[#allocation3 + $0x320] sm:$0xf0]  ;;  %v7954_v38 = vld [vmem:[#allocation3 + $0x324] sm:$0xf0]  ;;  %v4174_v15 = vunpack.c.l.b16 %v3870_v23 }
 0x37d   : > { %v7953_v61 = vor.u32 %v8278_v54, %v7952_v50  ;;  %v7957_v52 = vor.u32 %v8277_v18, %v7954_v38  ;;  %7137 = vst.msk [vmem:[#allocation5 + $0x158] sm:$0xff] %vm3421_vm8, %v7057_v37  ;;  %v3163_v62 = vsel %vm1543_vm3, %v3158_v6, %v3162_v46  ;;  %v8863_v18 = vld [vmem:[#allocation2 + $0x118] sm:$0xff]   ;;  %v8864_v6 = vld [vmem:[#allocation2 + $0x120] sm:$0xff]  }
 0x37e   : > { %v6363_v33 = vadd.f32 %v12350_v20, %v6144_v25  ;;  %v2349_v56 = vpop.permute.xlu1 %2348  ;;  %v4177_v20 = vunpack.c.h.b16 %v3870_v23  ;;  %v7260_v11 = vld [vmem:[#allocation5 + $0x11a] ss:$4 sm:$0x3f] }
 0x37f   : > { %v6818_v42 = vld [vmem:[#allocation4 + $0x17c] sm:$0xff]  ;;  %v3576_v16 = vsel %vm3506_vm9, %v3491_v39, %v2349_v56  ;;  %5966 = vmatmul.bf16.gmra.mxu1 %v7953_v61  ;;  %2139 = vrot.lane.b32.xlu2 %v2056_v63, %s8878_s30 }
 0x380   : > { %v6898_v60 = vld [vmem:[#allocation4 + $0x17d] sm:$0xff]  ;;  %6499 = vst.msk [vmem:[#allocation4 + $0x188] sm:$0xff] %vm3421_vm8, %v6363_v33  ;;  %v4173_v55 = vunpack.c.l.b16 %v3576_v16  ;;  %v4176_v47 = vunpack.c.h.b16 %v3576_v16  ;;  %6185 = vmatmul.bf16.gmra.mxu2 %v7957_v52  ;;  %7233 = vrot.lane.b32.xlu0 %v7231_v3, %s8878_s30  ;;  %v12768_v52 = vpop.f32.mrf.mxu3 }
 0x381   : > { %v6978_v58 = vmax.f32 %v6818_v42, %v6898_v60  ;;  %v3235_v30 = vpop.permute.xlu2 %3234 }
 0x382   : > { %v4357_v24 = vpack.c.b16 %v4174_v15, %v4173_v55  ;;  %v4359_v7 = vpack.c.b16 %v4177_v20, %v4176_v47  ;;  %v3008_v13 = vpop.permute.xlu0 %3007 }
 0x383   : > { %v6146_v45 = vpop.f32.mrf.mxu2  ;;  %v7058_v1 = vmax.f32 %v6738_v4, %v6978_v58  ;;  %8170 = vmatmul.msk.bf16.gmra.mxu3 %vm3336_vm7, %v8045_v57  ;;  %v8056_v4 = vld [vmem:[#allocation3 + $0x3e0] sm:$0xf]  ;;  %v8303_v58 = vld [vmem:[#allocation3 + $0x3e8] sm:$0xf0] }
 0x384   : > { %4693 = vst [vmem:[#allocation3 + $0x330] sm:$0xff] %v4357_v24  ;;  %v6147_v32 = vadd.f32 %v6146_v45, %v5927_v48  ;;  %7214 = vrot.lane.b32.xlu1 %v7212_v43, %s8878_s30  ;;  %v5929_v5 = vpop.f32.mrf.mxu1 }
 0x385   : > { %4695 = vst [vmem:[#allocation3 + $0x33c] sm:$0xff] %v4359_v7  ;;  %v8057_v7 = vor.u32 %v8303_v58, %v8056_v4 }
 0x386   : > { %v6366_v44 = vadd.f32 %v12403_v34, %v6147_v32  ;;  %v2914_v49 = vpop.permute.xlu1 %2913  ;;  %7138 = vst.msk [vmem:[#allocation5 + $0x160] sm:$0xff] %vm3421_vm8, %v7058_v1  ;;  %v3408_v34 = vsel %vm3336_vm7, %v8863_v18, %v12733_v9 }
 0x387   : > { %v3698_v22 = vsel %vm3336_vm7, %v12190_v12, %v2914_v49  ;;  %3246 = vrot.lane.b32.xlu2 %v3163_v62, %s8880_s7  ;;  %v3493_v16 = vsel %vm3421_vm8, %v3408_v34, %v12726_v26 }
 0x388   : > { %6500 = vst.msk [vmem:[#allocation4 + $0x190] sm:$0xff] %vm3421_vm8, %v6366_v44  ;;  %v3788_v2 = vsel %vm3421_vm8, %v3698_v22, %v3008_v13  ;;  %v12779_v36 = vpop.f32.mrf.mxu3 }
 0x389   : > { %v12764_v50 = vpop.permute.xlu2 %2129  ;;  %v3872_v41 = vsel %vm3506_vm9, %v3788_v2, %v3235_v30 }
 0x38a   : > { %v1957_v25 = vpop.permute.xlu0 %1956  ;;  %v4180_v55 = vunpack.c.l.b16 %v3872_v41  ;;  %v4183_v47 = vunpack.c.h.b16 %v3872_v41 }
 0x38b   : > { %v6148_v37 = vpop.f32.mrf.mxu2  ;;  %v7964_v48 = vld [vmem:[#allocation3 + $0x330] sm:$0xf]  ;;  %v8280_v54 = vld [vmem:[#allocation3 + $0x334] sm:$0xf]  ;;  %v3410_v1 = vsel %vm3336_vm7, %v8864_v6, %v1957_v25 }
 0x38c   : > { %v6149_v38 = vadd.f32 %v6148_v37, %v5929_v5  ;;  %v5932_v12 = vpop.f32.mrf.mxu1  ;;  %v8281_v23 = vld [vmem:[#allocation3 + $0x338] sm:$0xf0]  ;;  %v7966_v61 = vld [vmem:[#allocation3 + $0x33c] sm:$0xf0]  ;;  %v3495_v18 = vsel %vm3421_vm8, %v3410_v1, %v12764_v50 }
 0x38d   : > { %v7279_v33 = vld [vmem:[#allocation5 + $0x152] ss:$4 sm:$0x3f]  ;;  %v7965_v56 = vor.u32 %v8281_v23, %v7964_v48  ;;  %v7969_v39 = vor.u32 %v8280_v54, %v7966_v61 }
 0x38e   : > { %v6368_v42 = vadd.f32 %v12453_v53, %v6149_v38  ;;  %7281 = vrot.lane.b32.xlu0 %v7279_v33, %s8878_s30  ;;  %v2351_v9 = vpop.permute.xlu1 %2350 }
 0x38f   : > { %v3578_v63 = vsel %vm3506_vm9, %v3493_v16, %v2351_v9  ;;  %5971 = vmatmul.bf16.gmra.mxu1 %v7965_v56  ;;  %7262 = vrot.lane.b32.xlu2 %v7260_v11, %s8878_s30  ;;  %v6583_v11 = vld [vmem:[#allocation4 + $0x188] sm:$0xff] }
 0x390   : > { %6501 = vst.msk [vmem:[#allocation4 + $0x198] sm:$0xff] %vm3421_vm8, %v6368_v42  ;;  %v4179_v60 = vunpack.c.l.b16 %v3578_v63  ;;  %v4182_v15 = vunpack.c.h.b16 %v3578_v63  ;;  %6190 = vmatmul.bf16.gmra.mxu2 %v7969_v39  ;;  %v6663_v39 = vld [vmem:[#allocation4 + $0x189] sm:$0xff] }
 0x391   : > { %v3237_v3 = vpop.permute.xlu2 %3236 }
 0x392   : > { %v4361_v53 = vpack.c.b16 %v4180_v55, %v4179_v60  ;;  %v4363_v20 = vpack.c.b16 %v4183_v47, %v4182_v15  ;;  %v3010_v26 = vpop.permute.xlu0 %3009  ;;  %v6743_v55 = vmax.f32 %v6583_v11, %v6663_v39  ;;  %v12799_v47 = vpop.f32.mrf.mxu3 }
 0x393   : > { %v6151_v31 = vpop.f32.mrf.mxu2  ;;  %8171 = vmatmul.msk.bf16.gmra.mxu3 %vm3336_vm7, %v8057_v7 }
 0x394   : > { %4697 = vst [vmem:[#allocation3 + $0x348] sm:$0xff] %v4361_v53  ;;  %v6152_v59 = vadd.f32 %v6151_v31, %v5932_v12  ;;  %v5934_v24 = vpop.f32.mrf.mxu1 }
 0x395   : > { %4699 = vst [vmem:[#allocation3 + $0x354] sm:$0xff] %v4363_v20 }
 0x396   : > { %v6371_v30 = vadd.f32 %v12520_v14, %v6152_v59  ;;  %v2916_v17 = vpop.permute.xlu1 %2915 }
 0x397   : > { %v3701_v45 = vsel %vm3336_vm7, %v12287_v28, %v2916_v17 }
 0x398   : > { %6502 = vst.msk [vmem:[#allocation4 + $0x1a0] sm:$0xff] %vm3421_vm8, %v6371_v30  ;;  %v3790_v43 = vsel %vm3421_vm8, %v3701_v45, %v3010_v26  ;;  %v6664_v45 = vld [vmem:[#allocation4 + $0x191] sm:$0xff] }
 0x399   : > { %v12786_v13 = vpop.permute.xlu2 %2131  ;;  %v3874_v49 = vsel %vm3506_vm9, %v3790_v43, %v3237_v3  ;;  %v8865_v3 = vld [vmem:[#allocation2 + $0x128] sm:$0xff]  }
 0x39a   : > { %v1959_v5 = vpop.permute.xlu0 %1958  ;;  %v4186_v54 = vunpack.c.l.b16 %v3874_v49  ;;  %v4189_v12 = vunpack.c.h.b16 %v3874_v49 }
 0x39b   : > { %v6153_v32 = vpop.f32.mrf.mxu2  ;;  %v7976_v14 = vld [vmem:[#allocation3 + $0x348] sm:$0xf]  ;;  %v8283_v57 = vld [vmem:[#allocation3 + $0x34c] sm:$0xf] }
 0x39c   : > { %v6154_v46 = vadd.f32 %v6153_v32, %v5934_v24  ;;  %v5937_v44 = vpop.f32.mrf.mxu1  ;;  %v8284_v22 = vld [vmem:[#allocation3 + $0x350] sm:$0xf0]  ;;  %v7978_v62 = vld [vmem:[#allocation3 + $0x354] sm:$0xf0] }
 0x39d   : > { %v7977_v34 = vor.u32 %v8284_v22, %v7976_v14  ;;  %v7981_v37 = vor.u32 %v8283_v57, %v7978_v62 }
 0x39e   : > { %v6373_v28 = vadd.f32 %v12578_v0, %v6154_v46  ;;  %v2353_v2 = vpop.permute.xlu1 %2352  ;;  %v6584_v46 = vld [vmem:[#allocation4 + $0x190] sm:$0xff] }
 0x39f   : > { %v3580_v25 = vsel %vm3506_vm9, %v3495_v18, %v2353_v2  ;;  %5976 = vmatmul.bf16.gmra.mxu1 %v7977_v34 }
 0x3a0   : > { %6503 = vst.msk [vmem:[#allocation4 + $0x1a8] sm:$0xff] %vm3421_vm8, %v6373_v28  ;;  %v4185_v48 = vunpack.c.l.b16 %v3580_v25  ;;  %v4188_v38 = vunpack.c.h.b16 %v3580_v25  ;;  %6195 = vmatmul.bf16.gmra.mxu2 %v7981_v37 }
 0x3a1   : > { %v3239_v41 = vpop.permute.xlu2 %3238 }
 0x3a2   : > { %v4365_v23 = vpack.c.b16 %v4186_v54, %v4185_v48  ;;  %v4367_v61 = vpack.c.b16 %v4189_v12, %v4188_v38  ;;  %v3012_v33 = vpop.permute.xlu0 %3011  ;;  %v12812_v54 = vpop.f32.mrf.mxu3 }
 0x3a3   : > { %v6156_v0 = vpop.f32.mrf.mxu2 }
 0x3a4   : > { %4701 = vst [vmem:[#allocation3 + $0x360] sm:$0xff] %v4365_v23  ;;  %v6157_v56 = vadd.f32 %v6156_v0, %v5937_v44  ;;  %v5939_v50 = vpop.f32.mrf.mxu1  ;;  %v6665_v23 = vld [vmem:[#allocation4 + $0x199] sm:$0xff] }
 0x3a5   : > { %4703 = vst [vmem:[#allocation3 + $0x36c] sm:$0xff] %v4367_v61 }
 0x3a6   : > { %v6376_v42 = vadd.f32 %v12642_v51, %v6157_v56  ;;  %v2918_v9 = vpop.permute.xlu1 %2917  ;;  %v3412_v51 = vsel %vm3336_vm7, %v8865_v3, %v1959_v5  ;;  %v6585_v56 = vld [vmem:[#allocation4 + $0x198] sm:$0xff] }
 0x3a7   : > { %v6823_v16 = vld [vmem:[#allocation4 + $0x1a4] sm:$0xff]  ;;  %v3704_v63 = vsel %vm3336_vm7, %v12329_v40, %v2918_v9  ;;  %v3497_v1 = vsel %vm3421_vm8, %v3412_v51, %v12786_v13  ;;  %v6745_v39 = vmax.f32 %v6585_v56, %v6665_v23 }
 0x3a8   : > { %v6903_v60 = vld [vmem:[#allocation4 + $0x1a5] sm:$0xff]  ;;  %6504 = vst.msk [vmem:[#allocation4 + $0x1b0] sm:$0xff] %vm3421_vm8, %v6376_v42  ;;  %v3792_v53 = vsel %vm3421_vm8, %v3704_v63, %v3012_v33  ;;  %v8866_v63 = vld [vmem:[#allocation2 + $0x130] sm:$0xff]  }
 0x3a9   : > { %v6983_v15 = vmax.f32 %v6823_v16, %v6903_v60  ;;  %v12802_v20 = vpop.permute.xlu2 %2133  ;;  %v3876_v7 = vsel %vm3506_vm9, %v3792_v53, %v3239_v41 }
 0x3aa   : > { %v1961_v58 = vpop.permute.xlu0 %1960  ;;  %v4192_v22 = vunpack.c.l.b16 %v3876_v7  ;;  %v4195_v28 = vunpack.c.h.b16 %v3876_v7 }
 0x3ab   : > { %v6158_v4 = vpop.f32.mrf.mxu2  ;;  %v7988_v31 = vld [vmem:[#allocation3 + $0x360] sm:$0xf]  ;;  %v8286_v26 = vld [vmem:[#allocation3 + $0x364] sm:$0xf]  ;;  %v7063_v40 = vmax.f32 %v6743_v55, %v6983_v15  ;;  %v3414_v11 = vsel %vm3336_vm7, %v8866_v63, %v1961_v58 }
 0x3ac   : > { %v6159_v59 = vadd.f32 %v6158_v4, %v5939_v50  ;;  %v5942_v24 = vpop.f32.mrf.mxu1  ;;  %v8287_v30 = vld [vmem:[#allocation3 + $0x368] sm:$0xf0]  ;;  %v7990_v17 = vld [vmem:[#allocation3 + $0x36c] sm:$0xf0]  ;;  %v3499_v7 = vsel %vm3421_vm8, %v3414_v11, %v12802_v20 }
 0x3ad   : > { %7143 = vst.msk [vmem:[#allocation5 + $0x188] sm:$0xff] %vm3421_vm8, %v7063_v40  ;;  %v7989_v32 = vor.u32 %v8287_v30, %v7988_v31  ;;  %v7993_v5 = vor.u32 %v8286_v26, %v7990_v17 }
 0x3ae   : > { %v6378_v43 = vadd.f32 %v12689_v19, %v6159_v59  ;;  %v2355_v6 = vpop.permute.xlu1 %2354  ;;  %v6744_v19 = vmax.f32 %v6584_v46, %v6664_v45  ;;  %v12823_v59 = vpop.f32.mrf.mxu3 }
 0x3af   : > { %v6824_v14 = vld [vmem:[#allocation4 + $0x1ac] sm:$0xff]  ;;  %v3582_v57 = vsel %vm3506_vm9, %v3497_v1, %v2355_v6  ;;  %5981 = vmatmul.bf16.gmra.mxu1 %v7989_v32 }
 0x3b0   : > { %v6904_v44 = vld [vmem:[#allocation4 + $0x1ad] sm:$0xff]  ;;  %6505 = vst.msk [vmem:[#allocation4 + $0x1b8] sm:$0xff] %vm3421_vm8, %v6378_v43  ;;  %v4191_v49 = vunpack.c.l.b16 %v3582_v57  ;;  %v4194_v62 = vunpack.c.h.b16 %v3582_v57  ;;  %6200 = vmatmul.bf16.gmra.mxu2 %v7993_v5 }
 0x3b1   : > { %v6984_v2 = vmax.f32 %v6824_v14, %v6904_v44  ;;  %v3241_v13 = vpop.permute.xlu2 %3240 }
 0x3b2   : > { %v4369_v18 = vpack.c.b16 %v4192_v22, %v4191_v49  ;;  %v4371_v34 = vpack.c.b16 %v4195_v28, %v4194_v62  ;;  %v3014_v25 = vpop.permute.xlu0 %3013 }
 0x3b3   : > { %v6161_v37 = vpop.f32.mrf.mxu2  ;;  %v7064_v48 = vmax.f32 %v6744_v19, %v6984_v2  ;;  %v8867_v2 = vld [vmem:[#allocation2 + $0x138] sm:$0xff]  }
 0x3b4   : > { %4705 = vst [vmem:[#allocation3 + $0x378] sm:$0xff] %v4369_v18  ;;  %v6162_v38 = vadd.f32 %v6161_v37, %v5942_v24  ;;  %v5944_v12 = vpop.f32.mrf.mxu1 }
 0x3b5   : > { %4707 = vst [vmem:[#allocation3 + $0x384] sm:$0xff] %v4371_v34 }
 0x3b6   : > { %v6381_v61 = vadd.f32 %v12720_v29, %v6162_v38  ;;  %v2920_v41 = vpop.permute.xlu1 %2919  ;;  %7144 = vst.msk [vmem:[#allocation5 + $0x190] sm:$0xff] %vm3421_vm8, %v7064_v48  ;;  %v12834_v62 = vpop.f32.mrf.mxu3 }
 0x3b7   : > { %v6825_v0 = vld [vmem:[#allocation4 + $0x1b4] sm:$0xff]  ;;  %v3707_v33 = vsel %vm3336_vm7, %v12486_v8, %v2920_v41 }
 0x3b8   : > { %v6905_v50 = vld [vmem:[#allocation4 + $0x1b5] sm:$0xff]  ;;  %6506 = vst.msk [vmem:[#allocation4 + $0x1c0] sm:$0xff] %vm3421_vm8, %v6381_v61  ;;  %v3794_v9 = vsel %vm3421_vm8, %v3707_v33, %v3014_v25 }
 0x3b9   : > { %v6985_v42 = vmax.f32 %v6825_v0, %v6905_v50  ;;  %v2136_v16 = vpop.permute.xlu2 %2135  ;;  %v3878_v31 = vsel %vm3506_vm9, %v3794_v9, %v3241_v13 }
 0x3ba   : > { %v1963_v60 = vpop.permute.xlu0 %1962  ;;  %v4198_v45 = vunpack.c.l.b16 %v3878_v31  ;;  %v4201_v6 = vunpack.c.h.b16 %v3878_v31  ;;  %v8868_v31 = vld [vmem:[#allocation2 + $0x140] sm:$0xff]  }
 0x3bb   : > { %v6163_v29 = vpop.f32.mrf.mxu2  ;;  %v8000_v55 = vld [vmem:[#allocation3 + $0x378] sm:$0xf]  ;;  %v8289_v15 = vld [vmem:[#allocation3 + $0x37c] sm:$0xf]  ;;  %v7065_v53 = vmax.f32 %v6745_v39, %v6985_v42  ;;  %v3416_v18 = vsel %vm3336_vm7, %v8867_v2, %v1963_v60 }
 0x3bc   : > { %v6164_v3 = vadd.f32 %v6163_v29, %v5944_v12  ;;  %v5947_v51 = vpop.f32.mrf.mxu1  ;;  %v8290_v8 = vld [vmem:[#allocation3 + $0x380] sm:$0xf0]  ;;  %v8002_v4 = vld [vmem:[#allocation3 + $0x384] sm:$0xf0]  ;;  %v3501_v41 = vsel %vm3421_vm8, %v3416_v18, %v2136_v16 }
 0x3bd   : > { %v8001_v26 = vor.u32 %v8290_v8, %v8000_v55  ;;  %v8005_v40 = vor.u32 %v8289_v15, %v8002_v4  ;;  %7145 = vst.msk [vmem:[#allocation5 + $0x198] sm:$0xff] %vm3421_vm8, %v7065_v53 }
 0x3be   : > { %v6383_v24 = vadd.f32 %v12751_v21, %v6164_v3  ;;  %v2357_v58 = vpop.permute.xlu1 %2356  ;;  %v12844_v63 = vpop.f32.mrf.mxu3 }
 0x3bf   : > { %v3584_v30 = vsel %vm3506_vm9, %v3499_v7, %v2357_v58  ;;  %5986 = vmatmul.bf16.gmra.mxu1 %v8001_v26 }
 0x3c0   : > { %6507 = vst.msk [vmem:[#allocation4 + $0x1c8] sm:$0xff] %vm3421_vm8, %v6383_v24  ;;  %v4197_v17 = vunpack.c.l.b16 %v3584_v30  ;;  %v4200_v43 = vunpack.c.h.b16 %v3584_v30  ;;  %6205 = vmatmul.bf16.gmra.mxu2 %v8005_v40 }
 0x3c1   : > { %v3243_v5 = vpop.permute.xlu2 %3242 }
 0x3c2   : > { %v4373_v1 = vpack.c.b16 %v4198_v45, %v4197_v17  ;;  %v4375_v32 = vpack.c.b16 %v4201_v6, %v4200_v43  ;;  %v3016_v57 = vpop.permute.xlu0 %3015 }
 0x3c3   : > { %v6166_v14 = vpop.f32.mrf.mxu2 }
 0x3c4   : > { %4709 = vst [vmem:[#allocation3 + $0x390] sm:$0xff] %v4373_v1  ;;  %v6167_v21 = vadd.f32 %v6166_v14, %v5947_v51  ;;  %v7298_v46 = vld [vmem:[#allocation5 + $0x18a] ss:$4 sm:$0x3f]  ;;  %v5949_v44 = vpop.f32.mrf.mxu1 }
 0x3c5   : > { %7300 = vrot.lane.b32.xlu1 %v7298_v46, %s8878_s30  ;;  %4711 = vst [vmem:[#allocation3 + $0x39c] sm:$0xff] %v4375_v32 }
 0x3c6   : > { %v6386_v20 = vadd.f32 %v12768_v52, %v6167_v21  ;;  %v2922_v49 = vpop.permute.xlu1 %2921 }
 0x3c7   : > { %v3710_v22 = vsel %vm3336_vm7, %v12515_v35, %v2922_v49  ;;  %v6670_v6 = vld [vmem:[#allocation4 + $0x1c1] sm:$0xff] }
 0x3c8   : > { %6508 = vst.msk [vmem:[#allocation4 + $0x1d0] sm:$0xff] %vm3421_vm8, %v6386_v20  ;;  %v3796_v28 = vsel %vm3421_vm8, %v3710_v22, %v3016_v57 }
 0x3c9   : > { %v2138_v19 = vpop.permute.xlu2 %2137  ;;  %v3880_v38 = vsel %vm3506_vm9, %v3796_v28, %v3243_v5 }
 0x3ca   : > { %v1965_v13 = vpop.permute.xlu0 %1964  ;;  %v4204_v39 = vunpack.c.l.b16 %v3880_v38  ;;  %v4207_v9 = vunpack.c.h.b16 %v3880_v38 }
 0x3cb   : > { %v6168_v34 = vpop.f32.mrf.mxu2  ;;  %v8012_v37 = vld [vmem:[#allocation3 + $0x390] sm:$0xf]  ;;  %v8292_v25 = vld [vmem:[#allocation3 + $0x394] sm:$0xf]  ;;  %v3418_v26 = vsel %vm3336_vm7, %v8868_v31, %v1965_v13 }
 0x3cc   : > { %v6169_v48 = vadd.f32 %v6168_v34, %v5949_v44  ;;  %v5952_v52 = vpop.f32.mrf.mxu1  ;;  %v8293_v12 = vld [vmem:[#allocation3 + $0x398] sm:$0xf0]  ;;  %v8014_v35 = vld [vmem:[#allocation3 + $0x39c] sm:$0xf0]  ;;  %v3503_v5 = vsel %vm3421_vm8, %v3418_v26, %v2138_v19  ;;  %v6590_v44 = vld [vmem:[#allocation4 + $0x1c0] sm:$0xff] }
 0x3cd   : > { %v8013_v0 = vor.u32 %v8293_v12, %v8012_v37  ;;  %v8017_v33 = vor.u32 %v8292_v25, %v8014_v35  ;;  %v6750_v18 = vmax.f32 %v6590_v44, %v6670_v6 }
 0x3ce   : > { %v6388_v23 = vadd.f32 %v12779_v36, %v6169_v48  ;;  %v2359_v61 = vpop.permute.xlu1 %2358 }
 0x3cf   : > { %v3586_v56 = vsel %vm3506_vm9, %v3501_v41, %v2359_v61  ;;  %5991 = vmatmul.bf16.gmra.mxu1 %v8013_v0  ;;  %v6671_v12 = vld [vmem:[#allocation4 + $0x1c9] sm:$0xff] }
 0x3d0   : > { %6509 = vst.msk [vmem:[#allocation4 + $0x1d8] sm:$0xff] %vm3421_vm8, %v6388_v23  ;;  %v4203_v50 = vunpack.c.l.b16 %v3586_v56  ;;  %v4206_v42 = vunpack.c.h.b16 %v3586_v56  ;;  %6210 = vmatmul.bf16.gmra.mxu2 %v8017_v33  ;;  %v6591_v0 = vld [vmem:[#allocation4 + $0x1c8] sm:$0xff] }
 0x3d1   : > { %v3245_v36 = vpop.permute.xlu2 %3244  ;;  %v12869_v56 = vld [vmem:[%s12986_s4] ss:$0 sm:$0xff] }
 0x3d2   : > { %v4377_v11 = vpack.c.b16 %v4204_v39, %v4203_v50  ;;  %v4379_v29 = vpack.c.b16 %v4207_v9, %v4206_v42  ;;  %v3018_v55 = vpop.permute.xlu0 %3017  ;;  %v6751_v50 = vmax.f32 %v6591_v0, %v6671_v12  ;;  %v7258_v9 = vld [vmem:[#allocation5 + $0x118] ss:$4 sm:$0x3f] }
 0x3d3   : > { %v6171_v60 = vpop.f32.mrf.mxu2 }
 0x3d4   : > { %4713 = vst [vmem:[#allocation3 + $0x3a8] sm:$0xff] %v4377_v11  ;;  %v6172_v16 = vadd.f32 %v6171_v60, %v5952_v52  ;;  %v5954_v15 = vpop.f32.mrf.mxu1  ;;  %v7191_v11 = vld [vmem:[#allocation5 + $0x38] ss:$4 sm:$0x3f] }
 0x3d5   : > { %4715 = vst [vmem:[#allocation3 + $0x3b4] sm:$0xff] %v4379_v29  ;;  %v8869_v29 = vld [vmem:[#allocation2 + $0x148] sm:$0xff]  }
 0x3d6   : > { %v6391_v53 = vadd.f32 %v12799_v47, %v6172_v16  ;;  %v2924_v3 = vpop.permute.xlu1 %2923  ;;  %v12854_v47 = vpop.f32.mrf.mxu3 }
 0x3d7   : > { %v3713_v51 = vsel %vm3336_vm7, %v12615_v27, %v2924_v3  ;;  %v6672_v44 = vld [vmem:[#allocation4 + $0x1d1] sm:$0xff] }
 0x3d8   : > { %6510 = vst.msk [vmem:[#allocation4 + $0x1e0] sm:$0xff] %vm3421_vm8, %v6391_v53  ;;  %v3798_v8 = vsel %vm3421_vm8, %v3713_v51, %v3018_v55 }
 0x3d9   : > { %v12851_v4 = vpop.permute.xlu2 %2139  ;;  %v3882_v45 = vsel %vm3506_vm9, %v3798_v8, %v3245_v36 }
 0x3da   : > { %v1967_v24 = vpop.permute.xlu0 %1966  ;;  %v4210_v22 = vunpack.c.l.b16 %v3882_v45  ;;  %v4213_v2 = vunpack.c.h.b16 %v3882_v45 }
 0x3db   : > { %v6173_v40 = vpop.f32.mrf.mxu2  ;;  %v8024_v58 = vld [vmem:[#allocation3 + $0x3a8] sm:$0xf]  ;;  %v8295_v7 = vld [vmem:[#allocation3 + $0x3ac] sm:$0xf]  ;;  %v3420_v36 = vsel %vm3336_vm7, %v8869_v29, %v1967_v24 }
 0x3dc   : > { %v6174_v30 = vadd.f32 %v6173_v40, %v5954_v15  ;;  %v5957_v17 = vpop.f32.mrf.mxu1  ;;  %v8296_v27 = vld [vmem:[#allocation3 + $0x3b0] sm:$0xf0]  ;;  %v8026_v43 = vld [vmem:[#allocation3 + $0x3b4] sm:$0xf0] }
 0x3dd   : > { %v8025_v14 = vor.u32 %v8296_v27, %v8024_v58  ;;  %v8029_v57 = vor.u32 %v8295_v7, %v8026_v43  ;;  %v3505_v43 = vsel %vm3421_vm8, %v3420_v36, %v12851_v4 }
 0x3de   : > { %v6393_v1 = vadd.f32 %v12812_v54, %v6174_v30  ;;  %v2361_v32 = vpop.permute.xlu1 %2360  ;;  %v12863_v61 = vpop.f32.mrf.mxu3 }
 0x3df   : > { %v6830_v21 = vld [vmem:[#allocation4 + $0x1dc] sm:$0xff]  ;;  %v3588_v46 = vsel %vm3506_vm9, %v3503_v5, %v2361_v32  ;;  %5996 = vmatmul.bf16.gmra.mxu1 %v8025_v14 }
 0x3e0   : > { %v6910_v20 = vld [vmem:[#allocation4 + $0x1dd] sm:$0xff]  ;;  %6511 = vst.msk [vmem:[#allocation4 + $0x1e8] sm:$0xff] %vm3421_vm8, %v6393_v1  ;;  %v4209_v49 = vunpack.c.l.b16 %v3588_v46  ;;  %v4212_v28 = vunpack.c.h.b16 %v3588_v46  ;;  %6215 = vmatmul.bf16.gmra.mxu2 %v8029_v57 }
 0x3e1   : > { %v6990_v54 = vmax.f32 %v6830_v21, %v6910_v20  ;;  %v3247_v19 = vpop.permute.xlu2 %3246 }
 0x3e2   : > { %v4381_v34 = vpack.c.b16 %v4210_v22, %v4209_v49  ;;  %v4383_v13 = vpack.c.b16 %v4213_v2, %v4212_v28  ;;  %v3020_v25 = vpop.permute.xlu0 %3019 }
 0x3e3   : > { %v6176_v37 = vpop.f32.mrf.mxu2  ;;  %v7070_v48 = vmax.f32 %v6750_v18, %v6990_v54  ;;  %v7229_v54 = vld [vmem:[#allocation5 + $0xa8] ss:$4 sm:$0x3f] }
 0x3e4   : > { %4717 = vst [vmem:[#allocation3 + $0x3c0] sm:$0xff] %v4381_v34  ;;  %v6177_v52 = vadd.f32 %v6176_v37, %v5957_v17  ;;  %v5959_v38 = vpop.f32.mrf.mxu1 }
 0x3e5   : > { %4719 = vst [vmem:[#allocation3 + $0x3cc] sm:$0xff] %v4383_v13  ;;  %v6592_v13 = vld [vmem:[#allocation4 + $0x1d0] sm:$0xff] }
 0x3e6   : > { %v6396_v35 = vadd.f32 %v12823_v59, %v6177_v52  ;;  %v2926_v23 = vpop.permute.xlu1 %2925  ;;  %7150 = vst.msk [vmem:[#allocation5 + $0x1c0] sm:$0xff] %vm3421_vm8, %v7070_v48  ;;  %v12887_v46 = vpop.f32.mrf.mxu3 }
 0x3e7   : > { %v6831_v41 = vld [vmem:[#allocation4 + $0x1e4] sm:$0xff]  ;;  %v3716_v59 = vsel %vm3336_vm7, %v12657_v10, %v2926_v23 }
 0x3e8   : > { %v6911_v33 = vld [vmem:[#allocation4 + $0x1e5] sm:$0xff]  ;;  %6512 = vst.msk [vmem:[#allocation4 + $0x1f0] sm:$0xff] %vm3421_vm8, %v6396_v35  ;;  %v3800_v51 = vsel %vm3421_vm8, %v3716_v59, %v3020_v25 }
 0x3e9   : > { %v6991_v39 = vmax.f32 %v6831_v41, %v6911_v33  ;;  %v7263_v42 = vpop.permute.xlu2 %7262  ;;  %v3884_v6 = vsel %vm3506_vm9, %v3800_v51, %v3247_v19  ;;  %v7210_v33 = vld [vmem:[#allocation5 + $0x70] ss:$4 sm:$0x3f] }
 0x3ea   : > { %v7265_v60 = vsel %vm3421_vm8, %v7258_v9, %v7263_v42  ;;  %v7196_v16 = vpop.permute.xlu0 %7195  ;;  %v4216_v49 = vunpack.c.l.b16 %v3884_v6  ;;  %v4219_v2 = vunpack.c.h.b16 %v3884_v6 }
 0x3eb   : > { %v6178_v55 = vpop.f32.mrf.mxu2  ;;  %v8036_v15 = vld [vmem:[#allocation3 + $0x3c0] sm:$0xf]  ;;  %v8298_v53 = vld [vmem:[#allocation3 + $0x3c4] sm:$0xf]  ;;  %v7071_v3 = vmax.f32 %v6751_v50, %v6991_v39  ;;  %v7266_v8 = vadd.f32 %v12869_v56, %v7265_v60  ;;  %v7198_v26 = vsel %vm3421_vm8, %v7191_v11, %v7196_v16 }
 0x3ec   : > { %v6179_v31 = vadd.f32 %v6178_v55, %v5959_v38  ;;  %v5962_v10 = vpop.f32.mrf.mxu1  ;;  %v8299_v40 = vld [vmem:[#allocation3 + $0x3c8] sm:$0xf0]  ;;  %v8038_v58 = vld [vmem:[#allocation3 + $0x3cc] sm:$0xf0]  ;;  %v7199_v24 = vadd.f32 %v12869_v56, %v7198_v26  ;;  %v6752_v38 = vmax.f32 %v6592_v13, %v6672_v44  ;;  %v8180_v44 = vld [vmem:[#allocation3 + $0x10] sm:$0xf0] }
 0x3ed   : > { %v8037_v7 = vor.u32 %v8299_v40, %v8036_v15  ;;  %v8041_v30 = vor.u32 %v8298_v53, %v8038_v58  ;;  %7151 = vst.msk [vmem:[#allocation5 + $0x1c8] sm:$0xff] %vm3421_vm8, %v7071_v3  ;;  %v7267_v17 = vmax.f32 %v7266_v8, 0.0  ;;  %v7277_v3 = vld [vmem:[#allocation5 + $0x150] ss:$4 sm:$0x3f] }
 0x3ee   : > { %v6398_v45 = vadd.f32 %v12834_v62, %v6179_v31  ;;  %v2363_v27 = vpop.permute.xlu1 %2362  ;;  %v7200_v1 = vmax.f32 %v7199_v24, 0.0  ;;  %v6410_v29 = vpop.f32.mrf.mxu3 }
 0x3ef   : > { %v3590_v32 = vsel %vm3506_vm9, %v3505_v43, %v2363_v27  ;;  %v6832_v5 = vld [vmem:[#allocation4 + $0x1ec] sm:$0xff]  ;;  %v7268_v57 = vpack.c.bf16 %v7267_v17, %v7267_v17  ;;  %6001 = vmatmul.bf16.gmra.mxu1 %v8037_v7 }
 0x3f0   : > { %v6912_v14 = vld [vmem:[#allocation4 + $0x1ed] sm:$0xff]  ;;  %6513 = vst.msk [vmem:[#allocation4 + $0x1f8] sm:$0xff] %vm3421_vm8, %v6398_v45  ;;  %v4215_v21 = vunpack.c.l.b16 %v3590_v32  ;;  %6220 = vmatmul.bf16.gmra.mxu2 %v8041_v30  ;;  %v7201_v62 = vpack.c.bf16 %v7200_v1, %v7200_v1  ;;  %v4218_v4 = vunpack.c.h.b16 %v3590_v32 }
 0x3f1   : > { %v7270_v20 = vrot.slane %v7268_v57, 5  ;;  %v6992_v22 = vmax.f32 %v6832_v5, %v6912_v14 }
 0x3f2   : > { %v7203_v28 = vrot.slane %v7201_v62, 5  ;;  %v7234_v34 = vpop.permute.xlu0 %7233  ;;  %v4385_v37 = vpack.c.b16 %v4216_v49, %v4215_v21  ;;  %v4387_v35 = vpack.c.b16 %v4219_v2, %v4218_v4  ;;  %v7564_v4 = vld [vmem:[#allocation3 + $0x8] sm:$0xf] }
 0x3f3   : > { %v6181_v18 = vpop.f32.mrf.mxu2  ;;  %v7271_v19 = vrot.slane %v7270_v20, 4  ;;  %7274 = vst [vmem:[%s12892_s23 + $0xc] sm:$0x8] %v7270_v20  ;;  %v7236_v52 = vsel %vm3421_vm8, %v7229_v54, %v7234_v34  ;;  %v7072_v59 = vmax.f32 %v6752_v38, %v6992_v22  ;;  %v7565_v49 = vor.u32 %v8180_v44, %v7564_v4 }
 0x3f4   : > { %v6182_v25 = vadd.f32 %v6181_v18, %v5962_v10  ;;  %v5964_v48 = vpop.f32.mrf.mxu1  ;;  %v7204_v12 = vrot.slane %v7203_v28, 4  ;;  %7207 = vst [vmem:[%s12892_s23] sm:$0x8] %v7203_v28  ;;  %v7237_v23 = vadd.f32 %v12869_v56, %v7236_v52 }
 0x3f5   : > { %7275 = vst [vmem:[%s12892_s23 + $0x10] sm:$0x3] %v7271_v19 }
 0x3f6   : > { %v6401_v41 = vadd.f32 %v12844_v63, %v6182_v25  ;;  %v7215_v0 = vpop.permute.xlu1 %7214  ;;  %7208 = vst [vmem:[%s12892_s23 + $0x4] sm:$0x3] %v7204_v12  ;;  %v7238_v50 = vmax.f32 %v7237_v23, 0.0  ;;  %v6412_v43 = vpop.f32.mrf.mxu3 }
 0x3f7   : > { %v7217_v39 = vsel %vm3421_vm8, %v7210_v33, %v7215_v0  ;;  %4721 = vst [vmem:[#allocation3 + $0x3d8] sm:$0xff] %v4385_v37  ;;  %v6597_v34 = vld [vmem:[#allocation4 + $0x1f8] sm:$0xff] }
 0x3f8   : > { %v7218_v42 = vadd.f32 %v12869_v56, %v7217_v39  ;;  %4723 = vst [vmem:[#allocation3 + $0x3e4] sm:$0xff] %v4387_v35  ;;  %v7239_v9 = vpack.c.bf16 %v7238_v50, %v7238_v50 }
 0x3f9   : > { %6514 = vst.msk [vmem:[#allocation4 + $0x200] sm:$0xff] %vm3421_vm8, %v6401_v41 }
 0x3fa   : > { %v7219_v11 = vmax.f32 %v7218_v42, 0.0  ;;  %v7241_v36 = vrot.slane %v7239_v9, 7  ;;  %7152 = vst.msk [vmem:[#allocation5 + $0x1d0] sm:$0xff] %vm3421_vm8, %v7072_v59 }
 0x3fb   : > { %v6183_v63 = vpop.f32.mrf.mxu2 }
 0x3fc   : > { %v7220_v60 = vpack.c.bf16 %v7219_v11, %v7219_v11  ;;  %v6184_v55 = vadd.f32 %v6183_v63, %v5964_v48  ;;  %v5967_v16 = vpop.f32.mrf.mxu1  ;;  %7243 = vst [vmem:[%s12892_s23 + $0x8] sm:$0xe] %v7241_v36 }
 0x3fe   : > { %v7222_v15 = vrot.slane %v7220_v60, 6  ;;  %v6403_v53 = vadd.f32 %v12854_v47, %v6184_v55  ;;  %v8048_v51 = vld [vmem:[#allocation3 + $0x3d8] sm:$0xf]  ;;  %v8301_v8 = vld [vmem:[#allocation3 + $0x3dc] sm:$0xf]  ;;  %v6415_v20 = vpop.f32.mrf.mxu3 }
 0x3ff   : > { %v8302_v26 = vld [vmem:[#allocation3 + $0x3e0] sm:$0xf0]  ;;  %v8050_v7 = vld [vmem:[#allocation3 + $0x3e4] sm:$0xf0] }
 0x400   : > { %v7223_v31 = vrot.slane %v7222_v15, 4  ;;  %7226 = vst [vmem:[%s12892_s23 + $0x4] sm:$0xc] %v7222_v15  ;;  %v7282_v10 = vpop.permute.xlu0 %7281  ;;  %v8049_v58 = vor.u32 %v8302_v26, %v8048_v51  ;;  %v8053_v47 = vor.u32 %v8301_v8, %v8050_v7  ;;  %v6677_v2 = vld [vmem:[#allocation4 + $0x1f9] sm:$0xff] }
 0x401   : > { %6515 = vst.msk [vmem:[#allocation4 + $0x208] sm:$0xff] %vm3421_vm8, %v6403_v53  ;;  %v7284_v40 = vsel %vm3421_vm8, %v7277_v3, %v7282_v10  ;;  %v6598_v41 = vld [vmem:[#allocation4 + $0x200] sm:$0xff] }
 0x402   : > { %7227 = vst [vmem:[%s12892_s23 + $0x8] sm:$0x1] %v7223_v31  ;;  %v7285_v24 = vadd.f32 %v12869_v56, %v7284_v40  ;;  %6006 = vmatmul.bf16.gmra.mxu1 %v8049_v58  ;;  %6225 = vmatmul.bf16.gmra.mxu2 %v8053_v47 }
 0x403   : > { %v6186_v30 = vpop.f32.mrf.mxu2 }
 0x404   : > { %v7286_v17 = vmax.f32 %v7285_v24, 0.0  ;;  %v6187_v45 = vadd.f32 %v6186_v30, %v5967_v16  ;;  %v5969_v27 = vpop.f32.mrf.mxu1 }
 0x406   : > { %v7287_v6 = vpack.c.bf16 %v7286_v17, %v7286_v17  ;;  %v6406_v1 = vadd.f32 %v12863_v61, %v6187_v45  ;;  %v6417_v19 = vpop.f32.mrf.mxu3  ;;  %v7296_v17 = vld [vmem:[#allocation5 + $0x188] ss:$4 sm:$0x3f] }
 0x408   : > { %v7289_v32 = vrot.slane %v7287_v6, 6  ;;  %6516 = vst.msk [vmem:[#allocation4 + $0x210] sm:$0xff] %vm3421_vm8, %v6406_v1  ;;  %v6678_v12 = vld [vmem:[#allocation4 + $0x201] sm:$0xff] }
 0x409   : > { %v6758_v33 = vmax.f32 %v6598_v41, %v6678_v12  ;;  %v6599_v60 = vld [vmem:[#allocation4 + $0x208] sm:$0xff] }
 0x40a   : > { %v7290_v5 = vrot.slane %v7289_v32, 4  ;;  %7293 = vst [vmem:[%s12892_s23 + $0x10] sm:$0xc] %v7289_v32  ;;  %v7247_v32 = vld [vmem:[#allocation5 + $0xe2] ss:$4 sm:$0x3f] }
 0x40b   : > { %v6188_v14 = vpop.f32.mrf.mxu2 }
 0x40c   : > { %7294 = vst [vmem:[%s12892_s23 + $0x14] sm:$0x1] %v7290_v5  ;;  %v6189_v57 = vadd.f32 %v6188_v14, %v5969_v27  ;;  %v5972_v21 = vpop.f32.mrf.mxu1 }
 0x40e   : > { %v6408_v62 = vadd.f32 %v12887_v46, %v6189_v57  ;;  %v6757_v46 = vmax.f32 %v6597_v34, %v6677_v2  ;;  %v6420_v39 = vpop.f32.mrf.mxu3 }
 0x410   : > { %6517 = vst.msk [vmem:[#allocation4 + $0x218] sm:$0xff] %vm3421_vm8, %v6408_v62 }
 0x412   : > { %8130 = vmatmul.msk.bf16.vlgmr.msrb.gmra.mxu1 %vm3336_vm7, %v7565_v49 }
 0x413   : > { %v6191_v61 = vpop.f32.mrf.mxu2 }
 0x414   : > { %v6192_v22 = vadd.f32 %v6191_v61, %v5972_v21  ;;  %v5974_v28 = vpop.f32.mrf.mxu1 }
 0x416   : > { %v6411_v18 = vadd.f32 %v6410_v29, %v6192_v22  ;;  %v6679_v29 = vld [vmem:[#allocation4 + $0x209] sm:$0xff]  ;;  %v6422_v8 = vpop.f32.mrf.mxu3 }
 0x417   : > { %v6837_v54 = vld [vmem:[#allocation4 + $0x214] sm:$0xff]  ;;  %v6759_v16 = vmax.f32 %v6599_v60, %v6679_v29 }
 0x418   : > { %v6917_v13 = vld [vmem:[#allocation4 + $0x215] sm:$0xff]  ;;  %6518 = vst.msk [vmem:[#allocation4 + $0x220] sm:$0xff] %vm3421_vm8, %v6411_v18 }
 0x419   : > { %v6997_v37 = vmax.f32 %v6837_v54, %v6917_v13 }
 0x41b   : > { %v6193_v25 = vpop.f32.mrf.mxu2  ;;  %v7077_v48 = vmax.f32 %v6757_v46, %v6997_v37 }
 0x41c   : > { %v6194_v52 = vadd.f32 %v6193_v25, %v5974_v28  ;;  %v5977_v38 = vpop.f32.mrf.mxu1 }
 0x41d   : > { %7157 = vst.msk [vmem:[#allocation5 + $0x1f8] sm:$0xff] %vm3421_vm8, %v7077_v48 }
 0x41e   : > { %v6413_v35 = vadd.f32 %v6412_v43, %v6194_v52  ;;  %v6425_v47 = vpop.f32.mrf.mxu3 }
 0x41f   : > { %v6838_v23 = vld [vmem:[#allocation4 + $0x21c] sm:$0xff] }
 0x420   : > { %v6918_v0 = vld [vmem:[#allocation4 + $0x21d] sm:$0xff]  ;;  %6519 = vst.msk [vmem:[#allocation4 + $0x228] sm:$0xff] %vm3421_vm8, %v6413_v35 }
 0x421   : > { %v6998_v50 = vmax.f32 %v6838_v23, %v6918_v0 }
 0x423   : > { %v6196_v59 = vpop.f32.mrf.mxu2  ;;  %v7078_v42 = vmax.f32 %v6758_v33, %v6998_v50 }
 0x424   : > { %v6197_v9 = vadd.f32 %v6196_v59, %v5977_v38  ;;  %v5979_v11 = vpop.f32.mrf.mxu1 }
 0x425   : > { %7158 = vst.msk [vmem:[#allocation5 + $0x200] sm:$0xff] %vm3421_vm8, %v7078_v42 }
 0x426   : > { %v6416_v36 = vadd.f32 %v6415_v20, %v6197_v9  ;;  %v6427_v62 = vpop.f32.mrf.mxu3 }
 0x427   : > { %v6839_v63 = vld [vmem:[#allocation4 + $0x224] sm:$0xff] }
 0x428   : > { %v6919_v55 = vld [vmem:[#allocation4 + $0x225] sm:$0xff]  ;;  %6520 = vst.msk [vmem:[#allocation4 + $0x230] sm:$0xff] %vm3421_vm8, %v6416_v36 }
 0x429   : > { %v6999_v15 = vmax.f32 %v6839_v63, %v6919_v55 }
 0x42b   : > { %v6198_v53 = vpop.f32.mrf.mxu2  ;;  %v7079_v3 = vmax.f32 %v6759_v16, %v6999_v15 }
 0x42c   : > { %v6199_v51 = vadd.f32 %v6198_v53, %v5979_v11  ;;  %v5982_v31 = vpop.f32.mrf.mxu1 }
 0x42d   : > { %7159 = vst.msk [vmem:[#allocation5 + $0x208] sm:$0xff] %vm3421_vm8, %v7079_v3 }
 0x42e   : > { %v6418_v10 = vadd.f32 %v6417_v19, %v6199_v51  ;;  %v6430_v61 = vpop.f32.mrf.mxu3 }
 0x42f   : > { %v6604_v13 = vld [vmem:[#allocation4 + $0x230] sm:$0xff] }
 0x430   : > { %6521 = vst.msk [vmem:[#allocation4 + $0x238] sm:$0xff] %vm3421_vm8, %v6418_v10 }
 0x433   : > { %v6201_v26 = vpop.f32.mrf.mxu2 }
 0x434   : > { %v6202_v40 = vadd.f32 %v6201_v26, %v5982_v31  ;;  %v7327_v58 = vld [vmem:[#allocation5 + $0x1fa] ss:$4 sm:$0x3f]  ;;  %v5984_v24 = vpop.f32.mrf.mxu1 }
 0x435   : > { %7329 = vrot.lane.b32.xlu1 %v7327_v58, %s8878_s30 }
 0x436   : > { %v6421_v7 = vadd.f32 %v6420_v39, %v6202_v40  ;;  %v6432_v38 = vpop.f32.mrf.mxu3 }
 0x437   : > { %v7301_v30 = vpop.permute.xlu1 %7300  ;;  %v6684_v18 = vld [vmem:[#allocation4 + $0x231] sm:$0xff] }
 0x438   : > { %6522 = vst.msk [vmem:[#allocation4 + $0x240] sm:$0xff] %vm3421_vm8, %v6421_v7  ;;  %v7303_v45 = vsel %vm3421_vm8, %v7296_v17, %v7301_v30  ;;  %v6764_v46 = vmax.f32 %v6604_v13, %v6684_v18  ;;  %v6605_v0 = vld [vmem:[#allocation4 + $0x238] sm:$0xff] }
 0x439   : > { %v7304_v27 = vadd.f32 %v12869_v56, %v7303_v45 }
 0x43b   : > { %v7305_v43 = vmax.f32 %v7304_v27, 0.0  ;;  %v6203_v6 = vpop.f32.mrf.mxu2 }
 0x43c   : > { %v6204_v1 = vadd.f32 %v6203_v6, %v5984_v24  ;;  %v5987_v14 = vpop.f32.mrf.mxu1 }
 0x43d   : > { %v7306_v5 = vpack.c.bf16 %v7305_v43, %v7305_v43  ;;  %7249 = vrot.lane.b32.xlu1 %v7247_v32, %s8878_s30 }
 0x43e   : > { %v6423_v57 = vadd.f32 %v6422_v8, %v6204_v1  ;;  %v6435_v63 = vpop.f32.mrf.mxu3 }
 0x43f   : > { %v7308_v21 = vrot.slane %v7306_v5, 7  ;;  %v6685_v35 = vld [vmem:[#allocation4 + $0x239] sm:$0xff] }
 0x440   : > { %6523 = vst.msk [vmem:[#allocation4 + $0x248] sm:$0xff] %vm3421_vm8, %v6423_v57  ;;  %v6765_v50 = vmax.f32 %v6605_v0, %v6685_v35  ;;  %v6606_v55 = vld [vmem:[#allocation4 + $0x240] sm:$0xff] }
 0x441   : > { %7310 = vst [vmem:[%s12892_s23 + $0x14] sm:$0xe] %v7308_v21 }
 0x443   : > { %v6206_v4 = vpop.f32.mrf.mxu2 }
 0x444   : > { %v6207_v44 = vadd.f32 %v6206_v4, %v5987_v14  ;;  %v5989_v20 = vpop.f32.mrf.mxu1 }
 0x446   : > { %v6426_v49 = vadd.f32 %v6425_v47, %v6207_v44  ;;  %v6437_v26 = vpop.f32.mrf.mxu3 }
 0x447   : > { %v6686_v29 = vld [vmem:[#allocation4 + $0x241] sm:$0xff] }
 0x448   : > { %6524 = vst.msk [vmem:[#allocation4 + $0x250] sm:$0xff] %vm3421_vm8, %v6426_v49  ;;  %v6766_v15 = vmax.f32 %v6606_v55, %v6686_v29  ;;  %v6775_v55 = vld [vmem:[#allocation4 + $0x24] sm:$0xff] }
 0x44b   : > { %v6208_v22 = vpop.f32.mrf.mxu2 }
 0x44c   : > { %v6209_v28 = vadd.f32 %v6208_v22, %v5989_v20  ;;  %v5992_v2 = vpop.f32.mrf.mxu1 }
 0x44e   : > { %v6428_v54 = vadd.f32 %v6427_v62, %v6209_v28  ;;  %v6440_v30 = vpop.f32.mrf.mxu3 }
 0x44f   : > { %v6844_v34 = vld [vmem:[#allocation4 + $0x24c] sm:$0xff] }
 0x450   : > { %v6924_v19 = vld [vmem:[#allocation4 + $0x24d] sm:$0xff]  ;;  %6525 = vst.msk [vmem:[#allocation4 + $0x258] sm:$0xff] %vm3421_vm8, %v6428_v54 }
 0x451   : > { %v7004_v37 = vmax.f32 %v6844_v34, %v6924_v19  ;;  %v13044_v19 = vld [vmem:[#allocation6_spill] sm:$0xff] }
 0x453   : > { %v6211_v25 = vpop.f32.mrf.mxu2  ;;  %v7084_v48 = vmax.f32 %v6764_v46, %v7004_v37 }
 0x454   : > { %v6212_v52 = vadd.f32 %v6211_v25, %v5992_v2  ;;  %v5994_v12 = vpop.f32.mrf.mxu1 }
 0x455   : > { %7164 = vst.msk [vmem:[#allocation5 + $0x230] sm:$0xff] %vm3421_vm8, %v7084_v48 }
 0x456   : > { %v6431_v23 = vadd.f32 %v6430_v61, %v6212_v52  ;;  %v6442_v32 = vpop.f32.mrf.mxu3 }
 0x457   : > { %v6845_v41 = vld [vmem:[#allocation4 + $0x254] sm:$0xff] }
 0x458   : > { %v6925_v33 = vld [vmem:[#allocation4 + $0x255] sm:$0xff]  ;;  %6526 = vst.msk [vmem:[#allocation4 + $0x260] sm:$0xff] %vm3421_vm8, %v6431_v23 }
 0x459   : > { %v7005_v39 = vmax.f32 %v6845_v41, %v6925_v33  ;;  %v13045_v33 = vld [vmem:[#allocation7_spill] sm:$0xff] }
 0x45b   : > { %v6213_v59 = vpop.f32.mrf.mxu2  ;;  %v7085_v42 = vmax.f32 %v6765_v50, %v7005_v39 }
 0x45c   : > { %v6214_v9 = vadd.f32 %v6213_v59, %v5994_v12  ;;  %v5997_v11 = vpop.f32.mrf.mxu1 }
 0x45d   : > { %7165 = vst.msk [vmem:[#allocation5 + $0x238] sm:$0xff] %vm3421_vm8, %v7085_v42 }
 0x45e   : > { %v6433_v36 = vadd.f32 %v6432_v38, %v6214_v9  ;;  %v6445_v21 = vpop.f32.mrf.mxu3 }
 0x45f   : > { %v6846_v60 = vld [vmem:[#allocation4 + $0x25c] sm:$0xff] }
 0x460   : > { %v6926_v16 = vld [vmem:[#allocation4 + $0x25d] sm:$0xff]  ;;  %6527 = vst.msk [vmem:[#allocation4 + $0x268] sm:$0xff] %vm3421_vm8, %v6433_v36 }
 0x461   : > { %v7006_v53 = vmax.f32 %v6846_v60, %v6926_v16  ;;  %v6774_v36 = vld [vmem:[#allocation4 + $0x1c] sm:$0xff]  ;;  %v6855_v16 = vld [vmem:[#allocation4 + $0x25] sm:$0xff] }
 0x462   : > { %v6854_v60 = vld [vmem:[#allocation4 + $0x1d] sm:$0xff] }
 0x463   : > { %v6216_v3 = vpop.f32.mrf.mxu2  ;;  %v7086_v51 = vmax.f32 %v6766_v15, %v7006_v53 }
 0x464   : > { %v6217_v8 = vadd.f32 %v6216_v3, %v5997_v11  ;;  %v5999_v31 = vpop.f32.mrf.mxu1 }
 0x465   : > { %7166 = vst.msk [vmem:[#allocation5 + $0x240] sm:$0xff] %vm3421_vm8, %v7086_v51 }
 0x466   : > { %v6436_v10 = vadd.f32 %v6435_v63, %v6217_v8  ;;  %v6447_v37 = vpop.f32.mrf.mxu3  ;;  %v6934_v8 = vmax.f32 %v6774_v36, %v6854_v60 }
 0x467   : > { %v6611_v62 = vld [vmem:[#allocation4 + $0x268] sm:$0xff] }
 0x468   : > { %6528 = vst.msk [vmem:[#allocation4 + $0x270] sm:$0xff] %vm3421_vm8, %v6436_v10 }
 0x46b   : > { %v6218_v40 = vpop.f32.mrf.mxu2 }
 0x46c   : > { %v6219_v58 = vadd.f32 %v6218_v40, %v5999_v31  ;;  %v7346_v24 = vld [vmem:[#allocation5 + $0x232] ss:$4 sm:$0x3f]  ;;  %v6002_v7 = vpop.f32.mrf.mxu1  ;;  %v6935_v31 = vmax.f32 %v6775_v55, %v6855_v16 }
 0x46d   : > { %7348 = vrot.lane.b32.xlu2 %v7346_v24, %s8878_s30 }
 0x46e   : > { %v6438_v47 = vadd.f32 %v6437_v26, %v6219_v58 }
 0x46f   : > { %v6691_v57 = vld [vmem:[#allocation4 + $0x269] sm:$0xff] }
 0x470   : > { %6529 = vst.msk [vmem:[#allocation4 + $0x278] sm:$0xff] %vm3421_vm8, %v6438_v47  ;;  %v6771_v20 = vmax.f32 %v6611_v62, %v6691_v57  ;;  %v6612_v52 = vld [vmem:[#allocation4 + $0x270] sm:$0xff] }
 0x473   : > { %v6221_v17 = vpop.f32.mrf.mxu2 }
 0x474   : > { %v6222_v45 = vadd.f32 %v6221_v17, %v6002_v7  ;;  %v6004_v43 = vpop.f32.mrf.mxu1  ;;  %v7325_v7 = vld [vmem:[#allocation5 + $0x1f8] ss:$4 sm:$0x3f] }
 0x476   : > { %v6441_v27 = vadd.f32 %v6440_v30, %v6222_v45 }
 0x477   : > { %v6692_v25 = vld [vmem:[#allocation4 + $0x271] sm:$0xff] }
 0x478   : > { %6530 = vst.msk [vmem:[#allocation4 + $0x280] sm:$0xff] %vm3421_vm8, %v6441_v27  ;;  %v6772_v35 = vmax.f32 %v6612_v52, %v6692_v25  ;;  %v6613_v59 = vld [vmem:[#allocation4 + $0x278] sm:$0xff] }
 0x47b   : > { %v6223_v6 = vpop.f32.mrf.mxu2 }
 0x47c   : > { %v6224_v1 = vadd.f32 %v6223_v6, %v6004_v43  ;;  %v7245_v43 = vld [vmem:[#allocation5 + $0xe0] ss:$4 sm:$0x3f] }
 0x47e   : > { %v6443_v5 = vadd.f32 %v6442_v32, %v6224_v1 }
 0x47f   : > { %v6007_v14 = vpop.f32.mrf.mxu1  ;;  %v6693_v39 = vld [vmem:[#allocation4 + $0x279] sm:$0xff] }
 0x480   : > { %6531 = vst.msk [vmem:[#allocation4 + $0x288] sm:$0xff] %vm3421_vm8, %v6443_v5  ;;  %v6773_v11 = vmax.f32 %v6613_v59, %v6693_v39  ;;  %v7314_v5 = vld [vmem:[#allocation5 + $0x1c2] ss:$4 sm:$0x3f] }
 0x485   : > { %v6226_v61 = vpop.f32.mrf.mxu2 }
 0x486   : > { %v6227_v28 = vadd.f32 %v6226_v61, %v6007_v14 }
 0x487   : > { %v6851_v4 = vld [vmem:[#allocation4 + $0x284] sm:$0xff]  ;;  %v6009_v22 = vpop.f32.mrf.mxu1 }
 0x488   : > { %v6931_v44 = vld [vmem:[#allocation4 + $0x285] sm:$0xff]  ;;  %v6446_v18 = vadd.f32 %v6445_v21, %v6227_v28 }
 0x489   : > { %v7011_v49 = vmax.f32 %v6851_v4, %v6931_v44 }
 0x48a   : > { %6532 = vst.msk [vmem:[#allocation4 + $0x290] sm:$0xff] %vm3421_vm8, %v6446_v18 }
 0x48b   : > { %v7091_v2 = vmax.f32 %v6771_v20, %v7011_v49  ;;  %v7344_v20 = vld [vmem:[#allocation5 + $0x230] ss:$4 sm:$0x3f] }
 0x48d   : > { %7171 = vst.msk [vmem:[#allocation5 + $0x268] sm:$0xff] %vm3421_vm8, %v7091_v2  ;;  %v6228_v54 = vpop.f32.mrf.mxu2 }
 0x48e   : > { %v6229_v13 = vadd.f32 %v6228_v54, %v6009_v22 }
 0x48f   : > { %v6240_v34 = vpop.f32.mrf.mxu1 }
 0x490   : > { %v6241_v46 = vadd.f32 %v6240_v34, %v13044_v19  ;;  %v6448_v48 = vadd.f32 %v6447_v37, %v6229_v13 }
 0x491   : > { %v6852_v38 = vld [vmem:[#allocation4 + $0x28c] sm:$0xff] }
 0x492   : > { %6450 = vst.msk [vmem:[#allocation4] sm:$0xff] %vm3421_vm8, %v6241_v46  ;;  %v6932_v12 = vld [vmem:[#allocation4 + $0x28d] sm:$0xff] }
 0x493   : > { %v7012_v23 = vmax.f32 %v6852_v38, %v6932_v12  ;;  %6533 = vst.msk [vmem:[#allocation4 + $0x298] sm:$0xff] %vm3421_vm8, %v6448_v48  ;;  %v7312_v48 = vld [vmem:[#allocation5 + $0x1c0] ss:$4 sm:$0x3f] }
 0x495   : > { %v7092_v41 = vmax.f32 %v6772_v35, %v7012_v23 }
 0x497   : > { %v6242_v0 = vpop.f32.mrf.mxu1  ;;  %7172 = vst.msk [vmem:[#allocation5 + $0x270] sm:$0xff] %vm3421_vm8, %v7092_v41 }
 0x498   : > { %v6243_v50 = vadd.f32 %v6242_v0, %v13045_v33 }
 0x499   : > { %v6534_v15 = vld [vmem:[#allocation4] sm:$0xff] }
 0x49a   : > { %6451 = vst.msk [vmem:[#allocation4 + $0x8] sm:$0xff] %vm3421_vm8, %v6243_v50  ;;  %v6853_v42 = vld [vmem:[#allocation4 + $0x294] sm:$0xff] }
 0x49b   : > { %v6933_v9 = vld [vmem:[#allocation4 + $0x295] sm:$0xff] }
 0x49c   : > { %v7013_v29 = vmax.f32 %v6853_v42, %v6933_v9 }
 0x49e   : > { %v7093_v63 = vmax.f32 %v6773_v11, %v7013_v29 }
 0x4a0   : > { %7173 = vst.msk [vmem:[#allocation5 + $0x278] sm:$0xff] %vm3421_vm8, %v7093_v63 }
 0x4a1   : > { %v6535_v53 = vld [vmem:[#allocation4 + $0x8] sm:$0xff] }
 0x4a2   : > { %v6614_v3 = vld [vmem:[#allocation4 + $0x1] sm:$0xff]  ;;  %v6615_v51 = vld [vmem:[#allocation4 + $0x9] sm:$0xff] }
 0x4a3   : > { %v6694_v10 = vmax.f32 %v6534_v15, %v6614_v3  ;;  %v6695_v26 = vmax.f32 %v6535_v53, %v6615_v51 }
 0x4a5   : > { %v7014_v40 = vmax.f32 %v6694_v10, %v6934_v8  ;;  %v7015_v58 = vmax.f32 %v6695_v26, %v6935_v31 }
 0x4a7   : > { %v7330_v24 = vpop.permute.xlu1 %7329  ;;  %7094 = vst.msk [vmem:[#allocation5] sm:$0xff] %vm3421_vm8, %v7014_v40  ;;  %v7365_v47 = vld [vmem:[#allocation5 + $0x26a] ss:$4 sm:$0x3f] }
 0x4a8   : > { %v7332_v30 = vsel %vm3421_vm8, %v7325_v7, %v7330_v24  ;;  %7095 = vst.msk [vmem:[#allocation5 + $0x8] sm:$0xff] %vm3421_vm8, %v7015_v58  ;;  %7367 = vrot.lane.b32.xlu2 %v7365_v47, %s8878_s30  ;;  %v7363_v34 = vld [vmem:[#allocation5 + $0x268] ss:$4 sm:$0x3f] }
 0x4a9   : > { %v7333_v17 = vadd.f32 %v12869_v56, %v7332_v30 }
 0x4ab   : > { %v7334_v45 = vmax.f32 %v7333_v17, 0.0 }
 0x4ad   : > { %v7335_v27 = vpack.c.bf16 %v7334_v45, %v7334_v45 }
 0x4af   : > { %v7337_v6 = vrot.slane %v7335_v27, 5  ;;  %v7177_v1 = vld [vmem:[#allocation5 + $0x2] ss:$4 sm:$0x3f]  ;;  %v7250_v32 = vpop.permute.xlu1 %7249 }
 0x4b0   : > { %7179 = vrot.lane.b32.xlu0 %v7177_v1, %s8878_s30  ;;  %v7252_v14 = vsel %vm3421_vm8, %v7245_v43, %v7250_v32  ;;  %7316 = vrot.lane.b32.xlu2 %v7314_v5, %s8878_s30  ;;  %v7175_v41 = vld [vmem:[#allocation5] ss:$4 sm:$0x3f] }
 0x4b1   : > { %v7338_v57 = vrot.slane %v7337_v6, 4  ;;  %7341 = vst [vmem:[%s12892_s23 + $0x18] sm:$0x8] %v7337_v6  ;;  %v7253_v21 = vadd.f32 %v12869_v56, %v7252_v14 }
 0x4b3   : > { %7342 = vst [vmem:[%s12892_s23 + $0x1c] sm:$0x3] %v7338_v57  ;;  %v7254_v62 = vmax.f32 %v7253_v21, 0.0 }
 0x4b5   : > { %v7255_v4 = vpack.c.bf16 %v7254_v62, %v7254_v62 }
 0x4b7   : > { %7256 = vst [vmem:[%s12892_s23 + $0xc] sm:$0x7] %v7255_v4 }
 0x4c7   : > { %v7349_v44 = vpop.permute.xlu2 %7348 }
 0x4c8   : > { %v7351_v49 = vsel %vm3421_vm8, %v7344_v20, %v7349_v44 }
 0x4c9   : > { %v7352_v61 = vadd.f32 %v12869_v56, %v7351_v49 }
 0x4cb   : > { %v7353_v22 = vmax.f32 %v7352_v61, 0.0 }
 0x4cd   : > { %v7354_v28 = vpack.c.bf16 %v7353_v22, %v7353_v22 }
 0x4cf   : > { %v7356_v2 = vrot.slane %v7354_v28, 6 }
 0x4d1   : > { %v7357_v18 = vrot.slane %v7356_v2, 4  ;;  %7360 = vst [vmem:[%s12892_s23 + $0x1c] sm:$0xc] %v7356_v2 }
 0x4d3   : > { %7361 = vst [vmem:[%s12892_s23 + $0x20] sm:$0x1] %v7357_v18 }
 0x502   : > { %v7368_v54 = vpop.permute.xlu2 %7367 }
 0x503   : > { %v7370_v13 = vsel %vm3421_vm8, %v7363_v34, %v7368_v54 }
 0x504   : > { %v7371_v19 = vadd.f32 %v12869_v56, %v7370_v13 }
 0x506   : > { %v7372_v46 = vmax.f32 %v7371_v19, 0.0 }
 0x508   : > { %v7373_v37 = vpack.c.bf16 %v7372_v46, %v7372_v46 }
 0x50a   : > { %v7375_v25 = vrot.slane %v7373_v37, 7  ;;  %v7317_v52 = vpop.permute.xlu2 %7316 }
 0x50b   : > { %v7319_v38 = vsel %vm3421_vm8, %v7312_v48, %v7317_v52 }
 0x50c   : > { %7377 = vst [vmem:[%s12892_s23 + $0x20] sm:$0xe] %v7375_v25  ;;  %v7320_v12 = vadd.f32 %v12869_v56, %v7319_v38 }
 0x50e   : > { %v7321_v35 = vmax.f32 %v7320_v12, 0.0 }
 0x510   : > { %v7322_v23 = vpack.c.bf16 %v7321_v35, %v7321_v35 }
 0x512   : > { %7323 = vst [vmem:[%s12892_s23 + $0x18] sm:$0x7] %v7322_v23 }
 0x522   : > { %v7180_v0 = vpop.permute.xlu0 %7179 }
 0x523   : > { %v7182_v33 = vsel %vm3421_vm8, %v7175_v41, %v7180_v0 }
 0x524   : > { %v7186_v50 = vadd.f32 %v12869_v56, %v7182_v33 }
 0x526   : > { %v7187_v39 = vmax.f32 %v7186_v50, 0.0 }
 0x528   : > { %v7188_v59 = vpack.c.bf16 %v7187_v39, %v7187_v39 }
 0x52a   : > { %7189 = vst [vmem:[%s12892_s23] sm:$0x7] %v7188_v59 }
 0x52b PF: > { %s15_s18 = sadd.s32 1, %s8876_s18  }
 0x52c   : > { %p12_p4 = scmp.ge.s32.totalorder %s15_s18, 4  }
 0x52e   :  { %14 = sbr.rel (!%p12_p4) target bundleno = 1 (0x1), region = 93 }

</bundles_post_ra>
